<compile_context>
chip_gen: v5e
topology: v5e:2x2
jax: 0.10.0
libtpu: 0.0.40
codegen_flags: <defaults>
</compile_context>

<pallas_src>
import functools

import jax
import jax.numpy as jnp
from jax.experimental import pallas as pl
from jax.experimental.pallas import tpu as pltpu


_VMEM_LIMIT_BYTES = 48 * 1024 * 1024  # safe on all chips (v7x physical VMEM = 64 MiB)


def _compiler_params():
    return pltpu.CompilerParams(
        dimension_semantics=("parallel",),
        vmem_limit_bytes=_VMEM_LIMIT_BYTES,
    )


def _pick_tm(M, target):
    """Row tile: large (amortize ~0.35us/step), multiple of 8, and >=2 grid steps
    so the grid can shard across v7x's two TensorCores."""
    tm = min(target, M)
    if tm >= M and M >= 16:
        tm = ((M // 2) + 7) // 8 * 8
    return max(tm, 1)


# ---------------------------------------------------------------------------
# Kernels
# ---------------------------------------------------------------------------
def _mm_bias_silu_kernel(x_ref, w_ref, b_ref, o_ref, *, compute_dtype):
    """1x1 conv (+ folded BN) + SiLU on a (tm, K) row tile."""
    x = x_ref[...].astype(compute_dtype)
    w = w_ref[...].astype(compute_dtype)
    y = jnp.dot(x, w, preferred_element_type=jnp.float32) + b_ref[...]
    o_ref[...] = (y * jax.nn.sigmoid(y)).astype(o_ref.dtype)


def _mm2_bias_silu_kernel(xa_ref, xb_ref, wa_ref, wb_ref, b_ref, o_ref, *,
                          compute_dtype):
    """Fused channel-concat + 1x1 conv: silu(xa@wa + xb@wb + bias)."""
    ya = jnp.dot(xa_ref[...].astype(compute_dtype), wa_ref[...].astype(compute_dtype),
                 preferred_element_type=jnp.float32)
    yb = jnp.dot(xb_ref[...].astype(compute_dtype), wb_ref[...].astype(compute_dtype),
                 preferred_element_type=jnp.float32)
    y = ya + yb + b_ref[...]
    o_ref[...] = (y * jax.nn.sigmoid(y)).astype(o_ref.dtype)


def _conv3x3_taps(x_ref, w_ref, H, W, cin, cout, compute_dtype):
    """Accumulate the 9 shifted-window taps of a 3x3 'same' conv in f32.

    x_ref: (H+2, W+2, cin) zero-padded image tile in VMEM.
    w_ref: (9*cin, cout) weight, rows ordered (kh, kw, cin)."""
    acc = jnp.zeros((H * W, cout), jnp.float32)
    for kh in range(3):
        for kw in range(3):
            tap = x_ref[kh:kh + H, kw:kw + W, :]            # (H, W, cin) window
            tap = tap.reshape(H * W, cin).astype(compute_dtype)
            t = kh * 3 + kw
            wt = w_ref[t * cin:(t + 1) * cin, :].astype(compute_dtype)
            acc = acc + jnp.dot(tap, wt, preferred_element_type=jnp.float32)
    return acc


def _conv3x3_bias_silu_kernel(x_ref, w_ref, b_ref, o_ref, *, H, W, cin,
                              compute_dtype):
    y = _conv3x3_taps(x_ref, w_ref, H, W, cin, o_ref.shape[-1], compute_dtype)
    y = y + b_ref[...]
    o_ref[...] = (y * jax.nn.sigmoid(y)).astype(o_ref.dtype)


def _conv3x3_bias_silu_res_kernel(x_ref, w_ref, b_ref, r_ref, o_ref, *, H, W, cin,
                                  compute_dtype):
    y = _conv3x3_taps(x_ref, w_ref, H, W, cin, o_ref.shape[-1], compute_dtype)
    y = y + b_ref[...]
    o_ref[...] = (r_ref[...].astype(jnp.float32) + y * jax.nn.sigmoid(y)).astype(
        o_ref.dtype)


# ---------------------------------------------------------------------------
# pallas_call wrappers
# ---------------------------------------------------------------------------
def fused_matmul_bias_silu(x2d, w, bias, *, compute_dtype=jnp.float32, tm=512):
    """silu(x2d @ w + bias); BN already folded into w/bias. x2d: (M, K)."""
    M, K = x2d.shape
    Cout = w.shape[1]
    tm = _pick_tm(M, tm)
    b2 = bias.reshape(1, Cout).astype(jnp.float32)
    kernel = functools.partial(_mm_bias_silu_kernel, compute_dtype=compute_dtype)
    return pl.pallas_call(
        kernel,
        out_shape=jax.ShapeDtypeStruct((M, Cout), x2d.dtype),
        grid_spec=pltpu.PrefetchScalarGridSpec(
            num_scalar_prefetch=0,
            grid=(pl.cdiv(M, tm),),
            in_specs=[
                pl.BlockSpec((tm, K), lambda i: (i, 0)),
                pl.BlockSpec((K, Cout), lambda i: (0, 0)),
                pl.BlockSpec((1, Cout), lambda i: (0, 0)),
            ],
            out_specs=pl.BlockSpec((tm, Cout), lambda i: (i, 0)),
        ),
        compiler_params=_compiler_params(),
    )(x2d, w, b2)


def fused_matmul2_bias_silu(xa, xb, wa, wb, bias, *, compute_dtype=jnp.float32,
                            tm=512):
    """silu(xa @ wa + xb @ wb + bias): fuses channel-concat + 1x1 conv (cv3)."""
    M, Ka = xa.shape
    Kb = xb.shape[1]
    Cout = wa.shape[1]
    tm = _pick_tm(M, tm)
    b2 = bias.reshape(1, Cout).astype(jnp.float32)
    kernel = functools.partial(_mm2_bias_silu_kernel, compute_dtype=compute_dtype)
    return pl.pallas_call(
        kernel,
        out_shape=jax.ShapeDtypeStruct((M, Cout), xa.dtype),
        grid_spec=pltpu.PrefetchScalarGridSpec(
            num_scalar_prefetch=0,
            grid=(pl.cdiv(M, tm),),
            in_specs=[
                pl.BlockSpec((tm, Ka), lambda i: (i, 0)),
                pl.BlockSpec((tm, Kb), lambda i: (i, 0)),
                pl.BlockSpec((Ka, Cout), lambda i: (0, 0)),
                pl.BlockSpec((Kb, Cout), lambda i: (0, 0)),
                pl.BlockSpec((1, Cout), lambda i: (0, 0)),
            ],
            out_specs=pl.BlockSpec((tm, Cout), lambda i: (i, 0)),
        ),
        compiler_params=_compiler_params(),
    )(xa, xb, wa, wb, b2)


def fused_conv3x3_bias_silu(x_nhwc, w, bias, residual=None, *,
                            compute_dtype=jnp.float32):
    """3x3 'same' conv (+ folded BN) + SiLU (+ optional residual), no im2col in HBM.

    x_nhwc: (N, H, W, Cin); w: (9*Cin, Cout) with rows ordered (kh, kw, cin);
    residual: (N*H*W, Cout) or None. Returns (N*H*W, Cout)."""
    N, H, W, cin = x_nhwc.shape
    Cout = w.shape[1]
    # In-kernel (H, W, cin)->(H*W, cin) tap collapse requires the W (sublane) dim
    # to align with the 8-row f32 tile.
    assert W % 8 == 0, "fused 3x3 path requires W % 8 == 0"
    xp = jnp.pad(x_nhwc, ((0, 0), (1, 1), (1, 1), (0, 0)))  # autopad(3) = 1, zeros
    Hp, Wp = H + 2, W + 2
    HW = H * W
    b2 = bias.reshape(1, Cout).astype(jnp.float32)

    in_specs = [
        pl.BlockSpec((pl.Squeezed(), Hp, Wp, cin), lambda n: (n, 0, 0, 0)),
        pl.BlockSpec((9 * cin, Cout), lambda n: (0, 0)),
        pl.BlockSpec((1, Cout), lambda n: (0, 0)),
    ]
    args = [xp, w, b2]
    if residual is None:
        kernel = functools.partial(_conv3x3_bias_silu_kernel,
                                   H=H, W=W, cin=cin, compute_dtype=compute_dtype)
    else:
        kernel = functools.partial(_conv3x3_bias_silu_res_kernel,
                                   H=H, W=W, cin=cin, compute_dtype=compute_dtype)
        in_specs.append(pl.BlockSpec((pl.Squeezed(), HW, Cout), lambda n: (n, 0, 0)))
        args.append(residual.reshape(N, HW, Cout))

    out = pl.pallas_call(
        kernel,
        out_shape=jax.ShapeDtypeStruct((N, HW, Cout), x_nhwc.dtype),
        grid_spec=pltpu.PrefetchScalarGridSpec(
            num_scalar_prefetch=0,
            grid=(N,),
            in_specs=in_specs,
            out_specs=pl.BlockSpec((pl.Squeezed(), HW, Cout), lambda n: (n, 0, 0)),
        ),
        compiler_params=_compiler_params(),
    )(*args)
    # NOTE: for large spatial sizes, tile H (with 1-row halos) inside this kernel
    # instead of holding the full H*W accumulator per image.
    return out.reshape(N * HW, Cout)


# ---------------------------------------------------------------------------
# Parameter construction (deterministic, synthetic) with BN folded (eval mode)
# ---------------------------------------------------------------------------
def make_conv_params(key, cin, cout, k):
    """Conv(k, bias=False) + BatchNorm(eps=1e-3), folded into (k*k*cin, cout) weight
    and (cout,) bias. Row order of the weight matrix is (kh, kw, cin)."""
    k1, k2, k3, k4, k5 = jax.random.split(key, 5)
    w_pt = 0.1 * jax.random.normal(k1, (cout, cin, k, k), jnp.float32)  # PyTorch layout
    gamma = 1.0 + 0.1 * jax.random.normal(k2, (cout,), jnp.float32)
    beta = 0.05 * jax.random.normal(k3, (cout,), jnp.float32)
    r_mean = 0.02 * jax.random.normal(k4, (cout,), jnp.float32)
    r_var = 1.0 + 0.1 * jnp.abs(jax.random.normal(k5, (cout,), jnp.float32))
    inv = gamma / jnp.sqrt(r_var + 1e-3)  # BN eps = 0.001
    w_mat = jnp.transpose(w_pt, (2, 3, 1, 0)).reshape(k * k * cin, cout)
    return dict(w=w_mat * inv[None, :], b=beta - r_mean * inv)


def init_c3_params(key, c1, c2, n=1, e=0.5):
    c_ = int(c2 * e)
    keys = jax.random.split(key, 3 + 2 * n)
    params = dict(
        cv1=make_conv_params(keys[0], c1, c_, 1),
        cv2=make_conv_params(keys[1], c1, c_, 1),
        cv3=make_conv_params(keys[2], 2 * c_, c2, 1),
        m=[],
    )
    for i in range(n):
        ch = int(c_ * 0.5)  # Bottleneck e=0.5
        params["m"].append(dict(
            cv1=make_conv_params(keys[3 + 2 * i], c_, ch, 1),
            cv2=make_conv_params(keys[4 + 2 * i], ch, c_, 3),
        ))
    return params


# ---------------------------------------------------------------------------
# C3 forward (Pallas) and a pure-JAX reference with identical math
# ---------------------------------------------------------------------------
def c3_forward_nhwc(x_nhwc, params, shortcut=True, compute_dtype=jnp.float32):
    """NHWC-native forward (use this when chaining blocks to avoid transposes)."""
    N, H, W, C = x_nhwc.shape
    M = N * H * W
    x_flat = x_nhwc.reshape(M, C)
    c_ = params["cv1"]["b"].shape[0]

    # cv1 + cv2 fused: one kernel, one pass over x, lane-denser (M, 2*c_) output.
    w12 = jnp.concatenate([params["cv1"]["w"], params["cv2"]["w"]], axis=1)
    b12 = jnp.concatenate([params["cv1"]["b"], params["cv2"]["b"]], axis=0)
    y12 = fused_matmul_bias_silu(x_flat, w12, b12, compute_dtype=compute_dtype)
    y1, y2 = y12[:, :c_], y12[:, c_:]

    h = y1
    for bp in params["m"]:
        t = fused_matmul_bias_silu(h, bp["cv1"]["w"], bp["cv1"]["b"],
                                   compute_dtype=compute_dtype)          # (M, c_/2)
        h = fused_conv3x3_bias_silu(t.reshape(N, H, W, -1),
                                    bp["cv2"]["w"], bp["cv2"]["b"],
                                    residual=h if shortcut else None,
                                    compute_dtype=compute_dtype)         # (M, c_)

    # cat([h, y2]) @ cv3 fused via split weights -> no concatenated tensor in HBM.
    wc3, bc3 = params["cv3"]["w"], params["cv3"]["b"]
    out = fused_matmul2_bias_silu(h, y2, wc3[:c_], wc3[c_:], bc3,
                                  compute_dtype=compute_dtype)           # (M, c2)
    return out.reshape(N, H, W, -1)


def c3_forward(x_nchw, params, shortcut=True, compute_dtype=jnp.float32):
    """PyTorch-compatible NCHW API (transposes only at the block boundary)."""
    x = jnp.transpose(x_nchw, (0, 2, 3, 1))
    out = c3_forward_nhwc(x, params, shortcut=shortcut, compute_dtype=compute_dtype)
    return jnp.transpose(out, (0, 3, 1, 2))


def im2col_3x3(x_nhwc):
    """Reference-only: (N,H,W,C) -> (N,H,W,9*C), zero pad 1, order (kh, kw, cin)."""
    N, H, W, C = x_nhwc.shape
    xp = jnp.pad(x_nhwc, ((0, 0), (1, 1), (1, 1), (0, 0)))
    cols = [xp[:, i:i + H, j:j + W, :] for i in range(3) for j in range(3)]
    return jnp.concatenate(cols, axis=-1)


def _dense_ref(x2d, p, residual=None):
    y = x2d @ p["w"] + p["b"]
    y = y * jax.nn.sigmoid(y)
    return y if residual is None else residual + y


def c3_reference(x_nchw, params, shortcut=True):
    N, C, H, W = x_nchw.shape
    x_flat = jnp.transpose(x_nchw, (0, 2, 3, 1)).reshape(N * H * W, C)
    y1 = _dense_ref(x_flat, params["cv1"])
    y2 = _dense_ref(x_flat, params["cv2"])
    h = y1
    for bp in params["m"]:
        t = _dense_ref(h, bp["cv1"])
        patches = im2col_3x3(t.reshape(N, H, W, -1)).reshape(N * H * W, -1)
        h = _dense_ref(patches, bp["cv2"], h if shortcut else None)
    out = _dense_ref(jnp.concatenate([h, y2], axis=-1), params["cv3"])
    return jnp.transpose(out.reshape(N, H, W, -1), (0, 3, 1, 2))


if __name__ == "__main__":
    key = jax.random.PRNGKey(0)
    kx, kp = jax.random.split(key)

    c1, c2, n = 4, 4, 1
    x = jax.random.normal(kx, (2, c1, 16, 16), jnp.float32)  # NCHW, like PyTorch
    params = init_c3_params(kp, c1, c2, n=n, e=0.5)

    # f32 path (exact-semantics): validated tightly against the plain-JAX reference.
    fwd_f32 = jax.jit(functools.partial(c3_forward, shortcut=True))
    out = jax.block_until_ready(fwd_f32(x, params))
    ref = c3_reference(x, params, shortcut=True)
    assert out.shape == (2, c2, 16, 16), out.shape
    assert jnp.allclose(out, ref, atol=1e-4, rtol=1e-4), "f32 path mismatch vs reference"

    # bf16-MXU path (v6e/v7x oriented): bf16 dot inputs, f32 accumulate + epilogue.
    fwd_bf16 = jax.jit(functools.partial(c3_forward, shortcut=True,
                                         compute_dtype=jnp.bfloat16))
    out_bf16 = jax.block_until_ready(fwd_bf16(x, params))
    assert jnp.allclose(out_bf16, ref, atol=5e-2, rtol=5e-2), "bf16 path mismatch"

    print("KERNEL_OK")
</pallas_src>

<mosaic_0001>
module attributes {stable_mosaic.version = 11 : i64} {
  func.func @_mm_bias_silu_kernel(%arg0: i32, %arg1: memref<256x4xf32, #tpu.memory_space<vmem>>, %arg2: memref<4x4xf32, #tpu.memory_space<vmem>>, %arg3: memref<1x4xf32, #tpu.memory_space<vmem>>, %arg4: memref<256x4xf32, #tpu.memory_space<vmem>>) attributes {dimension_semantics = [#tpu.dimension_semantics<parallel>], iteration_bounds = array<i64: 2>, scalar_prefetch = 0 : i64, scratch_operands = 0 : i64, tpu.core_type = #tpu.core_type<tc>, window_params = [{transform_indices = @transform_0, window_bounds = array<i64: 256, 4>}, {pipeline_mode = #tpu.pipeline_mode<synchronous>, transform_indices = @transform_1, window_bounds = array<i64: 4, 4>}, {pipeline_mode = #tpu.pipeline_mode<synchronous>, transform_indices = @transform_2, window_bounds = array<i64: 1, 4>}, {transform_indices = @transform_3, window_bounds = array<i64: 256, 4>}]} {
    %c0 = arith.constant 0 : index
    %c0_0 = arith.constant 0 : index
    %0 = vector.load %arg1[%c0, %c0_0] : memref<256x4xf32, #tpu.memory_space<vmem>>, vector<256x4xf32>
    %c0_1 = arith.constant 0 : index
    %c0_2 = arith.constant 0 : index
    %1 = vector.load %arg2[%c0_1, %c0_2] : memref<4x4xf32, #tpu.memory_space<vmem>>, vector<4x4xf32>
    %cst = arith.constant dense<0.000000e+00> : vector<256x4xf32>
    %2 = tpu.matmul %0, %1, %cst {dimension_numbers = #tpu.dot_dimension_numbers<[1], [0], [0], [1], [0, 0, 1, 1], [], []>} : vector<256x4xf32>, vector<4x4xf32>, vector<256x4xf32> -> vector<256x4xf32>
    %c0_3 = arith.constant 0 : index
    %c0_4 = arith.constant 0 : index
    %3 = vector.load %arg3[%c0_3, %c0_4] : memref<1x4xf32, #tpu.memory_space<vmem>>, vector<1x4xf32>
    %4 = vector.broadcast %3 : vector<1x4xf32> to vector<256x4xf32>
    %5 = arith.addf %2, %4 : vector<256x4xf32>
    %6 = arith.negf %5 : vector<256x4xf32>
    %7 = math.exp %6 : vector<256x4xf32>
    %cst_5 = arith.constant 1.000000e+00 : f32
    %8 = vector.broadcast %cst_5 : f32 to vector<256x4xf32>
    %9 = arith.addf %8, %7 : vector<256x4xf32>
    %10 = arith.divf %8, %9 : vector<256x4xf32>
    %11 = arith.mulf %5, %10 : vector<256x4xf32>
    %c0_6 = arith.constant 0 : index
    %c0_7 = arith.constant 0 : index
    %12 = vector.load %arg4[%c0_6, %c0_7] : memref<256x4xf32, #tpu.memory_space<vmem>>, vector<256x4xf32>
    tpu.vector_store %arg4[%c0_6, %c0_7], %11 {strides = array<i32>} : memref<256x4xf32, #tpu.memory_space<vmem>>, vector<256x4xf32>,
    return
  }
  func.func @transform_0(%arg0: i32) -> (i32, i32) {
    %c0_i32 = arith.constant 0 : i32
    %c0_i32_0 = arith.constant 0 : i32
    return %arg0, %c0_i32 : i32, i32
  }
  func.func @transform_1(%arg0: i32) -> (i32, i32) {
    %c0_i32 = arith.constant 0 : i32
    %c0_i32_0 = arith.constant 0 : i32
    %c0_i32_1 = arith.constant 0 : i32
    return %c0_i32, %c0_i32_0 : i32, i32
  }
  func.func @transform_2(%arg0: i32) -> (i32, i32) {
    %c0_i32 = arith.constant 0 : i32
    %c0_i32_0 = arith.constant 0 : i32
    %c0_i32_1 = arith.constant 0 : i32
    return %c0_i32, %c0_i32_0 : i32, i32
  }
  func.func @transform_3(%arg0: i32) -> (i32, i32) {
    %c0_i32 = arith.constant 0 : i32
    %c0_i32_0 = arith.constant 0 : i32
    return %arg0, %c0_i32 : i32, i32
  }
}

module attributes {stable_mosaic.version = 11 : i64} {
  func.func @_mm_bias_silu_kernel(%arg0: i32, %arg1: memref<256x2xf32, #tpu.memory_space<vmem>>, %arg2: memref<2x1xf32, #tpu.memory_space<vmem>>, %arg3: memref<1x1xf32, #tpu.memory_space<vmem>>, %arg4: memref<256x1xf32, #tpu.memory_space<vmem>>) attributes {dimension_semantics = [#tpu.dimension_semantics<parallel>], iteration_bounds = array<i64: 2>, scalar_prefetch = 0 : i64, scratch_operands = 0 : i64, tpu.core_type = #tpu.core_type<tc>, window_params = [{transform_indices = @transform_0, window_bounds = array<i64: 256, 2>}, {pipeline_mode = #tpu.pipeline_mode<synchronous>, transform_indices = @transform_1, window_bounds = array<i64: 2, 1>}, {pipeline_mode = #tpu.pipeline_mode<synchronous>, transform_indices = @transform_2, window_bounds = array<i64: 1, 1>}, {transform_indices = @transform_3, window_bounds = array<i64: 256, 1>}]} {
    %c0 = arith.constant 0 : index
    %c0_0 = arith.constant 0 : index
    %0 = vector.load %arg1[%c0, %c0_0] : memref<256x2xf32, #tpu.memory_space<vmem>>, vector<256x2xf32>
    %c0_1 = arith.constant 0 : index
    %c0_2 = arith.constant 0 : index
    %1 = vector.load %arg2[%c0_1, %c0_2] : memref<2x1xf32, #tpu.memory_space<vmem>>, vector<2x1xf32>
    %cst = arith.constant dense<0.000000e+00> : vector<256x1xf32>
    %2 = tpu.matmul %0, %1, %cst {dimension_numbers = #tpu.dot_dimension_numbers<[1], [0], [0], [1], [0, 0, 1, 1], [], []>} : vector<256x2xf32>, vector<2x1xf32>, vector<256x1xf32> -> vector<256x1xf32>
    %c0_3 = arith.constant 0 : index
    %c0_4 = arith.constant 0 : index
    %3 = vector.load %arg3[%c0_3, %c0_4] : memref<1x1xf32, #tpu.memory_space<vmem>>, vector<1x1xf32>
    %4 = vector.broadcast %3 : vector<1x1xf32> to vector<256x1xf32>
    %5 = arith.addf %2, %4 : vector<256x1xf32>
    %6 = arith.negf %5 : vector<256x1xf32>
    %7 = math.exp %6 : vector<256x1xf32>
    %cst_5 = arith.constant 1.000000e+00 : f32
    %8 = vector.broadcast %cst_5 : f32 to vector<256x1xf32>
    %9 = arith.addf %8, %7 : vector<256x1xf32>
    %10 = arith.divf %8, %9 : vector<256x1xf32>
    %11 = arith.mulf %5, %10 : vector<256x1xf32>
    %c0_6 = arith.constant 0 : index
    %c0_7 = arith.constant 0 : index
    %12 = vector.load %arg4[%c0_6, %c0_7] : memref<256x1xf32, #tpu.memory_space<vmem>>, vector<256x1xf32>
    tpu.vector_store %arg4[%c0_6, %c0_7], %11 {strides = array<i32>} : memref<256x1xf32, #tpu.memory_space<vmem>>, vector<256x1xf32>,
    return
  }
  func.func @transform_0(%arg0: i32) -> (i32, i32) {
    %c0_i32 = arith.constant 0 : i32
    %c0_i32_0 = arith.constant 0 : i32
    return %arg0, %c0_i32 : i32, i32
  }
  func.func @transform_1(%arg0: i32) -> (i32, i32) {
    %c0_i32 = arith.constant 0 : i32
    %c0_i32_0 = arith.constant 0 : i32
    %c0_i32_1 = arith.constant 0 : i32
    return %c0_i32, %c0_i32_0 : i32, i32
  }
  func.func @transform_2(%arg0: i32) -> (i32, i32) {
    %c0_i32 = arith.constant 0 : i32
    %c0_i32_0 = arith.constant 0 : i32
    %c0_i32_1 = arith.constant 0 : i32
    return %c0_i32, %c0_i32_0 : i32, i32
  }
  func.func @transform_3(%arg0: i32) -> (i32, i32) {
    %c0_i32 = arith.constant 0 : i32
    %c0_i32_0 = arith.constant 0 : i32
    return %arg0, %c0_i32 : i32, i32
  }
}

module attributes {stable_mosaic.version = 11 : i64} {
  func.func @_conv3x3_bias_silu_res_kernel(%arg0: i32, %arg1: memref<1x18x18x1xf32, #tpu.memory_space<vmem>>, %arg2: memref<9x2xf32, #tpu.memory_space<vmem>>, %arg3: memref<1x2xf32, #tpu.memory_space<vmem>>, %arg4: memref<1x256x2xf32, #tpu.memory_space<vmem>>, %arg5: memref<1x256x2xf32, #tpu.memory_space<vmem>>) attributes {dimension_semantics = [#tpu.dimension_semantics<parallel>], iteration_bounds = array<i64: 2>, scalar_prefetch = 0 : i64, scratch_operands = 0 : i64, tpu.core_type = #tpu.core_type<tc>, window_params = [{transform_indices = @transform_0, window_bounds = array<i64: 1, 18, 18, 1>}, {pipeline_mode = #tpu.pipeline_mode<synchronous>, transform_indices = @transform_1, window_bounds = array<i64: 9, 2>}, {pipeline_mode = #tpu.pipeline_mode<synchronous>, transform_indices = @transform_2, window_bounds = array<i64: 1, 2>}, {transform_indices = @transform_3, window_bounds = array<i64: 1, 256, 2>}, {transform_indices = @transform_4, window_bounds = array<i64: 1, 256, 2>}]} {
    %cst = arith.constant 0.000000e+00 : f32
    %0 = vector.broadcast %cst : f32 to vector<256x2xf32>
    %c0 = arith.constant 0 : index
    %c0_0 = arith.constant 0 : index
    %c0_1 = arith.constant 0 : index
    %c0_2 = arith.constant 0 : index
    %1 = vector.load %arg1[%c0, %c0_0, %c0_1, %c0_2] : memref<1x18x18x1xf32, #tpu.memory_space<vmem>>, vector<1x16x16x1xf32>
    %2 = vector.shape_cast %1 : vector<1x16x16x1xf32> to vector<16x16x1xf32>
    %3 = vector.shape_cast %2 : vector<16x16x1xf32> to vector<256x1xf32>
    %c0_3 = arith.constant 0 : index
    %c0_4 = arith.constant 0 : index
    %4 = vector.load %arg2[%c0_3, %c0_4] : memref<9x2xf32, #tpu.memory_space<vmem>>, vector<1x2xf32>
    %cst_5 = arith.constant dense<0.000000e+00> : vector<256x2xf32>
    %5 = tpu.matmul %3, %4, %cst_5 {dimension_numbers = #tpu.dot_dimension_numbers<[1], [0], [0], [1], [0, 0, 1, 1], [], []>} : vector<256x1xf32>, vector<1x2xf32>, vector<256x2xf32> -> vector<256x2xf32>
    %6 = arith.addf %0, %5 : vector<256x2xf32>
    %c0_6 = arith.constant 0 : index
    %c0_7 = arith.constant 0 : index
    %c1 = arith.constant 1 : index
    %c0_8 = arith.constant 0 : index
    %7 = vector.load %arg1[%c0_6, %c0_7, %c1, %c0_8] : memref<1x18x18x1xf32, #tpu.memory_space<vmem>>, vector<1x16x16x1xf32>
    %8 = vector.shape_cast %7 : vector<1x16x16x1xf32> to vector<16x16x1xf32>
    %9 = vector.shape_cast %8 : vector<16x16x1xf32> to vector<256x1xf32>
    %c1_9 = arith.constant 1 : index
    %c0_10 = arith.constant 0 : index
    %10 = vector.load %arg2[%c1_9, %c0_10] : memref<9x2xf32, #tpu.memory_space<vmem>>, vector<1x2xf32>
    %cst_11 = arith.constant dense<0.000000e+00> : vector<256x2xf32>
    %11 = tpu.matmul %9, %10, %cst_11 {dimension_numbers = #tpu.dot_dimension_numbers<[1], [0], [0], [1], [0, 0, 1, 1], [], []>} : vector<256x1xf32>, vector<1x2xf32>, vector<256x2xf32> -> vector<256x2xf32>
    %12 = arith.addf %6, %11 : vector<256x2xf32>
    %c0_12 = arith.constant 0 : index
    %c0_13 = arith.constant 0 : index
    %c2 = arith.constant 2 : index
    %c0_14 = arith.constant 0 : index
    %13 = vector.load %arg1[%c0_12, %c0_13, %c2, %c0_14] : memref<1x18x18x1xf32, #tpu.memory_space<vmem>>, vector<1x16x16x1xf32>
    %14 = vector.shape_cast %13 : vector<1x16x16x1xf32> to vector<16x16x1xf32>
    %15 = vector.shape_cast %14 : vector<16x16x1xf32> to vector<256x1xf32>
    %c2_15 = arith.constant 2 : index
    %c0_16 = arith.constant 0 : index
    %16 = vector.load %arg2[%c2_15, %c0_16] : memref<9x2xf32, #tpu.memory_space<vmem>>, vector<1x2xf32>
    %cst_17 = arith.constant dense<0.000000e+00> : vector<256x2xf32>
    %17 = tpu.matmul %15, %16, %cst_17 {dimension_numbers = #tpu.dot_dimension_numbers<[1], [0], [0], [1], [0, 0, 1, 1], [], []>} : vector<256x1xf32>, vector<1x2xf32>, vector<256x2xf32> -> vector<256x2xf32>
    %18 = arith.addf %12, %17 : vector<256x2xf32>
    %c0_18 = arith.constant 0 : index
    %c1_19 = arith.constant 1 : index
    %c0_20 = arith.constant 0 : index
    %c0_21 = arith.constant 0 : index
    %19 = vector.load %arg1[%c0_18, %c1_19, %c0_20, %c0_21] : memref<1x18x18x1xf32, #tpu.memory_space<vmem>>, vector<1x16x16x1xf32>
    %20 = vector.shape_cast %19 : vector<1x16x16x1xf32> to vector<16x16x1xf32>
    %21 = vector.shape_cast %20 : vector<16x16x1xf32> to vector<256x1xf32>
    %c3 = arith.constant 3 : index
    %c0_22 = arith.constant 0 : index
    %22 = vector.load %arg2[%c3, %c0_22] : memref<9x2xf32, #tpu.memory_space<vmem>>, vector<1x2xf32>
    %cst_23 = arith.constant dense<0.000000e+00> : vector<256x2xf32>
    %23 = tpu.matmul %21, %22, %cst_23 {dimension_numbers = #tpu.dot_dimension_numbers<[1], [0], [0], [1], [0, 0, 1, 1], [], []>} : vector<256x1xf32>, vector<1x2xf32>, vector<256x2xf32> -> vector<256x2xf32>
    %24 = arith.addf %18, %23 : vector<256x2xf32>
    %c0_24 = arith.constant 0 : index
    %c1_25 = arith.constant 1 : index
    %c1_26 = arith.constant 1 : index
    %c0_27 = arith.constant 0 : index
    %25 = vector.load %arg1[%c0_24, %c1_25, %c1_26, %c0_27] : memref<1x18x18x1xf32, #tpu.memory_space<vmem>>, vector<1x16x16x1xf32>
    %26 = vector.shape_cast %25 : vector<1x16x16x1xf32> to vector<16x16x1xf32>
    %27 = vector.shape_cast %26 : vector<16x16x1xf32> to vector<256x1xf32>
    %c4 = arith.constant 4 : index
    %c0_28 = arith.constant 0 : index
    %28 = vector.load %arg2[%c4, %c0_28] : memref<9x2xf32, #tpu.memory_space<vmem>>, vector<1x2xf32>
    %cst_29 = arith.constant dense<0.000000e+00> : vector<256x2xf32>
    %29 = tpu.matmul %27, %28, %cst_29 {dimension_numbers = #tpu.dot_dimension_numbers<[1], [0], [0], [1], [0, 0, 1, 1], [], []>} : vector<256x1xf32>, vector<1x2xf32>, vector<256x2xf32> -> vector<256x2xf32>
    %30 = arith.addf %24, %29 : vector<256x2xf32>
    %c0_30 = arith.constant 0 : index
    %c1_31 = arith.constant 1 : index
    %c2_32 = arith.constant 2 : index
    %c0_33 = arith.constant 0 : index
    %31 = vector.load %arg1[%c0_30, %c1_31, %c2_32, %c0_33] : memref<1x18x18x1xf32, #tpu.memory_space<vmem>>, vector<1x16x16x1xf32>
    %32 = vector.shape_cast %31 : vector<1x16x16x1xf32> to vector<16x16x1xf32>
    %33 = vector.shape_cast %32 : vector<16x16x1xf32> to vector<256x1xf32>
    %c5 = arith.constant 5 : index
    %c0_34 = arith.constant 0 : index
    %34 = vector.load %arg2[%c5, %c0_34] : memref<9x2xf32, #tpu.memory_space<vmem>>, vector<1x2xf32>
    %cst_35 = arith.constant dense<0.000000e+00> : vector<256x2xf32>
    %35 = tpu.matmul %33, %34, %cst_35 {dimension_numbers = #tpu.dot_dimension_numbers<[1], [0], [0], [1], [0, 0, 1, 1], [], []>} : vector<256x1xf32>, vector<1x2xf32>, vector<256x2xf32> -> vector<256x2xf32>
    %36 = arith.addf %30, %35 : vector<256x2xf32>
    %c0_36 = arith.constant 0 : index
    %c2_37 = arith.constant 2 : index
    %c0_38 = arith.constant 0 : index
    %c0_39 = arith.constant 0 : index
    %37 = vector.load %arg1[%c0_36, %c2_37, %c0_38, %c0_39] : memref<1x18x18x1xf32, #tpu.memory_space<vmem>>, vector<1x16x16x1xf32>
    %38 = vector.shape_cast %37 : vector<1x16x16x1xf32> to vector<16x16x1xf32>
    %39 = vector.shape_cast %38 : vector<16x16x1xf32> to vector<256x1xf32>
    %c6 = arith.constant 6 : index
    %c0_40 = arith.constant 0 : index
    %40 = vector.load %arg2[%c6, %c0_40] : memref<9x2xf32, #tpu.memory_space<vmem>>, vector<1x2xf32>
    %cst_41 = arith.constant dense<0.000000e+00> : vector<256x2xf32>
    %41 = tpu.matmul %39, %40, %cst_41 {dimension_numbers = #tpu.dot_dimension_numbers<[1], [0], [0], [1], [0, 0, 1, 1], [], []>} : vector<256x1xf32>, vector<1x2xf32>, vector<256x2xf32> -> vector<256x2xf32>
    %42 = arith.addf %36, %41 : vector<256x2xf32>
    %c0_42 = arith.constant 0 : index
    %c2_43 = arith.constant 2 : index
    %c1_44 = arith.constant 1 : index
    %c0_45 = arith.constant 0 : index
    %43 = vector.load %arg1[%c0_42, %c2_43, %c1_44, %c0_45] : memref<1x18x18x1xf32, #tpu.memory_space<vmem>>, vector<1x16x16x1xf32>
    %44 = vector.shape_cast %43 : vector<1x16x16x1xf32> to vector<16x16x1xf32>
    %45 = vector.shape_cast %44 : vector<16x16x1xf32> to vector<256x1xf32>
    %c7 = arith.constant 7 : index
    %c0_46 = arith.constant 0 : index
    %46 = vector.load %arg2[%c7, %c0_46] : memref<9x2xf32, #tpu.memory_space<vmem>>, vector<1x2xf32>
    %cst_47 = arith.constant dense<0.000000e+00> : vector<256x2xf32>
    %47 = tpu.matmul %45, %46, %cst_47 {dimension_numbers = #tpu.dot_dimension_numbers<[1], [0], [0], [1], [0, 0, 1, 1], [], []>} : vector<256x1xf32>, vector<1x2xf32>, vector<256x2xf32> -> vector<256x2xf32>
    %48 = arith.addf %42, %47 : vector<256x2xf32>
    %c0_48 = arith.constant 0 : index
    %c2_49 = arith.constant 2 : index
    %c2_50 = arith.constant 2 : index
    %c0_51 = arith.constant 0 : index
    %49 = vector.load %arg1[%c0_48, %c2_49, %c2_50, %c0_51] : memref<1x18x18x1xf32, #tpu.memory_space<vmem>>, vector<1x16x16x1xf32>
    %50 = vector.shape_cast %49 : vector<1x16x16x1xf32> to vector<16x16x1xf32>
    %51 = vector.shape_cast %50 : vector<16x16x1xf32> to vector<256x1xf32>
    %c8 = arith.constant 8 : index
    %c0_52 = arith.constant 0 : index
    %52 = vector.load %arg2[%c8, %c0_52] : memref<9x2xf32, #tpu.memory_space<vmem>>, vector<1x2xf32>
    %cst_53 = arith.constant dense<0.000000e+00> : vector<256x2xf32>
    %53 = tpu.matmul %51, %52, %cst_53 {dimension_numbers = #tpu.dot_dimension_numbers<[1], [0], [0], [1], [0, 0, 1, 1], [], []>} : vector<256x1xf32>, vector<1x2xf32>, vector<256x2xf32> -> vector<256x2xf32>
    %54 = arith.addf %48, %53 : vector<256x2xf32>
    %c0_54 = arith.constant 0 : index
    %c0_55 = arith.constant 0 : index
    %55 = vector.load %arg3[%c0_54, %c0_55] : memref<1x2xf32, #tpu.memory_space<vmem>>, vector<1x2xf32>
    %56 = vector.broadcast %55 : vector<1x2xf32> to vector<256x2xf32>
    %57 = arith.addf %54, %56 : vector<256x2xf32>
    %c0_56 = arith.constant 0 : index
    %c0_57 = arith.constant 0 : index
    %c0_58 = arith.constant 0 : index
    %58 = vector.load %arg4[%c0_56, %c0_57, %c0_58] : memref<1x256x2xf32, #tpu.memory_space<vmem>>, vector<1x256x2xf32>
    %59 = vector.shape_cast %58 : vector<1x256x2xf32> to vector<256x2xf32>
    %60 = arith.negf %57 : vector<256x2xf32>
    %61 = math.exp %60 : vector<256x2xf32>
    %cst_59 = arith.constant 1.000000e+00 : f32
    %62 = vector.broadcast %cst_59 : f32 to vector<256x2xf32>
    %63 = arith.addf %62, %61 : vector<256x2xf32>
    %64 = arith.divf %62, %63 : vector<256x2xf32>
    %65 = arith.mulf %57, %64 : vector<256x2xf32>
    %66 = arith.addf %59, %65 : vector<256x2xf32>
    %c0_60 = arith.constant 0 : index
    %c0_61 = arith.constant 0 : index
    %c0_62 = arith.constant 0 : index
    %67 = vector.load %arg5[%c0_60, %c0_61, %c0_62] : memref<1x256x2xf32, #tpu.memory_space<vmem>>, vector<1x256x2xf32>
    %68 = vector.shape_cast %67 : vector<1x256x2xf32> to vector<256x2xf32>
    %69 = vector.shape_cast %66 : vector<256x2xf32> to vector<1x256x2xf32>
    tpu.vector_store %arg5[%c0_60, %c0_61, %c0_62], %69 {strides = array<i32>} : memref<1x256x2xf32, #tpu.memory_space<vmem>>, vector<1x256x2xf32>,
    return
  }
  func.func @transform_0(%arg0: i32) -> (i32, i32, i32, i32) {
    %c0_i32 = arith.constant 0 : i32
    %c0_i32_0 = arith.constant 0 : i32
    %c0_i32_1 = arith.constant 0 : i32
    %c0_i32_2 = arith.constant 0 : i32
    return %arg0, %c0_i32, %c0_i32_0, %c0_i32_1 : i32, i32, i32, i32
  }
  func.func @transform_1(%arg0: i32) -> (i32, i32) {
    %c0_i32 = arith.constant 0 : i32
    %c0_i32_0 = arith.constant 0 : i32
    %c0_i32_1 = arith.constant 0 : i32
    return %c0_i32, %c0_i32_0 : i32, i32
  }
  func.func @transform_2(%arg0: i32) -> (i32, i32) {
    %c0_i32 = arith.constant 0 : i32
    %c0_i32_0 = arith.constant 0 : i32
    %c0_i32_1 = arith.constant 0 : i32
    return %c0_i32, %c0_i32_0 : i32, i32
  }
  func.func @transform_3(%arg0: i32) -> (i32, i32, i32) {
    %c0_i32 = arith.constant 0 : i32
    %c0_i32_0 = arith.constant 0 : i32
    %c0_i32_1 = arith.constant 0 : i32
    return %arg0, %c0_i32, %c0_i32_0 : i32, i32, i32
  }
  func.func @transform_4(%arg0: i32) -> (i32, i32, i32) {
    %c0_i32 = arith.constant 0 : i32
    %c0_i32_0 = arith.constant 0 : i32
    %c0_i32_1 = arith.constant 0 : i32
    return %arg0, %c0_i32, %c0_i32_0 : i32, i32, i32
  }
}

module attributes {stable_mosaic.version = 11 : i64} {
  func.func @_mm2_bias_silu_kernel(%arg0: i32, %arg1: memref<256x2xf32, #tpu.memory_space<vmem>>, %arg2: memref<256x2xf32, #tpu.memory_space<vmem>>, %arg3: memref<2x4xf32, #tpu.memory_space<vmem>>, %arg4: memref<2x4xf32, #tpu.memory_space<vmem>>, %arg5: memref<1x4xf32, #tpu.memory_space<vmem>>, %arg6: memref<256x4xf32, #tpu.memory_space<vmem>>) attributes {dimension_semantics = [#tpu.dimension_semantics<parallel>], iteration_bounds = array<i64: 2>, scalar_prefetch = 0 : i64, scratch_operands = 0 : i64, tpu.core_type = #tpu.core_type<tc>, window_params = [{transform_indices = @transform_0, window_bounds = array<i64: 256, 2>}, {transform_indices = @transform_1, window_bounds = array<i64: 256, 2>}, {pipeline_mode = #tpu.pipeline_mode<synchronous>, transform_indices = @transform_2, window_bounds = array<i64: 2, 4>}, {pipeline_mode = #tpu.pipeline_mode<synchronous>, transform_indices = @transform_3, window_bounds = array<i64: 2, 4>}, {pipeline_mode = #tpu.pipeline_mode<synchronous>, transform_indices = @transform_4, window_bounds = array<i64: 1, 4>}, {transform_indices = @transform_5, window_bounds = array<i64: 256, 4>}]} {
    %c0 = arith.constant 0 : index
    %c0_0 = arith.constant 0 : index
    %0 = vector.load %arg1[%c0, %c0_0] : memref<256x2xf32, #tpu.memory_space<vmem>>, vector<256x2xf32>
    %c0_1 = arith.constant 0 : index
    %c0_2 = arith.constant 0 : index
    %1 = vector.load %arg3[%c0_1, %c0_2] : memref<2x4xf32, #tpu.memory_space<vmem>>, vector<2x4xf32>
    %cst = arith.constant dense<0.000000e+00> : vector<256x4xf32>
    %2 = tpu.matmul %0, %1, %cst {dimension_numbers = #tpu.dot_dimension_numbers<[1], [0], [0], [1], [0, 0, 1, 1], [], []>} : vector<256x2xf32>, vector<2x4xf32>, vector<256x4xf32> -> vector<256x4xf32>
    %c0_3 = arith.constant 0 : index
    %c0_4 = arith.constant 0 : index
    %3 = vector.load %arg2[%c0_3, %c0_4] : memref<256x2xf32, #tpu.memory_space<vmem>>, vector<256x2xf32>
    %c0_5 = arith.constant 0 : index
    %c0_6 = arith.constant 0 : index
    %4 = vector.load %arg4[%c0_5, %c0_6] : memref<2x4xf32, #tpu.memory_space<vmem>>, vector<2x4xf32>
    %cst_7 = arith.constant dense<0.000000e+00> : vector<256x4xf32>
    %5 = tpu.matmul %3, %4, %cst_7 {dimension_numbers = #tpu.dot_dimension_numbers<[1], [0], [0], [1], [0, 0, 1, 1], [], []>} : vector<256x2xf32>, vector<2x4xf32>, vector<256x4xf32> -> vector<256x4xf32>
    %6 = arith.addf %2, %5 : vector<256x4xf32>
    %c0_8 = arith.constant 0 : index
    %c0_9 = arith.constant 0 : index
    %7 = vector.load %arg5[%c0_8, %c0_9] : memref<1x4xf32, #tpu.memory_space<vmem>>, vector<1x4xf32>
    %8 = vector.broadcast %7 : vector<1x4xf32> to vector<256x4xf32>
    %9 = arith.addf %6, %8 : vector<256x4xf32>
    %10 = arith.negf %9 : vector<256x4xf32>
    %11 = math.exp %10 : vector<256x4xf32>
    %cst_10 = arith.constant 1.000000e+00 : f32
    %12 = vector.broadcast %cst_10 : f32 to vector<256x4xf32>
    %13 = arith.addf %12, %11 : vector<256x4xf32>
    %14 = arith.divf %12, %13 : vector<256x4xf32>
    %15 = arith.mulf %9, %14 : vector<256x4xf32>
    %c0_11 = arith.constant 0 : index
    %c0_12 = arith.constant 0 : index
    %16 = vector.load %arg6[%c0_11, %c0_12] : memref<256x4xf32, #tpu.memory_space<vmem>>, vector<256x4xf32>
    tpu.vector_store %arg6[%c0_11, %c0_12], %15 {strides = array<i32>} : memref<256x4xf32, #tpu.memory_space<vmem>>, vector<256x4xf32>,
    return
  }
  func.func @transform_0(%arg0: i32) -> (i32, i32) {
    %c0_i32 = arith.constant 0 : i32
    %c0_i32_0 = arith.constant 0 : i32
    return %arg0, %c0_i32 : i32, i32
  }
  func.func @transform_1(%arg0: i32) -> (i32, i32) {
    %c0_i32 = arith.constant 0 : i32
    %c0_i32_0 = arith.constant 0 : i32
    return %arg0, %c0_i32 : i32, i32
  }
  func.func @transform_2(%arg0: i32) -> (i32, i32) {
    %c0_i32 = arith.constant 0 : i32
    %c0_i32_0 = arith.constant 0 : i32
    %c0_i32_1 = arith.constant 0 : i32
    return %c0_i32, %c0_i32_0 : i32, i32
  }
  func.func @transform_3(%arg0: i32) -> (i32, i32) {
    %c0_i32 = arith.constant 0 : i32
    %c0_i32_0 = arith.constant 0 : i32
    %c0_i32_1 = arith.constant 0 : i32
    return %c0_i32, %c0_i32_0 : i32, i32
  }
  func.func @transform_4(%arg0: i32) -> (i32, i32) {
    %c0_i32 = arith.constant 0 : i32
    %c0_i32_0 = arith.constant 0 : i32
    %c0_i32_1 = arith.constant 0 : i32
    return %c0_i32, %c0_i32_0 : i32, i32
  }
  func.func @transform_5(%arg0: i32) -> (i32, i32) {
    %c0_i32 = arith.constant 0 : i32
    %c0_i32_0 = arith.constant 0 : i32
    return %arg0, %c0_i32 : i32, i32
  }
}

</mosaic_0001>

<bundles_post_ra>
// kernel: c3_forward.4
= control target key start
LH: loop header
LB: loop body
LE: loop exit
PB: predicated region body
PF: predicated region fallthrough
CT: control target
= control target key end

     0   :  { %s1398_s12 = smov 0   ;;  %s2174_s0 = inlined_call_operand.vmem [shape: f32[512,4], index: 0, kind: input, shape index: {}]   ;;  %s2175_s1 = inlined_call_operand.vmem [shape: f32[4,4], index: 1, kind: input, shape index: {}]   ;;  %s2176_s2 = inlined_call_operand.vmem [shape: f32[1,4], index: 2, kind: input, shape index: {}]   ;;  %s2177_s3 = inlined_call_operand.vmem [shape: f32[512,4], index: 3, kind: output, shape index: {}]  }
   0x1 LB: > { %s1153_s13 = sadd.s32 4294967295, %s1376_s12   ;;  %p1157_p0 = scmp.ge.s32.totalorder %s1376_s12, 1  ;;  %s1376_s12 = sphi %s1398_s12, %s13_s12  }
   0x2   : > { %p138_p1 = scmp.lt.s32.totalorder %s1376_s12, 3 }
   0x4   : > { %p139_p2 = pnand %p1157_p0, %p138_p1 }
   0x5   : > { %s1158_s16 = sshll.u32 (!%p139_p2), %s1153_s13, 5 }
   0x6   : > { %142 = sbr.rel (%p139_p2) target bundleno = 304 (0x130), region = 32  ;;  %p163_p3 = scmp.lt.s32.totalorder (!%p139_p2), %s1158_s16, 63 }
   0xb   : > { %v206_v0 = vld [vmem:[%s2175_s1] sm:$0xf]  ;;  %vm308_vm0 = vcmask 1043456   ;;  %s2229_s16 = smov (!%p163_p3, %s1158_s16), 63  ;;  %vm211_vm1 = vcmask 31744  }
   0xc   : > { %1162 = vmatpush.msk.msra.mxu0 %vm308_vm0, %v206_v0  ;;  %1229 = vmatpush.msk.msra.mxu1 %vm308_vm0, %v206_v0  ;;  %s1159_s17 = sshll.u32 %s2229_s16, 3  ;;  %v1486_v33 = vld [vmem:[%s2176_s2] ss:$0 sm:$0xff] }
   0xd   : > { %1230 = vmatpush.msk.msra.mxu2 %vm308_vm0, %v206_v0  ;;  %1231 = vmatpush.msk.msra.mxu3 %vm308_vm0, %v206_v0  ;;  %s1417_s20 = scalar_lea.vmem %s2174_s0, %s1159_s17  ;;  %s1586_s25 = scalar_lea.vmem %s2177_s3, %s1159_s17 }
   0xe   : > { %v174_v1 = vld [vmem:[%s1417_s20] sm:$0xff]  ;;  %v175_v5 = vld [vmem:[%s1417_s20 + $0x8] sm:$0xff]  ;;  %v176_v9 = vld [vmem:[%s1417_s20 + $0x10] sm:$0xff] }
   0xf   : > { %v182_v2 = vld [vmem:[%s1417_s20 + $0x40] sm:$0xff]  ;;  %1163 = vmatmul.msk.f32.vlgmr.msra.gmra.mxu0 %vm211_vm1, %v174_v1  ;;  %v183_v6 = vld [vmem:[%s1417_s20 + $0x48] sm:$0xff]  ;;  %v184_v10 = vld [vmem:[%s1417_s20 + $0x50] sm:$0xff] }
  0x10   : > { %v190_v3 = vld [vmem:[%s1417_s20 + $0x80] sm:$0xff]  ;;  %1171 = vmatmul.msk.f32.vlgmr.msra.gmra.mxu1 %vm211_vm1, %v182_v2  ;;  %v191_v7 = vld [vmem:[%s1417_s20 + $0x88] sm:$0xff]  ;;  %v192_v11 = vld [vmem:[%s1417_s20 + $0x90] sm:$0xff] }
  0x11   : > { %v198_v4 = vld [vmem:[%s1417_s20 + $0xc0] sm:$0xff]  ;;  %1179 = vmatmul.msk.f32.vlgmr.msra.gmra.mxu2 %vm211_vm1, %v190_v3  ;;  %v199_v8 = vld [vmem:[%s1417_s20 + $0xc8] sm:$0xff]  ;;  %v200_v12 = vld [vmem:[%s1417_s20 + $0xd0] sm:$0xff] }
  0x12   : > { %1187 = vmatmul.msk.f32.vlgmr.msra.gmra.mxu3 %vm211_vm1, %v198_v4  ;;  %v177_v13 = vld [vmem:[%s1417_s20 + $0x18] sm:$0xff]  ;;  %v178_v17 = vld [vmem:[%s1417_s20 + $0x20] sm:$0xff]  ;;  %v179_v21 = vld [vmem:[%s1417_s20 + $0x28] sm:$0xff] }
  0x13   : > { %v185_v14 = vld [vmem:[%s1417_s20 + $0x58] sm:$0xff]  ;;  %v186_v18 = vld [vmem:[%s1417_s20 + $0x60] sm:$0xff]  ;;  %v187_v22 = vld [vmem:[%s1417_s20 + $0x68] sm:$0xff] }
  0x14   : > { %v193_v15 = vld [vmem:[%s1417_s20 + $0x98] sm:$0xff]  ;;  %v194_v19 = vld [vmem:[%s1417_s20 + $0xa0] sm:$0xff]  ;;  %v195_v23 = vld [vmem:[%s1417_s20 + $0xa8] sm:$0xff] }
  0x15   : > { %v201_v16 = vld [vmem:[%s1417_s20 + $0xd8] sm:$0xff]  ;;  %v202_v20 = vld [vmem:[%s1417_s20 + $0xe0] sm:$0xff]  ;;  %v203_v24 = vld [vmem:[%s1417_s20 + $0xe8] sm:$0xff] }
  0x16   : > { %v180_v25 = vld [vmem:[%s1417_s20 + $0x30] sm:$0xff]  ;;  %v181_v29 = vld [vmem:[%s1417_s20 + $0x38] sm:$0xff] }
  0x17   : > { %1164 = vmatmul.msk.f32.gmra.mxu0 %vm211_vm1, %v175_v5  ;;  %v188_v26 = vld [vmem:[%s1417_s20 + $0x70] sm:$0xff]  ;;  %v189_v30 = vld [vmem:[%s1417_s20 + $0x78] sm:$0xff] }
  0x18   : > { %1172 = vmatmul.msk.f32.gmra.mxu1 %vm211_vm1, %v183_v6  ;;  %v196_v27 = vld [vmem:[%s1417_s20 + $0xb0] sm:$0xff]  ;;  %v197_v31 = vld [vmem:[%s1417_s20 + $0xb8] sm:$0xff] }
  0x19   : > { %1180 = vmatmul.msk.f32.gmra.mxu2 %vm211_vm1, %v191_v7  ;;  %v204_v28 = vld [vmem:[%s1417_s20 + $0xf0] sm:$0xff]  ;;  %v205_v32 = vld [vmem:[%s1417_s20 + $0xf8] sm:$0xff] }
  0x1a   : > { %1188 = vmatmul.msk.f32.gmra.mxu3 %vm211_vm1, %v199_v8 }
  0x1f   : > { %1165 = vmatmul.msk.f32.gmra.mxu0 %vm211_vm1, %v176_v9 }
  0x20   : > { %1173 = vmatmul.msk.f32.gmra.mxu1 %vm211_vm1, %v184_v10 }
  0x21   : > { %1181 = vmatmul.msk.f32.gmra.mxu2 %vm211_vm1, %v192_v11 }
  0x22   : > { %1189 = vmatmul.msk.f32.gmra.mxu3 %vm211_vm1, %v200_v12 }
  0x27   : > { %1166 = vmatmul.msk.f32.gmra.mxu0 %vm211_vm1, %v177_v13 }
  0x28   : > { %1174 = vmatmul.msk.f32.gmra.mxu1 %vm211_vm1, %v185_v14 }
  0x29   : > { %1182 = vmatmul.msk.f32.gmra.mxu2 %vm211_vm1, %v193_v15 }
  0x2a   : > { %1190 = vmatmul.msk.f32.gmra.mxu3 %vm211_vm1, %v201_v16 }
  0x2f   : > { %1167 = vmatmul.msk.f32.gmra.mxu0 %vm211_vm1, %v178_v17 }
  0x30   : > { %1175 = vmatmul.msk.f32.gmra.mxu1 %vm211_vm1, %v186_v18 }
  0x31   : > { %1183 = vmatmul.msk.f32.gmra.mxu2 %vm211_vm1, %v194_v19 }
  0x32   : > { %1191 = vmatmul.msk.f32.gmra.mxu3 %vm211_vm1, %v202_v20 }
  0x37   : > { %1168 = vmatmul.msk.f32.gmra.mxu0 %vm211_vm1, %v179_v21 }
  0x38   : > { %1176 = vmatmul.msk.f32.gmra.mxu1 %vm211_vm1, %v187_v22 }
  0x39   : > { %1184 = vmatmul.msk.f32.gmra.mxu2 %vm211_vm1, %v195_v23 }
  0x3a   : > { %1192 = vmatmul.msk.f32.gmra.mxu3 %vm211_vm1, %v203_v24 }
  0x3f   : > { %1169 = vmatmul.msk.f32.gmra.mxu0 %vm211_vm1, %v180_v25 }
  0x40   : > { %1177 = vmatmul.msk.f32.gmra.mxu1 %vm211_vm1, %v188_v26 }
  0x41   : > { %1185 = vmatmul.msk.f32.gmra.mxu2 %vm211_vm1, %v196_v27 }
  0x42   : > { %1193 = vmatmul.msk.f32.gmra.mxu3 %vm211_vm1, %v204_v28 }
  0x47   : > { %1170 = vmatmul.msk.f32.gmra.mxu0 %vm211_vm1, %v181_v29 }
  0x48   : > { %1178 = vmatmul.msk.f32.gmra.mxu1 %vm211_vm1, %v189_v30 }
  0x49   : > { %1186 = vmatmul.msk.f32.gmra.mxu2 %vm211_vm1, %v197_v31 }
  0x4a   : > { %1194 = vmatmul.msk.f32.gmra.mxu3 %vm211_vm1, %v205_v32 }
  0x8c   : > { %v329_v34 = vpop.f32.mrf.mxu0 }
  0x8d   : > { %v353_v35 = vpop.f32.mrf.mxu1  ;;  %v1489_v36 = vadd.f32 %v1486_v33, %v329_v34 }
  0x8e   : > { %v1492_v37 = vadd.f32 %v1486_v33, %v353_v35 }
  0x8f   : > { %v1195_v38 = vmul.f32 -1.442695, %v1489_v36 }
  0x90   : > { %v1203_v39 = vmul.f32 -1.442695, %v1492_v37 }
  0x91   : > { %1241 = vpow2.f32 %v1195_v38 }
  0x92   : > { %1243 = vpow2.f32 %v1203_v39 }
  0x94   : > { %v377_v40 = vpop.f32.mrf.mxu2  ;;  %v332_v44 = vpop.f32.mrf.mxu0 }
  0x95   : > { %v401_v41 = vpop.f32.mrf.mxu3  ;;  %v1497_v42 = vadd.f32 %v1486_v33, %v377_v40  ;;  %v356_v45 = vpop.f32.mrf.mxu1  ;;  %v1503_v46 = vadd.f32 %v1486_v33, %v332_v44 }
  0x96   : > { %v1500_v43 = vadd.f32 %v1486_v33, %v401_v41  ;;  %v1506_v47 = vadd.f32 %v1486_v33, %v356_v45 }
  0x97   : > { %v1211_v48 = vmul.f32 -1.442695, %v1497_v42  ;;  %v1242_v50 = vpop.eup %1241  ;;  %v1196_v53 = vmul.f32 -1.442695, %v1503_v46 }
  0x98   : > { %v1219_v49 = vmul.f32 -1.442695, %v1500_v43  ;;  %v1244_v51 = vpop.eup %1243  ;;  %v1510_v52 = vadd.f32 1.0, %v1242_v50  ;;  %v1204_v55 = vmul.f32 -1.442695, %v1506_v47 }
  0x99   : > { %1245 = vpow2.f32 %v1211_v48  ;;  %v1513_v54 = vadd.f32 1.0, %v1244_v51 }
  0x9a   : > { %1247 = vpow2.f32 %v1219_v49  ;;  %v562_v60 = vand.u32 2147483647, %v1510_v52  ;;  %v564_v61 = vand.u32 2147483648, %v1510_v52  ;;  %vm558_vm2 = vweird.f32 %v1510_v52 }
  0x9b   : > { %1249 = vrcp.f32 %v1510_v52  ;;  %v682_v63 = vand.u32 2147483647, %v1513_v54  ;;  %v684_v0 = vand.u32 2147483648, %v1513_v54  ;;  %vm678_vm3 = vweird.f32 %v1513_v54 }
  0x9c   : > { %1251 = vrcp.f32 %v1513_v54  ;;  %v380_v56 = vpop.f32.mrf.mxu2  ;;  %v335_v59 = vpop.f32.mrf.mxu0  ;;  %vm1539_vm4 = vcmp.eq.f32.partialorder %v562_v60, 8.507059e+37  ;;  %v565_v12 = vor.u32 1.1754944e-38, %v564_v61 }
  0x9d   : > { %v404_v57 = vpop.f32.mrf.mxu3  ;;  %1253 = vpow2.f32 %v1196_v53  ;;  %v1519_v58 = vadd.f32 %v1486_v33, %v380_v56  ;;  %v1532_v5 = vadd.f32 %v1486_v33, %v335_v59  ;;  %v359_v8 = vpop.f32.mrf.mxu1  ;;  %vm1545_vm5 = vcmp.eq.f32.partialorder %v682_v63, 8.507059e+37 }
  0x9e   : > { %1255 = vpow2.f32 %v1204_v55  ;;  %v1527_v2 = vadd.f32 %v1486_v33, %v404_v57  ;;  %v685_v16 = vor.u32 1.1754944e-38, %v684_v0  ;;  %v1553_v21 = vadd.f32 %v1486_v33, %v359_v8 }
  0x9f   : > { %v1246_v62 = vpop.eup %1245  ;;  %v1212_v1 = vmul.f32 -1.442695, %v1519_v58  ;;  %v1197_v20 = vmul.f32 -1.442695, %v1532_v5 }
  0xa0   : > { %v1248_v3 = vpop.eup %1247  ;;  %v1529_v4 = vadd.f32 1.0, %v1246_v62  ;;  %v1220_v17 = vmul.f32 -1.442695, %v1527_v2  ;;  %v1566_v34 = vmul.f32 -1.442695, %v1553_v21 }
  0xa1   : > { %v1250_v6 = vpop.eup %1249  ;;  %v1536_v7 = vadd.f32 1.0, %v1248_v3 }
  0xa2   : > { %v1252_v9 = vpop.eup %1251  ;;  %v554_v10 = vmul.f32 %v1250_v6, %v1510_v52  ;;  %1257 = vrcp.f32 %v1529_v4  ;;  %vm559_vm6 = vweird.f32 %v1250_v6  ;;  %v802_v23 = vand.u32 2147483647, %v1529_v4 }
  0xa3   : > { %v1254_v13 = vpop.eup %1253  ;;  %v674_v14 = vmul.f32 %v1252_v9, %v1513_v54  ;;  %1259 = vpow2.f32 %v1212_v1  ;;  %v804_v24 = vand.u32 2147483648, %v1529_v4  ;;  %v924_v26 = vand.u32 2147483648, %v1536_v7  ;;  %vm560_vm9 = vmor %vm558_vm2, %vm559_vm6 }
  0xa4   : > { %v1256_v18 = vpop.eup %1255  ;;  %v555_v19 = vsub.f32 1.0, %v554_v10  ;;  %1261 = vrcp.f32 %v1536_v7  ;;  %v1558_v27 = vadd.f32 1.0, %v1254_v13  ;;  %vm679_vm7 = vweird.f32 %v1252_v9  ;;  %v383_v41 = vpop.f32.mrf.mxu2 }
  0xa5   : > { %v675_v22 = vsub.f32 1.0, %v674_v14  ;;  %v1560_v28 = vadd.f32 1.0, %v1256_v18  ;;  %v922_v30 = vand.u32 2147483647, %v1536_v7  ;;  %1263 = vpow2.f32 %v1220_v17  ;;  %vm680_vm12 = vmor %vm678_vm3, %vm679_vm7 }
  0xa6   : > { %v556_v25 = vmul.f32 %v1250_v6, %v555_v19  ;;  %vm798_vm8 = vweird.f32 %v1529_v4  ;;  %1265 = vrcp.f32 %v1558_v27  ;;  %vm1572_vm10 = vcmp.eq.f32.partialorder %v802_v23, 8.507059e+37 }
  0xa7   : > { %v676_v29 = vmul.f32 %v1252_v9, %v675_v22  ;;  %vm918_vm11 = vweird.f32 %v1536_v7  ;;  %v805_v48 = vor.u32 1.1754944e-38, %v804_v24  ;;  %v925_v49 = vor.u32 1.1754944e-38, %v924_v26 }
  0xa8   : > { %v1258_v31 = vpop.eup %1257  ;;  %v557_v32 = vadd.f32 %v1250_v6, %v556_v25  ;;  %1267 = vrcp.f32 %v1560_v28  ;;  %vm1591_vm13 = vcmp.eq.f32.partialorder %v922_v30, 8.507059e+37  ;;  %v577_v57 = vand.u32 2147483647, %v1558_v27 }
  0xa9   : > { %v1260_v35 = vpop.eup %1259  ;;  %v677_v38 = vadd.f32 %v1252_v9, %v676_v29  ;;  %v794_v39 = vmul.f32 %v1258_v31, %v1529_v4  ;;  %v1600_v59 = vadd.f32 %v1486_v33, %v383_v41  ;;  %vm799_vm14 = vweird.f32 %v1258_v31  ;;  %v407_v29 = vpop.f32.mrf.mxu3 }
  0xaa   : > { %v1262_v44 = vpop.eup %1261  ;;  %v561_v45 = vsel %vm560_vm9, %v1250_v6, %v557_v32  ;;  %vm573_vm15 = vweird.f32 %v1558_v27  ;;  %v1607_v1 = vadd.f32 1.0, %v1260_v35  ;;  %1269 = vpow2.f32 %v1197_v20  ;;  %vm800_vm2 = vmor %vm798_vm8, %vm799_vm14 }
  0xab   : > { %v566_v50 = vsel %vm1539_vm4, %v565_v12, %v561_v45  ;;  %v681_v51 = vsel %vm680_vm12, %v1252_v9, %v677_v38  ;;  %v795_v52 = vsub.f32 1.0, %v794_v39  ;;  %v914_v53 = vmul.f32 %v1262_v44, %v1536_v7  ;;  %v1264_v60 = vpop.eup %1263 }
  0xac   : > { %v1033_v55 = vmul.f32 %v566_v50, %v1489_v36  ;;  %v686_v56 = vsel %vm1545_vm5, %v685_v16, %v681_v51  ;;  %v1266_v0 = vpop.eup %1265  ;;  %v579_v36 = vand.u32 2147483648, %v1558_v27  ;;  %vm919_vm0 = vweird.f32 %v1262_v44 }
  0xad   : > { %v1041_v61 = vmul.f32 %v686_v56, %v1492_v37  ;;  %v796_v62 = vmul.f32 %v1258_v31, %v795_v52  ;;  %v915_v63 = vsub.f32 1.0, %v914_v53  ;;  %v569_v37 = vmul.f32 %v1266_v0, %v1558_v27  ;;  %vm920_vm4 = vmor %vm918_vm11, %vm919_vm0  ;;  %v362_v56 = vpop.f32.mrf.mxu1 }
  0xae   : > { %1065 = vst.msk [vmem:[%s1586_s25] sm:$0xff] %vm211_vm1, %v1033_v55  ;;  %v1268_v8 = vpop.eup %1267  ;;  %vm1614_vm3 = vcmp.eq.f32.partialorder %v577_v57, 8.507059e+37  ;;  %v697_v10 = vand.u32 2147483647, %v1560_v28  ;;  %1271 = vrcp.f32 %v1607_v1  ;;  %v1620_v11 = vadd.f32 1.0, %v1264_v60 }
  0xaf   : > { %1073 = vst.msk [vmem:[%s1586_s25 + $0x40] sm:$0xff] %vm211_vm1, %v1041_v61  ;;  %v797_v3 = vadd.f32 %v1258_v31, %v796_v62  ;;  %v916_v6 = vmul.f32 %v1262_v44, %v915_v63  ;;  %v570_v14 = vsub.f32 1.0, %v569_v37  ;;  %v689_v15 = vmul.f32 %v1268_v8, %v1560_v28 }
  0xb0   : > { %vm574_vm5 = vweird.f32 %v1266_v0  ;;  %vm693_vm6 = vweird.f32 %v1560_v28  ;;  %v699_v16 = vand.u32 2147483648, %v1560_v28  ;;  %v1270_v22 = vpop.eup %1269  ;;  %v580_v24 = vor.u32 1.1754944e-38, %v579_v36  ;;  %v386_v36 = vpop.f32.mrf.mxu2 }
  0xb1   : > { %v801_v12 = vsel %vm800_vm2, %v1258_v31, %v797_v3  ;;  %v917_v13 = vadd.f32 %v1262_v44, %v916_v6  ;;  %v571_v19 = vmul.f32 %v1266_v0, %v570_v14  ;;  %v690_v20 = vsub.f32 1.0, %v689_v15  ;;  %vm575_vm9 = vmor %vm573_vm15, %vm574_vm5 }
  0xb2   : > { %v806_v4 = vsel %vm1572_vm10, %v805_v48, %v801_v12  ;;  %vm1632_vm7 = vcmp.eq.f32.partialorder %v697_v10, 8.507059e+37  ;;  %1273 = vrcp.f32 %v1620_v11  ;;  %vm694_vm8 = vweird.f32 %v1268_v8 }
  0xb3   : > { %v1049_v17 = vmul.f32 %v806_v4, %v1497_v42  ;;  %v921_v18 = vsel %vm920_vm4, %v1262_v44, %v917_v13  ;;  %v572_v42 = vadd.f32 %v1266_v0, %v571_v19  ;;  %v691_v26 = vmul.f32 %v1268_v8, %v690_v20  ;;  %vm695_vm10 = vmor %vm693_vm6, %vm694_vm8  ;;  %v410_v13 = vpop.f32.mrf.mxu3 }
  0xb4   : > { %v926_v23 = vsel %vm1591_vm13, %v925_v49, %v921_v18  ;;  %v1272_v30 = vpop.eup %1271  ;;  %v817_v31 = vand.u32 2147483647, %v1607_v1  ;;  %v819_v32 = vand.u32 2147483648, %v1607_v1  ;;  %v1645_v35 = vadd.f32 1.0, %v1270_v22  ;;  %v338_v49 = vpop.f32.mrf.mxu0 }
  0xb5   : > { %1081 = vst.msk [vmem:[%s1586_s25 + $0x80] sm:$0xff] %vm211_vm1, %v1049_v17  ;;  %v1057_v7 = vmul.f32 %v926_v23, %v1500_v43  ;;  %1275 = vpow2.f32 %v1566_v34  ;;  %v576_v43 = vsel %vm575_vm9, %v1266_v0, %v572_v42  ;;  %v692_v38 = vadd.f32 %v1268_v8, %v691_v26 }
  0xb6   : > { %v700_v39 = vor.u32 1.1754944e-38, %v699_v16  ;;  %v809_v40 = vmul.f32 %v1272_v30, %v1607_v1  ;;  %v581_v27 = vsel %vm1614_vm3, %v580_v24, %v576_v43  ;;  %vm813_vm11 = vweird.f32 %v1607_v1 }
  0xb7   : > { %1089 = vst.msk [vmem:[%s1586_s25 + $0xc0] sm:$0xff] %vm211_vm1, %v1057_v7  ;;  %v937_v41 = vand.u32 2147483647, %v1620_v11  ;;  %1277 = vrcp.f32 %v1645_v35  ;;  %v1034_v34 = vmul.f32 %v581_v27, %v1503_v46  ;;  %v696_v44 = vsel %vm695_vm10, %v1268_v8, %v692_v38 }
  0xb8   : > { %v810_v45 = vsub.f32 1.0, %v809_v40  ;;  %v939_v48 = vand.u32 2147483648, %v1620_v11  ;;  %v1274_v50 = vpop.eup %1273  ;;  %v701_v51 = vsel %vm1632_vm7, %v700_v39, %v696_v44  ;;  %vm1662_vm12 = vcmp.eq.f32.partialorder %v817_v31, 8.507059e+37 }
  0xb9   : > { %v820_v52 = vor.u32 1.1754944e-38, %v819_v32  ;;  %v1213_v53 = vmul.f32 -1.442695, %v1600_v59  ;;  %1066 = vst.msk [vmem:[%s1586_s25 + $0x8] sm:$0xff] %vm211_vm1, %v1034_v34  ;;  %v1042_v46 = vmul.f32 %v701_v51, %v1506_v47  ;;  %vm814_vm13 = vweird.f32 %v1272_v30 }
  0xba   : > { %v811_v54 = vmul.f32 %v1272_v30, %v810_v45  ;;  %v929_v55 = vmul.f32 %v1274_v50, %v1620_v11  ;;  %vm933_vm14 = vweird.f32 %v1620_v11  ;;  %vm1672_vm15 = vcmp.eq.f32.partialorder %v937_v41, 8.507059e+37  ;;  %vm815_vm0 = vmor %vm813_vm11, %vm814_vm13 }
  0xbb   : > { %v1276_v57 = vpop.eup %1275  ;;  %1279 = vpow2.f32 %v1213_v53  ;;  %v1677_v61 = vadd.f32 %v1486_v33, %v407_v29  ;;  %1074 = vst.msk [vmem:[%s1586_s25 + $0x48] sm:$0xff] %vm211_vm1, %v1042_v46  ;;  %v940_v63 = vor.u32 1.1754944e-38, %v939_v48  ;;  %vm588_vm2 = vweird.f32 %v1645_v35 }
  0xbc   : > { %v812_v62 = vadd.f32 %v1272_v30, %v811_v54  ;;  %v930_v47 = vsub.f32 1.0, %v929_v55  ;;  %v1681_v0 = vadd.f32 1.0, %v1276_v57  ;;  %v1689_v37 = vadd.f32 %v1486_v33, %v338_v49  ;;  %v341_v7 = vpop.f32.mrf.mxu0  ;;  %v389_v57 = vpop.f32.mrf.mxu2 }
  0xbd   : > { %v1278_v3 = vpop.eup %1277  ;;  %v1221_v6 = vmul.f32 -1.442695, %v1677_v61  ;;  %v1692_v8 = vadd.f32 %v1486_v33, %v362_v56  ;;  %vm934_vm3 = vweird.f32 %v1274_v50  ;;  %v592_v14 = vand.u32 2147483647, %v1645_v35  ;;  %v365_v56 = vpop.f32.mrf.mxu1 }
  0xbe   : > { %v816_v9 = vsel %vm815_vm0, %v1272_v30, %v812_v62  ;;  %v931_v10 = vmul.f32 %v1274_v50, %v930_v47  ;;  %v584_v12 = vmul.f32 %v1278_v3, %v1645_v35  ;;  %1281 = vrcp.f32 %v1681_v0  ;;  %vm935_vm4 = vmor %vm933_vm14, %vm934_vm3 }
  0xbf   : > { %v821_v1 = vsel %vm1662_vm12, %v820_v52, %v816_v9  ;;  %v1700_v15 = vadd.f32 %v1486_v33, %v386_v36  ;;  %v594_v18 = vand.u32 2147483648, %v1645_v35  ;;  %1283 = vpow2.f32 %v1221_v6 }
  0xc0   : > { %v1050_v4 = vmul.f32 %v821_v1, %v1519_v58  ;;  %v932_v16 = vadd.f32 %v1274_v50, %v931_v10  ;;  %v585_v17 = vsub.f32 1.0, %v584_v12  ;;  %v1198_v20 = vmul.f32 -1.442695, %v1689_v37 }
  0xc1   : > { %v1280_v19 = vpop.eup %1279  ;;  %v1206_v22 = vmul.f32 -1.442695, %v1692_v8  ;;  %v1709_v23 = vadd.f32 %v1486_v33, %v410_v13  ;;  %vm589_vm5 = vweird.f32 %v1278_v3  ;;  %v1214_v42 = vmul.f32 -1.442695, %v1700_v15 }
  0xc2   : > { %1082 = vst.msk [vmem:[%s1586_s25 + $0x88] sm:$0xff] %vm211_vm1, %v1050_v4  ;;  %v936_v24 = vsel %vm935_vm4, %v1274_v50, %v932_v16  ;;  %v586_v58 = vmul.f32 %v1278_v3, %v585_v17  ;;  %v1713_v25 = vadd.f32 1.0, %v1280_v19  ;;  %1285 = vpow2.f32 %v1198_v20  ;;  %vm590_vm6 = vmor %vm588_vm2, %vm589_vm5 }
  0xc3   : > { %v941_v11 = vsel %vm1672_vm15, %v940_v63, %v936_v24  ;;  %v595_v30 = vor.u32 1.1754944e-38, %v594_v18  ;;  %v712_v32 = vand.u32 2147483647, %v1681_v0  ;;  %v1222_v43 = vmul.f32 -1.442695, %v1709_v23  ;;  %v413_v63 = vpop.f32.mrf.mxu3 }
  0xc4   : > { %v1058_v26 = vmul.f32 %v941_v11, %v1527_v2  ;;  %v587_v29 = vadd.f32 %v1278_v3, %v586_v58  ;;  %1287 = vrcp.f32 %v1713_v25  ;;  %v1282_v31 = vpop.eup %1281  ;;  %v1725_v38 = vadd.f32 %v1486_v33, %v341_v7  ;;  %v344_v10 = vpop.f32.mrf.mxu0 }
  0xc5   : > { %1289 = vpow2.f32 %v1206_v22  ;;  %vm593_vm7 = vcmp.eq.f32.partialorder %v592_v14, 8.507059e+37  ;;  %v704_v2 = vmul.f32 %v1282_v31, %v1681_v0  ;;  %v714_v40 = vand.u32 2147483648, %v1681_v0  ;;  %v1284_v27 = vpop.eup %1283 }
  0xc6   : > { %1090 = vst.msk [vmem:[%s1586_s25 + $0xc8] sm:$0xff] %vm211_vm1, %v1058_v26  ;;  %v591_v39 = vsel %vm590_vm6, %v1278_v3, %v587_v29  ;;  %v832_v41 = vand.u32 2147483647, %v1713_v25  ;;  %v834_v34 = vand.u32 2147483648, %v1713_v25  ;;  %1291 = vpow2.f32 %v1214_v42 }
  0xc7   : > { %v596_v35 = vsel %vm593_vm7, %v595_v30, %v591_v39  ;;  %v705_v45 = vsub.f32 1.0, %v704_v2  ;;  %v1734_v48 = vadd.f32 1.0, %v1284_v27  ;;  %v1199_v49 = vmul.f32 -1.442695, %v1725_v38 }
  0xc8   : > { %v1035_v44 = vmul.f32 %v596_v35, %v1532_v5  ;;  %v1286_v50 = vpop.eup %1285  ;;  %vm708_vm8 = vweird.f32 %v1681_v0  ;;  %vm1738_vm9 = vcmp.eq.f32.partialorder %v712_v32, 8.507059e+37  ;;  %1293 = vpow2.f32 %v1222_v43 }
  0xc9   : > { %v706_v52 = vmul.f32 %v1282_v31, %v705_v45  ;;  %vm709_vm10 = vweird.f32 %v1282_v31  ;;  %v715_v53 = vor.u32 1.1754944e-38, %v714_v40  ;;  %1295 = vrcp.f32 %v1734_v48 }
  0xca   : > { %v1288_v28 = vpop.eup %1287  ;;  %1067 = vst.msk [vmem:[%s1586_s25 + $0x10] sm:$0xff] %vm211_vm1, %v1035_v44  ;;  %vm828_vm11 = vweird.f32 %v1713_v25  ;;  %vm1747_vm12 = vcmp.eq.f32.partialorder %v832_v41, 8.507059e+37  ;;  %v1751_v55 = vadd.f32 1.0, %v1286_v50  ;;  %v835_v62 = vor.u32 1.1754944e-38, %v834_v34  ;;  %vm710_vm13 = vmor %vm708_vm8, %vm709_vm10 }
  0xcb   : > { %v1290_v5 = vpop.eup %1289  ;;  %v824_v46 = vmul.f32 %v1288_v28, %v1713_v25  ;;  %v707_v60 = vadd.f32 %v1282_v31, %v706_v52  ;;  %1297 = vpow2.f32 %v1199_v49  ;;  %v952_v6 = vand.u32 2147483647, %v1734_v48 }
  0xcc   : > { %v1753_v47 = vadd.f32 1.0, %v1290_v5  ;;  %v1292_v36 = vpop.eup %1291  ;;  %v954_v9 = vand.u32 2147483648, %v1734_v48  ;;  %1299 = vrcp.f32 %v1751_v55  ;;  %v1763_v13 = vadd.f32 %v1486_v33, %v365_v56 }
  0xcd   : > { %v825_v3 = vsub.f32 1.0, %v824_v46  ;;  %v711_v12 = vsel %vm710_vm13, %v1282_v31, %v707_v60  ;;  %v1766_v1 = vadd.f32 %v1486_v33, %v389_v57  ;;  %vm829_vm14 = vweird.f32 %v1288_v28 }
  0xce   : > { %1301 = vrcp.f32 %v1753_v47  ;;  %v1294_v14 = vpop.eup %1293  ;;  %v716_v0 = vsel %vm1738_vm9, %v715_v53, %v711_v12  ;;  %v1771_v16 = vadd.f32 %v1486_v33, %v413_v63  ;;  %vm948_vm15 = vweird.f32 %v1734_v48  ;;  %vm830_vm3 = vmor %vm828_vm11, %vm829_vm14 }
  0xcf   : > { %v826_v4 = vmul.f32 %v1288_v28, %v825_v3  ;;  %v1296_v17 = vpop.eup %1295  ;;  %v1043_v18 = vmul.f32 %v716_v0, %v1553_v21  ;;  %v607_v19 = vand.u32 2147483647, %v1751_v55  ;;  %v1777_v20 = vadd.f32 %v1486_v33, %v344_v10 }
  0xd0   : > { %v944_v24 = vmul.f32 %v1296_v17, %v1734_v48  ;;  %vm1780_vm0 = vcmp.eq.f32.partialorder %v952_v6, 8.507059e+37  ;;  %v955_v7 = vor.u32 1.1754944e-38, %v954_v9  ;;  %vm603_vm2 = vweird.f32 %v1751_v55 }
  0xd1   : > { %v827_v22 = vadd.f32 %v1288_v28, %v826_v4  ;;  %v1298_v11 = vpop.eup %1297  ;;  %1075 = vst.msk [vmem:[%s1586_s25 + $0x50] sm:$0xff] %vm211_vm1, %v1043_v18  ;;  %v609_v21 = vand.u32 2147483648, %v1751_v55  ;;  %vm723_vm4 = vweird.f32 %v1753_v47  ;;  %v727_v42 = vand.u32 2147483647, %v1753_v47  ;;  %v368_v18 = vpop.f32.mrf.mxu1 }
  0xd2   : > { %v1792_v26 = vadd.f32 1.0, %v1292_v36  ;;  %v1300_v29 = vpop.eup %1299  ;;  %v945_v31 = vsub.f32 1.0, %v944_v24  ;;  %v729_v32 = vand.u32 2147483648, %v1753_v47  ;;  %v1795_v43 = vadd.f32 1.0, %v1294_v14 }
  0xd3   : > { %v831_v30 = vsel %vm830_vm3, %v1288_v28, %v827_v22  ;;  %vm949_vm5 = vweird.f32 %v1296_v17  ;;  %v599_v2 = vmul.f32 %v1300_v29, %v1751_v55  ;;  %vm1800_vm6 = vcmp.eq.f32.partialorder %v607_v19, 8.507059e+37 }
  0xd4   : > { %v1302_v39 = vpop.eup %1301  ;;  %v836_v25 = vsel %vm1747_vm12, %v835_v62, %v831_v30  ;;  %1303 = vrcp.f32 %v1792_v26  ;;  %v946_v35 = vmul.f32 %v1296_v17, %v945_v31  ;;  %v1807_v34 = vadd.f32 1.0, %v1298_v11  ;;  %vm950_vm8 = vmor %vm948_vm15, %vm949_vm5  ;;  %v392_v11 = vpop.f32.mrf.mxu2 }
  0xd5   : > { %v1051_v27 = vmul.f32 %v836_v25, %v1600_v59  ;;  %v719_v41 = vmul.f32 %v1302_v39, %v1753_v47  ;;  %v600_v44 = vsub.f32 1.0, %v599_v2  ;;  %v610_v45 = vor.u32 1.1754944e-38, %v609_v21 }
  0xd6   : > { %vm1809_vm7 = vcmp.eq.f32.partialorder %v727_v42, 8.507059e+37  ;;  %v847_v50 = vand.u32 2147483647, %v1792_v26  ;;  %v947_v51 = vadd.f32 %v1296_v17, %v946_v35  ;;  %v849_v52 = vand.u32 2147483648, %v1792_v26  ;;  %v416_v42 = vpop.f32.mrf.mxu3 }
  0xd7   : > { %1083 = vst.msk [vmem:[%s1586_s25 + $0x90] sm:$0xff] %vm211_vm1, %v1051_v27  ;;  %v720_v28 = vsub.f32 1.0, %v719_v41  ;;  %1305 = vrcp.f32 %v1795_v43  ;;  %v601_v59 = vmul.f32 %v1300_v29, %v600_v44  ;;  %vm604_vm9 = vweird.f32 %v1300_v29 }
  0xd8   : > { %v730_v53 = vor.u32 1.1754944e-38, %v729_v32  ;;  %v1207_v5 = vmul.f32 -1.442695, %v1763_v13  ;;  %v951_v46 = vsel %vm950_vm8, %v1296_v17, %v947_v51  ;;  %vm724_vm10 = vweird.f32 %v1302_v39  ;;  %vm605_vm12 = vmor %vm603_vm2, %vm604_vm9 }
  0xd9   : > { %v721_v54 = vmul.f32 %v1302_v39, %v720_v28  ;;  %1307 = vrcp.f32 %v1807_v34  ;;  %v956_v57 = vsel %vm1780_vm0, %v955_v7, %v951_v46  ;;  %v602_v60 = vadd.f32 %v1300_v29, %v601_v59  ;;  %vm725_vm14 = vmor %vm723_vm4, %vm724_vm10  ;;  %v347_v59 = vpop.f32.mrf.mxu0  ;;  %v371_v3 = vpop.f32.mrf.mxu1 }
  0xda   : > { %v1304_v56 = vpop.eup %1303  ;;  %vm843_vm11 = vweird.f32 %v1792_v26  ;;  %v1215_v48 = vmul.f32 -1.442695, %v1766_v1  ;;  %v1059_v62 = vmul.f32 %v956_v57, %v1677_v61  ;;  %vm1831_vm13 = vcmp.eq.f32.partialorder %v847_v50, 8.507059e+37 }
  0xdb   : > { %v722_v63 = vadd.f32 %v1302_v39, %v721_v54  ;;  %v839_v36 = vmul.f32 %v1304_v56, %v1792_v26  ;;  %v850_v6 = vor.u32 1.1754944e-38, %v849_v52  ;;  %v606_v9 = vsel %vm605_vm12, %v1300_v29, %v602_v60 }
  0xdc   : > { %vm963_vm15 = vweird.f32 %v1795_v43  ;;  %v967_v10 = vand.u32 2147483647, %v1795_v43  ;;  %v969_v61 = vand.u32 2147483648, %v1795_v43  ;;  %vm618_vm0 = vweird.f32 %v1807_v34  ;;  %1091 = vst.msk [vmem:[%s1586_s25 + $0xd0] sm:$0xff] %vm211_vm1, %v1059_v62 }
  0xdd   : > { %v1306_v55 = vpop.eup %1305  ;;  %v611_v12 = vsel %vm1800_vm6, %v610_v45, %v606_v9  ;;  %v726_v14 = vsel %vm725_vm14, %v1302_v39, %v722_v63  ;;  %v840_v0 = vsub.f32 1.0, %v839_v36  ;;  %1309 = vpow2.f32 %v1207_v5 }
  0xde   : > { %v1036_v47 = vmul.f32 %v611_v12, %v1689_v37  ;;  %v731_v4 = vsel %vm1809_vm7, %v730_v53, %v726_v14  ;;  %vm844_vm2 = vweird.f32 %v1304_v56  ;;  %v959_v17 = vmul.f32 %v1306_v55, %v1795_v43 }
  0xdf   : > { %v1308_v19 = vpop.eup %1307  ;;  %v1044_v22 = vmul.f32 %v731_v4, %v1692_v8  ;;  %v841_v24 = vmul.f32 %v1304_v56, %v840_v0  ;;  %v622_v58 = vand.u32 2147483647, %v1807_v34  ;;  %v624_v7 = vand.u32 2147483648, %v1807_v34  ;;  %vm845_vm4 = vmor %vm843_vm11, %vm844_vm2 }
  0xe0   : > { %1068 = vst.msk [vmem:[%s1586_s25 + $0x18] sm:$0xff] %vm211_vm1, %v1036_v47  ;;  %v960_v37 = vsub.f32 1.0, %v959_v17  ;;  %vm964_vm3 = vweird.f32 %v1306_v55  ;;  %v614_v21 = vmul.f32 %v1308_v19, %v1807_v34  ;;  %1311 = vpow2.f32 %v1215_v48 }
  0xe1   : > { %1076 = vst.msk [vmem:[%s1586_s25 + $0x58] sm:$0xff] %vm211_vm1, %v1044_v22  ;;  %v842_v29 = vadd.f32 %v1304_v56, %v841_v24  ;;  %v1223_v30 = vmul.f32 -1.442695, %v1771_v16  ;;  %v1200_v8 = vmul.f32 -1.442695, %v1777_v20  ;;  %v1860_v31 = vadd.f32 %v1486_v33, %v368_v18  ;;  %vm965_vm6 = vmor %vm963_vm15, %vm964_vm3 }
  0xe2   : > { %v961_v32 = vmul.f32 %v1306_v55, %v960_v37  ;;  %v615_v39 = vsub.f32 1.0, %v614_v21  ;;  %vm619_vm5 = vweird.f32 %v1308_v19  ;;  %v1866_v25 = vadd.f32 %v1486_v33, %v392_v11 }
  0xe3   : > { %v1310_v2 = vpop.eup %1309  ;;  %v846_v40 = vsel %vm845_vm4, %v1304_v56, %v842_v29  ;;  %1313 = vpow2.f32 %v1223_v30  ;;  %v1208_v27 = vmul.f32 -1.442695, %v1860_v31  ;;  %v1870_v35 = vadd.f32 %v1486_v33, %v416_v42  ;;  %vm620_vm9 = vmor %vm618_vm0, %vm619_vm5 }
  0xe4   : > { %v851_v41 = vsel %vm1831_vm13, %v850_v6, %v846_v40  ;;  %v962_v26 = vadd.f32 %v1306_v55, %v961_v32  ;;  %v616_v44 = vmul.f32 %v1308_v19, %v615_v39  ;;  %v1874_v45 = vadd.f32 1.0, %v1310_v2 }
  0xe5   : > { %v1052_v49 = vmul.f32 %v851_v41, %v1700_v15  ;;  %vm968_vm7 = vcmp.eq.f32.partialorder %v967_v10, 8.507059e+37  ;;  %v970_v50 = vor.u32 1.1754944e-38, %v969_v61  ;;  %1315 = vpow2.f32 %v1200_v8 }
  0xe6   : > { %v1312_v51 = vpop.eup %1311  ;;  %v966_v28 = vsel %vm965_vm6, %v1306_v55, %v962_v26  ;;  %v617_v52 = vadd.f32 %v1308_v19, %v616_v44  ;;  %vm623_vm8 = vcmp.eq.f32.partialorder %v622_v58, 8.507059e+37  ;;  %1317 = vrcp.f32 %v1874_v45 }
  0xe7   : > { %1084 = vst.msk [vmem:[%s1586_s25 + $0x98] sm:$0xff] %vm211_vm1, %v1052_v49  ;;  %v971_v53 = vsel %vm968_vm7, %v970_v50, %v966_v28  ;;  %v625_v15 = vor.u32 1.1754944e-38, %v624_v7  ;;  %v1886_v43 = vadd.f32 1.0, %v1312_v51  ;;  %v1216_v5 = vmul.f32 -1.442695, %v1866_v25 }
  0xe8   : > { %v1060_v46 = vmul.f32 %v971_v53, %v1709_v23  ;;  %v621_v54 = vsel %vm620_vm9, %v1308_v19, %v617_v52  ;;  %1319 = vpow2.f32 %v1208_v27  ;;  %v1224_v56 = vmul.f32 -1.442695, %v1870_v35 }
  0xe9   : > { %v1314_v57 = vpop.eup %1313  ;;  %v626_v60 = vsel %vm623_vm8, %v625_v15, %v621_v54  ;;  %v742_v48 = vand.u32 2147483647, %v1874_v45  ;;  %1321 = vrcp.f32 %v1886_v43  ;;  %v1894_v34 = vadd.f32 %v1486_v33, %v347_v59 }
  0xea   : > { %1092 = vst.msk [vmem:[%s1586_s25 + $0xd8] sm:$0xff] %vm211_vm1, %v1060_v46  ;;  %v1037_v62 = vmul.f32 %v626_v60, %v1725_v38  ;;  %v744_v23 = vand.u32 2147483648, %v1874_v45  ;;  %vm738_vm10 = vweird.f32 %v1874_v45  ;;  %v1901_v36 = vadd.f32 1.0, %v1314_v57  ;;  %v395_v38 = vpop.f32.mrf.mxu2 }
  0xeb   : > { %v1316_v63 = vpop.eup %1315  ;;  %1323 = vpow2.f32 %v1216_v5  ;;  %v862_v9 = vand.u32 2147483647, %v1886_v43  ;;  %v864_v10 = vand.u32 2147483648, %v1886_v43  ;;  %vm1910_vm11 = vcmp.eq.f32.partialorder %v742_v48, 8.507059e+37 }
  0xec   : > { %v1318_v6 = vpop.eup %1317  ;;  %1069 = vst.msk [vmem:[%s1586_s25 + $0x20] sm:$0xff] %vm211_vm1, %v1037_v62  ;;  %v1907_v61 = vadd.f32 1.0, %v1316_v63  ;;  %1325 = vpow2.f32 %v1224_v56  ;;  %v1201_v14 = vmul.f32 -1.442695, %v1894_v34  ;;  %v745_v47 = vor.u32 1.1754944e-38, %v744_v23 }
  0xed   : > { %v734_v55 = vmul.f32 %v1318_v6, %v1874_v45  ;;  %1327 = vrcp.f32 %v1901_v36  ;;  %vm858_vm12 = vweird.f32 %v1886_v43  ;;  %v1919_v4 = vadd.f32 %v1486_v33, %v371_v3 }
  0xee   : > { %v1320_v0 = vpop.eup %1319  ;;  %1329 = vrcp.f32 %v1907_v61  ;;  %v984_v19 = vand.u32 2147483648, %v1901_v36  ;;  %v1925_v24 = vadd.f32 %v1486_v33, %v395_v38  ;;  %vm1928_vm13 = vcmp.eq.f32.partialorder %v862_v9, 8.507059e+37 }
  0xef   : > { %v1322_v17 = vpop.eup %1321  ;;  %v735_v18 = vsub.f32 1.0, %v734_v55  ;;  %v1922_v22 = vadd.f32 1.0, %v1320_v0  ;;  %v865_v11 = vor.u32 1.1754944e-38, %v864_v10  ;;  %v982_v37 = vand.u32 2147483647, %v1901_v36 }
  0xf0   : > { %v854_v58 = vmul.f32 %v1322_v17, %v1886_v43  ;;  %v639_v21 = vand.u32 2147483648, %v1907_v61  ;;  %vm739_vm14 = vweird.f32 %v1318_v6  ;;  %v637_v30 = vand.u32 2147483647, %v1907_v61 }
  0xf1   : > { %v1324_v42 = vpop.eup %1323  ;;  %v736_v29 = vmul.f32 %v1318_v6, %v735_v18  ;;  %1331 = vrcp.f32 %v1922_v22  ;;  %vm859_vm15 = vweird.f32 %v1322_v17  ;;  %vm978_vm0 = vweird.f32 %v1901_v36  ;;  %vm740_vm3 = vmor %vm738_vm10, %vm739_vm14 }
  0xf2   : > { %v1326_v33 = vpop.eup %1325  ;;  %v855_v8 = vsub.f32 1.0, %v854_v58  ;;  %vm633_vm2 = vweird.f32 %v1907_v61  ;;  %v985_v2 = vor.u32 1.1754944e-38, %v984_v19  ;;  %v1938_v40 = vadd.f32 1.0, %v1324_v42  ;;  %vm860_vm6 = vmor %vm858_vm12, %vm859_vm15 }
  0xf3   : > { %v1328_v32 = vpop.eup %1327  ;;  %v737_v39 = vadd.f32 %v1318_v6, %v736_v29  ;;  %1333 = vpow2.f32 %v1201_v14  ;;  %vm1943_vm4 = vcmp.eq.f32.partialorder %v982_v37, 8.507059e+37  ;;  %v640_v49 = vor.u32 1.1754944e-38, %v639_v21 }
  0xf4   : > { %v1330_v27 = vpop.eup %1329  ;;  %v856_v41 = vmul.f32 %v1322_v17, %v855_v8  ;;  %v974_v26 = vmul.f32 %v1328_v32, %v1901_v36  ;;  %v757_v50 = vand.u32 2147483647, %v1922_v22  ;;  %vm1949_vm5 = vcmp.eq.f32.partialorder %v637_v30, 8.507059e+37  ;;  %v419_v36 = vpop.f32.mrf.mxu3 }
  0xf5   : > { %v741_v51 = vsel %vm740_vm3, %v1318_v6, %v737_v39  ;;  %v629_v28 = vmul.f32 %v1330_v27, %v1907_v61  ;;  %v759_v45 = vand.u32 2147483648, %v1922_v22  ;;  %v1954_v59 = vadd.f32 1.0, %v1326_v33  ;;  %v374_v39 = vpop.f32.mrf.mxu1 }
  0xf6   : > { %v746_v53 = vsel %vm1910_vm11, %v745_v47, %v741_v51  ;;  %v857_v15 = vadd.f32 %v1322_v17, %v856_v41  ;;  %v975_v5 = vsub.f32 1.0, %v974_v26  ;;  %1335 = vrcp.f32 %v1938_v40  ;;  %v1369_v51 = vld [vmem:[%s2176_s2] ss:$0 sm:$0xff] }
  0xf7   : > { %v1332_v46 = vpop.eup %1331  ;;  %v1045_v54 = vmul.f32 %v746_v53, %v1763_v13  ;;  %vm979_vm7 = vweird.f32 %v1328_v32  ;;  %v630_v56 = vsub.f32 1.0, %v629_v28  ;;  %vm753_vm8 = vweird.f32 %v1922_v22 }
  0xf8   : > { %v861_v57 = vsel %vm860_vm6, %v1322_v17, %v857_v15  ;;  %v976_v60 = vmul.f32 %v1328_v32, %v975_v5  ;;  %v749_v48 = vmul.f32 %v1332_v46, %v1922_v22  ;;  %vm1965_vm9 = vcmp.eq.f32.partialorder %v757_v50, 8.507059e+37  ;;  %vm980_vm11 = vmor %vm978_vm0, %vm979_vm7 }
  0xf9   : > { %v1334_v23 = vpop.eup %1333  ;;  %1077 = vst.msk [vmem:[%s1586_s25 + $0x60] sm:$0xff] %vm211_vm1, %v1045_v54  ;;  %v866_v13 = vsel %vm1928_vm13, %v865_v11, %v861_v57  ;;  %v631_v43 = vmul.f32 %v1330_v27, %v630_v56  ;;  %vm634_vm10 = vweird.f32 %v1330_v27  ;;  %v760_v63 = vor.u32 1.1754944e-38, %v759_v45 }
  0xfa   : > { %v1053_v3 = vmul.f32 %v866_v13, %v1766_v1  ;;  %v977_v6 = vadd.f32 %v1328_v32, %v976_v60  ;;  %v750_v9 = vsub.f32 1.0, %v749_v48  ;;  %1337 = vrcp.f32 %v1954_v59  ;;  %vm635_vm13 = vmor %vm633_vm2, %vm634_vm10 }
  0xfb   : > { %v632_v10 = vadd.f32 %v1330_v27, %v631_v43  ;;  %vm754_vm12 = vweird.f32 %v1332_v46  ;;  %vm873_vm14 = vweird.f32 %v1938_v40  ;;  %v877_v38 = vand.u32 2147483647, %v1938_v40 }
  0xfc   : > { %v1336_v55 = vpop.eup %1335  ;;  %1085 = vst.msk [vmem:[%s1586_s25 + $0xa0] sm:$0xff] %vm211_vm1, %v1053_v3  ;;  %v981_v12 = vsel %vm980_vm11, %v1328_v32, %v977_v6  ;;  %v751_v1 = vmul.f32 %v1332_v46, %v750_v9  ;;  %v879_v14 = vand.u32 2147483648, %v1938_v40  ;;  %v1985_v0 = vadd.f32 1.0, %v1334_v23  ;;  %vm755_vm15 = vmor %vm753_vm8, %vm754_vm12  ;;  %v422_v57 = vpop.f32.mrf.mxu3 }
  0xfd   : > { %v986_v47 = vsel %vm1943_vm4, %v985_v2, %v981_v12  ;;  %v636_v17 = vsel %vm635_vm13, %v1330_v27, %v632_v10  ;;  %v869_v18 = vmul.f32 %v1336_v55, %v1938_v40  ;;  %v997_v19 = vand.u32 2147483647, %v1954_v59  ;;  %v398_v2 = vpop.f32.mrf.mxu2 }
  0xfe   : > { %v1061_v58 = vmul.f32 %v986_v47, %v1771_v16  ;;  %v641_v61 = vsel %vm1949_vm5, %v640_v49, %v636_v17  ;;  %v752_v7 = vadd.f32 %v1332_v46, %v751_v1  ;;  %v999_v11 = vand.u32 2147483648, %v1954_v59 }
  0xff   : > { %v1038_v37 = vmul.f32 %v641_v61, %v1777_v20  ;;  %v870_v21 = vsub.f32 1.0, %v869_v18  ;;  %vm1999_vm0 = vcmp.eq.f32.partialorder %v877_v38, 8.507059e+37  ;;  %1339 = vrcp.f32 %v1985_v0  ;;  %v350_v20 = vpop.f32.mrf.mxu0 }
 0x100   : > { %v1338_v16 = vpop.eup %1337  ;;  %1093 = vst.msk [vmem:[%s1586_s25 + $0xe0] sm:$0xff] %vm211_vm1, %v1061_v58  ;;  %v756_v29 = vsel %vm755_vm15, %v1332_v46, %v752_v7  ;;  %vm874_vm2 = vweird.f32 %v1336_v55  ;;  %v880_v30 = vor.u32 1.1754944e-38, %v879_v14  ;;  %vm993_vm3 = vweird.f32 %v1954_v59 }
 0x101   : > { %1070 = vst.msk [vmem:[%s1586_s25 + $0x28] sm:$0xff] %vm211_vm1, %v1038_v37  ;;  %v761_v22 = vsel %vm1965_vm9, %v760_v63, %v756_v29  ;;  %v871_v33 = vmul.f32 %v1336_v55, %v870_v21  ;;  %v989_v8 = vmul.f32 %v1338_v16, %v1954_v59  ;;  %vm2012_vm4 = vcmp.eq.f32.partialorder %v997_v19, 8.507059e+37  ;;  %vm875_vm6 = vmor %vm873_vm14, %vm874_vm2 }
 0x102   : > { %v1046_v27 = vmul.f32 %v761_v22, %v1860_v31  ;;  %vm994_vm5 = vweird.f32 %v1338_v16  ;;  %v1000_v41 = vor.u32 1.1754944e-38, %v999_v11  ;;  %v1209_v26 = vmul.f32 -1.442695, %v1919_v4 }
 0x103   : > { %v872_v44 = vadd.f32 %v1336_v55, %v871_v33  ;;  %v990_v49 = vsub.f32 1.0, %v989_v8  ;;  %v1217_v50 = vmul.f32 -1.442695, %v1925_v24  ;;  %v2022_v28 = vadd.f32 %v1369_v51, %v419_v36  ;;  %vm995_vm8 = vmor %vm993_vm3, %vm994_vm5 }
 0x104   : > { %1078 = vst.msk [vmem:[%s1586_s25 + $0x68] sm:$0xff] %vm211_vm1, %v1046_v27  ;;  %1341 = vpow2.f32 %v1209_v26  ;;  %v2029_v31 = vadd.f32 %v1369_v51, %v350_v20  ;;  %v2031_v52 = vadd.f32 %v1369_v51, %v374_v39  ;;  %v2033_v45 = vadd.f32 %v1369_v51, %v398_v2 }
 0x105   : > { %v1340_v53 = vpop.eup %1339  ;;  %v876_v15 = vsel %vm875_vm6, %v1336_v55, %v872_v44  ;;  %v991_v5 = vmul.f32 %v1338_v16, %v990_v49  ;;  %1343 = vpow2.f32 %v1217_v50  ;;  %v1225_v46 = vmul.f32 -1.442695, %v2022_v28 }
 0x106   : > { %v881_v54 = vsel %vm1999_vm0, %v880_v30, %v876_v15  ;;  %v644_v40 = vmul.f32 %v1340_v53, %v1985_v0  ;;  %vm648_vm7 = vweird.f32 %v1985_v0  ;;  %v1202_v56 = vmul.f32 -1.442695, %v2029_v31 }
 0x107   : > { %v1054_v60 = vmul.f32 %v881_v54, %v1866_v25  ;;  %v992_v48 = vadd.f32 %v1338_v16, %v991_v5  ;;  %1345 = vpow2.f32 %v1225_v46  ;;  %v1210_v62 = vmul.f32 -1.442695, %v2031_v52 }
 0x108   : > { %v645_v23 = vsub.f32 1.0, %v644_v40  ;;  %v652_v13 = vand.u32 2147483647, %v1985_v0  ;;  %1347 = vpow2.f32 %v1202_v56  ;;  %v1218_v43 = vmul.f32 -1.442695, %v2033_v45 }
 0x109   : > { %1086 = vst.msk [vmem:[%s1586_s25 + $0xa8] sm:$0xff] %vm211_vm1, %v1054_v60  ;;  %v996_v63 = vsel %vm995_vm8, %v1338_v16, %v992_v48  ;;  %v654_v25 = vand.u32 2147483648, %v1985_v0  ;;  %1349 = vpow2.f32 %v1210_v62  ;;  %v2051_v3 = vadd.f32 %v1369_v51, %v422_v57 }
 0x10a   : > { %v1342_v6 = vpop.eup %1341  ;;  %v1001_v59 = vsel %vm2012_vm4, %v1000_v41, %v996_v63  ;;  %v646_v9 = vmul.f32 %v1340_v53, %v645_v23  ;;  %vm649_vm9 = vweird.f32 %v1340_v53  ;;  %1351 = vpow2.f32 %v1218_v43 }
 0x10b   : > { %v1344_v10 = vpop.eup %1343  ;;  %v1062_v38 = vmul.f32 %v1001_v59, %v1870_v35  ;;  %v2056_v55 = vadd.f32 1.0, %v1342_v6  ;;  %vm650_vm10 = vmor %vm648_vm7, %vm649_vm9  ;;  %v655_v36 = vor.u32 1.1754944e-38, %v654_v25  ;;  %v1226_v47 = vmul.f32 -1.442695, %v2051_v3 }
 0x10c   : > { %v647_v12 = vadd.f32 %v1340_v53, %v646_v9  ;;  %v2058_v1 = vadd.f32 1.0, %v1344_v10  ;;  %vm653_vm11 = vcmp.eq.f32.partialorder %v652_v13, 8.507059e+37 }
 0x10d   : > { %v1346_v14 = vpop.eup %1345  ;;  %1094 = vst.msk [vmem:[%s1586_s25 + $0xe8] sm:$0xff] %vm211_vm1, %v1062_v38  ;;  %1353 = vrcp.f32 %v2056_v55  ;;  %v772_v7 = vand.u32 2147483647, %v2056_v55  ;;  %v774_v37 = vand.u32 2147483648, %v2056_v55  ;;  %vm768_vm12 = vweird.f32 %v2056_v55 }
 0x10e   : > { %v1348_v17 = vpop.eup %1347  ;;  %v651_v18 = vsel %vm650_vm10, %v1340_v53, %v647_v12  ;;  %1355 = vrcp.f32 %v2058_v1  ;;  %v2069_v0 = vadd.f32 1.0, %v1346_v14  ;;  %v892_v16 = vand.u32 2147483647, %v2058_v1 }
 0x10f   : > { %v1350_v35 = vpop.eup %1349  ;;  %v656_v19 = vsel %vm653_vm11, %v655_v36, %v651_v18  ;;  %v2071_v11 = vadd.f32 1.0, %v1348_v17  ;;  %1357 = vpow2.f32 %v1226_v47  ;;  %vm2086_vm14 = vcmp.eq.f32.partialorder %v772_v7, 8.507059e+37 }
 0x110   : > { %v1352_v58 = vpop.eup %1351  ;;  %v1039_v61 = vmul.f32 %v656_v19, %v1894_v34  ;;  %1359 = vrcp.f32 %v2069_v0  ;;  %v2077_v21 = vadd.f32 1.0, %v1350_v35  ;;  %v894_v34 = vand.u32 2147483648, %v2058_v1 }
 0x111   : > { %1361 = vrcp.f32 %v2071_v11  ;;  %v2082_v29 = vadd.f32 1.0, %v1352_v58  ;;  %vm888_vm13 = vweird.f32 %v2058_v1  ;;  %v775_v33 = vor.u32 1.1754944e-38, %v774_v37 }
 0x112   : > { %1071 = vst.msk [vmem:[%s1586_s25 + $0x30] sm:$0xff] %vm211_vm1, %v1039_v61  ;;  %v1012_v32 = vand.u32 2147483647, %v2069_v0  ;;  %v1014_v39 = vand.u32 2147483648, %v2069_v0  ;;  %v667_v27 = vand.u32 2147483647, %v2071_v11  ;;  %1363 = vrcp.f32 %v2077_v21 }
 0x113   : > { %v1354_v42 = vpop.eup %1353  ;;  %v669_v41 = vand.u32 2147483648, %v2071_v11  ;;  %vm2097_vm15 = vcmp.eq.f32.partialorder %v892_v16, 8.507059e+37  ;;  %v895_v50 = vor.u32 1.1754944e-38, %v894_v34  ;;  %1365 = vrcp.f32 %v2082_v29 }
 0x114   : > { %v1356_v30 = vpop.eup %1355  ;;  %v764_v20 = vmul.f32 %v1354_v42, %v2056_v55  ;;  %vm769_vm0 = vweird.f32 %v1354_v42  ;;  %vm1008_vm2 = vweird.f32 %v2069_v0  ;;  %vm663_vm3 = vweird.f32 %v2071_v11 }
 0x115   : > { %v884_v8 = vmul.f32 %v1356_v30, %v2058_v1  ;;  %v1358_v26 = vpop.eup %1357  ;;  %vm889_vm4 = vweird.f32 %v1356_v30  ;;  %vm2105_vm5 = vcmp.eq.f32.partialorder %v1012_v32, 8.507059e+37  ;;  %v1015_v40 = vor.u32 1.1754944e-38, %v1014_v39  ;;  %vm770_vm7 = vmor %vm768_vm12, %vm769_vm0 }
 0x116   : > { %v765_v2 = vsub.f32 1.0, %v764_v20  ;;  %v1360_v51 = vpop.eup %1359  ;;  %vm2110_vm6 = vcmp.eq.f32.partialorder %v667_v27, 8.507059e+37  ;;  %v670_v48 = vor.u32 1.1754944e-38, %v669_v41  ;;  %vm783_vm8 = vweird.f32 %v2077_v21  ;;  %vm890_vm9 = vmor %vm888_vm13, %vm889_vm4 }
 0x117   : > { %v885_v44 = vsub.f32 1.0, %v884_v8  ;;  %v1362_v15 = vpop.eup %1361  ;;  %v1004_v46 = vmul.f32 %v1360_v51, %v2069_v0  ;;  %v787_v13 = vand.u32 2147483647, %v2077_v21  ;;  %vm1009_vm10 = vweird.f32 %v1360_v51 }
 0x118   : > { %v766_v53 = vmul.f32 %v1354_v42, %v765_v2  ;;  %v659_v57 = vmul.f32 %v1362_v15, %v2071_v11  ;;  %v1364_v43 = vpop.eup %1363  ;;  %v2121_v6 = vadd.f32 1.0, %v1358_v26  ;;  %vm664_vm11 = vweird.f32 %v1362_v15  ;;  %vm1010_vm12 = vmor %vm1008_vm2, %vm1009_vm10 }
 0x119   : > { %v886_v5 = vmul.f32 %v1356_v30, %v885_v44  ;;  %v1005_v23 = vsub.f32 1.0, %v1004_v46  ;;  %v1366_v59 = vpop.eup %1365  ;;  %v779_v55 = vmul.f32 %v1364_v43, %v2077_v21  ;;  %v907_v19 = vand.u32 2147483647, %v2082_v29 }
 0x11a   : > { %v767_v56 = vadd.f32 %v1354_v42, %v766_v53  ;;  %v660_v25 = vsub.f32 1.0, %v659_v57  ;;  %v899_v18 = vmul.f32 %v1366_v59, %v2082_v29  ;;  %1367 = vrcp.f32 %v2121_v6 }
 0x11b   : > { %v887_v62 = vadd.f32 %v1356_v30, %v886_v5  ;;  %v1006_v38 = vmul.f32 %v1360_v51, %v1005_v23  ;;  %v780_v17 = vsub.f32 1.0, %v779_v55  ;;  %vm784_vm13 = vweird.f32 %v1364_v43 }
 0x11c   : > { %v771_v63 = vsel %vm770_vm7, %v1354_v42, %v767_v56  ;;  %v661_v14 = vmul.f32 %v1362_v15, %v660_v25  ;;  %v900_v61 = vsub.f32 1.0, %v899_v18  ;;  %v909_v37 = vand.u32 2147483648, %v2082_v29  ;;  %vm785_vm0 = vmor %vm783_vm8, %vm784_vm13 }
 0x11d   : > { %v776_v9 = vsel %vm2086_vm14, %v775_v33, %v771_v63  ;;  %v891_v10 = vsel %vm890_vm9, %v1356_v30, %v887_v62  ;;  %v1007_v47 = vadd.f32 %v1360_v51, %v1006_v38  ;;  %vm665_vm14 = vmor %vm663_vm3, %vm664_vm11  ;;  %v781_v58 = vmul.f32 %v1364_v43, %v780_v17 }
 0x11e   : > { %v1047_v12 = vmul.f32 %v776_v9, %v1919_v4  ;;  %v896_v1 = vsel %vm2097_vm15, %v895_v50, %v891_v10  ;;  %v662_v35 = vadd.f32 %v1362_v15, %v661_v14  ;;  %v789_v4 = vand.u32 2147483648, %v2077_v21 }
 0x11f   : > { %v1055_v36 = vmul.f32 %v896_v1, %v1925_v24  ;;  %v1011_v24 = vsel %vm1010_vm12, %v1360_v51, %v1007_v47  ;;  %vm904_vm15 = vweird.f32 %v1366_v59  ;;  %v782_v34 = vadd.f32 %v1364_v43, %v781_v58 }
 0x120   : > { %1079 = vst.msk [vmem:[%s1586_s25 + $0x70] sm:$0xff] %vm211_vm1, %v1047_v12  ;;  %v1016_v7 = vsel %vm2105_vm5, %v1015_v40, %v1011_v24  ;;  %v666_v0 = vsel %vm665_vm14, %v1362_v15, %v662_v35  ;;  %v901_v11 = vmul.f32 %v1366_v59, %v900_v61  ;;  %v790_v20 = vor.u32 1.1754944e-38, %v789_v4 }
 0x121   : > { %1087 = vst.msk [vmem:[%s1586_s25 + $0xb0] sm:$0xff] %vm211_vm1, %v1055_v36  ;;  %v1063_v42 = vmul.f32 %v1016_v7, %v2022_v28  ;;  %v671_v16 = vsel %vm2110_vm6, %v670_v48, %v666_v0  ;;  %v786_v22 = vsel %vm785_vm0, %v1364_v43, %v782_v34  ;;  %vm788_vm2 = vcmp.eq.f32.partialorder %v787_v13, 8.507059e+37  ;;  %v1368_v28 = vpop.eup %1367 }
 0x122   : > { %v1040_v30 = vmul.f32 %v671_v16, %v2029_v31  ;;  %v902_v33 = vadd.f32 %v1366_v59, %v901_v11  ;;  %vm903_vm3 = vweird.f32 %v2082_v29  ;;  %v791_v8 = vsel %vm788_vm2, %v790_v20, %v786_v22 }
 0x123   : > { %1095 = vst.msk [vmem:[%s1586_s25 + $0xf0] sm:$0xff] %vm211_vm1, %v1063_v42  ;;  %vm905_vm4 = vmor %vm903_vm3, %vm904_vm15  ;;  %v910_v31 = vor.u32 1.1754944e-38, %v909_v37  ;;  %v1048_v21 = vmul.f32 %v791_v8, %v2031_v52  ;;  %vm908_vm5 = vcmp.eq.f32.partialorder %v907_v19, 8.507059e+37  ;;  %v1019_v39 = vmul.f32 %v1368_v28, %v2121_v6 }
 0x124   : > { %1072 = vst.msk [vmem:[%s1586_s25 + $0x38] sm:$0xff] %vm211_vm1, %v1040_v30  ;;  %v906_v32 = vsel %vm905_vm4, %v1366_v59, %v902_v33  ;;  %v1029_v41 = vand.u32 2147483648, %v2121_v6  ;;  %vm1024_vm6 = vweird.f32 %v1368_v28  ;;  %v1027_v44 = vand.u32 2147483647, %v2121_v6 }
 0x125   : > { %v911_v2 = vsel %vm908_vm5, %v910_v31, %v906_v32  ;;  %1080 = vst.msk [vmem:[%s1586_s25 + $0x78] sm:$0xff] %vm211_vm1, %v1048_v21  ;;  %v1020_v29 = vsub.f32 1.0, %v1019_v39  ;;  %vm1023_vm7 = vweird.f32 %v2121_v6 }
 0x126   : > { %v1056_v27 = vmul.f32 %v911_v2, %v2033_v45  ;;  %vm1025_vm8 = vmor %vm1023_vm7, %vm1024_vm6  ;;  %v1030_v49 = vor.u32 1.1754944e-38, %v1029_v41  ;;  %vm1028_vm9 = vcmp.eq.f32.partialorder %v1027_v44, 8.507059e+37 }
 0x127   : > { %v1021_v26 = vmul.f32 %v1368_v28, %v1020_v29 }
 0x128   : > { %1088 = vst.msk [vmem:[%s1586_s25 + $0xb8] sm:$0xff] %vm211_vm1, %v1056_v27 }
 0x129   : > { %v1022_v52 = vadd.f32 %v1368_v28, %v1021_v26 }
 0x12b   : > { %v1026_v50 = vsel %vm1025_vm8, %v1368_v28, %v1022_v52 }
 0x12c   : > { %v1031_v51 = vsel %vm1028_vm9, %v1030_v49, %v1026_v50 }
 0x12d   : > { %v1064_v53 = vmul.f32 %v1031_v51, %v2051_v3 }
 0x12f   : > { %1096 = vst.msk [vmem:[%s1586_s25 + $0xf8] sm:$0xff] %vm211_vm1, %v1064_v53 }
 0x130 PF: > { %s13_s12 = sadd.s32 1, %s1376_s12  }
 0x131   : > { %p10_p4 = scmp.ge.s32.totalorder %s13_s12, 4  }
 0x133   :  { %12 = sbr.rel (!%p10_p4) target bundleno = 1 (0x1), region = 62 }

// kernel: c3_forward.5
= control target key start
LH: loop header
LB: loop body
LE: loop exit
PB: predicated region body
PF: predicated region fallthrough
CT: control target
= control target key end

     0   :  { %s1404_s14 = smov 0   ;;  %s2174_s0 = inlined_call_operand.vmem [shape: f32[512,2], index: 0, kind: input, shape index: {}]   ;;  %s2175_s1 = inlined_call_operand.vmem [shape: f32[2,1], index: 1, kind: input, shape index: {}]   ;;  %s2176_s2 = inlined_call_operand.<no memory space> [shape: f32[1,1], index: 2, kind: input, shape index: {}]   ;;  %s2177_s3 = inlined_call_operand.vmem [shape: f32[512,1], index: 3, kind: output, shape index: {}]  }
   0x1   :  { %v8_v0 = vstv %s2176_s2 }
   0x2   :  { %9 = vst [vmem:[#allocation2] sm:$0x1] %v8_v0 }
   0x3 LB: > { %s1156_s15 = sadd.s32 4294967295, %s1379_s14   ;;  %p1160_p0 = scmp.ge.s32.totalorder %s1379_s14, 1  ;;  %s1379_s14 = sphi %s1404_s14, %s15_s14  }
   0x4   : > { %p140_p1 = scmp.lt.s32.totalorder %s1379_s14, 3 }
   0x6   : > { %p141_p2 = pnand %p1160_p0, %p140_p1 }
   0x7   : > { %s1161_s2 = sshll.u32 (!%p141_p2), %s1156_s15, 5 }
   0x8   : > { %144 = sbr.rel (%p141_p2) target bundleno = 306 (0x132), region = 32  ;;  %p165_p3 = scmp.lt.s32.totalorder (!%p141_p2), %s1161_s2, 63 }
   0xd   : > { %v208_v1 = vld [vmem:[%s2175_s1] sm:$0x3]  ;;  %vm310_vm0 = vcmask 1041408   ;;  %s2229_s2 = smov (!%p165_p3, %s1161_s2), 63  ;;  %vm213_vm1 = vcmask 15360   ;;  %vm1067_vm5 = vcmask 7168  }
   0xe   : > { %1165 = vmatpush.msk.msra.mxu0 %vm310_vm0, %v208_v1  ;;  %1232 = vmatpush.msk.msra.mxu1 %vm310_vm0, %v208_v1  ;;  %s1162_s18 = sshll.u32 %s2229_s2, 3  ;;  %v1489_v34 = vld [vmem:[#allocation2] ss:$0 sm:$0xff] }
   0xf   : > { %1233 = vmatpush.msk.msra.mxu2 %vm310_vm0, %v208_v1  ;;  %1234 = vmatpush.msk.msra.mxu3 %vm310_vm0, %v208_v1  ;;  %s1423_s21 = scalar_lea.vmem %s2174_s0, %s1162_s18  ;;  %s1589_s24 = scalar_lea.vmem %s2177_s3, %s1162_s18 }
  0x10   : > { %v176_v2 = vld [vmem:[%s1423_s21] sm:$0xff]  ;;  %v177_v6 = vld [vmem:[%s1423_s21 + $0x8] sm:$0xff]  ;;  %v178_v10 = vld [vmem:[%s1423_s21 + $0x10] sm:$0xff] }
  0x11   : > { %v184_v3 = vld [vmem:[%s1423_s21 + $0x40] sm:$0xff]  ;;  %1166 = vmatmul.msk.f32.vlgmr.msra.gmra.mxu0 %vm213_vm1, %v176_v2  ;;  %v185_v7 = vld [vmem:[%s1423_s21 + $0x48] sm:$0xff]  ;;  %v186_v11 = vld [vmem:[%s1423_s21 + $0x50] sm:$0xff] }
  0x12   : > { %v192_v4 = vld [vmem:[%s1423_s21 + $0x80] sm:$0xff]  ;;  %1174 = vmatmul.msk.f32.vlgmr.msra.gmra.mxu1 %vm213_vm1, %v184_v3  ;;  %v193_v8 = vld [vmem:[%s1423_s21 + $0x88] sm:$0xff]  ;;  %v194_v12 = vld [vmem:[%s1423_s21 + $0x90] sm:$0xff] }
  0x13   : > { %v200_v5 = vld [vmem:[%s1423_s21 + $0xc0] sm:$0xff]  ;;  %1182 = vmatmul.msk.f32.vlgmr.msra.gmra.mxu2 %vm213_vm1, %v192_v4  ;;  %v201_v9 = vld [vmem:[%s1423_s21 + $0xc8] sm:$0xff]  ;;  %v202_v13 = vld [vmem:[%s1423_s21 + $0xd0] sm:$0xff] }
  0x14   : > { %1190 = vmatmul.msk.f32.vlgmr.msra.gmra.mxu3 %vm213_vm1, %v200_v5  ;;  %v179_v14 = vld [vmem:[%s1423_s21 + $0x18] sm:$0xff]  ;;  %v180_v18 = vld [vmem:[%s1423_s21 + $0x20] sm:$0xff]  ;;  %v181_v22 = vld [vmem:[%s1423_s21 + $0x28] sm:$0xff] }
  0x15   : > { %v187_v15 = vld [vmem:[%s1423_s21 + $0x58] sm:$0xff]  ;;  %v188_v19 = vld [vmem:[%s1423_s21 + $0x60] sm:$0xff]  ;;  %v189_v23 = vld [vmem:[%s1423_s21 + $0x68] sm:$0xff] }
  0x16   : > { %v195_v16 = vld [vmem:[%s1423_s21 + $0x98] sm:$0xff]  ;;  %v196_v20 = vld [vmem:[%s1423_s21 + $0xa0] sm:$0xff]  ;;  %v197_v24 = vld [vmem:[%s1423_s21 + $0xa8] sm:$0xff] }
  0x17   : > { %v203_v17 = vld [vmem:[%s1423_s21 + $0xd8] sm:$0xff]  ;;  %v204_v21 = vld [vmem:[%s1423_s21 + $0xe0] sm:$0xff]  ;;  %v205_v25 = vld [vmem:[%s1423_s21 + $0xe8] sm:$0xff] }
  0x18   : > { %v182_v26 = vld [vmem:[%s1423_s21 + $0x30] sm:$0xff]  ;;  %v183_v30 = vld [vmem:[%s1423_s21 + $0x38] sm:$0xff] }
  0x19   : > { %1167 = vmatmul.msk.f32.gmra.mxu0 %vm213_vm1, %v177_v6  ;;  %v190_v27 = vld [vmem:[%s1423_s21 + $0x70] sm:$0xff]  ;;  %v191_v31 = vld [vmem:[%s1423_s21 + $0x78] sm:$0xff] }
  0x1a   : > { %1175 = vmatmul.msk.f32.gmra.mxu1 %vm213_vm1, %v185_v7  ;;  %v198_v28 = vld [vmem:[%s1423_s21 + $0xb0] sm:$0xff]  ;;  %v199_v32 = vld [vmem:[%s1423_s21 + $0xb8] sm:$0xff] }
  0x1b   : > { %1183 = vmatmul.msk.f32.gmra.mxu2 %vm213_vm1, %v193_v8  ;;  %v206_v29 = vld [vmem:[%s1423_s21 + $0xf0] sm:$0xff]  ;;  %v207_v33 = vld [vmem:[%s1423_s21 + $0xf8] sm:$0xff] }
  0x1c   : > { %1191 = vmatmul.msk.f32.gmra.mxu3 %vm213_vm1, %v201_v9 }
  0x21   : > { %1168 = vmatmul.msk.f32.gmra.mxu0 %vm213_vm1, %v178_v10 }
  0x22   : > { %1176 = vmatmul.msk.f32.gmra.mxu1 %vm213_vm1, %v186_v11 }
  0x23   : > { %1184 = vmatmul.msk.f32.gmra.mxu2 %vm213_vm1, %v194_v12 }
  0x24   : > { %1192 = vmatmul.msk.f32.gmra.mxu3 %vm213_vm1, %v202_v13 }
  0x29   : > { %1169 = vmatmul.msk.f32.gmra.mxu0 %vm213_vm1, %v179_v14 }
  0x2a   : > { %1177 = vmatmul.msk.f32.gmra.mxu1 %vm213_vm1, %v187_v15 }
  0x2b   : > { %1185 = vmatmul.msk.f32.gmra.mxu2 %vm213_vm1, %v195_v16 }
  0x2c   : > { %1193 = vmatmul.msk.f32.gmra.mxu3 %vm213_vm1, %v203_v17 }
  0x31   : > { %1170 = vmatmul.msk.f32.gmra.mxu0 %vm213_vm1, %v180_v18 }
  0x32   : > { %1178 = vmatmul.msk.f32.gmra.mxu1 %vm213_vm1, %v188_v19 }
  0x33   : > { %1186 = vmatmul.msk.f32.gmra.mxu2 %vm213_vm1, %v196_v20 }
  0x34   : > { %1194 = vmatmul.msk.f32.gmra.mxu3 %vm213_vm1, %v204_v21 }
  0x39   : > { %1171 = vmatmul.msk.f32.gmra.mxu0 %vm213_vm1, %v181_v22 }
  0x3a   : > { %1179 = vmatmul.msk.f32.gmra.mxu1 %vm213_vm1, %v189_v23 }
  0x3b   : > { %1187 = vmatmul.msk.f32.gmra.mxu2 %vm213_vm1, %v197_v24 }
  0x3c   : > { %1195 = vmatmul.msk.f32.gmra.mxu3 %vm213_vm1, %v205_v25 }
  0x41   : > { %1172 = vmatmul.msk.f32.gmra.mxu0 %vm213_vm1, %v182_v26 }
  0x42   : > { %1180 = vmatmul.msk.f32.gmra.mxu1 %vm213_vm1, %v190_v27 }
  0x43   : > { %1188 = vmatmul.msk.f32.gmra.mxu2 %vm213_vm1, %v198_v28 }
  0x44   : > { %1196 = vmatmul.msk.f32.gmra.mxu3 %vm213_vm1, %v206_v29 }
  0x49   : > { %1173 = vmatmul.msk.f32.gmra.mxu0 %vm213_vm1, %v183_v30 }
  0x4a   : > { %1181 = vmatmul.msk.f32.gmra.mxu1 %vm213_vm1, %v191_v31 }
  0x4b   : > { %1189 = vmatmul.msk.f32.gmra.mxu2 %vm213_vm1, %v199_v32 }
  0x4c   : > { %1197 = vmatmul.msk.f32.gmra.mxu3 %vm213_vm1, %v207_v33 }
  0x8e   : > { %v331_v35 = vpop.f32.mrf.mxu0 }
  0x8f   : > { %v355_v36 = vpop.f32.mrf.mxu1  ;;  %v1492_v37 = vadd.f32 %v1489_v34, %v331_v35 }
  0x90   : > { %v1495_v38 = vadd.f32 %v1489_v34, %v355_v36 }
  0x91   : > { %v1198_v39 = vmul.f32 -1.442695, %v1492_v37 }
  0x92   : > { %v1206_v40 = vmul.f32 -1.442695, %v1495_v38 }
  0x93   : > { %1244 = vpow2.f32 %v1198_v39 }
  0x94   : > { %1246 = vpow2.f32 %v1206_v40 }
  0x96   : > { %v379_v41 = vpop.f32.mrf.mxu2  ;;  %v334_v45 = vpop.f32.mrf.mxu0 }
  0x97   : > { %v403_v42 = vpop.f32.mrf.mxu3  ;;  %v1500_v43 = vadd.f32 %v1489_v34, %v379_v41  ;;  %v358_v46 = vpop.f32.mrf.mxu1  ;;  %v1506_v47 = vadd.f32 %v1489_v34, %v334_v45 }
  0x98   : > { %v1503_v44 = vadd.f32 %v1489_v34, %v403_v42  ;;  %v1509_v48 = vadd.f32 %v1489_v34, %v358_v46 }
  0x99   : > { %v1214_v49 = vmul.f32 -1.442695, %v1500_v43  ;;  %v1245_v51 = vpop.eup %1244  ;;  %v1199_v54 = vmul.f32 -1.442695, %v1506_v47 }
  0x9a   : > { %v1222_v50 = vmul.f32 -1.442695, %v1503_v44  ;;  %v1247_v52 = vpop.eup %1246  ;;  %v1513_v53 = vadd.f32 1.0, %v1245_v51  ;;  %v1207_v56 = vmul.f32 -1.442695, %v1509_v48 }
  0x9b   : > { %1248 = vpow2.f32 %v1214_v49  ;;  %v1516_v55 = vadd.f32 1.0, %v1247_v52 }
  0x9c   : > { %1250 = vpow2.f32 %v1222_v50  ;;  %v564_v61 = vand.u32 2147483647, %v1513_v53  ;;  %v566_v62 = vand.u32 2147483648, %v1513_v53  ;;  %vm560_vm2 = vweird.f32 %v1513_v53 }
  0x9d   : > { %1252 = vrcp.f32 %v1513_v53  ;;  %v684_v0 = vand.u32 2147483647, %v1516_v55  ;;  %v686_v1 = vand.u32 2147483648, %v1516_v55  ;;  %vm680_vm3 = vweird.f32 %v1516_v55 }
  0x9e   : > { %1254 = vrcp.f32 %v1516_v55  ;;  %v382_v57 = vpop.f32.mrf.mxu2  ;;  %v337_v60 = vpop.f32.mrf.mxu0  ;;  %vm1542_vm4 = vcmp.eq.f32.partialorder %v564_v61, 8.507059e+37  ;;  %v567_v13 = vor.u32 1.1754944e-38, %v566_v62 }
  0x9f   : > { %v406_v58 = vpop.f32.mrf.mxu3  ;;  %1256 = vpow2.f32 %v1199_v54  ;;  %v1522_v59 = vadd.f32 %v1489_v34, %v382_v57  ;;  %v1535_v6 = vadd.f32 %v1489_v34, %v337_v60  ;;  %v361_v9 = vpop.f32.mrf.mxu1  ;;  %vm1548_vm6 = vcmp.eq.f32.partialorder %v684_v0, 8.507059e+37 }
  0xa0   : > { %1258 = vpow2.f32 %v1207_v56  ;;  %v1530_v3 = vadd.f32 %v1489_v34, %v406_v58  ;;  %v687_v17 = vor.u32 1.1754944e-38, %v686_v1  ;;  %v1556_v22 = vadd.f32 %v1489_v34, %v361_v9 }
  0xa1   : > { %v1249_v63 = vpop.eup %1248  ;;  %v1215_v2 = vmul.f32 -1.442695, %v1522_v59  ;;  %v1200_v21 = vmul.f32 -1.442695, %v1535_v6 }
  0xa2   : > { %v1251_v4 = vpop.eup %1250  ;;  %v1532_v5 = vadd.f32 1.0, %v1249_v63  ;;  %v1223_v18 = vmul.f32 -1.442695, %v1530_v3  ;;  %v1569_v35 = vmul.f32 -1.442695, %v1556_v22 }
  0xa3   : > { %v1253_v7 = vpop.eup %1252  ;;  %v1539_v8 = vadd.f32 1.0, %v1251_v4 }
  0xa4   : > { %v1255_v10 = vpop.eup %1254  ;;  %v556_v11 = vmul.f32 %v1253_v7, %v1513_v53  ;;  %1260 = vrcp.f32 %v1532_v5  ;;  %vm561_vm7 = vweird.f32 %v1253_v7  ;;  %v804_v24 = vand.u32 2147483647, %v1532_v5 }
  0xa5   : > { %v1257_v14 = vpop.eup %1256  ;;  %v676_v15 = vmul.f32 %v1255_v10, %v1516_v55  ;;  %1262 = vpow2.f32 %v1215_v2  ;;  %v806_v25 = vand.u32 2147483648, %v1532_v5  ;;  %v926_v27 = vand.u32 2147483648, %v1539_v8  ;;  %vm562_vm10 = vmor %vm560_vm2, %vm561_vm7 }
  0xa6   : > { %v1259_v19 = vpop.eup %1258  ;;  %v557_v20 = vsub.f32 1.0, %v556_v11  ;;  %1264 = vrcp.f32 %v1539_v8  ;;  %v1561_v28 = vadd.f32 1.0, %v1257_v14  ;;  %vm681_vm8 = vweird.f32 %v1255_v10  ;;  %v385_v42 = vpop.f32.mrf.mxu2 }
  0xa7   : > { %v677_v23 = vsub.f32 1.0, %v676_v15  ;;  %v1563_v29 = vadd.f32 1.0, %v1259_v19  ;;  %v924_v31 = vand.u32 2147483647, %v1539_v8  ;;  %1266 = vpow2.f32 %v1223_v18  ;;  %vm682_vm13 = vmor %vm680_vm3, %vm681_vm8 }
  0xa8   : > { %v558_v26 = vmul.f32 %v1253_v7, %v557_v20  ;;  %vm800_vm9 = vweird.f32 %v1532_v5  ;;  %1268 = vrcp.f32 %v1561_v28  ;;  %vm1575_vm11 = vcmp.eq.f32.partialorder %v804_v24, 8.507059e+37 }
  0xa9   : > { %v678_v30 = vmul.f32 %v1255_v10, %v677_v23  ;;  %vm920_vm12 = vweird.f32 %v1539_v8  ;;  %v807_v49 = vor.u32 1.1754944e-38, %v806_v25  ;;  %v927_v50 = vor.u32 1.1754944e-38, %v926_v27 }
  0xaa   : > { %v1261_v32 = vpop.eup %1260  ;;  %v559_v33 = vadd.f32 %v1253_v7, %v558_v26  ;;  %1270 = vrcp.f32 %v1563_v29  ;;  %vm1594_vm14 = vcmp.eq.f32.partialorder %v924_v31, 8.507059e+37  ;;  %v579_v58 = vand.u32 2147483647, %v1561_v28 }
  0xab   : > { %v1263_v36 = vpop.eup %1262  ;;  %v679_v39 = vadd.f32 %v1255_v10, %v678_v30  ;;  %v796_v40 = vmul.f32 %v1261_v32, %v1532_v5  ;;  %v1603_v60 = vadd.f32 %v1489_v34, %v385_v42  ;;  %vm801_vm15 = vweird.f32 %v1261_v32  ;;  %v409_v30 = vpop.f32.mrf.mxu3 }
  0xac   : > { %v1265_v45 = vpop.eup %1264  ;;  %v563_v46 = vsel %vm562_vm10, %v1253_v7, %v559_v33  ;;  %vm575_vm0 = vweird.f32 %v1561_v28  ;;  %v1610_v2 = vadd.f32 1.0, %v1263_v36  ;;  %1272 = vpow2.f32 %v1200_v21  ;;  %vm802_vm2 = vmor %vm800_vm9, %vm801_vm15 }
  0xad   : > { %v568_v51 = vsel %vm1542_vm4, %v567_v13, %v563_v46  ;;  %v683_v52 = vsel %vm682_vm13, %v1255_v10, %v679_v39  ;;  %v797_v53 = vsub.f32 1.0, %v796_v40  ;;  %v916_v54 = vmul.f32 %v1265_v45, %v1539_v8  ;;  %v1267_v61 = vpop.eup %1266 }
  0xae   : > { %v1035_v56 = vmul.f32 %v568_v51, %v1492_v37  ;;  %v688_v57 = vsel %vm1548_vm6, %v687_v17, %v683_v52  ;;  %v1269_v1 = vpop.eup %1268  ;;  %v581_v37 = vand.u32 2147483648, %v1561_v28  ;;  %vm921_vm1 = vweird.f32 %v1265_v45 }
  0xaf   : > { %v1043_v62 = vmul.f32 %v688_v57, %v1495_v38  ;;  %v798_v63 = vmul.f32 %v1261_v32, %v797_v53  ;;  %v917_v0 = vsub.f32 1.0, %v916_v54  ;;  %v571_v38 = vmul.f32 %v1269_v1, %v1561_v28  ;;  %vm922_vm4 = vmor %vm920_vm12, %vm921_vm1  ;;  %v364_v57 = vpop.f32.mrf.mxu1 }
  0xb0   : > { %1068 = vst.msk [vmem:[%s1589_s24] sm:$0xff] %vm1067_vm5, %v1035_v56  ;;  %v1271_v9 = vpop.eup %1270  ;;  %vm1617_vm3 = vcmp.eq.f32.partialorder %v579_v58, 8.507059e+37  ;;  %v699_v11 = vand.u32 2147483647, %v1563_v29  ;;  %1274 = vrcp.f32 %v1610_v2  ;;  %v1623_v12 = vadd.f32 1.0, %v1267_v61 }
  0xb1   : > { %1076 = vst.msk [vmem:[%s1589_s24 + $0x40] sm:$0xff] %vm1067_vm5, %v1043_v62  ;;  %v799_v4 = vadd.f32 %v1261_v32, %v798_v63  ;;  %v918_v7 = vmul.f32 %v1265_v45, %v917_v0  ;;  %v572_v15 = vsub.f32 1.0, %v571_v38  ;;  %v691_v16 = vmul.f32 %v1271_v9, %v1563_v29 }
  0xb2   : > { %vm576_vm6 = vweird.f32 %v1269_v1  ;;  %vm695_vm7 = vweird.f32 %v1563_v29  ;;  %v701_v17 = vand.u32 2147483648, %v1563_v29  ;;  %v1273_v23 = vpop.eup %1272  ;;  %v582_v25 = vor.u32 1.1754944e-38, %v581_v37  ;;  %v388_v37 = vpop.f32.mrf.mxu2 }
  0xb3   : > { %v803_v13 = vsel %vm802_vm2, %v1261_v32, %v799_v4  ;;  %v919_v14 = vadd.f32 %v1265_v45, %v918_v7  ;;  %v573_v20 = vmul.f32 %v1269_v1, %v572_v15  ;;  %v692_v21 = vsub.f32 1.0, %v691_v16  ;;  %vm577_vm10 = vmor %vm575_vm0, %vm576_vm6 }
  0xb4   : > { %v808_v5 = vsel %vm1575_vm11, %v807_v49, %v803_v13  ;;  %vm1635_vm8 = vcmp.eq.f32.partialorder %v699_v11, 8.507059e+37  ;;  %1276 = vrcp.f32 %v1623_v12  ;;  %vm696_vm9 = vweird.f32 %v1271_v9 }
  0xb5   : > { %v1051_v18 = vmul.f32 %v808_v5, %v1500_v43  ;;  %v923_v19 = vsel %vm922_vm4, %v1265_v45, %v919_v14  ;;  %v574_v43 = vadd.f32 %v1269_v1, %v573_v20  ;;  %v693_v27 = vmul.f32 %v1271_v9, %v692_v21  ;;  %vm697_vm11 = vmor %vm695_vm7, %vm696_vm9  ;;  %v412_v14 = vpop.f32.mrf.mxu3 }
  0xb6   : > { %v928_v24 = vsel %vm1594_vm14, %v927_v50, %v923_v19  ;;  %v1275_v31 = vpop.eup %1274  ;;  %v819_v32 = vand.u32 2147483647, %v1610_v2  ;;  %v821_v33 = vand.u32 2147483648, %v1610_v2  ;;  %v1648_v36 = vadd.f32 1.0, %v1273_v23  ;;  %v340_v50 = vpop.f32.mrf.mxu0 }
  0xb7   : > { %1084 = vst.msk [vmem:[%s1589_s24 + $0x80] sm:$0xff] %vm1067_vm5, %v1051_v18  ;;  %v1059_v8 = vmul.f32 %v928_v24, %v1503_v44  ;;  %1278 = vpow2.f32 %v1569_v35  ;;  %v578_v44 = vsel %vm577_vm10, %v1269_v1, %v574_v43  ;;  %v694_v39 = vadd.f32 %v1271_v9, %v693_v27 }
  0xb8   : > { %v702_v40 = vor.u32 1.1754944e-38, %v701_v17  ;;  %v811_v41 = vmul.f32 %v1275_v31, %v1610_v2  ;;  %v583_v28 = vsel %vm1617_vm3, %v582_v25, %v578_v44  ;;  %vm815_vm12 = vweird.f32 %v1610_v2 }
  0xb9   : > { %1092 = vst.msk [vmem:[%s1589_s24 + $0xc0] sm:$0xff] %vm1067_vm5, %v1059_v8  ;;  %v939_v42 = vand.u32 2147483647, %v1623_v12  ;;  %1280 = vrcp.f32 %v1648_v36  ;;  %v1036_v35 = vmul.f32 %v583_v28, %v1506_v47  ;;  %v698_v45 = vsel %vm697_vm11, %v1271_v9, %v694_v39 }
  0xba   : > { %v812_v46 = vsub.f32 1.0, %v811_v41  ;;  %v941_v49 = vand.u32 2147483648, %v1623_v12  ;;  %v1277_v51 = vpop.eup %1276  ;;  %v703_v52 = vsel %vm1635_vm8, %v702_v40, %v698_v45  ;;  %vm1665_vm13 = vcmp.eq.f32.partialorder %v819_v32, 8.507059e+37 }
  0xbb   : > { %v822_v53 = vor.u32 1.1754944e-38, %v821_v33  ;;  %v1216_v54 = vmul.f32 -1.442695, %v1603_v60  ;;  %1069 = vst.msk [vmem:[%s1589_s24 + $0x8] sm:$0xff] %vm1067_vm5, %v1036_v35  ;;  %v1044_v47 = vmul.f32 %v703_v52, %v1509_v48  ;;  %vm816_vm14 = vweird.f32 %v1275_v31 }
  0xbc   : > { %v813_v55 = vmul.f32 %v1275_v31, %v812_v46  ;;  %v931_v56 = vmul.f32 %v1277_v51, %v1623_v12  ;;  %vm935_vm15 = vweird.f32 %v1623_v12  ;;  %vm1675_vm0 = vcmp.eq.f32.partialorder %v939_v42, 8.507059e+37  ;;  %vm817_vm1 = vmor %vm815_vm12, %vm816_vm14 }
  0xbd   : > { %v1279_v58 = vpop.eup %1278  ;;  %1282 = vpow2.f32 %v1216_v54  ;;  %v1680_v62 = vadd.f32 %v1489_v34, %v409_v30  ;;  %1077 = vst.msk [vmem:[%s1589_s24 + $0x48] sm:$0xff] %vm1067_vm5, %v1044_v47  ;;  %v942_v0 = vor.u32 1.1754944e-38, %v941_v49  ;;  %vm590_vm2 = vweird.f32 %v1648_v36 }
  0xbe   : > { %v814_v63 = vadd.f32 %v1275_v31, %v813_v55  ;;  %v932_v48 = vsub.f32 1.0, %v931_v56  ;;  %v1684_v1 = vadd.f32 1.0, %v1279_v58  ;;  %v1692_v38 = vadd.f32 %v1489_v34, %v340_v50  ;;  %v343_v8 = vpop.f32.mrf.mxu0  ;;  %v391_v58 = vpop.f32.mrf.mxu2 }
  0xbf   : > { %v1281_v4 = vpop.eup %1280  ;;  %v1224_v7 = vmul.f32 -1.442695, %v1680_v62  ;;  %v1695_v9 = vadd.f32 %v1489_v34, %v364_v57  ;;  %vm936_vm3 = vweird.f32 %v1277_v51  ;;  %v594_v15 = vand.u32 2147483647, %v1648_v36  ;;  %v367_v57 = vpop.f32.mrf.mxu1 }
  0xc0   : > { %v818_v10 = vsel %vm817_vm1, %v1275_v31, %v814_v63  ;;  %v933_v11 = vmul.f32 %v1277_v51, %v932_v48  ;;  %v586_v13 = vmul.f32 %v1281_v4, %v1648_v36  ;;  %1284 = vrcp.f32 %v1684_v1  ;;  %vm937_vm4 = vmor %vm935_vm15, %vm936_vm3 }
  0xc1   : > { %v823_v2 = vsel %vm1665_vm13, %v822_v53, %v818_v10  ;;  %v1703_v16 = vadd.f32 %v1489_v34, %v388_v37  ;;  %v596_v19 = vand.u32 2147483648, %v1648_v36  ;;  %1286 = vpow2.f32 %v1224_v7 }
  0xc2   : > { %v1052_v5 = vmul.f32 %v823_v2, %v1522_v59  ;;  %v934_v17 = vadd.f32 %v1277_v51, %v933_v11  ;;  %v587_v18 = vsub.f32 1.0, %v586_v13  ;;  %v1201_v21 = vmul.f32 -1.442695, %v1692_v38 }
  0xc3   : > { %v1283_v20 = vpop.eup %1282  ;;  %v1209_v23 = vmul.f32 -1.442695, %v1695_v9  ;;  %v1712_v24 = vadd.f32 %v1489_v34, %v412_v14  ;;  %vm591_vm6 = vweird.f32 %v1281_v4  ;;  %v1217_v43 = vmul.f32 -1.442695, %v1703_v16 }
  0xc4   : > { %1085 = vst.msk [vmem:[%s1589_s24 + $0x88] sm:$0xff] %vm1067_vm5, %v1052_v5  ;;  %v938_v25 = vsel %vm937_vm4, %v1277_v51, %v934_v17  ;;  %v588_v59 = vmul.f32 %v1281_v4, %v587_v18  ;;  %v1716_v26 = vadd.f32 1.0, %v1283_v20  ;;  %1288 = vpow2.f32 %v1201_v21  ;;  %vm592_vm7 = vmor %vm590_vm2, %vm591_vm6 }
  0xc5   : > { %v943_v12 = vsel %vm1675_vm0, %v942_v0, %v938_v25  ;;  %v597_v31 = vor.u32 1.1754944e-38, %v596_v19  ;;  %v714_v33 = vand.u32 2147483647, %v1684_v1  ;;  %v1225_v44 = vmul.f32 -1.442695, %v1712_v24  ;;  %v415_v0 = vpop.f32.mrf.mxu3 }
  0xc6   : > { %v1060_v27 = vmul.f32 %v943_v12, %v1530_v3  ;;  %v589_v30 = vadd.f32 %v1281_v4, %v588_v59  ;;  %1290 = vrcp.f32 %v1716_v26  ;;  %v1285_v32 = vpop.eup %1284  ;;  %v1728_v39 = vadd.f32 %v1489_v34, %v343_v8  ;;  %v346_v11 = vpop.f32.mrf.mxu0 }
  0xc7   : > { %1292 = vpow2.f32 %v1209_v23  ;;  %vm595_vm8 = vcmp.eq.f32.partialorder %v594_v15, 8.507059e+37  ;;  %v706_v3 = vmul.f32 %v1285_v32, %v1684_v1  ;;  %v716_v41 = vand.u32 2147483648, %v1684_v1  ;;  %v1287_v28 = vpop.eup %1286 }
  0xc8   : > { %1093 = vst.msk [vmem:[%s1589_s24 + $0xc8] sm:$0xff] %vm1067_vm5, %v1060_v27  ;;  %v593_v40 = vsel %vm592_vm7, %v1281_v4, %v589_v30  ;;  %v834_v42 = vand.u32 2147483647, %v1716_v26  ;;  %v836_v35 = vand.u32 2147483648, %v1716_v26  ;;  %1294 = vpow2.f32 %v1217_v43 }
  0xc9   : > { %v598_v36 = vsel %vm595_vm8, %v597_v31, %v593_v40  ;;  %v707_v46 = vsub.f32 1.0, %v706_v3  ;;  %v1737_v49 = vadd.f32 1.0, %v1287_v28  ;;  %v1202_v50 = vmul.f32 -1.442695, %v1728_v39 }
  0xca   : > { %v1037_v45 = vmul.f32 %v598_v36, %v1535_v6  ;;  %v1289_v51 = vpop.eup %1288  ;;  %vm710_vm9 = vweird.f32 %v1684_v1  ;;  %vm1741_vm10 = vcmp.eq.f32.partialorder %v714_v33, 8.507059e+37  ;;  %1296 = vpow2.f32 %v1225_v44 }
  0xcb   : > { %v708_v53 = vmul.f32 %v1285_v32, %v707_v46  ;;  %vm711_vm11 = vweird.f32 %v1285_v32  ;;  %v717_v54 = vor.u32 1.1754944e-38, %v716_v41  ;;  %1298 = vrcp.f32 %v1737_v49 }
  0xcc   : > { %v1291_v29 = vpop.eup %1290  ;;  %1070 = vst.msk [vmem:[%s1589_s24 + $0x10] sm:$0xff] %vm1067_vm5, %v1037_v45  ;;  %vm830_vm12 = vweird.f32 %v1716_v26  ;;  %vm1750_vm13 = vcmp.eq.f32.partialorder %v834_v42, 8.507059e+37  ;;  %v1754_v56 = vadd.f32 1.0, %v1289_v51  ;;  %v837_v63 = vor.u32 1.1754944e-38, %v836_v35  ;;  %vm712_vm14 = vmor %vm710_vm9, %vm711_vm11 }
  0xcd   : > { %v1293_v6 = vpop.eup %1292  ;;  %v826_v47 = vmul.f32 %v1291_v29, %v1716_v26  ;;  %v709_v61 = vadd.f32 %v1285_v32, %v708_v53  ;;  %1300 = vpow2.f32 %v1202_v50  ;;  %v954_v7 = vand.u32 2147483647, %v1737_v49 }
  0xce   : > { %v1756_v48 = vadd.f32 1.0, %v1293_v6  ;;  %v1295_v37 = vpop.eup %1294  ;;  %v956_v10 = vand.u32 2147483648, %v1737_v49  ;;  %1302 = vrcp.f32 %v1754_v56  ;;  %v1766_v14 = vadd.f32 %v1489_v34, %v367_v57 }
  0xcf   : > { %v827_v4 = vsub.f32 1.0, %v826_v47  ;;  %v713_v13 = vsel %vm712_vm14, %v1285_v32, %v709_v61  ;;  %v1769_v2 = vadd.f32 %v1489_v34, %v391_v58  ;;  %vm831_vm15 = vweird.f32 %v1291_v29 }
  0xd0   : > { %1304 = vrcp.f32 %v1756_v48  ;;  %v1297_v15 = vpop.eup %1296  ;;  %v718_v1 = vsel %vm1741_vm10, %v717_v54, %v713_v13  ;;  %v1774_v17 = vadd.f32 %v1489_v34, %v415_v0  ;;  %vm950_vm0 = vweird.f32 %v1737_v49  ;;  %vm832_vm3 = vmor %vm830_vm12, %vm831_vm15 }
  0xd1   : > { %v828_v5 = vmul.f32 %v1291_v29, %v827_v4  ;;  %v1299_v18 = vpop.eup %1298  ;;  %v1045_v19 = vmul.f32 %v718_v1, %v1556_v22  ;;  %v609_v20 = vand.u32 2147483647, %v1754_v56  ;;  %v1780_v21 = vadd.f32 %v1489_v34, %v346_v11 }
  0xd2   : > { %v946_v25 = vmul.f32 %v1299_v18, %v1737_v49  ;;  %vm1783_vm1 = vcmp.eq.f32.partialorder %v954_v7, 8.507059e+37  ;;  %v957_v8 = vor.u32 1.1754944e-38, %v956_v10  ;;  %vm605_vm2 = vweird.f32 %v1754_v56 }
  0xd3   : > { %v829_v23 = vadd.f32 %v1291_v29, %v828_v5  ;;  %v1301_v12 = vpop.eup %1300  ;;  %1078 = vst.msk [vmem:[%s1589_s24 + $0x50] sm:$0xff] %vm1067_vm5, %v1045_v19  ;;  %v611_v22 = vand.u32 2147483648, %v1754_v56  ;;  %vm725_vm4 = vweird.f32 %v1756_v48  ;;  %v729_v43 = vand.u32 2147483647, %v1756_v48  ;;  %v370_v19 = vpop.f32.mrf.mxu1 }
  0xd4   : > { %v1795_v27 = vadd.f32 1.0, %v1295_v37  ;;  %v1303_v30 = vpop.eup %1302  ;;  %v947_v32 = vsub.f32 1.0, %v946_v25  ;;  %v731_v33 = vand.u32 2147483648, %v1756_v48  ;;  %v1798_v44 = vadd.f32 1.0, %v1297_v15 }
  0xd5   : > { %v833_v31 = vsel %vm832_vm3, %v1291_v29, %v829_v23  ;;  %vm951_vm6 = vweird.f32 %v1299_v18  ;;  %v601_v3 = vmul.f32 %v1303_v30, %v1754_v56  ;;  %vm1803_vm7 = vcmp.eq.f32.partialorder %v609_v20, 8.507059e+37 }
  0xd6   : > { %v1305_v40 = vpop.eup %1304  ;;  %v838_v26 = vsel %vm1750_vm13, %v837_v63, %v833_v31  ;;  %1306 = vrcp.f32 %v1795_v27  ;;  %v948_v36 = vmul.f32 %v1299_v18, %v947_v32  ;;  %v1810_v35 = vadd.f32 1.0, %v1301_v12  ;;  %vm952_vm9 = vmor %vm950_vm0, %vm951_vm6  ;;  %v394_v12 = vpop.f32.mrf.mxu2 }
  0xd7   : > { %v1053_v28 = vmul.f32 %v838_v26, %v1603_v60  ;;  %v721_v42 = vmul.f32 %v1305_v40, %v1756_v48  ;;  %v602_v45 = vsub.f32 1.0, %v601_v3  ;;  %v612_v46 = vor.u32 1.1754944e-38, %v611_v22 }
  0xd8   : > { %vm1812_vm8 = vcmp.eq.f32.partialorder %v729_v43, 8.507059e+37  ;;  %v849_v51 = vand.u32 2147483647, %v1795_v27  ;;  %v949_v52 = vadd.f32 %v1299_v18, %v948_v36  ;;  %v851_v53 = vand.u32 2147483648, %v1795_v27  ;;  %v418_v43 = vpop.f32.mrf.mxu3 }
  0xd9   : > { %1086 = vst.msk [vmem:[%s1589_s24 + $0x90] sm:$0xff] %vm1067_vm5, %v1053_v28  ;;  %v722_v29 = vsub.f32 1.0, %v721_v42  ;;  %1308 = vrcp.f32 %v1798_v44  ;;  %v603_v60 = vmul.f32 %v1303_v30, %v602_v45  ;;  %vm606_vm10 = vweird.f32 %v1303_v30 }
  0xda   : > { %v732_v54 = vor.u32 1.1754944e-38, %v731_v33  ;;  %v1210_v6 = vmul.f32 -1.442695, %v1766_v14  ;;  %v953_v47 = vsel %vm952_vm9, %v1299_v18, %v949_v52  ;;  %vm726_vm11 = vweird.f32 %v1305_v40  ;;  %vm607_vm13 = vmor %vm605_vm2, %vm606_vm10 }
  0xdb   : > { %v723_v55 = vmul.f32 %v1305_v40, %v722_v29  ;;  %1310 = vrcp.f32 %v1810_v35  ;;  %v958_v58 = vsel %vm1783_vm1, %v957_v8, %v953_v47  ;;  %v604_v61 = vadd.f32 %v1303_v30, %v603_v60  ;;  %vm727_vm15 = vmor %vm725_vm4, %vm726_vm11  ;;  %v349_v60 = vpop.f32.mrf.mxu0  ;;  %v373_v4 = vpop.f32.mrf.mxu1 }
  0xdc   : > { %v1307_v57 = vpop.eup %1306  ;;  %vm845_vm12 = vweird.f32 %v1795_v27  ;;  %v1218_v49 = vmul.f32 -1.442695, %v1769_v2  ;;  %v1061_v63 = vmul.f32 %v958_v58, %v1680_v62  ;;  %vm1834_vm14 = vcmp.eq.f32.partialorder %v849_v51, 8.507059e+37 }
  0xdd   : > { %v724_v0 = vadd.f32 %v1305_v40, %v723_v55  ;;  %v841_v37 = vmul.f32 %v1307_v57, %v1795_v27  ;;  %v852_v7 = vor.u32 1.1754944e-38, %v851_v53  ;;  %v608_v10 = vsel %vm607_vm13, %v1303_v30, %v604_v61 }
  0xde   : > { %vm965_vm0 = vweird.f32 %v1798_v44  ;;  %v969_v11 = vand.u32 2147483647, %v1798_v44  ;;  %v971_v62 = vand.u32 2147483648, %v1798_v44  ;;  %vm620_vm1 = vweird.f32 %v1810_v35  ;;  %1094 = vst.msk [vmem:[%s1589_s24 + $0xd0] sm:$0xff] %vm1067_vm5, %v1061_v63 }
  0xdf   : > { %v1309_v56 = vpop.eup %1308  ;;  %v613_v13 = vsel %vm1803_vm7, %v612_v46, %v608_v10  ;;  %v728_v15 = vsel %vm727_vm15, %v1305_v40, %v724_v0  ;;  %v842_v1 = vsub.f32 1.0, %v841_v37  ;;  %1312 = vpow2.f32 %v1210_v6 }
  0xe0   : > { %v1038_v48 = vmul.f32 %v613_v13, %v1692_v38  ;;  %v733_v5 = vsel %vm1812_vm8, %v732_v54, %v728_v15  ;;  %vm846_vm2 = vweird.f32 %v1307_v57  ;;  %v961_v18 = vmul.f32 %v1309_v56, %v1798_v44 }
  0xe1   : > { %v1311_v20 = vpop.eup %1310  ;;  %v1046_v23 = vmul.f32 %v733_v5, %v1695_v9  ;;  %v843_v25 = vmul.f32 %v1307_v57, %v842_v1  ;;  %v624_v59 = vand.u32 2147483647, %v1810_v35  ;;  %v626_v8 = vand.u32 2147483648, %v1810_v35  ;;  %vm847_vm4 = vmor %vm845_vm12, %vm846_vm2 }
  0xe2   : > { %1071 = vst.msk [vmem:[%s1589_s24 + $0x18] sm:$0xff] %vm1067_vm5, %v1038_v48  ;;  %v962_v38 = vsub.f32 1.0, %v961_v18  ;;  %vm966_vm3 = vweird.f32 %v1309_v56  ;;  %v616_v22 = vmul.f32 %v1311_v20, %v1810_v35  ;;  %1314 = vpow2.f32 %v1218_v49 }
  0xe3   : > { %1079 = vst.msk [vmem:[%s1589_s24 + $0x58] sm:$0xff] %vm1067_vm5, %v1046_v23  ;;  %v844_v30 = vadd.f32 %v1307_v57, %v843_v25  ;;  %v1226_v31 = vmul.f32 -1.442695, %v1774_v17  ;;  %v1203_v9 = vmul.f32 -1.442695, %v1780_v21  ;;  %v1863_v32 = vadd.f32 %v1489_v34, %v370_v19  ;;  %vm967_vm7 = vmor %vm965_vm0, %vm966_vm3 }
  0xe4   : > { %v963_v33 = vmul.f32 %v1309_v56, %v962_v38  ;;  %v617_v40 = vsub.f32 1.0, %v616_v22  ;;  %vm621_vm6 = vweird.f32 %v1311_v20  ;;  %v1869_v26 = vadd.f32 %v1489_v34, %v394_v12 }
  0xe5   : > { %v1313_v3 = vpop.eup %1312  ;;  %v848_v41 = vsel %vm847_vm4, %v1307_v57, %v844_v30  ;;  %1316 = vpow2.f32 %v1226_v31  ;;  %v1211_v28 = vmul.f32 -1.442695, %v1863_v32  ;;  %v1873_v36 = vadd.f32 %v1489_v34, %v418_v43  ;;  %vm622_vm10 = vmor %vm620_vm1, %vm621_vm6 }
  0xe6   : > { %v853_v42 = vsel %vm1834_vm14, %v852_v7, %v848_v41  ;;  %v964_v27 = vadd.f32 %v1309_v56, %v963_v33  ;;  %v618_v45 = vmul.f32 %v1311_v20, %v617_v40  ;;  %v1877_v46 = vadd.f32 1.0, %v1313_v3 }
  0xe7   : > { %v1054_v50 = vmul.f32 %v853_v42, %v1703_v16  ;;  %vm970_vm8 = vcmp.eq.f32.partialorder %v969_v11, 8.507059e+37  ;;  %v972_v51 = vor.u32 1.1754944e-38, %v971_v62  ;;  %1318 = vpow2.f32 %v1203_v9 }
  0xe8   : > { %v1315_v52 = vpop.eup %1314  ;;  %v968_v29 = vsel %vm967_vm7, %v1309_v56, %v964_v27  ;;  %v619_v53 = vadd.f32 %v1311_v20, %v618_v45  ;;  %vm625_vm9 = vcmp.eq.f32.partialorder %v624_v59, 8.507059e+37  ;;  %1320 = vrcp.f32 %v1877_v46 }
  0xe9   : > { %1087 = vst.msk [vmem:[%s1589_s24 + $0x98] sm:$0xff] %vm1067_vm5, %v1054_v50  ;;  %v973_v54 = vsel %vm970_vm8, %v972_v51, %v968_v29  ;;  %v627_v16 = vor.u32 1.1754944e-38, %v626_v8  ;;  %v1889_v44 = vadd.f32 1.0, %v1315_v52  ;;  %v1219_v6 = vmul.f32 -1.442695, %v1869_v26 }
  0xea   : > { %v1062_v47 = vmul.f32 %v973_v54, %v1712_v24  ;;  %v623_v55 = vsel %vm622_vm10, %v1311_v20, %v619_v53  ;;  %1322 = vpow2.f32 %v1211_v28  ;;  %v1227_v57 = vmul.f32 -1.442695, %v1873_v36 }
  0xeb   : > { %v1317_v58 = vpop.eup %1316  ;;  %v628_v61 = vsel %vm625_vm9, %v627_v16, %v623_v55  ;;  %v744_v49 = vand.u32 2147483647, %v1877_v46  ;;  %1324 = vrcp.f32 %v1889_v44  ;;  %v1897_v35 = vadd.f32 %v1489_v34, %v349_v60 }
  0xec   : > { %1095 = vst.msk [vmem:[%s1589_s24 + $0xd8] sm:$0xff] %vm1067_vm5, %v1062_v47  ;;  %v1039_v63 = vmul.f32 %v628_v61, %v1728_v39  ;;  %v746_v24 = vand.u32 2147483648, %v1877_v46  ;;  %vm740_vm11 = vweird.f32 %v1877_v46  ;;  %v1904_v37 = vadd.f32 1.0, %v1317_v58  ;;  %v397_v39 = vpop.f32.mrf.mxu2 }
  0xed   : > { %v1319_v0 = vpop.eup %1318  ;;  %1326 = vpow2.f32 %v1219_v6  ;;  %v864_v10 = vand.u32 2147483647, %v1889_v44  ;;  %v866_v11 = vand.u32 2147483648, %v1889_v44  ;;  %vm1913_vm12 = vcmp.eq.f32.partialorder %v744_v49, 8.507059e+37 }
  0xee   : > { %v1321_v7 = vpop.eup %1320  ;;  %1072 = vst.msk [vmem:[%s1589_s24 + $0x20] sm:$0xff] %vm1067_vm5, %v1039_v63  ;;  %v1910_v62 = vadd.f32 1.0, %v1319_v0  ;;  %1328 = vpow2.f32 %v1227_v57  ;;  %v1204_v15 = vmul.f32 -1.442695, %v1897_v35  ;;  %v747_v48 = vor.u32 1.1754944e-38, %v746_v24 }
  0xef   : > { %v736_v56 = vmul.f32 %v1321_v7, %v1877_v46  ;;  %1330 = vrcp.f32 %v1904_v37  ;;  %vm860_vm13 = vweird.f32 %v1889_v44  ;;  %v1922_v5 = vadd.f32 %v1489_v34, %v373_v4 }
  0xf0   : > { %v1323_v1 = vpop.eup %1322  ;;  %1332 = vrcp.f32 %v1910_v62  ;;  %v986_v20 = vand.u32 2147483648, %v1904_v37  ;;  %v1928_v25 = vadd.f32 %v1489_v34, %v397_v39  ;;  %vm1931_vm14 = vcmp.eq.f32.partialorder %v864_v10, 8.507059e+37 }
  0xf1   : > { %v1325_v18 = vpop.eup %1324  ;;  %v737_v19 = vsub.f32 1.0, %v736_v56  ;;  %v1925_v23 = vadd.f32 1.0, %v1323_v1  ;;  %v867_v12 = vor.u32 1.1754944e-38, %v866_v11  ;;  %v984_v38 = vand.u32 2147483647, %v1904_v37 }
  0xf2   : > { %v856_v59 = vmul.f32 %v1325_v18, %v1889_v44  ;;  %v641_v22 = vand.u32 2147483648, %v1910_v62  ;;  %vm741_vm15 = vweird.f32 %v1321_v7  ;;  %v639_v31 = vand.u32 2147483647, %v1910_v62 }
  0xf3   : > { %v1327_v43 = vpop.eup %1326  ;;  %v738_v30 = vmul.f32 %v1321_v7, %v737_v19  ;;  %1334 = vrcp.f32 %v1925_v23  ;;  %vm861_vm0 = vweird.f32 %v1325_v18  ;;  %vm980_vm1 = vweird.f32 %v1904_v37  ;;  %vm742_vm3 = vmor %vm740_vm11, %vm741_vm15 }
  0xf4   : > { %v1329_v34 = vpop.eup %1328  ;;  %v857_v9 = vsub.f32 1.0, %v856_v59  ;;  %vm635_vm2 = vweird.f32 %v1910_v62  ;;  %v987_v3 = vor.u32 1.1754944e-38, %v986_v20  ;;  %v1941_v41 = vadd.f32 1.0, %v1327_v43  ;;  %vm862_vm7 = vmor %vm860_vm13, %vm861_vm0 }
  0xf5   : > { %v1331_v33 = vpop.eup %1330  ;;  %v739_v40 = vadd.f32 %v1321_v7, %v738_v30  ;;  %1336 = vpow2.f32 %v1204_v15  ;;  %vm1946_vm4 = vcmp.eq.f32.partialorder %v984_v38, 8.507059e+37  ;;  %v642_v50 = vor.u32 1.1754944e-38, %v641_v22 }
  0xf6   : > { %v1333_v28 = vpop.eup %1332  ;;  %v858_v42 = vmul.f32 %v1325_v18, %v857_v9  ;;  %v976_v27 = vmul.f32 %v1331_v33, %v1904_v37  ;;  %v759_v51 = vand.u32 2147483647, %v1925_v23  ;;  %vm1952_vm6 = vcmp.eq.f32.partialorder %v639_v31, 8.507059e+37  ;;  %v421_v37 = vpop.f32.mrf.mxu3 }
  0xf7   : > { %v743_v52 = vsel %vm742_vm3, %v1321_v7, %v739_v40  ;;  %v631_v29 = vmul.f32 %v1333_v28, %v1910_v62  ;;  %v761_v46 = vand.u32 2147483648, %v1925_v23  ;;  %v1957_v60 = vadd.f32 1.0, %v1329_v34  ;;  %v376_v40 = vpop.f32.mrf.mxu1 }
  0xf8   : > { %v748_v54 = vsel %vm1913_vm12, %v747_v48, %v743_v52  ;;  %v859_v16 = vadd.f32 %v1325_v18, %v858_v42  ;;  %v977_v6 = vsub.f32 1.0, %v976_v27  ;;  %1338 = vrcp.f32 %v1941_v41  ;;  %v1372_v52 = vld [vmem:[#allocation2] ss:$0 sm:$0xff] }
  0xf9   : > { %v1335_v47 = vpop.eup %1334  ;;  %v1047_v55 = vmul.f32 %v748_v54, %v1766_v14  ;;  %vm981_vm8 = vweird.f32 %v1331_v33  ;;  %v632_v57 = vsub.f32 1.0, %v631_v29  ;;  %vm755_vm9 = vweird.f32 %v1925_v23 }
  0xfa   : > { %v863_v58 = vsel %vm862_vm7, %v1325_v18, %v859_v16  ;;  %v978_v61 = vmul.f32 %v1331_v33, %v977_v6  ;;  %v751_v49 = vmul.f32 %v1335_v47, %v1925_v23  ;;  %vm1968_vm10 = vcmp.eq.f32.partialorder %v759_v51, 8.507059e+37  ;;  %vm982_vm12 = vmor %vm980_vm1, %vm981_vm8 }
  0xfb   : > { %v1337_v24 = vpop.eup %1336  ;;  %1080 = vst.msk [vmem:[%s1589_s24 + $0x60] sm:$0xff] %vm1067_vm5, %v1047_v55  ;;  %v868_v14 = vsel %vm1931_vm14, %v867_v12, %v863_v58  ;;  %v633_v44 = vmul.f32 %v1333_v28, %v632_v57  ;;  %vm636_vm11 = vweird.f32 %v1333_v28  ;;  %v762_v0 = vor.u32 1.1754944e-38, %v761_v46 }
  0xfc   : > { %v1055_v4 = vmul.f32 %v868_v14, %v1769_v2  ;;  %v979_v7 = vadd.f32 %v1331_v33, %v978_v61  ;;  %v752_v10 = vsub.f32 1.0, %v751_v49  ;;  %1340 = vrcp.f32 %v1957_v60  ;;  %vm637_vm14 = vmor %vm635_vm2, %vm636_vm11 }
  0xfd   : > { %v634_v11 = vadd.f32 %v1333_v28, %v633_v44  ;;  %vm756_vm13 = vweird.f32 %v1335_v47  ;;  %vm875_vm15 = vweird.f32 %v1941_v41  ;;  %v879_v39 = vand.u32 2147483647, %v1941_v41 }
  0xfe   : > { %v1339_v56 = vpop.eup %1338  ;;  %1088 = vst.msk [vmem:[%s1589_s24 + $0xa0] sm:$0xff] %vm1067_vm5, %v1055_v4  ;;  %v983_v13 = vsel %vm982_vm12, %v1331_v33, %v979_v7  ;;  %v753_v2 = vmul.f32 %v1335_v47, %v752_v10  ;;  %v881_v15 = vand.u32 2147483648, %v1941_v41  ;;  %v1988_v1 = vadd.f32 1.0, %v1337_v24  ;;  %vm757_vm0 = vmor %vm755_vm9, %vm756_vm13  ;;  %v424_v58 = vpop.f32.mrf.mxu3 }
  0xff   : > { %v988_v48 = vsel %vm1946_vm4, %v987_v3, %v983_v13  ;;  %v638_v18 = vsel %vm637_vm14, %v1333_v28, %v634_v11  ;;  %v871_v19 = vmul.f32 %v1339_v56, %v1941_v41  ;;  %v999_v20 = vand.u32 2147483647, %v1957_v60  ;;  %v400_v3 = vpop.f32.mrf.mxu2 }
 0x100   : > { %v1063_v59 = vmul.f32 %v988_v48, %v1774_v17  ;;  %v643_v62 = vsel %vm1952_vm6, %v642_v50, %v638_v18  ;;  %v754_v8 = vadd.f32 %v1335_v47, %v753_v2  ;;  %v1001_v12 = vand.u32 2147483648, %v1957_v60 }
 0x101   : > { %v1040_v38 = vmul.f32 %v643_v62, %v1780_v21  ;;  %v872_v22 = vsub.f32 1.0, %v871_v19  ;;  %vm2002_vm1 = vcmp.eq.f32.partialorder %v879_v39, 8.507059e+37  ;;  %1342 = vrcp.f32 %v1988_v1  ;;  %v352_v21 = vpop.f32.mrf.mxu0 }
 0x102   : > { %v1341_v17 = vpop.eup %1340  ;;  %1096 = vst.msk [vmem:[%s1589_s24 + $0xe0] sm:$0xff] %vm1067_vm5, %v1063_v59  ;;  %v758_v30 = vsel %vm757_vm0, %v1335_v47, %v754_v8  ;;  %vm876_vm2 = vweird.f32 %v1339_v56  ;;  %v882_v31 = vor.u32 1.1754944e-38, %v881_v15  ;;  %vm995_vm3 = vweird.f32 %v1957_v60 }
 0x103   : > { %1073 = vst.msk [vmem:[%s1589_s24 + $0x28] sm:$0xff] %vm1067_vm5, %v1040_v38  ;;  %v763_v23 = vsel %vm1968_vm10, %v762_v0, %v758_v30  ;;  %v873_v34 = vmul.f32 %v1339_v56, %v872_v22  ;;  %v991_v9 = vmul.f32 %v1341_v17, %v1957_v60  ;;  %vm2015_vm4 = vcmp.eq.f32.partialorder %v999_v20, 8.507059e+37  ;;  %vm877_vm7 = vmor %vm875_vm15, %vm876_vm2 }
 0x104   : > { %v1048_v28 = vmul.f32 %v763_v23, %v1863_v32  ;;  %vm996_vm6 = vweird.f32 %v1341_v17  ;;  %v1002_v42 = vor.u32 1.1754944e-38, %v1001_v12  ;;  %v1212_v27 = vmul.f32 -1.442695, %v1922_v5 }
 0x105   : > { %v874_v45 = vadd.f32 %v1339_v56, %v873_v34  ;;  %v992_v50 = vsub.f32 1.0, %v991_v9  ;;  %v1220_v51 = vmul.f32 -1.442695, %v1928_v25  ;;  %v2022_v29 = vadd.f32 %v1372_v52, %v421_v37  ;;  %vm997_vm9 = vmor %vm995_vm3, %vm996_vm6 }
 0x106   : > { %1081 = vst.msk [vmem:[%s1589_s24 + $0x68] sm:$0xff] %vm1067_vm5, %v1048_v28  ;;  %1344 = vpow2.f32 %v1212_v27  ;;  %v2029_v53 = vadd.f32 %v1372_v52, %v352_v21  ;;  %v2031_v32 = vadd.f32 %v1372_v52, %v376_v40  ;;  %v2033_v46 = vadd.f32 %v1372_v52, %v400_v3 }
 0x107   : > { %v1343_v54 = vpop.eup %1342  ;;  %v878_v16 = vsel %vm877_vm7, %v1339_v56, %v874_v45  ;;  %v993_v6 = vmul.f32 %v1341_v17, %v992_v50  ;;  %1346 = vpow2.f32 %v1220_v51  ;;  %v1228_v47 = vmul.f32 -1.442695, %v2022_v29 }
 0x108   : > { %v883_v55 = vsel %vm2002_vm1, %v882_v31, %v878_v16  ;;  %v646_v41 = vmul.f32 %v1343_v54, %v1988_v1  ;;  %vm650_vm8 = vweird.f32 %v1988_v1  ;;  %v1205_v57 = vmul.f32 -1.442695, %v2029_v53 }
 0x109   : > { %v1056_v61 = vmul.f32 %v883_v55, %v1869_v26  ;;  %v994_v49 = vadd.f32 %v1341_v17, %v993_v6  ;;  %1348 = vpow2.f32 %v1228_v47  ;;  %v1213_v63 = vmul.f32 -1.442695, %v2031_v32 }
 0x10a   : > { %v647_v24 = vsub.f32 1.0, %v646_v41  ;;  %v654_v14 = vand.u32 2147483647, %v1988_v1  ;;  %1350 = vpow2.f32 %v1205_v57  ;;  %v1221_v44 = vmul.f32 -1.442695, %v2033_v46 }
 0x10b   : > { %1089 = vst.msk [vmem:[%s1589_s24 + $0xa8] sm:$0xff] %vm1067_vm5, %v1056_v61  ;;  %v998_v0 = vsel %vm997_vm9, %v1341_v17, %v994_v49  ;;  %v656_v26 = vand.u32 2147483648, %v1988_v1  ;;  %1352 = vpow2.f32 %v1213_v63  ;;  %v2051_v4 = vadd.f32 %v1372_v52, %v424_v58 }
 0x10c   : > { %v1345_v7 = vpop.eup %1344  ;;  %v1003_v60 = vsel %vm2015_vm4, %v1002_v42, %v998_v0  ;;  %v648_v10 = vmul.f32 %v1343_v54, %v647_v24  ;;  %vm651_vm10 = vweird.f32 %v1343_v54  ;;  %1354 = vpow2.f32 %v1221_v44 }
 0x10d   : > { %v1347_v11 = vpop.eup %1346  ;;  %v1064_v39 = vmul.f32 %v1003_v60, %v1873_v36  ;;  %v2056_v56 = vadd.f32 1.0, %v1345_v7  ;;  %vm652_vm11 = vmor %vm650_vm8, %vm651_vm10  ;;  %v657_v37 = vor.u32 1.1754944e-38, %v656_v26  ;;  %v1229_v48 = vmul.f32 -1.442695, %v2051_v4 }
 0x10e   : > { %v649_v13 = vadd.f32 %v1343_v54, %v648_v10  ;;  %v2058_v2 = vadd.f32 1.0, %v1347_v11  ;;  %vm655_vm12 = vcmp.eq.f32.partialorder %v654_v14, 8.507059e+37 }
 0x10f   : > { %v1349_v15 = vpop.eup %1348  ;;  %1097 = vst.msk [vmem:[%s1589_s24 + $0xe8] sm:$0xff] %vm1067_vm5, %v1064_v39  ;;  %1356 = vrcp.f32 %v2056_v56  ;;  %v774_v8 = vand.u32 2147483647, %v2056_v56  ;;  %v776_v38 = vand.u32 2147483648, %v2056_v56  ;;  %vm770_vm13 = vweird.f32 %v2056_v56 }
 0x110   : > { %v1351_v18 = vpop.eup %1350  ;;  %v653_v19 = vsel %vm652_vm11, %v1343_v54, %v649_v13  ;;  %1358 = vrcp.f32 %v2058_v2  ;;  %v2069_v1 = vadd.f32 1.0, %v1349_v15  ;;  %v894_v17 = vand.u32 2147483647, %v2058_v2 }
 0x111   : > { %v1353_v36 = vpop.eup %1352  ;;  %v658_v20 = vsel %vm655_vm12, %v657_v37, %v653_v19  ;;  %v2071_v12 = vadd.f32 1.0, %v1351_v18  ;;  %1360 = vpow2.f32 %v1229_v48  ;;  %vm2086_vm15 = vcmp.eq.f32.partialorder %v774_v8, 8.507059e+37 }
 0x112   : > { %v1355_v59 = vpop.eup %1354  ;;  %v1041_v62 = vmul.f32 %v658_v20, %v1897_v35  ;;  %1362 = vrcp.f32 %v2069_v1  ;;  %v2077_v22 = vadd.f32 1.0, %v1353_v36  ;;  %v896_v35 = vand.u32 2147483648, %v2058_v2 }
 0x113   : > { %1364 = vrcp.f32 %v2071_v12  ;;  %v2082_v30 = vadd.f32 1.0, %v1355_v59  ;;  %vm890_vm14 = vweird.f32 %v2058_v2  ;;  %v777_v34 = vor.u32 1.1754944e-38, %v776_v38 }
 0x114   : > { %1074 = vst.msk [vmem:[%s1589_s24 + $0x30] sm:$0xff] %vm1067_vm5, %v1041_v62  ;;  %v1014_v33 = vand.u32 2147483647, %v2069_v1  ;;  %v1016_v40 = vand.u32 2147483648, %v2069_v1  ;;  %v669_v28 = vand.u32 2147483647, %v2071_v12  ;;  %1366 = vrcp.f32 %v2077_v22 }
 0x115   : > { %v1357_v43 = vpop.eup %1356  ;;  %v671_v42 = vand.u32 2147483648, %v2071_v12  ;;  %vm2097_vm0 = vcmp.eq.f32.partialorder %v894_v17, 8.507059e+37  ;;  %v897_v51 = vor.u32 1.1754944e-38, %v896_v35  ;;  %1368 = vrcp.f32 %v2082_v30 }
 0x116   : > { %v1359_v31 = vpop.eup %1358  ;;  %v766_v21 = vmul.f32 %v1357_v43, %v2056_v56  ;;  %vm771_vm1 = vweird.f32 %v1357_v43  ;;  %vm1010_vm2 = vweird.f32 %v2069_v1  ;;  %vm665_vm3 = vweird.f32 %v2071_v12 }
 0x117   : > { %v886_v9 = vmul.f32 %v1359_v31, %v2058_v2  ;;  %v1361_v27 = vpop.eup %1360  ;;  %vm891_vm4 = vweird.f32 %v1359_v31  ;;  %vm2105_vm6 = vcmp.eq.f32.partialorder %v1014_v33, 8.507059e+37  ;;  %v1017_v41 = vor.u32 1.1754944e-38, %v1016_v40  ;;  %vm772_vm8 = vmor %vm770_vm13, %vm771_vm1 }
 0x118   : > { %v767_v3 = vsub.f32 1.0, %v766_v21  ;;  %v1363_v52 = vpop.eup %1362  ;;  %vm2110_vm7 = vcmp.eq.f32.partialorder %v669_v28, 8.507059e+37  ;;  %v672_v49 = vor.u32 1.1754944e-38, %v671_v42  ;;  %vm785_vm9 = vweird.f32 %v2077_v22  ;;  %vm892_vm10 = vmor %vm890_vm14, %vm891_vm4 }
 0x119   : > { %v887_v45 = vsub.f32 1.0, %v886_v9  ;;  %v1365_v16 = vpop.eup %1364  ;;  %v1006_v47 = vmul.f32 %v1363_v52, %v2069_v1  ;;  %v789_v14 = vand.u32 2147483647, %v2077_v22  ;;  %vm1011_vm11 = vweird.f32 %v1363_v52 }
 0x11a   : > { %v768_v54 = vmul.f32 %v1357_v43, %v767_v3  ;;  %v661_v58 = vmul.f32 %v1365_v16, %v2071_v12  ;;  %v1367_v44 = vpop.eup %1366  ;;  %v2121_v7 = vadd.f32 1.0, %v1361_v27  ;;  %vm666_vm12 = vweird.f32 %v1365_v16  ;;  %vm1012_vm13 = vmor %vm1010_vm2, %vm1011_vm11 }
 0x11b   : > { %v888_v6 = vmul.f32 %v1359_v31, %v887_v45  ;;  %v1007_v24 = vsub.f32 1.0, %v1006_v47  ;;  %v1369_v60 = vpop.eup %1368  ;;  %v781_v56 = vmul.f32 %v1367_v44, %v2077_v22  ;;  %v909_v20 = vand.u32 2147483647, %v2082_v30 }
 0x11c   : > { %v769_v57 = vadd.f32 %v1357_v43, %v768_v54  ;;  %v662_v26 = vsub.f32 1.0, %v661_v58  ;;  %v901_v19 = vmul.f32 %v1369_v60, %v2082_v30  ;;  %1370 = vrcp.f32 %v2121_v7 }
 0x11d   : > { %v889_v63 = vadd.f32 %v1359_v31, %v888_v6  ;;  %v1008_v39 = vmul.f32 %v1363_v52, %v1007_v24  ;;  %v782_v18 = vsub.f32 1.0, %v781_v56  ;;  %vm786_vm14 = vweird.f32 %v1367_v44 }
 0x11e   : > { %v773_v0 = vsel %vm772_vm8, %v1357_v43, %v769_v57  ;;  %v663_v15 = vmul.f32 %v1365_v16, %v662_v26  ;;  %v902_v62 = vsub.f32 1.0, %v901_v19  ;;  %v911_v38 = vand.u32 2147483648, %v2082_v30  ;;  %vm787_vm1 = vmor %vm785_vm9, %vm786_vm14 }
 0x11f   : > { %v778_v10 = vsel %vm2086_vm15, %v777_v34, %v773_v0  ;;  %v893_v11 = vsel %vm892_vm10, %v1359_v31, %v889_v63  ;;  %v1009_v48 = vadd.f32 %v1363_v52, %v1008_v39  ;;  %vm667_vm15 = vmor %vm665_vm3, %vm666_vm12  ;;  %v783_v59 = vmul.f32 %v1367_v44, %v782_v18 }
 0x120   : > { %v1049_v13 = vmul.f32 %v778_v10, %v1922_v5  ;;  %v898_v2 = vsel %vm2097_vm0, %v897_v51, %v893_v11  ;;  %v664_v36 = vadd.f32 %v1365_v16, %v663_v15  ;;  %v791_v5 = vand.u32 2147483648, %v2077_v22 }
 0x121   : > { %v1057_v37 = vmul.f32 %v898_v2, %v1928_v25  ;;  %v1013_v25 = vsel %vm1012_vm13, %v1363_v52, %v1009_v48  ;;  %vm906_vm0 = vweird.f32 %v1369_v60  ;;  %v784_v35 = vadd.f32 %v1367_v44, %v783_v59 }
 0x122   : > { %1082 = vst.msk [vmem:[%s1589_s24 + $0x70] sm:$0xff] %vm1067_vm5, %v1049_v13  ;;  %v1018_v8 = vsel %vm2105_vm6, %v1017_v41, %v1013_v25  ;;  %v668_v1 = vsel %vm667_vm15, %v1365_v16, %v664_v36  ;;  %v903_v12 = vmul.f32 %v1369_v60, %v902_v62  ;;  %v792_v21 = vor.u32 1.1754944e-38, %v791_v5 }
 0x123   : > { %1090 = vst.msk [vmem:[%s1589_s24 + $0xb0] sm:$0xff] %vm1067_vm5, %v1057_v37  ;;  %v1065_v43 = vmul.f32 %v1018_v8, %v2022_v29  ;;  %v673_v17 = vsel %vm2110_vm7, %v672_v49, %v668_v1  ;;  %v788_v23 = vsel %vm787_vm1, %v1367_v44, %v784_v35  ;;  %vm790_vm2 = vcmp.eq.f32.partialorder %v789_v14, 8.507059e+37  ;;  %v1371_v29 = vpop.eup %1370 }
 0x124   : > { %v1042_v31 = vmul.f32 %v673_v17, %v2029_v53  ;;  %v904_v34 = vadd.f32 %v1369_v60, %v903_v12  ;;  %vm905_vm3 = vweird.f32 %v2082_v30  ;;  %v793_v9 = vsel %vm790_vm2, %v792_v21, %v788_v23 }
 0x125   : > { %1098 = vst.msk [vmem:[%s1589_s24 + $0xf0] sm:$0xff] %vm1067_vm5, %v1065_v43  ;;  %vm907_vm4 = vmor %vm905_vm3, %vm906_vm0  ;;  %v912_v53 = vor.u32 1.1754944e-38, %v911_v38  ;;  %v1050_v22 = vmul.f32 %v793_v9, %v2031_v32  ;;  %vm910_vm6 = vcmp.eq.f32.partialorder %v909_v20, 8.507059e+37  ;;  %v1021_v40 = vmul.f32 %v1371_v29, %v2121_v7 }
 0x126   : > { %1075 = vst.msk [vmem:[%s1589_s24 + $0x38] sm:$0xff] %vm1067_vm5, %v1042_v31  ;;  %v908_v33 = vsel %vm907_vm4, %v1369_v60, %v904_v34  ;;  %v1031_v42 = vand.u32 2147483648, %v2121_v7  ;;  %vm1026_vm7 = vweird.f32 %v1371_v29  ;;  %v1029_v45 = vand.u32 2147483647, %v2121_v7 }
 0x127   : > { %v913_v3 = vsel %vm910_vm6, %v912_v53, %v908_v33  ;;  %1083 = vst.msk [vmem:[%s1589_s24 + $0x78] sm:$0xff] %vm1067_vm5, %v1050_v22  ;;  %v1022_v30 = vsub.f32 1.0, %v1021_v40  ;;  %vm1025_vm8 = vweird.f32 %v2121_v7 }
 0x128   : > { %v1058_v28 = vmul.f32 %v913_v3, %v2033_v46  ;;  %vm1027_vm9 = vmor %vm1025_vm8, %vm1026_vm7  ;;  %v1032_v50 = vor.u32 1.1754944e-38, %v1031_v42  ;;  %vm1030_vm10 = vcmp.eq.f32.partialorder %v1029_v45, 8.507059e+37 }
 0x129   : > { %v1023_v27 = vmul.f32 %v1371_v29, %v1022_v30 }
 0x12a   : > { %1091 = vst.msk [vmem:[%s1589_s24 + $0xb8] sm:$0xff] %vm1067_vm5, %v1058_v28 }
 0x12b   : > { %v1024_v32 = vadd.f32 %v1371_v29, %v1023_v27 }
 0x12d   : > { %v1028_v51 = vsel %vm1027_vm9, %v1371_v29, %v1024_v32 }
 0x12e   : > { %v1033_v52 = vsel %vm1030_vm10, %v1032_v50, %v1028_v51 }
 0x12f   : > { %v1066_v54 = vmul.f32 %v1033_v52, %v2051_v4 }
 0x131   : > { %1099 = vst.msk [vmem:[%s1589_s24 + $0xf8] sm:$0xff] %vm1067_vm5, %v1066_v54 }
 0x132 PF: > { %s15_s14 = sadd.s32 1, %s1379_s14  }
 0x133   : > { %p12_p4 = scmp.ge.s32.totalorder %s15_s14, 4  }
 0x135   :  { %14 = sbr.rel (!%p12_p4) target bundleno = 3 (0x3), region = 62 }

// kernel: c3_forward.7
= control target key start
LH: loop header
LB: loop body
LE: loop exit
PB: predicated region body
PF: predicated region fallthrough
CT: control target
= control target key end

     0   :  { %s1808_s18 = smov 0   ;;  %s2652_s0 = inlined_call_operand.vmem [shape: f32[512,2], index: 0, kind: input, shape index: {}]   ;;  %s2653_s1 = inlined_call_operand.vmem [shape: f32[512,2], index: 1, kind: input, shape index: {}]   ;;  %s2654_s2 = inlined_call_operand.vmem [shape: f32[2,4], index: 2, kind: input, shape index: {}]   ;;  %s2655_s3 = inlined_call_operand.vmem [shape: f32[2,4], index: 3, kind: input, shape index: {}]   ;;  %s2656_s4 = inlined_call_operand.vmem [shape: f32[1,4], index: 4, kind: input, shape index: {}]   ;;  %s2657_s5 = inlined_call_operand.vmem [shape: f32[512,4], index: 5, kind: output, shape index: {}]  }
   0x1 LB: > { %s1519_s19 = sadd.s32 4294967295, %s1776_s18   ;;  %p1523_p0 = scmp.ge.s32.totalorder %s1776_s18, 1  ;;  %s1776_s18 = sphi %s1808_s18, %s15_s18  }
   0x2   : > { %p199_p1 = scmp.lt.s32.totalorder %s1776_s18, 3 }
   0x4   : > { %p200_p2 = pnand %p1523_p0, %p199_p1 }
   0x5   : > { %s1524_s24 = sshll.u32 (!%p200_p2), %s1519_s19, 5 }
   0x6   : > { %203 = sbr.rel (%p200_p2) target bundleno = 318 (0x13e), region = 40  ;;  %p233_p3 = scmp.lt.s32.totalorder (!%p200_p2), %s1524_s24, 63 }
   0xb   : > { %v315_v0 = vld [vmem:[%s2655_s3] sm:$0x3]  ;;  %vm413_vm0 = vcmask 1041408   ;;  %s2705_s24 = smov (!%p233_p3, %s1524_s24), 63  ;;  %vm316_vm1 = vcmask 15360   ;;  %vm1418_vm2 = vcmask 31744  }
   0xc   : > { %v282_v1 = vld [vmem:[%s2654_s2] sm:$0x3]  ;;  %1530 = vmatpush.msk.msra.mxu0 %vm413_vm0, %v315_v0  ;;  %1630 = vmatpush.msk.msra.mxu2 %vm413_vm0, %v315_v0  ;;  %s1822_s25 = sshll.u32 %s2705_s24, 3 }
   0xd   : > { %1563 = vmatpush.msk.msra.mxu1 %vm413_vm0, %v282_v1  ;;  %1631 = vmatpush.msk.msra.mxu3 %vm413_vm0, %v282_v1  ;;  %s1828_s28 = scalar_lea.vmem %s2653_s1, %s1822_s25  ;;  %s1836_s6 = scalar_lea.vmem %s2652_s0, %s1822_s25 }
   0xe   : > { %v283_v2 = vld [vmem:[%s1828_s28] sm:$0xff]  ;;  %v284_v6 = vld [vmem:[%s1828_s28 + $0x8] sm:$0xff]  ;;  %v285_v10 = vld [vmem:[%s1828_s28 + $0x10] sm:$0xff]  ;;  %s2025_s11 = scalar_lea.vmem %s2657_s5, %s1822_s25 }
   0xf   : > { %v299_v3 = vld [vmem:[%s1828_s28 + $0x80] sm:$0xff]  ;;  %1531 = vmatmul.msk.f32.vlgmr.msra.gmra.mxu0 %vm316_vm1, %v283_v2  ;;  %v300_v7 = vld [vmem:[%s1828_s28 + $0x88] sm:$0xff]  ;;  %v301_v11 = vld [vmem:[%s1828_s28 + $0x90] sm:$0xff] }
  0x10   : > { %1547 = vmatmul.msk.f32.vlgmr.msra.gmra.mxu2 %vm316_vm1, %v299_v3  ;;  %v250_v4 = vld [vmem:[%s1836_s6] sm:$0xff]  ;;  %v251_v8 = vld [vmem:[%s1836_s6 + $0x8] sm:$0xff]  ;;  %v252_v12 = vld [vmem:[%s1836_s6 + $0x10] sm:$0xff] }
  0x11   : > { %v266_v5 = vld [vmem:[%s1836_s6 + $0x80] sm:$0xff]  ;;  %1564 = vmatmul.msk.f32.vlgmr.msra.gmra.mxu1 %vm316_vm1, %v250_v4  ;;  %v267_v9 = vld [vmem:[%s1836_s6 + $0x88] sm:$0xff]  ;;  %v268_v13 = vld [vmem:[%s1836_s6 + $0x90] sm:$0xff] }
  0x12   : > { %1580 = vmatmul.msk.f32.vlgmr.msra.gmra.mxu3 %vm316_vm1, %v266_v5  ;;  %v286_v14 = vld [vmem:[%s1828_s28 + $0x18] sm:$0xff]  ;;  %v287_v18 = vld [vmem:[%s1828_s28 + $0x20] sm:$0xff]  ;;  %v288_v22 = vld [vmem:[%s1828_s28 + $0x28] sm:$0xff] }
  0x13   : > { %v302_v15 = vld [vmem:[%s1828_s28 + $0x98] sm:$0xff]  ;;  %v303_v19 = vld [vmem:[%s1828_s28 + $0xa0] sm:$0xff]  ;;  %v304_v23 = vld [vmem:[%s1828_s28 + $0xa8] sm:$0xff] }
  0x14   : > { %v253_v16 = vld [vmem:[%s1836_s6 + $0x18] sm:$0xff]  ;;  %v254_v20 = vld [vmem:[%s1836_s6 + $0x20] sm:$0xff]  ;;  %v255_v24 = vld [vmem:[%s1836_s6 + $0x28] sm:$0xff] }
  0x15   : > { %v269_v17 = vld [vmem:[%s1836_s6 + $0x98] sm:$0xff]  ;;  %v270_v21 = vld [vmem:[%s1836_s6 + $0xa0] sm:$0xff]  ;;  %v271_v25 = vld [vmem:[%s1836_s6 + $0xa8] sm:$0xff] }
  0x16   : > { %v289_v26 = vld [vmem:[%s1828_s28 + $0x30] sm:$0xff]  ;;  %v290_v30 = vld [vmem:[%s1828_s28 + $0x38] sm:$0xff]  ;;  %v291_v34 = vld [vmem:[%s1828_s28 + $0x40] sm:$0xff] }
  0x17   : > { %1532 = vmatmul.msk.f32.gmra.mxu0 %vm316_vm1, %v284_v6  ;;  %v305_v27 = vld [vmem:[%s1828_s28 + $0xb0] sm:$0xff]  ;;  %v306_v31 = vld [vmem:[%s1828_s28 + $0xb8] sm:$0xff]  ;;  %v307_v35 = vld [vmem:[%s1828_s28 + $0xc0] sm:$0xff] }
  0x18   : > { %1548 = vmatmul.msk.f32.gmra.mxu2 %vm316_vm1, %v300_v7  ;;  %v256_v28 = vld [vmem:[%s1836_s6 + $0x30] sm:$0xff]  ;;  %v257_v32 = vld [vmem:[%s1836_s6 + $0x38] sm:$0xff]  ;;  %v258_v36 = vld [vmem:[%s1836_s6 + $0x40] sm:$0xff] }
  0x19   : > { %1565 = vmatmul.msk.f32.gmra.mxu1 %vm316_vm1, %v251_v8  ;;  %v272_v29 = vld [vmem:[%s1836_s6 + $0xb0] sm:$0xff]  ;;  %v273_v33 = vld [vmem:[%s1836_s6 + $0xb8] sm:$0xff]  ;;  %v274_v37 = vld [vmem:[%s1836_s6 + $0xc0] sm:$0xff] }
  0x1a   : > { %1581 = vmatmul.msk.f32.gmra.mxu3 %vm316_vm1, %v267_v9  ;;  %v292_v38 = vld [vmem:[%s1828_s28 + $0x48] sm:$0xff]  ;;  %v293_v42 = vld [vmem:[%s1828_s28 + $0x50] sm:$0xff]  ;;  %v294_v46 = vld [vmem:[%s1828_s28 + $0x58] sm:$0xff] }
  0x1b   : > { %v308_v39 = vld [vmem:[%s1828_s28 + $0xc8] sm:$0xff]  ;;  %v309_v43 = vld [vmem:[%s1828_s28 + $0xd0] sm:$0xff]  ;;  %v310_v47 = vld [vmem:[%s1828_s28 + $0xd8] sm:$0xff] }
  0x1c   : > { %v259_v40 = vld [vmem:[%s1836_s6 + $0x48] sm:$0xff]  ;;  %v260_v44 = vld [vmem:[%s1836_s6 + $0x50] sm:$0xff]  ;;  %v261_v48 = vld [vmem:[%s1836_s6 + $0x58] sm:$0xff] }
  0x1d   : > { %v275_v41 = vld [vmem:[%s1836_s6 + $0xc8] sm:$0xff]  ;;  %v276_v45 = vld [vmem:[%s1836_s6 + $0xd0] sm:$0xff]  ;;  %v277_v49 = vld [vmem:[%s1836_s6 + $0xd8] sm:$0xff] }
  0x1e   : > { %v295_v50 = vld [vmem:[%s1828_s28 + $0x60] sm:$0xff]  ;;  %v296_v54 = vld [vmem:[%s1828_s28 + $0x68] sm:$0xff]  ;;  %v297_v58 = vld [vmem:[%s1828_s28 + $0x70] sm:$0xff] }
  0x1f   : > { %1533 = vmatmul.msk.f32.gmra.mxu0 %vm316_vm1, %v285_v10  ;;  %v311_v51 = vld [vmem:[%s1828_s28 + $0xe0] sm:$0xff]  ;;  %v312_v55 = vld [vmem:[%s1828_s28 + $0xe8] sm:$0xff]  ;;  %v313_v59 = vld [vmem:[%s1828_s28 + $0xf0] sm:$0xff] }
  0x20   : > { %1549 = vmatmul.msk.f32.gmra.mxu2 %vm316_vm1, %v301_v11  ;;  %v262_v52 = vld [vmem:[%s1836_s6 + $0x60] sm:$0xff]  ;;  %v263_v56 = vld [vmem:[%s1836_s6 + $0x68] sm:$0xff]  ;;  %v264_v60 = vld [vmem:[%s1836_s6 + $0x70] sm:$0xff] }
  0x21   : > { %1566 = vmatmul.msk.f32.gmra.mxu1 %vm316_vm1, %v252_v12  ;;  %v278_v53 = vld [vmem:[%s1836_s6 + $0xe0] sm:$0xff]  ;;  %v279_v57 = vld [vmem:[%s1836_s6 + $0xe8] sm:$0xff]  ;;  %v280_v61 = vld [vmem:[%s1836_s6 + $0xf0] sm:$0xff] }
  0x22   : > { %1582 = vmatmul.msk.f32.gmra.mxu3 %vm316_vm1, %v268_v13  ;;  %v298_v62 = vld [vmem:[%s1828_s28 + $0x78] sm:$0xff]  ;;  %v1967_v3 = vld [vmem:[%s2656_s4] ss:$0 sm:$0xff] }
  0x23   : > { %v314_v63 = vld [vmem:[%s1828_s28 + $0xf8] sm:$0xff] }
  0x24   : > { %v265_v0 = vld [vmem:[%s1836_s6 + $0x78] sm:$0xff] }
  0x25   : > { %v281_v1 = vld [vmem:[%s1836_s6 + $0xf8] sm:$0xff] }
  0x27   : > { %1534 = vmatmul.msk.f32.gmra.mxu0 %vm316_vm1, %v286_v14 }
  0x28   : > { %1550 = vmatmul.msk.f32.gmra.mxu2 %vm316_vm1, %v302_v15 }
  0x29   : > { %1567 = vmatmul.msk.f32.gmra.mxu1 %vm316_vm1, %v253_v16 }
  0x2a   : > { %1583 = vmatmul.msk.f32.gmra.mxu3 %vm316_vm1, %v269_v17 }
  0x2f   : > { %1535 = vmatmul.msk.f32.gmra.mxu0 %vm316_vm1, %v287_v18 }
  0x30   : > { %1551 = vmatmul.msk.f32.gmra.mxu2 %vm316_vm1, %v303_v19 }
  0x31   : > { %1568 = vmatmul.msk.f32.gmra.mxu1 %vm316_vm1, %v254_v20 }
  0x32   : > { %1584 = vmatmul.msk.f32.gmra.mxu3 %vm316_vm1, %v270_v21 }
  0x37   : > { %1536 = vmatmul.msk.f32.gmra.mxu0 %vm316_vm1, %v288_v22 }
  0x38   : > { %1552 = vmatmul.msk.f32.gmra.mxu2 %vm316_vm1, %v304_v23 }
  0x39   : > { %1569 = vmatmul.msk.f32.gmra.mxu1 %vm316_vm1, %v255_v24 }
  0x3a   : > { %1585 = vmatmul.msk.f32.gmra.mxu3 %vm316_vm1, %v271_v25 }
  0x3f   : > { %1537 = vmatmul.msk.f32.gmra.mxu0 %vm316_vm1, %v289_v26 }
  0x40   : > { %1553 = vmatmul.msk.f32.gmra.mxu2 %vm316_vm1, %v305_v27 }
  0x41   : > { %1570 = vmatmul.msk.f32.gmra.mxu1 %vm316_vm1, %v256_v28 }
  0x42   : > { %1586 = vmatmul.msk.f32.gmra.mxu3 %vm316_vm1, %v272_v29 }
  0x47   : > { %1538 = vmatmul.msk.f32.gmra.mxu0 %vm316_vm1, %v290_v30 }
  0x48   : > { %1554 = vmatmul.msk.f32.gmra.mxu2 %vm316_vm1, %v306_v31 }
  0x49   : > { %1571 = vmatmul.msk.f32.gmra.mxu1 %vm316_vm1, %v257_v32 }
  0x4a   : > { %1587 = vmatmul.msk.f32.gmra.mxu3 %vm316_vm1, %v273_v33 }
  0x4f   : > { %1539 = vmatmul.msk.f32.gmra.mxu0 %vm316_vm1, %v291_v34 }
  0x50   : > { %1555 = vmatmul.msk.f32.gmra.mxu2 %vm316_vm1, %v307_v35 }
  0x51   : > { %1572 = vmatmul.msk.f32.gmra.mxu1 %vm316_vm1, %v258_v36 }
  0x52   : > { %1588 = vmatmul.msk.f32.gmra.mxu3 %vm316_vm1, %v274_v37 }
  0x57   : > { %1540 = vmatmul.msk.f32.gmra.mxu0 %vm316_vm1, %v292_v38 }
  0x58   : > { %1556 = vmatmul.msk.f32.gmra.mxu2 %vm316_vm1, %v308_v39 }
  0x59   : > { %1573 = vmatmul.msk.f32.gmra.mxu1 %vm316_vm1, %v259_v40 }
  0x5a   : > { %1589 = vmatmul.msk.f32.gmra.mxu3 %vm316_vm1, %v275_v41 }
  0x5f   : > { %1541 = vmatmul.msk.f32.gmra.mxu0 %vm316_vm1, %v293_v42 }
  0x60   : > { %1557 = vmatmul.msk.f32.gmra.mxu2 %vm316_vm1, %v309_v43 }
  0x61   : > { %1574 = vmatmul.msk.f32.gmra.mxu1 %vm316_vm1, %v260_v44 }
  0x62   : > { %1590 = vmatmul.msk.f32.gmra.mxu3 %vm316_vm1, %v276_v45 }
  0x67   : > { %1542 = vmatmul.msk.f32.gmra.mxu0 %vm316_vm1, %v294_v46 }
  0x68   : > { %1558 = vmatmul.msk.f32.gmra.mxu2 %vm316_vm1, %v310_v47 }
  0x69   : > { %1575 = vmatmul.msk.f32.gmra.mxu1 %vm316_vm1, %v261_v48 }
  0x6a   : > { %1591 = vmatmul.msk.f32.gmra.mxu3 %vm316_vm1, %v277_v49 }
  0x6f   : > { %1543 = vmatmul.msk.f32.gmra.mxu0 %vm316_vm1, %v295_v50 }
  0x70   : > { %1559 = vmatmul.msk.f32.gmra.mxu2 %vm316_vm1, %v311_v51 }
  0x71   : > { %1576 = vmatmul.msk.f32.gmra.mxu1 %vm316_vm1, %v262_v52 }
  0x72   : > { %1592 = vmatmul.msk.f32.gmra.mxu3 %vm316_vm1, %v278_v53 }
  0x77   : > { %1544 = vmatmul.msk.f32.gmra.mxu0 %vm316_vm1, %v296_v54 }
  0x78   : > { %1560 = vmatmul.msk.f32.gmra.mxu2 %vm316_vm1, %v312_v55 }
  0x79   : > { %1577 = vmatmul.msk.f32.gmra.mxu1 %vm316_vm1, %v263_v56 }
  0x7a   : > { %1593 = vmatmul.msk.f32.gmra.mxu3 %vm316_vm1, %v279_v57 }
  0x7f   : > { %1545 = vmatmul.msk.f32.gmra.mxu0 %vm316_vm1, %v297_v58 }
  0x80   : > { %1561 = vmatmul.msk.f32.gmra.mxu2 %vm316_vm1, %v313_v59 }
  0x81   : > { %1578 = vmatmul.msk.f32.gmra.mxu1 %vm316_vm1, %v264_v60 }
  0x82   : > { %1594 = vmatmul.msk.f32.gmra.mxu3 %vm316_vm1, %v280_v61 }
  0x87   : > { %1546 = vmatmul.msk.f32.gmra.mxu0 %vm316_vm1, %v298_v62 }
  0x88   : > { %1562 = vmatmul.msk.f32.gmra.mxu2 %vm316_vm1, %v314_v63 }
  0x89   : > { %1579 = vmatmul.msk.f32.gmra.mxu1 %vm316_vm1, %v265_v0 }
  0x8a   : > { %1595 = vmatmul.msk.f32.gmra.mxu3 %vm316_vm1, %v281_v1 }
  0x8c   : > { %v434_v2 = vpop.f32.mrf.mxu0 }
  0x8e   : > { %v646_v4 = vpop.f32.mrf.mxu1 }
  0x8f   : > { %v647_v5 = vadd.f32 %v646_v4, %v434_v2 }
  0x91   : > { %v1970_v6 = vadd.f32 %v1967_v3, %v647_v5 }
  0x93   : > { %v1596_v7 = vmul.f32 -1.442695, %v1970_v6  ;;  %v482_v8 = vpop.f32.mrf.mxu2 }
  0x94   : > { %v437_v11 = vpop.f32.mrf.mxu0 }
  0x95   : > { %v694_v9 = vpop.f32.mrf.mxu3  ;;  %1641 = vpow2.f32 %v1596_v7 }
  0x96   : > { %v695_v10 = vadd.f32 %v694_v9, %v482_v8  ;;  %v649_v12 = vpop.f32.mrf.mxu1 }
  0x97   : > { %v650_v14 = vadd.f32 %v649_v12, %v437_v11 }
  0x98   : > { %v1974_v13 = vadd.f32 %v1967_v3, %v695_v10 }
  0x99   : > { %v1978_v16 = vadd.f32 %v1967_v3, %v650_v14 }
  0x9a   : > { %v1612_v15 = vmul.f32 -1.442695, %v1974_v13 }
  0x9b   : > { %v1642_v17 = vpop.eup %1641  ;;  %v1597_v18 = vmul.f32 -1.442695, %v1978_v16  ;;  %v485_v19 = vpop.f32.mrf.mxu2 }
  0x9c   : > { %1643 = vpow2.f32 %v1612_v15  ;;  %v874_v20 = vadd.f32 1.0, %v1642_v17  ;;  %v440_v23 = vpop.f32.mrf.mxu0 }
  0x9d   : > { %v697_v21 = vpop.f32.mrf.mxu3  ;;  %1645 = vpow2.f32 %v1597_v18 }
  0x9e   : > { %v698_v22 = vadd.f32 %v697_v21, %v485_v19  ;;  %1647 = vrcp.f32 %v874_v20  ;;  %v652_v24 = vpop.f32.mrf.mxu1  ;;  %v915_v37 = vand.u32 2147483647, %v874_v20  ;;  %v917_v40 = vand.u32 2147483648, %v874_v20 }
  0x9f   : > { %v653_v26 = vadd.f32 %v652_v24, %v440_v23  ;;  %vm911_vm3 = vweird.f32 %v874_v20 }
  0xa0   : > { %v1982_v25 = vadd.f32 %v1967_v3, %v698_v22  ;;  %vm1999_vm5 = vcmp.eq.f32.partialorder %v915_v37, 8.507059e+37  ;;  %v918_v51 = vor.u32 1.1754944e-38, %v917_v40 }
  0xa1   : > { %v1986_v29 = vadd.f32 %v1967_v3, %v653_v26 }
  0xa2   : > { %v1644_v27 = vpop.eup %1643  ;;  %v1613_v28 = vmul.f32 -1.442695, %v1982_v25 }
  0xa3   : > { %v1988_v30 = vadd.f32 1.0, %v1644_v27  ;;  %v1646_v31 = vpop.eup %1645  ;;  %v1598_v32 = vmul.f32 -1.442695, %v1986_v29  ;;  %v488_v33 = vpop.f32.mrf.mxu2 }
  0xa4   : > { %1649 = vpow2.f32 %v1613_v28  ;;  %v1648_v34 = vpop.eup %1647  ;;  %v1992_v38 = vadd.f32 1.0, %v1646_v31  ;;  %v443_v39 = vpop.f32.mrf.mxu0 }
  0xa5   : > { %1651 = vrcp.f32 %v1988_v30  ;;  %v700_v35 = vpop.f32.mrf.mxu3  ;;  %v907_v36 = vmul.f32 %v1648_v34, %v874_v20  ;;  %v1155_v44 = vand.u32 2147483647, %v1988_v30  ;;  %vm912_vm4 = vweird.f32 %v1648_v34 }
  0xa6   : > { %1653 = vpow2.f32 %v1598_v32  ;;  %v701_v41 = vadd.f32 %v700_v35, %v488_v33  ;;  %v655_v42 = vpop.f32.mrf.mxu1  ;;  %v1157_v52 = vand.u32 2147483648, %v1988_v30  ;;  %vm1151_vm6 = vweird.f32 %v1988_v30  ;;  %vm913_vm8 = vmor %vm911_vm3, %vm912_vm4 }
  0xa7   : > { %v908_v43 = vsub.f32 1.0, %v907_v36  ;;  %1655 = vrcp.f32 %v1992_v38  ;;  %v656_v46 = vadd.f32 %v655_v42, %v443_v39  ;;  %vm2009_vm7 = vcmp.eq.f32.partialorder %v1155_v44, 8.507059e+37 }
  0xa8   : > { %v1997_v45 = vadd.f32 %v1967_v3, %v701_v41  ;;  %v930_v60 = vand.u32 2147483647, %v1992_v38  ;;  %v932_v61 = vand.u32 2147483648, %v1992_v38  ;;  %v1158_v8 = vor.u32 1.1754944e-38, %v1157_v52 }
  0xa9   : > { %v909_v48 = vmul.f32 %v1648_v34, %v908_v43  ;;  %v2017_v62 = vadd.f32 %v1967_v3, %v656_v46  ;;  %vm926_vm10 = vweird.f32 %v1992_v38 }
  0xaa   : > { %v1650_v47 = vpop.eup %1649  ;;  %v1614_v54 = vmul.f32 -1.442695, %v1997_v45  ;;  %vm2034_vm11 = vcmp.eq.f32.partialorder %v930_v60, 8.507059e+37  ;;  %v933_v18 = vor.u32 1.1754944e-38, %v932_v61 }
  0xab   : > { %v1652_v50 = vpop.eup %1651  ;;  %v2004_v53 = vadd.f32 1.0, %v1650_v47  ;;  %v910_v56 = vadd.f32 %v1648_v34, %v909_v48  ;;  %v491_v59 = vpop.f32.mrf.mxu2  ;;  %v1599_v20 = vmul.f32 -1.442695, %v2017_v62 }
  0xac   : > { %v1654_v55 = vpop.eup %1653  ;;  %v1147_v57 = vmul.f32 %v1652_v50, %v1988_v30  ;;  %v446_v5 = vpop.f32.mrf.mxu0  ;;  %vm1152_vm9 = vweird.f32 %v1652_v50 }
  0xad   : > { %1657 = vrcp.f32 %v2004_v53  ;;  %v703_v63 = vpop.f32.mrf.mxu3  ;;  %v1656_v0 = vpop.eup %1655  ;;  %v914_v1 = vsel %vm913_vm8, %v1648_v34, %v910_v56  ;;  %v2019_v4 = vadd.f32 1.0, %v1654_v55  ;;  %v1170_v14 = vand.u32 2147483647, %v2004_v53  ;;  %vm1153_vm12 = vmor %vm1151_vm6, %vm1152_vm9 }
  0xae   : > { %v1148_v2 = vsub.f32 1.0, %v1147_v57  ;;  %1659 = vpow2.f32 %v1614_v54  ;;  %v919_v7 = vsel %vm1999_vm5, %v918_v51, %v914_v1  ;;  %v922_v9 = vmul.f32 %v1656_v0, %v1992_v38  ;;  %v658_v10 = vpop.f32.mrf.mxu1 }
  0xaf   : > { %v1386_v11 = vmul.f32 %v919_v7, %v1970_v6  ;;  %1661 = vrcp.f32 %v2019_v4  ;;  %v704_v21 = vadd.f32 %v703_v63, %v491_v59  ;;  %v659_v6 = vadd.f32 %v658_v10, %v446_v5 }
  0xb0   : > { %v1149_v12 = vmul.f32 %v1652_v50, %v1148_v2  ;;  %v923_v15 = vsub.f32 1.0, %v922_v9  ;;  %vm927_vm13 = vweird.f32 %v1656_v0  ;;  %vm1166_vm14 = vweird.f32 %v2004_v53 }
  0xb1   : > { %1419 = vst.msk [vmem:[%s2025_s11] sm:$0xff] %vm1418_vm2, %v1386_v11  ;;  %v1172_v24 = vand.u32 2147483648, %v2004_v53  ;;  %vm2047_vm15 = vcmp.eq.f32.partialorder %v1170_v14, 8.507059e+37  ;;  %1663 = vpow2.f32 %v1599_v20  ;;  %v2056_v35 = vadd.f32 %v1967_v3, %v704_v21  ;;  %vm928_vm0 = vmor %vm926_vm10, %vm927_vm13 }
  0xb2   : > { %v1150_v19 = vadd.f32 %v1652_v50, %v1149_v12  ;;  %v924_v23 = vmul.f32 %v1656_v0, %v923_v15  ;;  %v2063_v41 = vadd.f32 %v1967_v3, %v659_v6  ;;  %vm941_vm3 = vweird.f32 %v2019_v4 }
  0xb3   : > { %v1658_v22 = vpop.eup %1657  ;;  %v494_v32 = vpop.f32.mrf.mxu2  ;;  %v1173_v46 = vor.u32 1.1754944e-38, %v1172_v24  ;;  %v945_v51 = vand.u32 2147483647, %v2019_v4  ;;  %v1615_v52 = vmul.f32 -1.442695, %v2056_v35  ;;  %v947_v56 = vand.u32 2147483648, %v2019_v4 }
  0xb4   : > { %v1660_v26 = vpop.eup %1659  ;;  %v1154_v27 = vsel %vm1153_vm12, %v1652_v50, %v1150_v19  ;;  %v1162_v28 = vmul.f32 %v1658_v22, %v2004_v53  ;;  %v925_v33 = vadd.f32 %v1656_v0, %v924_v23  ;;  %v449_v43 = vpop.f32.mrf.mxu0  ;;  %vm1167_vm1 = vweird.f32 %v1658_v22 }
  0xb5   : > { %v1159_v30 = vsel %vm2009_vm7, %v1158_v8, %v1154_v27  ;;  %v2053_v34 = vadd.f32 1.0, %v1660_v26  ;;  %v706_v36 = vpop.f32.mrf.mxu3  ;;  %v1662_v37 = vpop.eup %1661  ;;  %v1600_v57 = vmul.f32 -1.442695, %v2063_v41  ;;  %vm1168_vm4 = vmor %vm1166_vm14, %vm1167_vm1  ;;  %v948_v8 = vor.u32 1.1754944e-38, %v947_v56 }
  0xb6   : > { %v1402_v39 = vmul.f32 %v1159_v30, %v1974_v13  ;;  %v1163_v40 = vsub.f32 1.0, %v1162_v28  ;;  %v707_v42 = vadd.f32 %v706_v36, %v494_v32  ;;  %v929_v44 = vsel %vm928_vm0, %v1656_v0, %v925_v33  ;;  %v661_v48 = vpop.f32.mrf.mxu1 }
  0xb7   : > { %v937_v47 = vmul.f32 %v1662_v37, %v2019_v4  ;;  %1665 = vrcp.f32 %v2053_v34  ;;  %v934_v13 = vsel %vm2034_vm11, %v933_v18, %v929_v44  ;;  %v1664_v54 = vpop.eup %1663  ;;  %vm942_vm5 = vweird.f32 %v1662_v37 }
  0xb8   : > { %1435 = vst.msk [vmem:[%s2025_s11 + $0x80] sm:$0xff] %vm1418_vm2, %v1402_v39  ;;  %v1164_v38 = vmul.f32 %v1658_v22, %v1163_v40  ;;  %v1387_v49 = vmul.f32 %v934_v13, %v1978_v16  ;;  %v2078_v58 = vadd.f32 %v1967_v3, %v707_v42  ;;  %v2084_v59 = vadd.f32 1.0, %v1664_v54  ;;  %vm943_vm6 = vmor %vm941_vm3, %vm942_vm5 }
  0xb9   : > { %v938_v50 = vsub.f32 1.0, %v937_v47  ;;  %1667 = vpow2.f32 %v1615_v52  ;;  %v662_v63 = vadd.f32 %v661_v48, %v449_v43  ;;  %vm946_vm7 = vcmp.eq.f32.partialorder %v945_v51, 8.507059e+37 }
  0xba   : > { %v1165_v55 = vadd.f32 %v1658_v22, %v1164_v38  ;;  %1420 = vst.msk [vmem:[%s2025_s11 + $0x8] sm:$0xff] %vm1418_vm2, %v1387_v49  ;;  %1669 = vpow2.f32 %v1600_v57  ;;  %v1616_v61 = vmul.f32 -1.442695, %v2078_v58  ;;  %v1187_v19 = vand.u32 2147483648, %v2053_v34 }
  0xbb   : > { %v939_v16 = vmul.f32 %v1662_v37, %v938_v50  ;;  %v497_v0 = vpop.f32.mrf.mxu2  ;;  %1671 = vrcp.f32 %v2084_v59  ;;  %v2095_v12 = vadd.f32 %v1967_v3, %v662_v63  ;;  %vm1181_vm9 = vweird.f32 %v2053_v34 }
  0xbc   : > { %v1169_v60 = vsel %vm1168_vm4, %v1658_v22, %v1165_v55  ;;  %v452_v10 = vpop.f32.mrf.mxu0  ;;  %1673 = vpow2.f32 %v1616_v61  ;;  %v1188_v33 = vor.u32 1.1754944e-38, %v1187_v19  ;;  %v962_v36 = vand.u32 2147483648, %v2084_v59 }
  0xbd   : > { %v1666_v1 = vpop.eup %1665  ;;  %v1174_v2 = vsel %vm2047_vm15, %v1173_v46, %v1169_v60  ;;  %v940_v5 = vadd.f32 %v1662_v37, %v939_v16  ;;  %v709_v53 = vpop.f32.mrf.mxu3  ;;  %v1601_v20 = vmul.f32 -1.442695, %v2095_v12  ;;  %vm956_vm12 = vweird.f32 %v2084_v59 }
  0xbe   : > { %v1403_v7 = vmul.f32 %v1174_v2, %v1982_v25  ;;  %v1177_v9 = vmul.f32 %v1666_v1, %v2053_v34  ;;  %v664_v14 = vpop.f32.mrf.mxu1  ;;  %v1185_v25 = vand.u32 2147483647, %v2053_v34  ;;  %vm1182_vm8 = vweird.f32 %v1666_v1 }
  0xbf   : > { %v944_v11 = vsel %vm943_vm6, %v1662_v37, %v940_v5  ;;  %v1668_v4 = vpop.eup %1667  ;;  %v710_v23 = vadd.f32 %v709_v53, %v497_v0  ;;  %1675 = vpow2.f32 %v1601_v20  ;;  %v665_v27 = vadd.f32 %v664_v14, %v452_v10  ;;  %vm1183_vm11 = vmor %vm1181_vm9, %vm1182_vm8 }
  0xc0   : > { %1436 = vst.msk [vmem:[%s2025_s11 + $0x88] sm:$0xff] %vm1418_vm2, %v1403_v7  ;;  %v949_v15 = vsel %vm946_vm7, %v948_v8, %v944_v11  ;;  %v1178_v17 = vsub.f32 1.0, %v1177_v9  ;;  %v1670_v21 = vpop.eup %1669  ;;  %v2103_v22 = vadd.f32 1.0, %v1668_v4  ;;  %vm2110_vm10 = vcmp.eq.f32.partialorder %v1185_v25, 8.507059e+37 }
  0xc1   : > { %v1388_v18 = vmul.f32 %v949_v15, %v1986_v29  ;;  %v1672_v24 = vpop.eup %1671  ;;  %v2108_v26 = vadd.f32 1.0, %v1670_v21  ;;  %v960_v34 = vand.u32 2147483647, %v2084_v59  ;;  %v2122_v42 = vadd.f32 %v1967_v3, %v710_v23 }
  0xc2   : > { %v1179_v6 = vmul.f32 %v1666_v1, %v1178_v17  ;;  %v952_v31 = vmul.f32 %v1672_v24, %v2084_v59  ;;  %1677 = vrcp.f32 %v2103_v22  ;;  %v1674_v30 = vpop.eup %1673  ;;  %vm957_vm13 = vweird.f32 %v1672_v24 }
  0xc3   : > { %1421 = vst.msk [vmem:[%s2025_s11 + $0x10] sm:$0xff] %vm1418_vm2, %v1388_v18  ;;  %v500_v32 = vpop.f32.mrf.mxu2  ;;  %1679 = vrcp.f32 %v2108_v26  ;;  %v1200_v46 = vand.u32 2147483647, %v2103_v22  ;;  %v2128_v47 = vadd.f32 %v1967_v3, %v665_v27  ;;  %v1202_v49 = vand.u32 2147483648, %v2103_v22  ;;  %vm958_vm1 = vmor %vm956_vm12, %vm957_vm13 }
  0xc4   : > { %v1180_v29 = vadd.f32 %v1666_v1, %v1179_v6  ;;  %v953_v40 = vsub.f32 1.0, %v952_v31  ;;  %v455_v43 = vpop.f32.mrf.mxu0  ;;  %v2132_v50 = vadd.f32 1.0, %v1674_v30  ;;  %vm2134_vm14 = vcmp.eq.f32.partialorder %v960_v34, 8.507059e+37 }
  0xc5   : > { %v712_v37 = vpop.f32.mrf.mxu3  ;;  %v1676_v51 = vpop.eup %1675  ;;  %v963_v54 = vor.u32 1.1754944e-38, %v962_v36  ;;  %vm1196_vm15 = vweird.f32 %v2103_v22  ;;  %vm971_vm0 = vweird.f32 %v2108_v26  ;;  %v977_v57 = vand.u32 2147483648, %v2108_v26 }
  0xc6   : > { %v1184_v39 = vsel %vm1183_vm11, %v1666_v1, %v1180_v29  ;;  %v667_v48 = vpop.f32.mrf.mxu1  ;;  %v954_v38 = vmul.f32 %v1672_v24, %v953_v40  ;;  %1681 = vrcp.f32 %v2132_v50  ;;  %vm2149_vm3 = vcmp.eq.f32.partialorder %v1200_v46, 8.507059e+37 }
  0xc7   : > { %v1189_v44 = vsel %vm2110_vm10, %v1188_v33, %v1184_v39  ;;  %v2153_v63 = vadd.f32 1.0, %v1676_v51  ;;  %v1617_v0 = vmul.f32 -1.442695, %v2122_v42  ;;  %v713_v1 = vadd.f32 %v712_v37, %v500_v32 }
  0xc8   : > { %v1404_v13 = vmul.f32 %v1189_v44, %v1997_v45  ;;  %v1678_v55 = vpop.eup %1677  ;;  %v955_v56 = vadd.f32 %v1672_v24, %v954_v38  ;;  %v975_v45 = vand.u32 2147483647, %v2108_v26  ;;  %v1203_v5 = vor.u32 1.1754944e-38, %v1202_v49 }
  0xc9   : > { %v1680_v16 = vpop.eup %1679  ;;  %v1192_v60 = vmul.f32 %v1678_v55, %v2103_v22  ;;  %v1602_v7 = vmul.f32 -1.442695, %v2128_v47  ;;  %v1217_v10 = vand.u32 2147483648, %v2132_v50  ;;  %1683 = vrcp.f32 %v2153_v63 }
  0xca   : > { %1437 = vst.msk [vmem:[%s2025_s11 + $0x90] sm:$0xff] %vm1418_vm2, %v1404_v13  ;;  %v959_v2 = vsel %vm958_vm1, %v1672_v24, %v955_v56  ;;  %v967_v53 = vmul.f32 %v1680_v16, %v2108_v26  ;;  %vm2163_vm4 = vcmp.eq.f32.partialorder %v975_v45, 8.507059e+37  ;;  %v978_v25 = vor.u32 1.1754944e-38, %v977_v57 }
  0xcb   : > { %v503_v8 = vpop.f32.mrf.mxu2  ;;  %v964_v59 = vsel %vm2134_vm14, %v963_v54, %v959_v2  ;;  %v1193_v9 = vsub.f32 1.0, %v1192_v60  ;;  %vm1197_vm5 = vweird.f32 %v1678_v55  ;;  %vm1211_vm6 = vweird.f32 %v2132_v50 }
  0xcc   : > { %v1389_v14 = vmul.f32 %v964_v59, %v2017_v62  ;;  %v968_v15 = vsub.f32 1.0, %v967_v53  ;;  %v458_v4 = vpop.f32.mrf.mxu0  ;;  %1685 = vpow2.f32 %v1617_v0  ;;  %v2169_v19 = vadd.f32 %v1967_v3, %v713_v1  ;;  %v1682_v21 = vpop.eup %1681  ;;  %vm1198_vm8 = vmor %vm1196_vm15, %vm1197_vm5 }
  0xcd   : > { %v715_v11 = vpop.f32.mrf.mxu3  ;;  %v1194_v18 = vmul.f32 %v1678_v55, %v1193_v9  ;;  %vm972_vm7 = vweird.f32 %v1680_v16  ;;  %1687 = vpow2.f32 %v1602_v7  ;;  %v668_v6 = vadd.f32 %v667_v48, %v455_v43 }
  0xce   : > { %v670_v20 = vpop.f32.mrf.mxu1  ;;  %1422 = vst.msk [vmem:[%s2025_s11 + $0x18] sm:$0xff] %vm1418_vm2, %v1389_v14  ;;  %v969_v62 = vmul.f32 %v1680_v16, %v968_v15  ;;  %v1207_v24 = vmul.f32 %v1682_v21, %v2132_v50  ;;  %v1215_v27 = vand.u32 2147483647, %v2132_v50  ;;  %v1218_v29 = vor.u32 1.1754944e-38, %v1217_v10  ;;  %vm973_vm11 = vmor %vm971_vm0, %vm972_vm7 }
  0xcf   : > { %v1195_v23 = vadd.f32 %v1678_v55, %v1194_v18  ;;  %vm1212_vm9 = vweird.f32 %v1682_v21  ;;  %vm986_vm10 = vweird.f32 %v2153_v63  ;;  %v1618_v31 = vmul.f32 -1.442695, %v2169_v19  ;;  %v1684_v32 = vpop.eup %1683 }
  0xd0   : > { %v970_v28 = vadd.f32 %v1680_v16, %v969_v62  ;;  %v1208_v33 = vsub.f32 1.0, %v1207_v24  ;;  %v2183_v34 = vadd.f32 %v1967_v3, %v668_v6  ;;  %v716_v36 = vadd.f32 %v715_v11, %v503_v8  ;;  %vm1213_vm12 = vmor %vm1211_vm6, %vm1212_vm9 }
  0xd1   : > { %v1199_v30 = vsel %vm1198_vm8, %v1678_v55, %v1195_v23  ;;  %v982_v39 = vmul.f32 %v1684_v32, %v2153_v63  ;;  %v671_v40 = vadd.f32 %v670_v20, %v458_v4  ;;  %1689 = vpow2.f32 %v1618_v31 }
  0xd2   : > { %v1204_v22 = vsel %vm2149_vm3, %v1203_v5, %v1199_v30  ;;  %v974_v37 = vsel %vm973_vm11, %v1680_v16, %v970_v28  ;;  %v1686_v44 = vpop.eup %1685  ;;  %v1209_v48 = vmul.f32 %v1682_v21, %v1208_v33  ;;  %v990_v52 = vand.u32 2147483647, %v2153_v63 }
  0xd3   : > { %v506_v43 = vpop.f32.mrf.mxu2  ;;  %v1405_v46 = vmul.f32 %v1204_v22, %v2056_v35  ;;  %v979_v26 = vsel %vm2163_vm4, %v978_v25, %v974_v37  ;;  %v1688_v38 = vpop.eup %1687  ;;  %v983_v51 = vsub.f32 1.0, %v982_v39  ;;  %v2193_v54 = vadd.f32 1.0, %v1686_v44 }
  0xd4   : > { %v1390_v49 = vmul.f32 %v979_v26, %v2063_v41  ;;  %v1210_v55 = vadd.f32 %v1682_v21, %v1209_v48  ;;  %v992_v35 = vand.u32 2147483648, %v2153_v63  ;;  %v2198_v56 = vadd.f32 1.0, %v1688_v38  ;;  %v2201_v57 = vpop.f32.mrf.mxu0 }
  0xd5   : > { %v718_v13 = vpop.f32.mrf.mxu3  ;;  %1438 = vst.msk [vmem:[%s2025_s11 + $0x98] sm:$0xff] %vm1418_vm2, %v1405_v46  ;;  %v1603_v45 = vmul.f32 -1.442695, %v2183_v34  ;;  %v984_v41 = vmul.f32 %v1684_v32, %v983_v51  ;;  %vm987_vm13 = vweird.f32 %v1684_v32  ;;  %1691 = vrcp.f32 %v2193_v54 }
  0xd6   : > { %v2203_v16 = vpop.f32.mrf.mxu1  ;;  %1423 = vst.msk [vmem:[%s2025_s11 + $0x20] sm:$0xff] %vm1418_vm2, %v1390_v49  ;;  %v2212_v60 = vadd.f32 %v1967_v3, %v716_v36  ;;  %v1214_v61 = vsel %vm1213_vm12, %v1682_v21, %v1210_v55  ;;  %vm1216_vm14 = vcmp.eq.f32.partialorder %v1215_v27, 8.507059e+37  ;;  %1693 = vrcp.f32 %v2198_v56  ;;  %vm988_vm15 = vmor %vm986_vm10, %vm987_vm13 }
  0xd7   : > { %v2216_v0 = vadd.f32 %v1967_v3, %v671_v40  ;;  %v1219_v1 = vsel %vm1216_vm14, %v1218_v29, %v1214_v61  ;;  %v985_v2 = vadd.f32 %v1684_v32, %v984_v41  ;;  %v1690_v5 = vpop.eup %1689  ;;  %vm991_vm0 = vcmp.eq.f32.partialorder %v990_v52, 8.507059e+37 }
  0xd8   : > { %v1406_v50 = vmul.f32 %v1219_v1, %v2078_v58  ;;  %v993_v53 = vor.u32 1.1754944e-38, %v992_v35  ;;  %1695 = vpow2.f32 %v1603_v45  ;;  %v1230_v8 = vand.u32 2147483647, %v2193_v54 }
  0xd9   : > { %v989_v7 = vsel %vm988_vm15, %v1684_v32, %v985_v2  ;;  %v2222_v59 = vadd.f32 1.0, %v1690_v5  ;;  %v1619_v9 = vmul.f32 -1.442695, %v2212_v60  ;;  %v1232_v58 = vand.u32 2147483648, %v2193_v54 }
  0xda   : > { %1439 = vst.msk [vmem:[%s2025_s11 + $0xa0] sm:$0xff] %vm1418_vm2, %v1406_v50  ;;  %v994_v11 = vsel %vm991_vm0, %v993_v53, %v989_v7  ;;  %v1604_v63 = vmul.f32 -1.442695, %v2216_v0  ;;  %v719_v14 = vadd.f32 %v718_v13, %v506_v43  ;;  %v1005_v4 = vand.u32 2147483647, %v2198_v56 }
  0xdb   : > { %v509_v10 = vpop.f32.mrf.mxu2  ;;  %v1692_v17 = vpop.eup %1691  ;;  %v1391_v25 = vmul.f32 %v994_v11, %v2095_v12  ;;  %v1007_v18 = vand.u32 2147483648, %v2198_v56  ;;  %1697 = vrcp.f32 %v2222_v59  ;;  %vm1226_vm1 = vweird.f32 %v2193_v54 }
  0xdc   : > { %v1694_v20 = vpop.eup %1693  ;;  %v1222_v21 = vmul.f32 %v1692_v17, %v2193_v54  ;;  %vm1001_vm3 = vweird.f32 %v2198_v56  ;;  %1699 = vpow2.f32 %v1619_v9  ;;  %vm2238_vm4 = vcmp.eq.f32.partialorder %v1230_v8, 8.507059e+37  ;;  %v464_v31 = vpop.f32.mrf.mxu0 }
  0xdd   : > { %v721_v15 = vpop.f32.mrf.mxu3  ;;  %1424 = vst.msk [vmem:[%s2025_s11 + $0x28] sm:$0xff] %vm1418_vm2, %v1391_v25  ;;  %v997_v12 = vmul.f32 %v1694_v20, %v2198_v56  ;;  %v1247_v6 = vand.u32 2147483648, %v2222_v59  ;;  %1701 = vpow2.f32 %v1604_v63  ;;  %v1233_v27 = vor.u32 1.1754944e-38, %v1232_v58 }
  0xde   : > { %v1696_v23 = vpop.eup %1695  ;;  %v1223_v24 = vsub.f32 1.0, %v1222_v21  ;;  %v1245_v29 = vand.u32 2147483647, %v2222_v59  ;;  %v2246_v28 = vadd.f32 %v1967_v3, %v719_v14  ;;  %v676_v32 = vpop.f32.mrf.mxu1  ;;  %vm2248_vm5 = vcmp.eq.f32.partialorder %v1005_v4, 8.507059e+37 }
  0xdf   : > { %v998_v30 = vsub.f32 1.0, %v997_v12  ;;  %v1008_v36 = vor.u32 1.1754944e-38, %v1007_v18  ;;  %v2252_v22 = vadd.f32 1.0, %v1696_v23  ;;  %vm1227_vm6 = vweird.f32 %v1692_v17 }
  0xe0   : > { %v1224_v37 = vmul.f32 %v1692_v17, %v1223_v24  ;;  %vm1241_vm7 = vweird.f32 %v2222_v59  ;;  %v1620_v39 = vmul.f32 -1.442695, %v2246_v28  ;;  %vm1002_vm8 = vweird.f32 %v1694_v20  ;;  %vm1228_vm10 = vmor %vm1226_vm1, %vm1227_vm6 }
  0xe1   : > { %v1698_v40 = vpop.eup %1697  ;;  %v999_v43 = vmul.f32 %v1694_v20, %v998_v30  ;;  %v1248_v44 = vor.u32 1.1754944e-38, %v1247_v6  ;;  %1703 = vrcp.f32 %v2252_v22  ;;  %vm2260_vm9 = vcmp.eq.f32.partialorder %v1245_v29, 8.507059e+37  ;;  %vm1003_vm11 = vmor %vm1001_vm3, %vm1002_vm8 }
  0xe2   : > { %v1700_v26 = vpop.eup %1699  ;;  %v1225_v48 = vadd.f32 %v1692_v17, %v1224_v37  ;;  %v1237_v13 = vmul.f32 %v1698_v40, %v2222_v59  ;;  %v674_v49 = vadd.f32 %v2203_v16, %v2201_v57  ;;  %v722_v51 = vadd.f32 %v721_v15, %v509_v10 }
  0xe3   : > { %v2257_v46 = vpop.f32.mrf.mxu2  ;;  %v1702_v55 = vpop.eup %1701  ;;  %v1000_v35 = vadd.f32 %v1694_v20, %v999_v43  ;;  %v1020_v45 = vand.u32 2147483647, %v2252_v22  ;;  %v2272_v41 = vadd.f32 1.0, %v1700_v26  ;;  %1705 = vpow2.f32 %v1620_v39 }
  0xe4   : > { %v1229_v61 = vsel %vm1228_vm10, %v1692_v17, %v1225_v48  ;;  %v1238_v57 = vsub.f32 1.0, %v1237_v13  ;;  %v1022_v16 = vand.u32 2147483648, %v2252_v22  ;;  %v2278_v1 = vadd.f32 1.0, %v1702_v55  ;;  %v467_v63 = vpop.f32.mrf.mxu0 }
  0xe5   : > { %v2266_v52 = vpop.f32.mrf.mxu3  ;;  %v1234_v54 = vsel %vm2238_vm4, %v1233_v27, %v1229_v61  ;;  %v1004_v2 = vsel %vm1003_vm11, %v1694_v20, %v1000_v35  ;;  %1707 = vrcp.f32 %v2272_v41  ;;  %v677_v5 = vadd.f32 %v676_v32, %v464_v31 }
  0xe6   : > { %v1407_v50 = vmul.f32 %v1234_v54, %v2122_v42  ;;  %v1009_v53 = vsel %vm2248_vm5, %v1008_v36, %v1004_v2  ;;  %v1239_v56 = vmul.f32 %v1698_v40, %v1238_v57  ;;  %vm1242_vm12 = vweird.f32 %v1698_v40  ;;  %v679_v14 = vpop.f32.mrf.mxu1 }
  0xe7   : > { %v1704_v7 = vpop.eup %1703  ;;  %v1392_v8 = vmul.f32 %v1009_v53, %v2128_v47  ;;  %vm1016_vm13 = vweird.f32 %v2252_v22  ;;  %1709 = vrcp.f32 %v2278_v1  ;;  %v2290_v9 = vadd.f32 %v1967_v3, %v674_v49  ;;  %vm1243_vm15 = vmor %vm1241_vm7, %vm1242_vm12 }
  0xe8   : > { %1440 = vst.msk [vmem:[%s2025_s11 + $0xa8] sm:$0xff] %vm1418_vm2, %v1407_v50  ;;  %v1240_v10 = vadd.f32 %v1698_v40, %v1239_v56  ;;  %v1012_v42 = vmul.f32 %v1704_v7, %v2252_v22  ;;  %vm2295_vm14 = vcmp.eq.f32.partialorder %v1020_v45, 8.507059e+37  ;;  %v1023_v58 = vor.u32 1.1754944e-38, %v1022_v16 }
  0xe9   : > { %v1706_v47 = vpop.eup %1705  ;;  %1425 = vst.msk [vmem:[%s2025_s11 + $0x30] sm:$0xff] %vm1418_vm2, %v1392_v8  ;;  %v1260_v15 = vand.u32 2147483647, %v2272_v41  ;;  %v1262_v17 = vand.u32 2147483648, %v2272_v41  ;;  %v1035_v25 = vand.u32 2147483647, %v2278_v1  ;;  %v2308_v4 = vadd.f32 %v1967_v3, %v722_v51 }
  0xea   : > { %v1244_v18 = vsel %vm1243_vm15, %v1698_v40, %v1240_v10  ;;  %v1013_v20 = vsub.f32 1.0, %v1012_v42  ;;  %v1037_v21 = vand.u32 2147483648, %v2278_v1  ;;  %v2311_v62 = vadd.f32 1.0, %v1706_v47 }
  0xeb   : > { %v515_v12 = vpop.f32.mrf.mxu2  ;;  %v1708_v59 = vpop.eup %1707  ;;  %v1249_v23 = vsel %vm2260_vm9, %v1248_v44, %v1244_v18  ;;  %vm1017_vm0 = vweird.f32 %v1704_v7  ;;  %vm1256_vm1 = vweird.f32 %v2272_v41  ;;  %v1605_v24 = vmul.f32 -1.442695, %v2290_v9 }
  0xec   : > { %v1408_v27 = vmul.f32 %v1249_v23, %v2169_v19  ;;  %v1014_v29 = vmul.f32 %v1704_v7, %v1013_v20  ;;  %v1252_v31 = vmul.f32 %v1708_v59, %v2272_v41  ;;  %v1621_v32 = vmul.f32 -1.442695, %v2308_v4  ;;  %vm1018_vm6 = vmor %vm1016_vm13, %vm1017_vm0  ;;  %v470_v57 = vpop.f32.mrf.mxu0 }
  0xed   : > { %v727_v6 = vpop.f32.mrf.mxu3  ;;  %v1710_v30 = vpop.eup %1709  ;;  %vm2320_vm3 = vcmp.eq.f32.partialorder %v1260_v15, 8.507059e+37  ;;  %v1263_v36 = vor.u32 1.1754944e-38, %v1262_v17  ;;  %vm1031_vm4 = vweird.f32 %v2278_v1  ;;  %1711 = vrcp.f32 %v2311_v62 }
  0xee   : > { %1441 = vst.msk [vmem:[%s2025_s11 + $0xb0] sm:$0xff] %vm1418_vm2, %v1408_v27  ;;  %v1015_v37 = vadd.f32 %v1704_v7, %v1014_v29  ;;  %v1253_v39 = vsub.f32 1.0, %v1252_v31  ;;  %v1027_v19 = vmul.f32 %v1710_v30, %v2278_v1  ;;  %vm2329_vm5 = vcmp.eq.f32.partialorder %v1035_v25, 8.507059e+37  ;;  %v682_v16 = vpop.f32.mrf.mxu1 }
  0xef   : > { %v1038_v43 = vor.u32 1.1754944e-38, %v1037_v21  ;;  %vm1257_vm7 = vweird.f32 %v1708_v59  ;;  %vm1032_vm8 = vweird.f32 %v1710_v30  ;;  %1713 = vpow2.f32 %v1605_v24 }
  0xf0   : > { %v2337_v44 = vadd.f32 %v1967_v3, %v677_v5  ;;  %v1019_v26 = vsel %vm1018_vm6, %v1704_v7, %v1015_v37  ;;  %v1254_v48 = vmul.f32 %v1708_v59, %v1253_v39  ;;  %v1028_v13 = vsub.f32 1.0, %v1027_v19  ;;  %vm1258_vm9 = vmor %vm1256_vm1, %vm1257_vm7 }
  0xf1   : > { %1715 = vpow2.f32 %v1621_v32  ;;  %v1024_v38 = vsel %vm2295_vm14, %v1023_v58, %v1019_v26  ;;  %v725_v22 = vadd.f32 %v2266_v52, %v2257_v46  ;;  %v680_v51 = vadd.f32 %v679_v14, %v467_v63  ;;  %vm1033_vm10 = vmor %vm1031_vm4, %vm1032_vm8 }
  0xf2   : > { %v1606_v49 = vmul.f32 -1.442695, %v2337_v44  ;;  %v1393_v55 = vmul.f32 %v1024_v38, %v2183_v34  ;;  %v1255_v35 = vadd.f32 %v1708_v59, %v1254_v48  ;;  %v1029_v45 = vmul.f32 %v1710_v30, %v1028_v13 }
  0xf3   : > { %v728_v61 = vadd.f32 %v727_v6, %v515_v12  ;;  %v1712_v54 = vpop.eup %1711  ;;  %v1275_v2 = vand.u32 2147483647, %v2311_v62  ;;  %v2350_v5 = vadd.f32 %v1967_v3, %v725_v22  ;;  %v2353_v46 = vadd.f32 %v1967_v3, %v680_v51  ;;  %v2359_v56 = vpop.f32.mrf.mxu2 }
  0xf4   : > { %1717 = vpow2.f32 %v1606_v49  ;;  %1426 = vst.msk [vmem:[%s2025_s11 + $0x38] sm:$0xff] %vm1418_vm2, %v1393_v55  ;;  %v1259_v34 = vsel %vm1258_vm9, %v1708_v59, %v1255_v35  ;;  %v1030_v52 = vadd.f32 %v1710_v30, %v1029_v45  ;;  %v1267_v50 = vmul.f32 %v1712_v54, %v2311_v62 }
  0xf5   : > { %v1277_v53 = vand.u32 2147483648, %v2311_v62  ;;  %v2361_v41 = vpop.f32.mrf.mxu3  ;;  %v1714_v7 = vpop.eup %1713  ;;  %v1264_v8 = vsel %vm2320_vm3, %v1263_v36, %v1259_v34  ;;  %v1622_v10 = vmul.f32 -1.442695, %v2350_v5  ;;  %v2370_v42 = vadd.f32 %v1967_v3, %v728_v61 }
  0xf6   : > { %v683_v11 = vadd.f32 %v682_v16, %v470_v57  ;;  %v1409_v63 = vmul.f32 %v1264_v8, %v2212_v60  ;;  %v1034_v14 = vsel %vm1033_vm10, %v1710_v30, %v1030_v52  ;;  %v1268_v47 = vsub.f32 1.0, %v1267_v50  ;;  %v473_v30 = vpop.f32.mrf.mxu0  ;;  %v685_v33 = vpop.f32.mrf.mxu1 }
  0xf7   : > { %v1716_v58 = vpop.eup %1715  ;;  %v2373_v15 = vadd.f32 1.0, %v1714_v7  ;;  %v1039_v17 = vsel %vm2329_vm5, %v1038_v43, %v1034_v14  ;;  %1719 = vpow2.f32 %v1622_v10  ;;  %v1607_v1 = vmul.f32 -1.442695, %v2353_v46 }
  0xf8   : > { %v2377_v25 = vadd.f32 1.0, %v1716_v58  ;;  %1442 = vst.msk [vmem:[%s2025_s11 + $0xb8] sm:$0xff] %vm1418_vm2, %v1409_v63  ;;  %v1394_v18 = vmul.f32 %v1039_v17, %v2216_v0  ;;  %v1269_v20 = vmul.f32 %v1712_v54, %v1268_v47  ;;  %vm1272_vm11 = vweird.f32 %v1712_v54 }
  0xf9   : > { %1721 = vrcp.f32 %v2373_v15  ;;  %vm1271_vm12 = vweird.f32 %v2311_v62  ;;  %vm1276_vm13 = vcmp.eq.f32.partialorder %v1275_v2, 8.507059e+37  ;;  %v1623_v6 = vmul.f32 -1.442695, %v2370_v42 }
  0xfa   : > { %v1718_v60 = vpop.eup %1717  ;;  %1723 = vrcp.f32 %v2377_v25  ;;  %1427 = vst.msk [vmem:[%s2025_s11 + $0x40] sm:$0xff] %vm1418_vm2, %v1394_v18  ;;  %v1270_v21 = vadd.f32 %v1712_v54, %v1269_v20  ;;  %vm1273_vm14 = vmor %vm1271_vm12, %vm1272_vm11  ;;  %v1278_v59 = vor.u32 1.1754944e-38, %v1277_v53  ;;  %v1050_v0 = vand.u32 2147483647, %v2373_v15 }
  0xfb   : > { %v2388_v12 = vadd.f32 1.0, %v1718_v60  ;;  %1725 = vpow2.f32 %v1607_v1  ;;  %v2393_v23 = vadd.f32 %v1967_v3, %v683_v11  ;;  %v1052_v62 = vand.u32 2147483648, %v2373_v15  ;;  %v2404_v39 = vpop.f32.mrf.mxu2 }
  0xfc   : > { %v1274_v24 = vsel %vm1273_vm14, %v1712_v54, %v1270_v21  ;;  %v1290_v27 = vand.u32 2147483647, %v2377_v25  ;;  %vm1046_vm15 = vweird.f32 %v2373_v15  ;;  %v1292_v32 = vand.u32 2147483648, %v2377_v25 }
  0xfd   : > { %1727 = vrcp.f32 %v2388_v12  ;;  %v1720_v29 = vpop.eup %1719  ;;  %v1279_v31 = vsel %vm1276_vm13, %v1278_v59, %v1274_v24  ;;  %vm1286_vm0 = vweird.f32 %v2377_v25  ;;  %v2406_v19 = vpop.f32.mrf.mxu3  ;;  %vm2409_vm1 = vcmp.eq.f32.partialorder %v1050_v0, 8.507059e+37 }
  0xfe   : > { %v1410_v3 = vmul.f32 %v1279_v31, %v2246_v28  ;;  %v2402_v37 = vadd.f32 1.0, %v1720_v29  ;;  %1729 = vpow2.f32 %v1623_v6  ;;  %v1065_v48 = vand.u32 2147483647, %v2388_v12  ;;  %v476_v20 = vpop.f32.mrf.mxu0  ;;  %v688_v60 = vpop.f32.mrf.mxu1  ;;  %v2462_v6 = vld [vmem:[%s2656_s4] ss:$0 sm:$0xff] }
  0xff   : > { %v1722_v36 = vpop.eup %1721  ;;  %v1608_v28 = vmul.f32 -1.442695, %v2393_v23  ;;  %v1053_v13 = vor.u32 1.1754944e-38, %v1052_v62  ;;  %vm2418_vm3 = vcmp.eq.f32.partialorder %v1290_v27, 8.507059e+37  ;;  %v1293_v55 = vor.u32 1.1754944e-38, %v1292_v32 }
 0x100   : > { %v1724_v40 = vpop.eup %1723  ;;  %v1042_v43 = vmul.f32 %v1722_v36, %v2373_v15  ;;  %1443 = vst.msk [vmem:[%s2025_s11 + $0xc0] sm:$0xff] %vm1418_vm2, %v1410_v3  ;;  %1731 = vrcp.f32 %v2402_v37  ;;  %vm1061_vm4 = vweird.f32 %v2388_v12  ;;  %v1067_v35 = vand.u32 2147483648, %v2388_v12 }
 0x101   : > { %v1282_v38 = vmul.f32 %v1724_v40, %v2377_v25  ;;  %v1726_v22 = vpop.eup %1725  ;;  %vm1047_vm5 = vweird.f32 %v1722_v36  ;;  %v1305_v57 = vand.u32 2147483647, %v2402_v37  ;;  %vm2429_vm6 = vcmp.eq.f32.partialorder %v1065_v48, 8.507059e+37 }
 0x102   : > { %v1043_v51 = vsub.f32 1.0, %v1042_v43  ;;  %v2426_v16 = vadd.f32 1.0, %v1726_v22  ;;  %v1307_v52 = vand.u32 2147483648, %v2402_v37  ;;  %1733 = vpow2.f32 %v1608_v28  ;;  %vm1048_vm9 = vmor %vm1046_vm15, %vm1047_vm5 }
 0x103   : > { %v1728_v45 = vpop.eup %1727  ;;  %v1283_v61 = vsub.f32 1.0, %v1282_v38  ;;  %vm1287_vm7 = vweird.f32 %v1724_v40  ;;  %v731_v7 = vadd.f32 %v2361_v41, %v2359_v56  ;;  %v1068_v11 = vor.u32 1.1754944e-38, %v1067_v35  ;;  %v524_v0 = vpop.f32.mrf.mxu2 }
 0x104   : > { %v1044_v54 = vmul.f32 %v1722_v36, %v1043_v51  ;;  %v1057_v2 = vmul.f32 %v1728_v45, %v2388_v12  ;;  %v1730_v50 = vpop.eup %1729  ;;  %1735 = vrcp.f32 %v2426_v16  ;;  %vm1301_vm8 = vweird.f32 %v2402_v37  ;;  %vm2445_vm11 = vmor %vm1286_vm0, %vm1287_vm7 }
 0x105   : > { %v1284_v53 = vmul.f32 %v1724_v40, %v1283_v61  ;;  %vm1062_vm10 = vweird.f32 %v1728_v45  ;;  %v2441_v14 = vadd.f32 1.0, %v1730_v50  ;;  %v686_v47 = vadd.f32 %v685_v33, %v473_v30  ;;  %v736_v24 = vpop.f32.mrf.mxu3 }
 0x106   : > { %v1045_v8 = vadd.f32 %v1722_v36, %v1044_v54  ;;  %v1058_v10 = vsub.f32 1.0, %v1057_v2  ;;  %v1732_v58 = vpop.eup %1731  ;;  %vm2450_vm12 = vcmp.eq.f32.partialorder %v1305_v57, 8.507059e+37  ;;  %v1308_v15 = vor.u32 1.1754944e-38, %v1307_v52  ;;  %vm1063_vm14 = vmor %vm1061_vm4, %vm1062_vm10  ;;  %v479_v50 = vpop.f32.mrf.mxu0 }
 0x107   : > { %v1285_v63 = vadd.f32 %v1724_v40, %v1284_v53  ;;  %v1297_v1 = vmul.f32 %v1732_v58, %v2402_v37  ;;  %vm1076_vm13 = vweird.f32 %v2426_v16  ;;  %v2465_v59 = vadd.f32 %v2462_v6, %v731_v7  ;;  %v691_v53 = vpop.f32.mrf.mxu1 }
 0x108   : > { %v1049_v17 = vsel %vm1048_vm9, %v1722_v36, %v1045_v8  ;;  %v1059_v41 = vmul.f32 %v1728_v45, %v1058_v10  ;;  %v1734_v62 = vpop.eup %1733  ;;  %v1080_v36 = vand.u32 2147483647, %v2426_v16  ;;  %v1082_v3 = vand.u32 2147483648, %v2426_v16 }
 0x109   : > { %v1054_v21 = vsel %vm2409_vm1, %v1053_v13, %v1049_v17  ;;  %v1289_v25 = vsel %vm2445_vm11, %v1724_v40, %v1285_v63  ;;  %v1298_v32 = vsub.f32 1.0, %v1297_v1  ;;  %1737 = vrcp.f32 %v2441_v14 }
 0x10a   : > { %v1395_v27 = vmul.f32 %v1054_v21, %v2290_v9  ;;  %v1294_v29 = vsel %vm2418_vm3, %v1293_v55, %v1289_v25  ;;  %v1060_v31 = vadd.f32 %v1728_v45, %v1059_v41  ;;  %v1736_v30 = vpop.eup %1735  ;;  %vm1302_vm15 = vweird.f32 %v1732_v58 }
 0x10b   : > { %v1411_v33 = vmul.f32 %v1294_v29, %v2308_v4  ;;  %v1299_v40 = vmul.f32 %v1732_v58, %v1298_v32  ;;  %v1072_v43 = vmul.f32 %v1736_v30, %v2426_v16  ;;  %v1320_v12 = vand.u32 2147483647, %v2441_v14  ;;  %vm1303_vm0 = vmor %vm1301_vm8, %vm1302_vm15 }
 0x10c   : > { %1428 = vst.msk [vmem:[%s2025_s11 + $0x48] sm:$0xff] %vm1418_vm2, %v1395_v27  ;;  %v1064_v9 = vsel %vm1063_vm14, %v1728_v45, %v1060_v31  ;;  %v2485_v26 = vadd.f32 1.0, %v1734_v62  ;;  %v2488_v48 = vadd.f32 %v2462_v6, %v686_v47  ;;  %v1624_v49 = vmul.f32 -1.442695, %v2465_v59 }
 0x10d   : > { %1444 = vst.msk [vmem:[%s2025_s11 + $0xc8] sm:$0xff] %vm1418_vm2, %v1411_v33  ;;  %v1069_v4 = vsel %vm2429_vm6, %v1068_v11, %v1064_v9  ;;  %v1300_v13 = vadd.f32 %v1732_v58, %v1299_v40  ;;  %v1073_v38 = vsub.f32 1.0, %v1072_v43  ;;  %vm2494_vm1 = vcmp.eq.f32.partialorder %v1080_v36, 8.507059e+37 }
 0x10e   : > { %v1396_v28 = vmul.f32 %v1069_v4, %v2337_v44  ;;  %v1083_v51 = vor.u32 1.1754944e-38, %v1082_v3  ;;  %v1322_v55 = vand.u32 2147483648, %v2441_v14  ;;  %1739 = vrcp.f32 %v2485_v26 }
 0x10f   : > { %v1304_v35 = vsel %vm1303_vm0, %v1732_v58, %v1300_v13  ;;  %v1074_v44 = vmul.f32 %v1736_v30, %v1073_v38  ;;  %vm1077_vm3 = vweird.f32 %v1736_v30  ;;  %1741 = vpow2.f32 %v1624_v49  ;;  %v1738_v45 = vpop.eup %1737 }
 0x110   : > { %1429 = vst.msk [vmem:[%s2025_s11 + $0x50] sm:$0xff] %vm1418_vm2, %v1396_v28  ;;  %v1309_v37 = vsel %vm2450_vm12, %v1308_v15, %v1304_v35  ;;  %vm1316_vm4 = vweird.f32 %v2441_v14  ;;  %v1609_v61 = vmul.f32 -1.442695, %v2488_v48  ;;  %v734_v57 = vadd.f32 %v2406_v19, %v2404_v39  ;;  %vm1078_vm6 = vmor %vm1076_vm13, %vm1077_vm3  ;;  %v527_v19 = vpop.f32.mrf.mxu2 }
 0x111   : > { %v1412_v54 = vmul.f32 %v1309_v37, %v2350_v5  ;;  %v1075_v2 = vadd.f32 %v1736_v30, %v1074_v44  ;;  %v1312_v34 = vmul.f32 %v1738_v45, %v2441_v14  ;;  %vm2510_vm5 = vcmp.eq.f32.partialorder %v1320_v12, 8.507059e+37  ;;  %v739_v5 = vpop.f32.mrf.mxu3 }
 0x112   : > { %v1323_v7 = vor.u32 1.1754944e-38, %v1322_v55  ;;  %1743 = vpow2.f32 %v1609_v61  ;;  %v2517_v8 = vadd.f32 %v2462_v6, %v734_v57  ;;  %v689_v39 = vadd.f32 %v688_v60, %v476_v20 }
 0x113   : > { %1445 = vst.msk [vmem:[%s2025_s11 + $0xd0] sm:$0xff] %vm1418_vm2, %v1412_v54  ;;  %v1079_v10 = vsel %vm1078_vm6, %v1736_v30, %v1075_v2  ;;  %v1313_v11 = vsub.f32 1.0, %v1312_v34  ;;  %vm1317_vm7 = vweird.f32 %v1738_v45  ;;  %v737_v58 = vadd.f32 %v736_v24, %v524_v0 }
 0x114   : > { %v1740_v63 = vpop.eup %1739  ;;  %v1084_v16 = vsel %vm2494_vm1, %v1083_v51, %v1079_v10  ;;  %v1625_v47 = vmul.f32 -1.442695, %v2517_v8  ;;  %v2525_v17 = vadd.f32 %v2462_v6, %v689_v39  ;;  %v692_v56 = vadd.f32 %v691_v53, %v479_v50  ;;  %vm1318_vm9 = vmor %vm1316_vm4, %vm1317_vm7 }
 0x115   : > { %v1742_v41 = vpop.eup %1741  ;;  %v1397_v1 = vmul.f32 %v1084_v16, %v2353_v46  ;;  %v1314_v18 = vmul.f32 %v1738_v45, %v1313_v11  ;;  %v1087_v15 = vmul.f32 %v1740_v63, %v2485_v26  ;;  %v740_v20 = vadd.f32 %v739_v5, %v527_v19 }
 0x116   : > { %v2529_v60 = vadd.f32 1.0, %v1742_v41  ;;  %1745 = vpow2.f32 %v1625_v47  ;;  %v1610_v21 = vmul.f32 -1.442695, %v2525_v17  ;;  %v2533_v25 = vadd.f32 %v2462_v6, %v737_v58 }
 0x117   : > { %1430 = vst.msk [vmem:[%s2025_s11 + $0x58] sm:$0xff] %vm1418_vm2, %v1397_v1  ;;  %v1315_v0 = vadd.f32 %v1738_v45, %v1314_v18  ;;  %v1088_v24 = vsub.f32 1.0, %v1087_v15  ;;  %vm1091_vm8 = vweird.f32 %v2485_v26  ;;  %v1095_v46 = vand.u32 2147483647, %v2485_v26 }
 0x118   : > { %v1744_v62 = vpop.eup %1743  ;;  %vm1092_vm10 = vweird.f32 %v1740_v63  ;;  %v1097_v27 = vand.u32 2147483648, %v2485_v26  ;;  %1747 = vrcp.f32 %v2529_v60  ;;  %v2545_v29 = vadd.f32 %v2462_v6, %v692_v56 }
 0x119   : > { %v1319_v31 = vsel %vm1318_vm9, %v1738_v45, %v1315_v0  ;;  %v1089_v32 = vmul.f32 %v1740_v63, %v1088_v24  ;;  %v2547_v30 = vadd.f32 1.0, %v1744_v62  ;;  %1749 = vpow2.f32 %v1610_v21  ;;  %vm1093_vm11 = vmor %vm1091_vm8, %vm1092_vm10 }
 0x11a   : > { %v1324_v33 = vsel %vm2510_vm5, %v1323_v7, %v1319_v31  ;;  %v1626_v14 = vmul.f32 -1.442695, %v2533_v25  ;;  %v2553_v36 = vadd.f32 %v2462_v6, %v740_v20  ;;  %v1098_v43 = vor.u32 1.1754944e-38, %v1097_v27 }
 0x11b   : > { %v1413_v3 = vmul.f32 %v1324_v33, %v2370_v42  ;;  %v1090_v9 = vadd.f32 %v1740_v63, %v1089_v32  ;;  %1751 = vrcp.f32 %v2547_v30  ;;  %v1611_v4 = vmul.f32 -1.442695, %v2545_v29 }
 0x11c   : > { %v1746_v40 = vpop.eup %1745  ;;  %1753 = vpow2.f32 %v1626_v14  ;;  %vm1096_vm12 = vcmp.eq.f32.partialorder %v1095_v46, 8.507059e+37  ;;  %v1627_v13 = vmul.f32 -1.442695, %v2553_v36  ;;  %v1337_v35 = vand.u32 2147483648, %v2529_v60 }
 0x11d   : > { %1446 = vst.msk [vmem:[%s2025_s11 + $0xd8] sm:$0xff] %vm1418_vm2, %v1413_v3  ;;  %v1094_v12 = vsel %vm1093_vm11, %v1740_v63, %v1090_v9  ;;  %v2563_v6 = vadd.f32 1.0, %v1746_v40  ;;  %1755 = vpow2.f32 %v1611_v4  ;;  %v1335_v45 = vand.u32 2147483647, %v2529_v60 }
 0x11e   : > { %v1748_v42 = vpop.eup %1747  ;;  %v1099_v28 = vsel %vm1096_vm12, %v1098_v43, %v1094_v12  ;;  %v1112_v2 = vand.u32 2147483648, %v2547_v30  ;;  %vm1331_vm14 = vweird.f32 %v2529_v60  ;;  %v1338_v53 = vor.u32 1.1754944e-38, %v1337_v35 }
 0x11f   : > { %v1750_v38 = vpop.eup %1749  ;;  %v1398_v26 = vmul.f32 %v1099_v28, %v2393_v23  ;;  %v1327_v49 = vmul.f32 %v1748_v42, %v2529_v60  ;;  %1757 = vrcp.f32 %v2563_v6  ;;  %vm1332_vm13 = vweird.f32 %v1748_v42 }
 0x120   : > { %v2569_v22 = vadd.f32 1.0, %v1750_v38  ;;  %1759 = vpow2.f32 %v1627_v13  ;;  %v1110_v23 = vand.u32 2147483647, %v2547_v30  ;;  %vm1333_vm15 = vmor %vm1331_vm14, %vm1332_vm13  ;;  %vm1106_vm0 = vweird.f32 %v2547_v30 }
 0x121   : > { %v1752_v51 = vpop.eup %1751  ;;  %1431 = vst.msk [vmem:[%s2025_s11 + $0x60] sm:$0xff] %vm1418_vm2, %v1398_v26  ;;  %v1328_v55 = vsub.f32 1.0, %v1327_v49  ;;  %vm1336_vm3 = vcmp.eq.f32.partialorder %v1335_v45, 8.507059e+37  ;;  %v1113_v16 = vor.u32 1.1754944e-38, %v1112_v2  ;;  %v1350_v1 = vand.u32 2147483647, %v2563_v6 }
 0x122   : > { %v1754_v44 = vpop.eup %1753  ;;  %v1102_v37 = vmul.f32 %v1752_v51, %v2547_v30  ;;  %1761 = vrcp.f32 %v2569_v22  ;;  %vm1107_vm1 = vweird.f32 %v1752_v51  ;;  %vm2586_vm4 = vcmp.eq.f32.partialorder %v1110_v23, 8.507059e+37 }
 0x123   : > { %v1329_v61 = vmul.f32 %v1748_v42, %v1328_v55  ;;  %v1756_v57 = vpop.eup %1755  ;;  %v2579_v34 = vadd.f32 1.0, %v1754_v44  ;;  %vm1108_vm5 = vmor %vm1106_vm0, %vm1107_vm1  ;;  %v1352_v18 = vand.u32 2147483648, %v2563_v6  ;;  %vm1346_vm7 = vweird.f32 %v2563_v6 }
 0x124   : > { %v1103_v54 = vsub.f32 1.0, %v1102_v37  ;;  %v2582_v7 = vadd.f32 1.0, %v1756_v57  ;;  %vm1351_vm9 = vcmp.eq.f32.partialorder %v1350_v1, 8.507059e+37  ;;  %vm1121_vm10 = vweird.f32 %v2569_v22 }
 0x125   : > { %v1758_v52 = vpop.eup %1757  ;;  %v1330_v50 = vadd.f32 %v1748_v42, %v1329_v61  ;;  %1763 = vrcp.f32 %v2579_v34  ;;  %v1353_v31 = vor.u32 1.1754944e-38, %v1352_v18  ;;  %v1127_v32 = vand.u32 2147483648, %v2569_v22 }
 0x126   : > { %v1104_v39 = vmul.f32 %v1752_v51, %v1103_v54  ;;  %v1342_v19 = vmul.f32 %v1758_v52, %v2563_v6  ;;  %v1760_v11 = vpop.eup %1759  ;;  %1765 = vrcp.f32 %v2582_v7  ;;  %vm1347_vm6 = vweird.f32 %v1758_v52 }
 0x127   : > { %v1334_v5 = vsel %vm1333_vm15, %v1748_v42, %v1330_v50  ;;  %v2603_v62 = vadd.f32 1.0, %v1760_v11  ;;  %vm1348_vm8 = vmor %vm1346_vm7, %vm1347_vm6  ;;  %v1128_v6 = vor.u32 1.1754944e-38, %v1127_v32  ;;  %vm1361_vm14 = vweird.f32 %v2579_v34 }
 0x128   : > { %v1339_v58 = vsel %vm1336_vm3, %v1338_v53, %v1334_v5  ;;  %v1105_v63 = vadd.f32 %v1752_v51, %v1104_v39  ;;  %v1343_v47 = vsub.f32 1.0, %v1342_v19  ;;  %v1762_v56 = vpop.eup %1761  ;;  %v1365_v42 = vand.u32 2147483647, %v2579_v34 }
 0x129   : > { %v1414_v41 = vmul.f32 %v1339_v58, %v2465_v59  ;;  %v1117_v60 = vmul.f32 %v1762_v56, %v2569_v22  ;;  %v1125_v59 = vand.u32 2147483647, %v2569_v22  ;;  %vm1122_vm11 = vweird.f32 %v1762_v56 }
 0x12a   : > { %v1109_v15 = vsel %vm1108_vm5, %v1752_v51, %v1105_v63  ;;  %v1344_v20 = vmul.f32 %v1758_v52, %v1343_v47  ;;  %1767 = vrcp.f32 %v2603_v62  ;;  %vm1123_vm13 = vmor %vm1121_vm10, %vm1122_vm11  ;;  %v1367_v28 = vand.u32 2147483648, %v2579_v34 }
 0x12b   : > { %1447 = vst.msk [vmem:[%s2025_s11 + $0xe0] sm:$0xff] %vm1418_vm2, %v1414_v41  ;;  %v1114_v21 = vsel %vm2586_vm4, %v1113_v16, %v1109_v15  ;;  %v1118_v46 = vsub.f32 1.0, %v1117_v60  ;;  %v1764_v27 = vpop.eup %1763  ;;  %vm2610_vm12 = vcmp.eq.f32.partialorder %v1125_v59, 8.507059e+37  ;;  %vm1136_vm0 = vweird.f32 %v2582_v7 }
 0x12c   : > { %v1399_v0 = vmul.f32 %v1114_v21, %v2488_v48  ;;  %v1345_v24 = vadd.f32 %v1758_v52, %v1344_v20  ;;  %v1357_v48 = vmul.f32 %v1764_v27, %v2579_v34  ;;  %v1766_v14 = vpop.eup %1765  ;;  %vm1362_vm15 = vweird.f32 %v1764_v27 }
 0x12d   : > { %v1119_v33 = vmul.f32 %v1762_v56, %v1118_v46  ;;  %v1132_v12 = vmul.f32 %v1766_v14, %v2582_v7  ;;  %v1140_v49 = vand.u32 2147483647, %v2582_v7  ;;  %v1142_v22 = vand.u32 2147483648, %v2582_v7  ;;  %vm1363_vm3 = vmor %vm1361_vm14, %vm1362_vm15 }
 0x12e   : > { %1432 = vst.msk [vmem:[%s2025_s11 + $0x68] sm:$0xff] %vm1418_vm2, %v1399_v0  ;;  %v1349_v30 = vsel %vm1348_vm8, %v1758_v52, %v1345_v24  ;;  %v1358_v4 = vsub.f32 1.0, %v1357_v48  ;;  %vm1137_vm1 = vweird.f32 %v1766_v14  ;;  %v1368_v45 = vor.u32 1.1754944e-38, %v1367_v28 }
 0x12f   : > { %v1354_v3 = vsel %vm1351_vm9, %v1353_v31, %v1349_v30  ;;  %v1120_v43 = vadd.f32 %v1762_v56, %v1119_v33  ;;  %vm1366_vm4 = vcmp.eq.f32.partialorder %v1365_v42, 8.507059e+37  ;;  %vm1138_vm5 = vmor %vm1136_vm0, %vm1137_vm1  ;;  %vm1141_vm6 = vcmp.eq.f32.partialorder %v1140_v49, 8.507059e+37 }
 0x130   : > { %v1415_v40 = vmul.f32 %v1354_v3, %v2517_v8  ;;  %v1359_v38 = vmul.f32 %v1764_v27, %v1358_v4  ;;  %v1133_v8 = vsub.f32 1.0, %v1132_v12  ;;  %v1768_v44 = vpop.eup %1767  ;;  %v1382_v50 = vand.u32 2147483648, %v2603_v62 }
 0x131   : > { %v1124_v13 = vsel %vm1123_vm13, %v1762_v56, %v1120_v43  ;;  %v1372_v23 = vmul.f32 %v1768_v44, %v2603_v62  ;;  %vm1377_vm7 = vweird.f32 %v1768_v44  ;;  %v1380_v19 = vand.u32 2147483647, %v2603_v62 }
 0x132   : > { %1448 = vst.msk [vmem:[%s2025_s11 + $0xe8] sm:$0xff] %vm1418_vm2, %v1415_v40  ;;  %v1129_v26 = vsel %vm2610_vm12, %v1128_v6, %v1124_v13  ;;  %v1360_v55 = vadd.f32 %v1764_v27, %v1359_v38  ;;  %v1134_v35 = vmul.f32 %v1766_v14, %v1133_v8  ;;  %vm1376_vm8 = vweird.f32 %v2603_v62 }
 0x133   : > { %v1400_v51 = vmul.f32 %v1129_v26, %v2525_v17  ;;  %v1143_v17 = vor.u32 1.1754944e-38, %v1142_v22  ;;  %v1373_v34 = vsub.f32 1.0, %v1372_v23  ;;  %vm1378_vm9 = vmor %vm1376_vm8, %vm1377_vm7  ;;  %vm1381_vm10 = vcmp.eq.f32.partialorder %v1380_v19, 8.507059e+37 }
 0x134   : > { %v1364_v37 = vsel %vm1363_vm3, %v1764_v27, %v1360_v55  ;;  %v1135_v61 = vadd.f32 %v1766_v14, %v1134_v35 }
 0x135   : > { %1433 = vst.msk [vmem:[%s2025_s11 + $0x70] sm:$0xff] %vm1418_vm2, %v1400_v51  ;;  %v1369_v57 = vsel %vm1366_vm4, %v1368_v45, %v1364_v37  ;;  %v1374_v39 = vmul.f32 %v1768_v44, %v1373_v34 }
 0x136   : > { %v1416_v54 = vmul.f32 %v1369_v57, %v2533_v25  ;;  %v1139_v2 = vsel %vm1138_vm5, %v1766_v14, %v1135_v61  ;;  %v1383_v25 = vor.u32 1.1754944e-38, %v1382_v50 }
 0x137   : > { %v1144_v52 = vsel %vm1141_vm6, %v1143_v17, %v1139_v2  ;;  %v1375_v7 = vadd.f32 %v1768_v44, %v1374_v39 }
 0x138   : > { %1449 = vst.msk [vmem:[%s2025_s11 + $0xf0] sm:$0xff] %vm1418_vm2, %v1416_v54  ;;  %v1401_v53 = vmul.f32 %v1144_v52, %v2545_v29 }
 0x139   : > { %v1379_v5 = vsel %vm1378_vm9, %v1768_v44, %v1375_v7 }
 0x13a   : > { %1434 = vst.msk [vmem:[%s2025_s11 + $0x78] sm:$0xff] %vm1418_vm2, %v1401_v53  ;;  %v1384_v10 = vsel %vm1381_vm10, %v1383_v25, %v1379_v5 }
 0x13b   : > { %v1417_v11 = vmul.f32 %v1384_v10, %v2553_v36 }
 0x13d   : > { %1450 = vst.msk [vmem:[%s2025_s11 + $0xf8] sm:$0xff] %vm1418_vm2, %v1417_v11 }
 0x13e PF: > { %s15_s18 = sadd.s32 1, %s1776_s18  }
 0x13f   : > { %p12_p4 = scmp.ge.s32.totalorder %s15_s18, 4  }
 0x141   :  { %14 = sbr.rel (!%p12_p4) target bundleno = 1 (0x1), region = 73 }

// kernel: c3_forward.6
= control target key start
LH: loop header
LB: loop body
LE: loop exit
PB: predicated region body
PF: predicated region fallthrough
CT: control target
= control target key end

     0   :  { %s4201_s15 = smov 0   ;;  %s5715_s0 = inlined_call_operand.vmem [shape: f32[2,18,18,1], index: 0, kind: input, shape index: {}]   ;;  %s5716_s1 = inlined_call_operand.vmem [shape: f32[9,2], index: 1, kind: input, shape index: {}]   ;;  %s5717_s2 = inlined_call_operand.vmem [shape: f32[1,2], index: 2, kind: input, shape index: {}]   ;;  %s5718_s3 = inlined_call_operand.vmem [shape: f32[2,256,2], index: 3, kind: input, shape index: {}]   ;;  %s5719_s4 = inlined_call_operand.vmem [shape: f32[2,256,2], index: 4, kind: output, shape index: {}]  }
   0x1 LB: > { %s3491_s16 = sadd.s32 4294967295, %s4174_s15   ;;  %p3495_p0 = scmp.ge.s32.totalorder %s4174_s15, 1  ;;  %s4174_s15 = sphi %s4201_s15, %s14_s15  }
   0x2   : > { %p172_p1 = scmp.lt.s32.totalorder %s4174_s15, 3 }
   0x4   : > { %p173_p2 = pnand %p3495_p0, %p172_p1 }
   0x6   : > { %176 = sbr.rel (%p173_p2) target bundleno = 760 (0x2f8), region = 36 }
   0xb   : > { %v283_v0 = vld [vmem:[%s5716_s1 + $0x1] sm:$0x1]  ;;  %vm381_vm0 = vcmask 1040384   ;;  %p203_p3 = scmp.lt.s32.totalorder %s3491_s16, 1  ;;  %v742_v1 = vld [vmem:[%s5716_s1 + $0x2] sm:$0x1] }
   0xc   : > { %4026 = vmatpush.msk.msra.mxu1 %vm381_vm0, %v283_v0  ;;  %4027 = vmatpush.msk.msra.mxu2 %vm381_vm0, %v283_v0  ;;  %v1020_v2 = vld [vmem:[%s5716_s1 + $0x3] sm:$0x1]  ;;  %v250_v3 = vld [vmem:[%s5716_s1] sm:$0x1]  ;;  %v1297_v4 = vld [vmem:[%s5716_s1 + $0x4] sm:$0x1] }
   0xd   : > { %s5811_s16 = smov (!%p203_p3, %s3491_s16), 1  ;;  %4028 = vmatpush.msk.msra.mxu3 %vm381_vm0, %v283_v0  ;;  %3501 = vmatpush.msk.msra.mxu0 %vm381_vm0, %v283_v0  ;;  %vm284_vm1 = vcmask 7168   ;;  %v1852_v25 = vld [vmem:[%s5716_s1 + $0x6] sm:$0x1]  ;;  %v2129_v26 = vld [vmem:[%s5716_s1 + $0x7] sm:$0x1] }
   0xe   : > { %3567 = vmatpush.msk.msrb.mxu2 %vm381_vm0, %v742_v1  ;;  %3534 = vmatpush.msk.msrb.mxu1 %vm381_vm0, %v250_v3  ;;  %s4029_s27 = smul.u32 432, %s5811_s16  ;;  %v1574_v27 = vld [vmem:[%s5716_s1 + $0x5] sm:$0x1]  ;;  %v2406_v32 = vld [vmem:[%s5716_s1 + $0x8] sm:$0x1]  ;;  %s4024_s17 = sshll.u32 %s5811_s16, 8 }
   0xf   : > { %3632 = vmatpush.msk.msrb.mxu3 %vm381_vm0, %v1020_v2  ;;  %3697 = vmatpush.msk.msrb.mxu0 %vm381_vm0, %v1297_v4  ;;  %s5120_s20 = scalar_lea.vmem %s5718_s3, %s4024_s17  ;;  %s5145_s23 = scalar_lea.vmem %s5719_s4, %s4024_s17  ;;  %vm3391_vm6 = vcmask 15360  }
  0x10   : > { %s4238_s30 = scalar_lea.vmem %s5715_s0, %s4029_s27 }
  0x11   : > { %v4241_v5 = vld [vmem:[%s4238_s30 + $0x61] sm:$0xff]  ;;  %v4258_v9 = vld [vmem:[%s4238_s30 + $0x69] sm:$0xff]  ;;  %v4275_v13 = vld [vmem:[%s4238_s30 + $0x79] sm:$0xff] }
  0x12   : > { %v4244_v6 = vld [vmem:[%s4238_s30 + $0xc1] sm:$0xff]  ;;  %3510 = vmatmul.msk.f32.vlgmr.msra.gmra.mxu1 %vm284_vm1, %v4241_v5  ;;  %v4261_v10 = vld [vmem:[%s4238_s30 + $0xc9] sm:$0xff]  ;;  %v4278_v14 = vld [vmem:[%s4238_s30 + $0xd9] sm:$0xff] }
  0x13   : > { %v4247_v7 = vld [vmem:[%s4238_s30 + $0x121] sm:$0xff]  ;;  %3518 = vmatmul.msk.f32.vlgmr.msra.gmra.mxu2 %vm284_vm1, %v4244_v6  ;;  %v4264_v11 = vld [vmem:[%s4238_s30 + $0x129] sm:$0xff]  ;;  %v4281_v15 = vld [vmem:[%s4238_s30 + $0x139] sm:$0xff]  ;;  %3762 = vmatpush.msk.msra.mxu1 %vm381_vm0, %v1574_v27 }
  0x14   : > { %v251_v8 = vld [vmem:[%s4238_s30 + $0x1] sm:$0xff]  ;;  %3526 = vmatmul.msk.f32.vlgmr.msra.gmra.mxu3 %vm284_vm1, %v4247_v7  ;;  %v252_v12 = vld [vmem:[%s4238_s30 + $0x9] sm:$0xff]  ;;  %v253_v16 = vld [vmem:[%s4238_s30 + $0x19] sm:$0xff]  ;;  %3827 = vmatpush.msk.msra.mxu2 %vm381_vm0, %v1852_v25 }
  0x15   : > { %3502 = vmatmul.msk.f32.vlgmr.msra.gmra.mxu0 %vm284_vm1, %v251_v8  ;;  %v4292_v17 = vld [vmem:[%s4238_s30 + $0x81] sm:$0xff]  ;;  %v4309_v21 = vld [vmem:[%s4238_s30 + $0x91] sm:$0xff]  ;;  %3892 = vmatpush.msk.msra.mxu3 %vm381_vm0, %v2129_v26  ;;  %v4341_v28 = vld [vmem:[%s4238_s30 + $0x99] sm:$0xff] }
  0x16   : > { %v4295_v18 = vld [vmem:[%s4238_s30 + $0xe1] sm:$0xff]  ;;  %v4312_v22 = vld [vmem:[%s4238_s30 + $0xf1] sm:$0xff]  ;;  %v4344_v29 = vld [vmem:[%s4238_s30 + $0xf9] sm:$0xff]  ;;  %3957 = vmatpush.msk.msra.mxu0 %vm381_vm0, %v2406_v32 }
  0x17   : > { %v4298_v19 = vld [vmem:[%s4238_s30 + $0x141] sm:$0xff]  ;;  %v4315_v23 = vld [vmem:[%s4238_s30 + $0x151] sm:$0xff]  ;;  %v4347_v30 = vld [vmem:[%s4238_s30 + $0x159] sm:$0xff] }
  0x18   : > { %v254_v20 = vld [vmem:[%s4238_s30 + $0x21] sm:$0xff]  ;;  %v4318_v24 = vld [vmem:[%s4238_s30 + $0x31] sm:$0xff]  ;;  %v4350_v31 = vld [vmem:[%s4238_s30 + $0x39] sm:$0xff] }
  0x19   : > { %v4365_v33 = vld [vmem:[%s4238_s30 + $0xa9] sm:$0xff]  ;;  %v4385_v37 = vld [vmem:[%s4238_s30 + $0xb1] sm:$0xff]  ;;  %v218_v41 = vld [vmem:[%s4238_s30] sm:$0xff] }
  0x1a   : > { %3511 = vmatmul.msk.f32.gmra.mxu1 %vm284_vm1, %v4258_v9  ;;  %v4368_v34 = vld [vmem:[%s4238_s30 + $0x109] sm:$0xff]  ;;  %v4388_v38 = vld [vmem:[%s4238_s30 + $0x111] sm:$0xff]  ;;  %v3601_v46 = vld [vmem:[%s4238_s30 + $0x20] sm:$0xff] }
  0x1b   : > { %3519 = vmatmul.msk.f32.gmra.mxu2 %vm284_vm1, %v4261_v10  ;;  %v4371_v35 = vld [vmem:[%s4238_s30 + $0x169] sm:$0xff]  ;;  %v4391_v39 = vld [vmem:[%s4238_s30 + $0x171] sm:$0xff]  ;;  %v4419_v47 = vld [vmem:[%s4238_s30 + $0x1a] sm:$0xff] }
  0x1c   : > { %3527 = vmatmul.msk.f32.gmra.mxu3 %vm284_vm1, %v4264_v11  ;;  %v4374_v36 = vld [vmem:[%s4238_s30 + $0x49] sm:$0xff]  ;;  %v4394_v40 = vld [vmem:[%s4238_s30 + $0x51] sm:$0xff]  ;;  %v4459_v53 = vld [vmem:[%s4238_s30 + $0x3a] sm:$0xff] }
  0x1d   : > { %3503 = vmatmul.msk.f32.gmra.mxu0 %vm284_vm1, %v252_v12  ;;  %v710_v42 = vld [vmem:[%s4238_s30 + $0x2] sm:$0xff]  ;;  %v3600_v43 = vld [vmem:[%s4238_s30 + $0x18] sm:$0xff]  ;;  %v711_v45 = vld [vmem:[%s4238_s30 + $0xa] sm:$0xff] }
  0x1e   : > { %v219_v44 = vld [vmem:[%s4238_s30 + $0x8] sm:$0xff]  ;;  %v4422_v48 = vld [vmem:[%s4238_s30 + $0x30] sm:$0xff]  ;;  %v4435_v50 = vld [vmem:[%s4238_s30 + $0x38] sm:$0xff] }
  0x1f   : > { %v4432_v49 = vld [vmem:[%s4238_s30 + $0x22] sm:$0xff]  ;;  %v4445_v51 = vld [vmem:[%s4238_s30 + $0x32] sm:$0xff]  ;;  %v4473_v55 = vld [vmem:[%s4238_s30 + $0x4a] sm:$0xff] }
  0x20   : > { %v4448_v52 = vld [vmem:[%s4238_s30 + $0x48] sm:$0xff]  ;;  %v4462_v54 = vld [vmem:[%s4238_s30 + $0x50] sm:$0xff]  ;;  %v4476_v56 = vld [vmem:[%s4238_s30 + $0x60] sm:$0xff] }
  0x21   : > { %v4487_v57 = vld [vmem:[%s4238_s30 + $0x52] sm:$0xff]  ;;  %v4490_v58 = vld [vmem:[%s4238_s30 + $0x68] sm:$0xff]  ;;  %v4528_v3 = vld [vmem:[%s4238_s30 + $0x80] sm:$0xff] }
  0x22   : > { %3512 = vmatmul.msk.f32.gmra.mxu1 %vm284_vm1, %v4275_v13  ;;  %5744 = vst [vmem:[#allocation2_spill] sm:$0xff] %v4490_v58  ;;  %v4503_v60 = vld [vmem:[%s4238_s30 + $0x62] sm:$0xff]  ;;  %v4506_v61 = vld [vmem:[%s4238_s30 + $0x78] sm:$0xff]  ;;  %v4525_v2 = vld [vmem:[%s4238_s30 + $0x6a] sm:$0xff] }
  0x23   : > { %3520 = vmatmul.msk.f32.gmra.mxu2 %vm284_vm1, %v4278_v14  ;;  %5745 = vst [vmem:[#allocation3_spill] sm:$0xff] %v4506_v61  ;;  %v4547_v12 = vld [vmem:[%s4238_s30 + $0x7a] sm:$0xff]  ;;  %v4569_v26 = vld [vmem:[%s4238_s30 + $0x82] sm:$0xff] }
  0x24   : > { %3528 = vmatmul.msk.f32.gmra.mxu3 %vm284_vm1, %v4281_v15  ;;  %5747 = vst [vmem:[#allocation5_spill] sm:$0xff] %v4525_v2  ;;  %v4572_v27 = vld [vmem:[%s4238_s30 + $0x98] sm:$0xff] }
  0x25   : > { %3504 = vmatmul.msk.f32.gmra.mxu0 %vm284_vm1, %v253_v16  ;;  %5748 = vst [vmem:[#allocation6_spill] sm:$0xff] %v4528_v3 }
  0x26   : > { %5750 = vst [vmem:[#allocation8_spill] sm:$0xff] %v4547_v12 }
  0x27   : > { %5753 = vst [vmem:[#allocation11_spill] sm:$0xff] %v4569_v26 }
  0x28   : > { %5754 = vst [vmem:[#allocation12_spill] sm:$0xff] %v4572_v27 }
  0x2a   : > { %3513 = vmatmul.msk.f32.gmra.mxu1 %vm284_vm1, %v4292_v17 }
  0x2b   : > { %3521 = vmatmul.msk.f32.gmra.mxu2 %vm284_vm1, %v4295_v18 }
  0x2c   : > { %3529 = vmatmul.msk.f32.gmra.mxu3 %vm284_vm1, %v4298_v19 }
  0x2d   : > { %3505 = vmatmul.msk.f32.gmra.mxu0 %vm284_vm1, %v254_v20 }
  0x32   : > { %3514 = vmatmul.msk.f32.gmra.mxu1 %vm284_vm1, %v4309_v21 }
  0x33   : > { %3522 = vmatmul.msk.f32.gmra.mxu2 %vm284_vm1, %v4312_v22 }
  0x34   : > { %3530 = vmatmul.msk.f32.gmra.mxu3 %vm284_vm1, %v4315_v23 }
  0x35   : > { %3506 = vmatmul.msk.f32.gmra.mxu0 %vm284_vm1, %v4318_v24 }
  0x3a   : > { %3515 = vmatmul.msk.f32.gmra.mxu1 %vm284_vm1, %v4341_v28 }
  0x3b   : > { %3523 = vmatmul.msk.f32.gmra.mxu2 %vm284_vm1, %v4344_v29 }
  0x3c   : > { %3531 = vmatmul.msk.f32.gmra.mxu3 %vm284_vm1, %v4347_v30 }
  0x3d   : > { %3507 = vmatmul.msk.f32.gmra.mxu0 %vm284_vm1, %v4350_v31 }
  0x42   : > { %3516 = vmatmul.msk.f32.gmra.mxu1 %vm284_vm1, %v4365_v33 }
  0x43   : > { %3524 = vmatmul.msk.f32.gmra.mxu2 %vm284_vm1, %v4368_v34 }
  0x44   : > { %3532 = vmatmul.msk.f32.gmra.mxu3 %vm284_vm1, %v4371_v35 }
  0x45   : > { %3508 = vmatmul.msk.f32.gmra.mxu0 %vm284_vm1, %v4374_v36 }
  0x4a   : > { %3517 = vmatmul.msk.f32.gmra.mxu1 %vm284_vm1, %v4385_v37 }
  0x4b   : > { %3525 = vmatmul.msk.f32.gmra.mxu2 %vm284_vm1, %v4388_v38 }
  0x4c   : > { %3533 = vmatmul.msk.f32.gmra.mxu3 %vm284_vm1, %v4391_v39 }
  0x4d   : > { %3509 = vmatmul.msk.f32.gmra.mxu0 %vm284_vm1, %v4394_v40 }
  0x52   : > { %3535 = vmatmul.msk.f32.vlgmr.msrb.gmra.mxu1 %vm284_vm1, %v218_v41 }
  0x53   : > { %3568 = vmatmul.msk.f32.vlgmr.msrb.gmra.mxu2 %vm284_vm1, %v710_v42 }
  0x54   : > { %3633 = vmatmul.msk.f32.vlgmr.msrb.gmra.mxu3 %vm284_vm1, %v3600_v43 }
  0x55   : > { %3698 = vmatmul.msk.f32.vlgmr.msrb.gmra.mxu0 %vm284_vm1, %v253_v16 }
  0x5a   : > { %3536 = vmatmul.msk.f32.gmra.mxu1 %vm284_vm1, %v219_v44  ;;  %v4594_v44 = vld [vmem:[%s4238_s30 + $0xa8] sm:$0xff] }
  0x5b   : > { %3569 = vmatmul.msk.f32.gmra.mxu2 %vm284_vm1, %v711_v45  ;;  %5757 = vst [vmem:[#allocation15_spill] sm:$0xff] %v4594_v44 }
  0x5c   : > { %3634 = vmatmul.msk.f32.gmra.mxu3 %vm284_vm1, %v3601_v46 }
  0x5d   : > { %3699 = vmatmul.msk.f32.gmra.mxu0 %vm284_vm1, %v254_v20 }
  0x62   : > { %3537 = vmatmul.msk.f32.gmra.mxu1 %vm284_vm1, %v3600_v43  ;;  %v4591_v43 = vld [vmem:[%s4238_s30 + $0x92] sm:$0xff] }
  0x63   : > { %3570 = vmatmul.msk.f32.gmra.mxu2 %vm284_vm1, %v4419_v47  ;;  %5756 = vst [vmem:[#allocation14_spill] sm:$0xff] %v4591_v43 }
  0x64   : > { %3635 = vmatmul.msk.f32.gmra.mxu3 %vm284_vm1, %v4422_v48 }
  0x65   : > { %3700 = vmatmul.msk.f32.gmra.mxu0 %vm284_vm1, %v4318_v24 }
  0x6a   : > { %3538 = vmatmul.msk.f32.gmra.mxu1 %vm284_vm1, %v3601_v46 }
  0x6b   : > { %3571 = vmatmul.msk.f32.gmra.mxu2 %vm284_vm1, %v4432_v49 }
  0x6c   : > { %3636 = vmatmul.msk.f32.gmra.mxu3 %vm284_vm1, %v4435_v50 }
  0x6d   : > { %3701 = vmatmul.msk.f32.gmra.mxu0 %vm284_vm1, %v4350_v31 }
  0x72   : > { %3539 = vmatmul.msk.f32.gmra.mxu1 %vm284_vm1, %v4422_v48 }
  0x73   : > { %3572 = vmatmul.msk.f32.gmra.mxu2 %vm284_vm1, %v4445_v51 }
  0x74   : > { %3637 = vmatmul.msk.f32.gmra.mxu3 %vm284_vm1, %v4448_v52 }
  0x75   : > { %3702 = vmatmul.msk.f32.gmra.mxu0 %vm284_vm1, %v4374_v36 }
  0x7a   : > { %3540 = vmatmul.msk.f32.gmra.mxu1 %vm284_vm1, %v4435_v50 }
  0x7b   : > { %3573 = vmatmul.msk.f32.gmra.mxu2 %vm284_vm1, %v4459_v53 }
  0x7c   : > { %3638 = vmatmul.msk.f32.gmra.mxu3 %vm284_vm1, %v4462_v54 }
  0x7d   : > { %3703 = vmatmul.msk.f32.gmra.mxu0 %vm284_vm1, %v4394_v40 }
  0x82   : > { %3541 = vmatmul.msk.f32.gmra.mxu1 %vm284_vm1, %v4448_v52 }
  0x83   : > { %3574 = vmatmul.msk.f32.gmra.mxu2 %vm284_vm1, %v4473_v55 }
  0x84   : > { %3639 = vmatmul.msk.f32.gmra.mxu3 %vm284_vm1, %v4476_v56 }
  0x85   : > { %3704 = vmatmul.msk.f32.gmra.mxu0 %vm284_vm1, %v4241_v5 }
  0x8a   : > { %3542 = vmatmul.msk.f32.gmra.mxu1 %vm284_vm1, %v4462_v54 }
  0x8b   : > { %3575 = vmatmul.msk.f32.gmra.mxu2 %vm284_vm1, %v4487_v57 }
  0x8c   : > { %3640 = vmatmul.msk.f32.gmra.mxu3 %vm284_vm1, %v4490_v58 }
  0x8d   : > { %3705 = vmatmul.msk.f32.gmra.mxu0 %vm284_vm1, %v4258_v9 }
  0x8f   : > { %v4500_v59 = vpop.f32.mrf.mxu1 }
  0x92   : > { %v4508_v62 = vpop.f32.mrf.mxu0  ;;  %3543 = vmatmul.msk.f32.gmra.mxu1 %vm284_vm1, %v4476_v56 }
  0x93   : > { %3576 = vmatmul.msk.f32.gmra.mxu2 %vm284_vm1, %v4503_v60 }
  0x94   : > { %3641 = vmatmul.msk.f32.gmra.mxu3 %vm284_vm1, %v4506_v61 }
  0x95   : > { %3706 = vmatmul.msk.f32.gmra.mxu0 %vm284_vm1, %v4275_v13  ;;  %v4550_v13 = vld [vmem:[%s4238_s30 + $0x90] sm:$0xff] }
  0x96   : > { %v4518_v63 = vpop.f32.mrf.mxu2  ;;  %5751 = vst [vmem:[#allocation9_spill] sm:$0xff] %v4550_v13 }
  0x97   : > { %v4520_v0 = vpop.f32.mrf.mxu3  ;;  %v4522_v1 = vpop.f32.mrf.mxu1 }
  0x98   : > { %5746 = vst [vmem:[#allocation4_spill] sm:$0xff] %v4520_v0 }
  0x9a   : > { %v4530_v4 = vpop.f32.mrf.mxu0  ;;  %3544 = vmatmul.msk.f32.gmra.mxu1 %vm284_vm1, %v4490_v58  ;;  %v4695_v58 = vld [vmem:[%s4238_s30 + $0xe0] sm:$0xff] }
  0x9b   : > { %3577 = vmatmul.msk.f32.gmra.mxu2 %vm284_vm1, %v4525_v2  ;;  %v4692_v2 = vld [vmem:[%s4238_s30 + $0xca] sm:$0xff] }
  0x9c   : > { %3642 = vmatmul.msk.f32.gmra.mxu3 %vm284_vm1, %v4528_v3 }
  0x9d   : > { %3707 = vmatmul.msk.f32.gmra.mxu0 %vm284_vm1, %v4292_v17 }
  0x9e   : > { %v4540_v5 = vpop.f32.mrf.mxu2 }
  0x9f   : > { %v4542_v8 = vpop.f32.mrf.mxu3  ;;  %v4544_v9 = vpop.f32.mrf.mxu1 }
  0xa0   : > { %5749 = vst [vmem:[#allocation7_spill] sm:$0xff] %v4542_v8  ;;  %v4616_v8 = vld [vmem:[%s4238_s30 + $0xb0] sm:$0xff] }
  0xa1   : > { %5761 = vst [vmem:[#allocation19_spill] sm:$0xff] %v4616_v8 }
  0xa2   : > { %v4552_v16 = vpop.f32.mrf.mxu0  ;;  %3545 = vmatmul.msk.f32.gmra.mxu1 %vm284_vm1, %v4506_v61  ;;  %v4680_v61 = vld [vmem:[%s4238_s30 + $0xd8] sm:$0xff] }
  0xa3   : > { %3578 = vmatmul.msk.f32.gmra.mxu2 %vm284_vm1, %v4547_v12 }
  0xa4   : > { %3643 = vmatmul.msk.f32.gmra.mxu3 %vm284_vm1, %v4550_v13 }
  0xa5   : > { %3708 = vmatmul.msk.f32.gmra.mxu0 %vm284_vm1, %v4309_v21 }
  0xa6   : > { %v4562_v17 = vpop.f32.mrf.mxu2 }
  0xa7   : > { %v4564_v20 = vpop.f32.mrf.mxu3  ;;  %v4566_v25 = vpop.f32.mrf.mxu1 }
  0xa8   : > { %5752 = vst [vmem:[#allocation10_spill] sm:$0xff] %v4564_v20  ;;  %v4613_v20 = vld [vmem:[%s4238_s30 + $0x9a] sm:$0xff] }
  0xa9   : > { %5760 = vst [vmem:[#allocation18_spill] sm:$0xff] %v4613_v20 }
  0xaa   : > { %v4574_v32 = vpop.f32.mrf.mxu0  ;;  %3546 = vmatmul.msk.f32.gmra.mxu1 %vm284_vm1, %v4528_v3  ;;  %v4657_v3 = vld [vmem:[%s4238_s30 + $0xb2] sm:$0xff] }
  0xab   : > { %3579 = vmatmul.msk.f32.gmra.mxu2 %vm284_vm1, %v4569_v26  ;;  %5768 = vst [vmem:[#allocation26_spill] sm:$0xff] %v4657_v3 }
  0xac   : > { %3644 = vmatmul.msk.f32.gmra.mxu3 %vm284_vm1, %v4572_v27 }
  0xad   : > { %3709 = vmatmul.msk.f32.gmra.mxu0 %vm284_vm1, %v4341_v28 }
  0xae   : > { %v4584_v21 = vpop.f32.mrf.mxu2 }
  0xaf   : > { %v4586_v41 = vpop.f32.mrf.mxu3  ;;  %v4588_v42 = vpop.f32.mrf.mxu1 }
  0xb0   : > { %5755 = vst [vmem:[#allocation13_spill] sm:$0xff] %v4586_v41 }
  0xb2   : > { %v4596_v45 = vpop.f32.mrf.mxu0  ;;  %3547 = vmatmul.msk.f32.gmra.mxu1 %vm284_vm1, %v4550_v13  ;;  %v4635_v13 = vld [vmem:[%s4238_s30 + $0xaa] sm:$0xff] }
  0xb3   : > { %3580 = vmatmul.msk.f32.gmra.mxu2 %vm284_vm1, %v4591_v43  ;;  %5764 = vst [vmem:[#allocation22_spill] sm:$0xff] %v4635_v13 }
  0xb4   : > { %3645 = vmatmul.msk.f32.gmra.mxu3 %vm284_vm1, %v4594_v44 }
  0xb5   : > { %3710 = vmatmul.msk.f32.gmra.mxu0 %vm284_vm1, %v4365_v33 }
  0xb6   : > { %v4606_v28 = vpop.f32.mrf.mxu2 }
  0xb7   : > { %5758 = vst [vmem:[#allocation16_spill] sm:$0xff] %v4606_v28  ;;  %v4608_v46 = vpop.f32.mrf.mxu3  ;;  %v4610_v41 = vpop.f32.mrf.mxu1 }
  0xb8   : > { %5759 = vst [vmem:[#allocation17_spill] sm:$0xff] %v4608_v46 }
  0xba   : > { %v4618_v0 = vpop.f32.mrf.mxu0  ;;  %3548 = vmatmul.msk.f32.gmra.mxu1 %vm284_vm1, %v4572_v27  ;;  %v4638_v27 = vld [vmem:[%s4238_s30 + $0xc0] sm:$0xff] }
  0xbb   : > { %3581 = vmatmul.msk.f32.gmra.mxu2 %vm284_vm1, %v4613_v20  ;;  %5765 = vst [vmem:[#allocation23_spill] sm:$0xff] %v4638_v27 }
  0xbc   : > { %3646 = vmatmul.msk.f32.gmra.mxu3 %vm284_vm1, %v4616_v8 }
  0xbd   : > { %3711 = vmatmul.msk.f32.gmra.mxu0 %vm284_vm1, %v4385_v37 }
  0xbe   : > { %v4628_v33 = vpop.f32.mrf.mxu2 }
  0xbf   : > { %5762 = vst [vmem:[#allocation20_spill] sm:$0xff] %v4628_v33  ;;  %v4630_v46 = vpop.f32.mrf.mxu3  ;;  %v4632_v43 = vpop.f32.mrf.mxu1 }
  0xc0   : > { %5763 = vst [vmem:[#allocation21_spill] sm:$0xff] %v4630_v46 }
  0xc2   : > { %v4640_v26 = vpop.f32.mrf.mxu0  ;;  %3549 = vmatmul.msk.f32.gmra.mxu1 %vm284_vm1, %v4594_v44  ;;  %v4660_v44 = vld [vmem:[%s4238_s30 + $0xc8] sm:$0xff] }
  0xc3   : > { %3582 = vmatmul.msk.f32.gmra.mxu2 %vm284_vm1, %v4635_v13 }
  0xc4   : > { %3647 = vmatmul.msk.f32.gmra.mxu3 %vm284_vm1, %v4638_v27 }
  0xc5   : > { %3712 = vmatmul.msk.f32.gmra.mxu0 %vm284_vm1, %v4244_v6 }
  0xc6   : > { %v4650_v37 = vpop.f32.mrf.mxu2 }
  0xc7   : > { %5766 = vst [vmem:[#allocation24_spill] sm:$0xff] %v4650_v37  ;;  %v4652_v46 = vpop.f32.mrf.mxu3  ;;  %v4654_v20 = vpop.f32.mrf.mxu1  ;;  %v4677_v37 = vld [vmem:[%s4238_s30 + $0xc2] sm:$0xff] }
  0xc8   : > { %5767 = vst [vmem:[#allocation25_spill] sm:$0xff] %v4652_v46 }
  0xc9   : > { %5771 = vst [vmem:[#allocation29_spill] sm:$0xff] %v4677_v37 }
  0xca   : > { %v4662_v12 = vpop.f32.mrf.mxu0  ;;  %3550 = vmatmul.msk.f32.gmra.mxu1 %vm284_vm1, %v4616_v8 }
  0xcb   : > { %3583 = vmatmul.msk.f32.gmra.mxu2 %vm284_vm1, %v4657_v3 }
  0xcc   : > { %3648 = vmatmul.msk.f32.gmra.mxu3 %vm284_vm1, %v4660_v44 }
  0xcd   : > { %3713 = vmatmul.msk.f32.gmra.mxu0 %vm284_vm1, %v4261_v10 }
  0xce   : > { %v4672_v6 = vpop.f32.mrf.mxu2 }
  0xcf   : > { %5769 = vst [vmem:[#allocation27_spill] sm:$0xff] %v4672_v6  ;;  %v4674_v46 = vpop.f32.mrf.mxu3  ;;  %v614_v13 = vpop.f32.mrf.mxu1 }
  0xd0   : > { %5770 = vst [vmem:[#allocation28_spill] sm:$0xff] %v4674_v46  ;;  %v615_v10 = vadd.f32 %v614_v13, %v4508_v62 }
  0xd2   : > { %v1414_v8 = vpop.f32.mrf.mxu0  ;;  %3551 = vmatmul.msk.f32.gmra.mxu1 %vm284_vm1, %v4638_v27 }
  0xd3   : > { %3584 = vmatmul.msk.f32.gmra.mxu2 %vm284_vm1, %v4677_v37 }
  0xd4   : > { %3649 = vmatmul.msk.f32.gmra.mxu3 %vm284_vm1, %v4680_v61 }
  0xd5   : > { %3714 = vmatmul.msk.f32.gmra.mxu0 %vm284_vm1, %v4278_v14 }
  0xd6   : > { %v859_v46 = vpop.f32.mrf.mxu2 }
  0xd7   : > { %v955_v3 = vadd.f32 %v859_v46, %v615_v10  ;;  %v1137_v6 = vpop.f32.mrf.mxu3  ;;  %v617_v33 = vpop.f32.mrf.mxu1 }
  0xd8   : > { %v618_v14 = vadd.f32 %v617_v33, %v4530_v4 }
  0xd9   : > { %v1233_v27 = vadd.f32 %v1137_v6, %v955_v3  ;;  %v4712_v6 = vld [vmem:[%s4238_s30 + $0xf0] sm:$0xff] }
  0xda   : > { %v1417_v37 = vpop.f32.mrf.mxu0  ;;  %3552 = vmatmul.msk.f32.gmra.mxu1 %vm284_vm1, %v4660_v44 }
  0xdb   : > { %v4697_v28 = vadd.f32 %v1414_v8, %v1233_v27  ;;  %3585 = vmatmul.msk.f32.gmra.mxu2 %vm284_vm1, %v4692_v2  ;;  %v4709_v27 = vld [vmem:[%s4238_s30 + $0xda] sm:$0xff] }
  0xdc   : > { %3650 = vmatmul.msk.f32.gmra.mxu3 %vm284_vm1, %v4695_v58 }
  0xdd   : > { %5772 = vst [vmem:[#allocation30_spill] sm:$0xff] %v4697_v28  ;;  %3715 = vmatmul.msk.f32.gmra.mxu0 %vm284_vm1, %v4295_v18 }
  0xde   : > { %v862_v62 = vpop.f32.mrf.mxu2 }
  0xdf   : > { %v956_v3 = vadd.f32 %v862_v62, %v618_v14  ;;  %v1140_v13 = vpop.f32.mrf.mxu3  ;;  %v620_v8 = vpop.f32.mrf.mxu1  ;;  %v4726_v62 = vld [vmem:[%s4238_s30 + $0xe2] sm:$0xff] }
  0xe0   : > { %v621_v18 = vadd.f32 %v620_v8, %v4552_v16 }
  0xe1   : > { %v1234_v46 = vadd.f32 %v1140_v13, %v956_v3  ;;  %v4729_v13 = vld [vmem:[%s4238_s30 + $0xf8] sm:$0xff] }
  0xe2   : > { %v1420_v10 = vpop.f32.mrf.mxu0  ;;  %3553 = vmatmul.msk.f32.gmra.mxu1 %vm284_vm1, %v4680_v61 }
  0xe3   : > { %v4714_v28 = vadd.f32 %v1417_v37, %v1234_v46  ;;  %3586 = vmatmul.msk.f32.gmra.mxu2 %vm284_vm1, %v4709_v27 }
  0xe4   : > { %3651 = vmatmul.msk.f32.gmra.mxu3 %vm284_vm1, %v4712_v6 }
  0xe5   : > { %5773 = vst [vmem:[#allocation31_spill] sm:$0xff] %v4714_v28  ;;  %3716 = vmatmul.msk.f32.gmra.mxu0 %vm284_vm1, %v4312_v22 }
  0xe6   : > { %v865_v4 = vpop.f32.mrf.mxu2 }
  0xe7   : > { %v957_v33 = vadd.f32 %v865_v4, %v621_v18  ;;  %v1143_v14 = vpop.f32.mrf.mxu3  ;;  %v623_v37 = vpop.f32.mrf.mxu1  ;;  %v4743_v4 = vld [vmem:[%s4238_s30 + $0xf2] sm:$0xff] }
  0xe8   : > { %v624_v22 = vadd.f32 %v623_v37, %v4574_v32 }
  0xe9   : > { %v1235_v3 = vadd.f32 %v1143_v14, %v957_v33  ;;  %v3620_v14 = vld [vmem:[%s4238_s30 + $0x108] sm:$0xff] }
  0xea   : > { %v1423_v46 = vpop.f32.mrf.mxu0  ;;  %3554 = vmatmul.msk.f32.gmra.mxu1 %vm284_vm1, %v4695_v58 }
  0xeb   : > { %v4731_v28 = vadd.f32 %v1420_v10, %v1235_v3  ;;  %3587 = vmatmul.msk.f32.gmra.mxu2 %vm284_vm1, %v4726_v62 }
  0xec   : > { %3652 = vmatmul.msk.f32.gmra.mxu3 %vm284_vm1, %v4729_v13 }
  0xed   : > { %5774 = vst [vmem:[#allocation32_spill] sm:$0xff] %v4731_v28  ;;  %3717 = vmatmul.msk.f32.gmra.mxu0 %vm284_vm1, %v4344_v29 }
  0xee   : > { %v868_v16 = vpop.f32.mrf.mxu2 }
  0xef   : > { %v958_v8 = vadd.f32 %v868_v16, %v624_v22  ;;  %v1146_v18 = vpop.f32.mrf.mxu3  ;;  %v626_v10 = vpop.f32.mrf.mxu1 }
  0xf0   : > { %v627_v29 = vadd.f32 %v626_v10, %v4596_v45 }
  0xf1   : > { %v1236_v33 = vadd.f32 %v1146_v18, %v958_v8  ;;  %v3621_v18 = vld [vmem:[%s4238_s30 + $0x110] sm:$0xff] }
  0xf2   : > { %v1426_v3 = vpop.f32.mrf.mxu0  ;;  %3555 = vmatmul.msk.f32.gmra.mxu1 %vm284_vm1, %v4712_v6 }
  0xf3   : > { %v4746_v28 = vadd.f32 %v1423_v46, %v1236_v33  ;;  %3588 = vmatmul.msk.f32.gmra.mxu2 %vm284_vm1, %v4743_v4  ;;  %v731_v46 = vld [vmem:[%s4238_s30 + $0xfa] sm:$0xff] }
  0xf4   : > { %3653 = vmatmul.msk.f32.gmra.mxu3 %vm284_vm1, %v3620_v14 }
  0xf5   : > { %5775 = vst [vmem:[#allocation33_spill] sm:$0xff] %v4746_v28  ;;  %3718 = vmatmul.msk.f32.gmra.mxu0 %vm284_vm1, %v4368_v34 }
  0xf6   : > { %v871_v32 = vpop.f32.mrf.mxu2 }
  0xf7   : > { %v959_v37 = vadd.f32 %v871_v32, %v627_v29  ;;  %v1149_v22 = vpop.f32.mrf.mxu3  ;;  %v629_v16 = vpop.f32.mrf.mxu1 }
  0xf8   : > { %v630_v34 = vadd.f32 %v629_v16, %v4618_v0 }
  0xf9   : > { %v1237_v8 = vadd.f32 %v1149_v22, %v959_v37  ;;  %v732_v37 = vld [vmem:[%s4238_s30 + $0x10a] sm:$0xff]  ;;  %v3622_v22 = vld [vmem:[%s4238_s30 + $0x120] sm:$0xff] }
  0xfa   : > { %v1429_v33 = vpop.f32.mrf.mxu0  ;;  %3556 = vmatmul.msk.f32.gmra.mxu1 %vm284_vm1, %v4729_v13 }
  0xfb   : > { %v4758_v28 = vadd.f32 %v1426_v3, %v1237_v8  ;;  %3589 = vmatmul.msk.f32.gmra.mxu2 %vm284_vm1, %v731_v46 }
  0xfc   : > { %3654 = vmatmul.msk.f32.gmra.mxu3 %vm284_vm1, %v3621_v18 }
  0xfd   : > { %5776 = vst [vmem:[#allocation34_spill] sm:$0xff] %v4758_v28  ;;  %3719 = vmatmul.msk.f32.gmra.mxu0 %vm284_vm1, %v4388_v38 }
  0xfe   : > { %v874_v45 = vpop.f32.mrf.mxu2 }
  0xff   : > { %v960_v10 = vadd.f32 %v874_v45, %v630_v34  ;;  %v1152_v29 = vpop.f32.mrf.mxu3  ;;  %v632_v32 = vpop.f32.mrf.mxu1  ;;  %v733_v45 = vld [vmem:[%s4238_s30 + $0x112] sm:$0xff] }
 0x100   : > { %v633_v38 = vadd.f32 %v632_v32, %v4640_v26 }
 0x101   : > { %v1238_v3 = vadd.f32 %v1152_v29, %v960_v10  ;;  %v3623_v10 = vld [vmem:[%s4238_s30 + $0x128] sm:$0xff] }
 0x102   : > { %v1432_v8 = vpop.f32.mrf.mxu0  ;;  %3557 = vmatmul.msk.f32.gmra.mxu1 %vm284_vm1, %v3620_v14 }
 0x103   : > { %v4769_v28 = vadd.f32 %v1429_v33, %v1238_v3  ;;  %3590 = vmatmul.msk.f32.gmra.mxu2 %vm284_vm1, %v732_v37 }
 0x104   : > { %3655 = vmatmul.msk.f32.gmra.mxu3 %vm284_vm1, %v3622_v22 }
 0x105   : > { %3720 = vmatmul.msk.f32.gmra.mxu0 %vm284_vm1, %v4247_v7 }
 0x106   : > { %v877_v0 = vpop.f32.mrf.mxu2 }
 0x107   : > { %v961_v16 = vadd.f32 %v877_v0, %v633_v38  ;;  %v1155_v46 = vpop.f32.mrf.mxu3  ;;  %v635_v34 = vpop.f32.mrf.mxu1  ;;  %v734_v38 = vld [vmem:[%s4238_s30 + $0x122] sm:$0xff]  ;;  %v3624_v0 = vld [vmem:[%s4238_s30 + $0x138] sm:$0xff] }
 0x108   : > { %v636_v7 = vadd.f32 %v635_v34, %v4662_v12 }
 0x109   : > { %v1239_v33 = vadd.f32 %v1155_v46, %v961_v16 }
 0x10a   : > { %v1435_v29 = vpop.f32.mrf.mxu0  ;;  %3558 = vmatmul.msk.f32.gmra.mxu1 %vm284_vm1, %v3621_v18 }
 0x10b   : > { %v4779_v14 = vadd.f32 %v1432_v8, %v1239_v33  ;;  %3591 = vmatmul.msk.f32.gmra.mxu2 %vm284_vm1, %v733_v45  ;;  %v735_v33 = vld [vmem:[%s4238_s30 + $0x12a] sm:$0xff] }
 0x10c   : > { %3656 = vmatmul.msk.f32.gmra.mxu3 %vm284_vm1, %v3623_v10 }
 0x10d   : > { %3721 = vmatmul.msk.f32.gmra.mxu0 %vm284_vm1, %v4264_v11 }
 0x10e   : > { %v880_v26 = vpop.f32.mrf.mxu2 }
 0x10f   : > { %v962_v32 = vadd.f32 %v880_v26, %v636_v7  ;;  %v1158_v37 = vpop.f32.mrf.mxu3  ;;  %v638_v3 = vpop.f32.mrf.mxu1  ;;  %v3625_v7 = vld [vmem:[%s4238_s30 + $0x140] sm:$0xff] }
 0x110   : > { %v639_v11 = vadd.f32 %v638_v3, %v4500_v59 }
 0x111   : > { %v1240_v8 = vadd.f32 %v1158_v37, %v962_v32 }
 0x112   : > { %v1438_v16 = vpop.f32.mrf.mxu0  ;;  %3559 = vmatmul.msk.f32.gmra.mxu1 %vm284_vm1, %v3622_v22 }
 0x113   : > { %v4789_v18 = vadd.f32 %v1435_v29, %v1240_v8  ;;  %3592 = vmatmul.msk.f32.gmra.mxu2 %vm284_vm1, %v734_v38  ;;  %v736_v38 = vld [vmem:[%s4238_s30 + $0x13a] sm:$0xff] }
 0x114   : > { %3657 = vmatmul.msk.f32.gmra.mxu3 %vm284_vm1, %v3624_v0 }
 0x115   : > { %3722 = vmatmul.msk.f32.gmra.mxu0 %vm284_vm1, %v4281_v15 }
 0x116   : > { %v883_v12 = vpop.f32.mrf.mxu2 }
 0x117   : > { %v963_v46 = vadd.f32 %v883_v12, %v639_v11  ;;  %v1161_v34 = vpop.f32.mrf.mxu3  ;;  %v641_v45 = vpop.f32.mrf.mxu1 }
 0x118   : > { %v642_v15 = vadd.f32 %v641_v45, %v4522_v1  ;;  %v737_v45 = vld [vmem:[%s4238_s30 + $0x142] sm:$0xff] }
 0x119   : > { %v1241_v29 = vadd.f32 %v1161_v34, %v963_v46 }
 0x11a   : > { %v1441_v26 = vpop.f32.mrf.mxu0  ;;  %3560 = vmatmul.msk.f32.gmra.mxu1 %vm284_vm1, %v3623_v10 }
 0x11b   : > { %v4799_v22 = vadd.f32 %v1438_v16, %v1241_v29  ;;  %3593 = vmatmul.msk.f32.gmra.mxu2 %vm284_vm1, %v735_v33  ;;  %v3626_v16 = vld [vmem:[%s4238_s30 + $0x150] sm:$0xff]  ;;  %v3627_v29 = vld [vmem:[%s4238_s30 + $0x158] sm:$0xff] }
 0x11c   : > { %3658 = vmatmul.msk.f32.gmra.mxu3 %vm284_vm1, %v3625_v7 }
 0x11d   : > { %3723 = vmatmul.msk.f32.gmra.mxu0 %vm284_vm1, %v4298_v19 }
 0x11e   : > { %v886_v59 = vpop.f32.mrf.mxu2 }
 0x11f   : > { %v964_v32 = vadd.f32 %v886_v59, %v642_v15  ;;  %v1164_v37 = vpop.f32.mrf.mxu3  ;;  %v644_v3 = vpop.f32.mrf.mxu1 }
 0x120   : > { %v645_v19 = vadd.f32 %v644_v3, %v4544_v9 }
 0x121   : > { %v1242_v8 = vadd.f32 %v1164_v37, %v964_v32  ;;  %v738_v37 = vld [vmem:[%s4238_s30 + $0x152] sm:$0xff] }
 0x122   : > { %v1444_v11 = vpop.f32.mrf.mxu0  ;;  %3561 = vmatmul.msk.f32.gmra.mxu1 %vm284_vm1, %v3624_v0 }
 0x123   : > { %v4809_v10 = vadd.f32 %v1441_v26, %v1242_v8  ;;  %3594 = vmatmul.msk.f32.gmra.mxu2 %vm284_vm1, %v736_v38  ;;  %v3628_v38 = vld [vmem:[%s4238_s30 + $0x168] sm:$0xff] }
 0x124   : > { %3659 = vmatmul.msk.f32.gmra.mxu3 %vm284_vm1, %v3626_v16 }
 0x125   : > { %3724 = vmatmul.msk.f32.gmra.mxu0 %vm284_vm1, %v4315_v23 }
 0x126   : > { %v889_v1 = vpop.f32.mrf.mxu2 }
 0x127   : > { %v965_v12 = vadd.f32 %v889_v1, %v645_v19  ;;  %v1167_v46 = vpop.f32.mrf.mxu3  ;;  %v647_v34 = vpop.f32.mrf.mxu1 }
 0x128   : > { %v648_v23 = vadd.f32 %v647_v34, %v4566_v25  ;;  %v3629_v34 = vld [vmem:[%s4238_s30 + $0x170] sm:$0xff] }
 0x129   : > { %v1243_v33 = vadd.f32 %v1167_v46, %v965_v12  ;;  %v739_v12 = vld [vmem:[%s4238_s30 + $0x15a] sm:$0xff] }
 0x12a   : > { %v1447_v26 = vpop.f32.mrf.mxu0  ;;  %3562 = vmatmul.msk.f32.gmra.mxu1 %vm284_vm1, %v3625_v7 }
 0x12b   : > { %v4819_v0 = vadd.f32 %v1444_v11, %v1243_v33  ;;  %3595 = vmatmul.msk.f32.gmra.mxu2 %vm284_vm1, %v737_v45 }
 0x12c   : > { %3660 = vmatmul.msk.f32.gmra.mxu3 %vm284_vm1, %v3627_v29 }
 0x12d   : > { %3725 = vmatmul.msk.f32.gmra.mxu0 %vm284_vm1, %v4347_v30 }
 0x12e   : > { %v892_v9 = vpop.f32.mrf.mxu2 }
 0x12f   : > { %v966_v15 = vadd.f32 %v892_v9, %v648_v23  ;;  %v1170_v59 = vpop.f32.mrf.mxu3  ;;  %v650_v32 = vpop.f32.mrf.mxu1  ;;  %v740_v9 = vld [vmem:[%s4238_s30 + $0x16a] sm:$0xff] }
 0x130   : > { %v651_v30 = vadd.f32 %v650_v32, %v4588_v42 }
 0x131   : > { %v1244_v3 = vadd.f32 %v1170_v59, %v966_v15  ;;  %v3630_v59 = vld [vmem:[%s4238_s30 + $0x180] sm:$0xff] }
 0x132   : > { %v1450_v8 = vpop.f32.mrf.mxu0  ;;  %3563 = vmatmul.msk.f32.gmra.mxu1 %vm284_vm1, %v3626_v16 }
 0x133   : > { %v4829_v7 = vadd.f32 %v1447_v26, %v1244_v3  ;;  %3596 = vmatmul.msk.f32.gmra.mxu2 %vm284_vm1, %v738_v37 }
 0x134   : > { %3661 = vmatmul.msk.f32.gmra.mxu3 %vm284_vm1, %v3628_v38 }
 0x135   : > { %3726 = vmatmul.msk.f32.gmra.mxu0 %vm284_vm1, %v4371_v35 }
 0x136   : > { %v895_v25 = vpop.f32.mrf.mxu2 }
 0x137   : > { %v967_v11 = vadd.f32 %v895_v25, %v651_v30  ;;  %v1173_v19 = vpop.f32.mrf.mxu3  ;;  %v653_v1 = vpop.f32.mrf.mxu1  ;;  %v741_v25 = vld [vmem:[%s4238_s30 + $0x172] sm:$0xff] }
 0x138   : > { %v654_v35 = vadd.f32 %v653_v1, %v4610_v41 }
 0x139   : > { %v1245_v46 = vadd.f32 %v1173_v19, %v967_v11  ;;  %v3631_v19 = vld [vmem:[%s4238_s30 + $0x188] sm:$0xff] }
 0x13a   : > { %v1453_v16 = vpop.f32.mrf.mxu0  ;;  %3564 = vmatmul.msk.f32.gmra.mxu1 %vm284_vm1, %v3627_v29  ;;  %v3695_v29 = vld [vmem:[%s4238_s30 + $0x181] sm:$0xff] }
 0x13b   : > { %v4839_v45 = vadd.f32 %v1450_v8, %v1245_v46  ;;  %3597 = vmatmul.msk.f32.gmra.mxu2 %vm284_vm1, %v739_v12  ;;  %v3696_v12 = vld [vmem:[%s4238_s30 + $0x189] sm:$0xff] }
 0x13c   : > { %3662 = vmatmul.msk.f32.gmra.mxu3 %vm284_vm1, %v3629_v34 }
 0x13d   : > { %3727 = vmatmul.msk.f32.gmra.mxu0 %vm284_vm1, %v4391_v39 }
 0x13e   : > { %v898_v42 = vpop.f32.mrf.mxu2 }
 0x13f   : > { %v968_v33 = vadd.f32 %v898_v42, %v654_v35  ;;  %v1176_v26 = vpop.f32.mrf.mxu3  ;;  %v656_v23 = vpop.f32.mrf.mxu1 }
 0x140   : > { %v657_v39 = vadd.f32 %v656_v23, %v4632_v43 }
 0x141   : > { %v1246_v15 = vadd.f32 %v1176_v26, %v968_v33 }
 0x142   : > { %v1456_v32 = vpop.f32.mrf.mxu0  ;;  %3565 = vmatmul.msk.f32.gmra.mxu1 %vm284_vm1, %v3628_v38 }
 0x143   : > { %v4850_v37 = vadd.f32 %v1453_v16, %v1246_v15  ;;  %3598 = vmatmul.msk.f32.gmra.mxu2 %vm284_vm1, %v740_v9 }
 0x144   : > { %3663 = vmatmul.msk.f32.gmra.mxu3 %vm284_vm1, %v3630_v59 }
 0x145   : > { %3728 = vmatmul.msk.f32.gmra.mxu0 %vm284_vm1, %v3695_v29 }
 0x146   : > { %v901_v41 = vpop.f32.mrf.mxu2 }
 0x147   : > { %v969_v3 = vadd.f32 %v901_v41, %v657_v39  ;;  %v1179_v8 = vpop.f32.mrf.mxu3  ;;  %v659_v30 = vpop.f32.mrf.mxu1 }
 0x148   : > { %v660_v43 = vadd.f32 %v659_v30, %v4654_v20 }
 0x149   : > { %v1247_v11 = vadd.f32 %v1179_v8, %v969_v3 }
 0x14a   : > { %v1459_v1 = vpop.f32.mrf.mxu0  ;;  %3566 = vmatmul.msk.f32.gmra.mxu1 %vm284_vm1, %v3629_v34 }
 0x14b   : > { %v4860_v46 = vadd.f32 %v1456_v32, %v1247_v11  ;;  %3599 = vmatmul.msk.f32.gmra.mxu2 %vm284_vm1, %v741_v25 }
 0x14c   : > { %3664 = vmatmul.msk.f32.gmra.mxu3 %vm284_vm1, %v3631_v19 }
 0x14d   : > { %3729 = vmatmul.msk.f32.gmra.mxu0 %vm284_vm1, %v3696_v12 }
 0x14e   : > { %v904_v38 = vpop.f32.mrf.mxu2 }
 0x14f   : > { %v970_v16 = vadd.f32 %v904_v38, %v660_v43  ;;  %v1182_v35 = vpop.f32.mrf.mxu3  ;;  %v662_v42 = vpop.f32.mrf.mxu1  ;;  %v3864_v38 = vld [vmem:[%s4238_s30 + $0x61] sm:$0xff] }
 0x150   : > { %v663_v20 = vadd.f32 %v662_v42, %v4518_v63 }
 0x151   : > { %v1248_v33 = vadd.f32 %v1182_v35, %v970_v16 }
 0x152   : > { %v1462_v26 = vpop.f32.mrf.mxu0  ;;  %3763 = vmatmul.msk.f32.vlgmr.msra.gmra.mxu1 %vm284_vm1, %v4419_v47 }
 0x153   : > { %v4867_v23 = vadd.f32 %v1459_v1, %v1248_v33  ;;  %3828 = vmatmul.msk.f32.vlgmr.msra.gmra.mxu2 %vm284_vm1, %v4422_v48 }
 0x154   : > { %3893 = vmatmul.msk.f32.vlgmr.msra.gmra.mxu3 %vm284_vm1, %v4318_v24 }
 0x155   : > { %3958 = vmatmul.msk.f32.vlgmr.msra.gmra.mxu0 %vm284_vm1, %v4445_v51 }
 0x156   : > { %v907_v34 = vpop.f32.mrf.mxu2 }
 0x157   : > { %v971_v9 = vadd.f32 %v907_v34, %v663_v20  ;;  %v1185_v15 = vpop.f32.mrf.mxu3  ;;  %v665_v59 = vpop.f32.mrf.mxu1  ;;  %v3865_v20 = vld [vmem:[%s4238_s30 + $0x69] sm:$0xff] }
 0x158   : > { %v666_v24 = vadd.f32 %v665_v59, %v4540_v5 }
 0x159   : > { %v1249_v32 = vadd.f32 %v1185_v15, %v971_v9  ;;  %v5780_v15 = vld [vmem:[#allocation20_spill] sm:$0xff] }
 0x15a   : > { %v1465_v29 = vpop.f32.mrf.mxu0  ;;  %3764 = vmatmul.msk.f32.gmra.mxu1 %vm284_vm1, %v4432_v49 }
 0x15b   : > { %v4878_v39 = vadd.f32 %v1462_v26, %v1249_v32  ;;  %3829 = vmatmul.msk.f32.gmra.mxu2 %vm284_vm1, %v4435_v50 }
 0x15c   : > { %3894 = vmatmul.msk.f32.gmra.mxu3 %vm284_vm1, %v4350_v31 }
 0x15d   : > { %3959 = vmatmul.msk.f32.gmra.mxu0 %vm284_vm1, %v4459_v53 }
 0x15e   : > { %v910_v47 = vpop.f32.mrf.mxu2 }
 0x15f   : > { %v972_v48 = vadd.f32 %v910_v47, %v666_v24  ;;  %v1188_v63 = vpop.f32.mrf.mxu3  ;;  %v668_v41 = vpop.f32.mrf.mxu1 }
 0x160   : > { %v669_v31 = vadd.f32 %v668_v41, %v4562_v17 }
 0x161   : > { %v1250_v3 = vadd.f32 %v1188_v63, %v972_v48  ;;  %v3866_v63 = vld [vmem:[%s4238_s30 + $0x79] sm:$0xff] }
 0x162   : > { %v1468_v8 = vpop.f32.mrf.mxu0  ;;  %3765 = vmatmul.msk.f32.gmra.mxu1 %vm284_vm1, %v4445_v51 }
 0x163   : > { %v4889_v30 = vadd.f32 %v1465_v29, %v1250_v3  ;;  %3830 = vmatmul.msk.f32.gmra.mxu2 %vm284_vm1, %v4448_v52 }
 0x164   : > { %3895 = vmatmul.msk.f32.gmra.mxu3 %vm284_vm1, %v4374_v36 }
 0x165   : > { %3960 = vmatmul.msk.f32.gmra.mxu0 %vm284_vm1, %v4473_v55 }
 0x166   : > { %v913_v49 = vpop.f32.mrf.mxu2 }
 0x167   : > { %v973_v50 = vadd.f32 %v913_v49, %v669_v31  ;;  %v1191_v5 = vpop.f32.mrf.mxu3  ;;  %v671_v25 = vpop.f32.mrf.mxu1  ;;  %v5783_v31 = vld [vmem:[#allocation24_spill] sm:$0xff] }
 0x168   : > { %v672_v36 = vadd.f32 %v671_v25, %v4584_v21 }
 0x169   : > { %v1251_v11 = vadd.f32 %v1191_v5, %v973_v50 }
 0x16a   : > { %v1471_v19 = vpop.f32.mrf.mxu0  ;;  %3766 = vmatmul.msk.f32.gmra.mxu1 %vm284_vm1, %v4459_v53 }
 0x16b   : > { %v4900_v1 = vadd.f32 %v1468_v8, %v1251_v11  ;;  %3831 = vmatmul.msk.f32.gmra.mxu2 %vm284_vm1, %v4462_v54  ;;  %v5782_v8 = vld [vmem:[#allocation8_spill] sm:$0xff] }
 0x16c   : > { %3896 = vmatmul.msk.f32.gmra.mxu3 %vm284_vm1, %v4394_v40  ;;  %v5777_v40 = vld [vmem:[#allocation16_spill] sm:$0xff] }
 0x16d   : > { %3961 = vmatmul.msk.f32.gmra.mxu0 %vm284_vm1, %v4487_v57 }
 0x16e   : > { %v916_v51 = vpop.f32.mrf.mxu2 }
 0x16f   : > { %v974_v52 = vadd.f32 %v916_v51, %v672_v36  ;;  %v1194_v17 = vpop.f32.mrf.mxu3  ;;  %v674_v12 = vpop.f32.mrf.mxu1  ;;  %v3867_v36 = vld [vmem:[%s4238_s30 + $0x81] sm:$0xff] }
 0x170   : > { %v675_v54 = vadd.f32 %v674_v12, %v5777_v40  ;;  %v5786_v12 = vld [vmem:[#allocation27_spill] sm:$0xff] }
 0x171   : > { %v1252_v43 = vadd.f32 %v1194_v17, %v974_v52  ;;  %v5785_v17 = vld [vmem:[#allocation11_spill] sm:$0xff] }
 0x172   : > { %v1474_v16 = vpop.f32.mrf.mxu0  ;;  %3767 = vmatmul.msk.f32.gmra.mxu1 %vm284_vm1, %v4473_v55  ;;  %v5778_v55 = vld [vmem:[#allocation2_spill] sm:$0xff] }
 0x173   : > { %v4912_v53 = vadd.f32 %v1471_v19, %v1252_v43  ;;  %3832 = vmatmul.msk.f32.gmra.mxu2 %vm284_vm1, %v4476_v56  ;;  %v5779_v56 = vld [vmem:[#allocation5_spill] sm:$0xff] }
 0x174   : > { %3897 = vmatmul.msk.f32.gmra.mxu3 %vm284_vm1, %v3864_v38 }
 0x175   : > { %3962 = vmatmul.msk.f32.gmra.mxu0 %vm284_vm1, %v4503_v60 }
 0x176   : > { %v919_v21 = vpop.f32.mrf.mxu2 }
 0x177   : > { %v975_v35 = vadd.f32 %v919_v21, %v675_v54  ;;  %v1197_v42 = vpop.f32.mrf.mxu3  ;;  %v677_v33 = vpop.f32.mrf.mxu1 }
 0x178   : > { %v678_v59 = vadd.f32 %v677_v33, %v5780_v15 }
 0x179   : > { %v1253_v26 = vadd.f32 %v1197_v42, %v975_v35  ;;  %v3868_v35 = vld [vmem:[%s4238_s30 + $0x91] sm:$0xff] }
 0x17a   : > { %v1477_v34 = vpop.f32.mrf.mxu0  ;;  %3768 = vmatmul.msk.f32.gmra.mxu1 %vm284_vm1, %v4487_v57  ;;  %v5781_v57 = vld [vmem:[#allocation3_spill] sm:$0xff] }
 0x17b   : > { %v4923_v9 = vadd.f32 %v1474_v16, %v1253_v26  ;;  %3833 = vmatmul.msk.f32.gmra.mxu2 %vm284_vm1, %v5778_v55  ;;  %v5787_v26 = vld [vmem:[#allocation9_spill] sm:$0xff] }
 0x17c   : > { %3898 = vmatmul.msk.f32.gmra.mxu3 %vm284_vm1, %v3865_v20  ;;  %v5788_v20 = vld [vmem:[#allocation14_spill] sm:$0xff] }
 0x17d   : > { %3963 = vmatmul.msk.f32.gmra.mxu0 %vm284_vm1, %v5779_v56 }
 0x17e   : > { %v922_v32 = vpop.f32.mrf.mxu2 }
 0x17f   : > { %v976_v29 = vadd.f32 %v922_v32, %v678_v59  ;;  %v1200_v24 = vpop.f32.mrf.mxu3  ;;  %v680_v47 = vpop.f32.mrf.mxu1 }
 0x180   : > { %v681_v49 = vadd.f32 %v680_v47, %v5783_v31 }
 0x181   : > { %v1254_v48 = vadd.f32 %v1200_v24, %v976_v29  ;;  %v3869_v24 = vld [vmem:[%s4238_s30 + $0x99] sm:$0xff] }
 0x182   : > { %v1480_v41 = vpop.f32.mrf.mxu0  ;;  %3769 = vmatmul.msk.f32.gmra.mxu1 %vm284_vm1, %v4503_v60  ;;  %v5784_v60 = vld [vmem:[#allocation6_spill] sm:$0xff] }
 0x183   : > { %v4934_v3 = vadd.f32 %v1477_v34, %v1254_v48  ;;  %3834 = vmatmul.msk.f32.gmra.mxu2 %vm284_vm1, %v5781_v57  ;;  %v5789_v34 = vld [vmem:[#allocation4_spill] sm:$0xff]  ;;  %v5792_v57 = vld [vmem:[#allocation7_spill] sm:$0xff] }
 0x184   : > { %3899 = vmatmul.msk.f32.gmra.mxu3 %vm284_vm1, %v3866_v63  ;;  %v5790_v63 = vld [vmem:[#allocation12_spill] sm:$0xff] }
 0x185   : > { %3964 = vmatmul.msk.f32.gmra.mxu0 %vm284_vm1, %v5782_v8 }
 0x186   : > { %v925_v50 = vpop.f32.mrf.mxu2 }
 0x187   : > { %v977_v5 = vadd.f32 %v925_v50, %v681_v49  ;;  %v1203_v25 = vpop.f32.mrf.mxu3  ;;  %v683_v11 = vpop.f32.mrf.mxu1 }
 0x188   : > { %v684_v43 = vadd.f32 %v683_v11, %v5786_v12  ;;  %v3870_v11 = vld [vmem:[%s4238_s30 + $0xa9] sm:$0xff] }
 0x189   : > { %v1255_v19 = vadd.f32 %v1203_v25, %v977_v5 }
 0x18a   : > { %v1483_v51 = vpop.f32.mrf.mxu0  ;;  %3770 = vmatmul.msk.f32.gmra.mxu1 %vm284_vm1, %v5779_v56 }
 0x18b   : > { %v4945_v52 = vadd.f32 %v1480_v41, %v1255_v19  ;;  %3835 = vmatmul.msk.f32.gmra.mxu2 %vm284_vm1, %v5784_v60  ;;  %v5791_v41 = vld [vmem:[#allocation18_spill] sm:$0xff] }
 0x18c   : > { %3900 = vmatmul.msk.f32.gmra.mxu3 %vm284_vm1, %v3867_v36  ;;  %v5794_v60 = vld [vmem:[#allocation22_spill] sm:$0xff] }
 0x18d   : > { %3965 = vmatmul.msk.f32.gmra.mxu0 %vm284_vm1, %v5785_v17 }
 0x18e   : > { %v928_v38 = vpop.f32.mrf.mxu2 }
 0x18f   : > { %v978_v16 = vadd.f32 %v928_v38, %v684_v43  ;;  %v1206_v40 = vpop.f32.mrf.mxu3  ;;  %v686_v54 = vpop.f32.mrf.mxu1 }
 0x190   : > { %v687_v55 = vadd.f32 %v686_v54, %v5789_v34  ;;  %v5798_v34 = vld [vmem:[#allocation13_spill] sm:$0xff] }
 0x191   : > { %v1256_v21 = vadd.f32 %v1206_v40, %v978_v16 }
 0x192   : > { %v1486_v42 = vpop.f32.mrf.mxu0  ;;  %3771 = vmatmul.msk.f32.gmra.mxu1 %vm284_vm1, %v5782_v8 }
 0x193   : > { %v4956_v33 = vadd.f32 %v1483_v51, %v1256_v21  ;;  %3836 = vmatmul.msk.f32.gmra.mxu2 %vm284_vm1, %v5787_v26  ;;  %v5793_v51 = vld [vmem:[#allocation15_spill] sm:$0xff]  ;;  %v3871_v21 = vld [vmem:[%s4238_s30 + $0xb1] sm:$0xff] }
 0x194   : > { %3901 = vmatmul.msk.f32.gmra.mxu3 %vm284_vm1, %v3868_v35  ;;  %v5796_v26 = vld [vmem:[#allocation19_spill] sm:$0xff] }
 0x195   : > { %3966 = vmatmul.msk.f32.gmra.mxu0 %vm284_vm1, %v5788_v20 }
 0x196   : > { %v931_v56 = vpop.f32.mrf.mxu2 }
 0x197   : > { %v979_v15 = vadd.f32 %v931_v56, %v687_v55  ;;  %v1209_v59 = vpop.f32.mrf.mxu3  ;;  %v689_v32 = vpop.f32.mrf.mxu1 }
 0x198   : > { %v690_v8 = vadd.f32 %v689_v32, %v5792_v57  ;;  %v5800_v57 = vld [vmem:[#allocation29_spill] sm:$0xff] }
 0x199   : > { %v1257_v29 = vadd.f32 %v1209_v59, %v979_v15 }
 0x19a   : > { %v1489_v47 = vpop.f32.mrf.mxu0  ;;  %3772 = vmatmul.msk.f32.gmra.mxu1 %vm284_vm1, %v5785_v17  ;;  %v5795_v17 = vld [vmem:[#allocation10_spill] sm:$0xff] }
 0x19b   : > { %v4967_v48 = vadd.f32 %v1486_v42, %v1257_v29  ;;  %3837 = vmatmul.msk.f32.gmra.mxu2 %vm284_vm1, %v5790_v63 }
 0x19c   : > { %3902 = vmatmul.msk.f32.gmra.mxu3 %vm284_vm1, %v3869_v24  ;;  %v3872_v24 = vld [vmem:[%s4238_s30 + $0xc1] sm:$0xff] }
 0x19d   : > { %3967 = vmatmul.msk.f32.gmra.mxu0 %vm284_vm1, %v5791_v41 }
 0x19e   : > { %v934_v31 = vpop.f32.mrf.mxu2 }
 0x19f   : > { %v980_v49 = vadd.f32 %v934_v31, %v690_v8  ;;  %v1212_v50 = vpop.f32.mrf.mxu3  ;;  %v692_v5 = vpop.f32.mrf.mxu1  ;;  %v5801_v8 = vld [vmem:[#allocation17_spill] sm:$0xff] }
 0x1a0   : > { %v693_v12 = vadd.f32 %v692_v5, %v5795_v17 }
 0x1a1   : > { %v1258_v25 = vadd.f32 %v1212_v50, %v980_v49 }
 0x1a2   : > { %v1492_v19 = vpop.f32.mrf.mxu0  ;;  %3773 = vmatmul.msk.f32.gmra.mxu1 %vm284_vm1, %v5788_v20  ;;  %v5797_v20 = vld [vmem:[#allocation26_spill] sm:$0xff] }
 0x1a3   : > { %v4978_v36 = vadd.f32 %v1489_v47, %v1258_v25  ;;  %3838 = vmatmul.msk.f32.gmra.mxu2 %vm284_vm1, %v5793_v51 }
 0x1a4   : > { %3903 = vmatmul.msk.f32.gmra.mxu3 %vm284_vm1, %v3870_v11 }
 0x1a5   : > { %3968 = vmatmul.msk.f32.gmra.mxu0 %vm284_vm1, %v5794_v60 }
 0x1a6   : > { %v937_v43 = vpop.f32.mrf.mxu2 }
 0x1a7   : > { %v981_v38 = vadd.f32 %v937_v43, %v693_v12  ;;  %v1215_v16 = vpop.f32.mrf.mxu3  ;;  %v695_v40 = vpop.f32.mrf.mxu1 }
 0x1a8   : > { %v696_v55 = vadd.f32 %v695_v40, %v5798_v34 }
 0x1a9   : > { %v1259_v54 = vadd.f32 %v1215_v16, %v981_v38 }
 0x1aa   : > { %v1495_v35 = vpop.f32.mrf.mxu0  ;;  %3774 = vmatmul.msk.f32.gmra.mxu1 %vm284_vm1, %v5791_v41  ;;  %v5799_v41 = vld [vmem:[#allocation23_spill] sm:$0xff] }
 0x1ab   : > { %v4989_v42 = vadd.f32 %v1492_v19, %v1259_v54  ;;  %3839 = vmatmul.msk.f32.gmra.mxu2 %vm284_vm1, %v5796_v26  ;;  %v3873_v19 = vld [vmem:[%s4238_s30 + $0xc9] sm:$0xff] }
 0x1ac   : > { %3904 = vmatmul.msk.f32.gmra.mxu3 %vm284_vm1, %v3871_v21  ;;  %v3874_v21 = vld [vmem:[%s4238_s30 + $0xd9] sm:$0xff] }
 0x1ad   : > { %3969 = vmatmul.msk.f32.gmra.mxu0 %vm284_vm1, %v5797_v20 }
 0x1ae   : > { %v940_v56 = vpop.f32.mrf.mxu2 }
 0x1af   : > { %v982_v15 = vadd.f32 %v940_v56, %v696_v55  ;;  %v1218_v59 = vpop.f32.mrf.mxu3  ;;  %v698_v32 = vpop.f32.mrf.mxu1 }
 0x1b0   : > { %v699_v31 = vadd.f32 %v698_v32, %v5801_v8  ;;  %v3875_v32 = vld [vmem:[%s4238_s30 + $0xe1] sm:$0xff] }
 0x1b1   : > { %v1260_v29 = vadd.f32 %v1218_v59, %v982_v15 }
 0x1b2   : > { %v1498_v47 = vpop.f32.mrf.mxu0  ;;  %3775 = vmatmul.msk.f32.gmra.mxu1 %vm284_vm1, %v5794_v60  ;;  %v5802_v60 = vld [vmem:[#allocation21_spill] sm:$0xff] }
 0x1b3   : > { %v5000_v63 = vadd.f32 %v1495_v35, %v1260_v29  ;;  %3840 = vmatmul.msk.f32.gmra.mxu2 %vm284_vm1, %v5799_v41 }
 0x1b4   : > { %3905 = vmatmul.msk.f32.gmra.mxu3 %vm284_vm1, %v3872_v24 }
 0x1b5   : > { %3970 = vmatmul.msk.f32.gmra.mxu0 %vm284_vm1, %v5800_v57 }
 0x1b6   : > { %v943_v49 = vpop.f32.mrf.mxu2 }
 0x1b7   : > { %v983_v50 = vadd.f32 %v943_v49, %v699_v31  ;;  %v1221_v5 = vpop.f32.mrf.mxu3  ;;  %v701_v25 = vpop.f32.mrf.mxu1 }
 0x1b8   : > { %v702_v12 = vadd.f32 %v701_v25, %v5802_v60 }
 0x1b9   : > { %v1261_v11 = vadd.f32 %v1221_v5, %v983_v50  ;;  %v3876_v50 = vld [vmem:[%s4238_s30 + $0xf1] sm:$0xff] }
 0x1ba   : > { %v1501_v51 = vpop.f32.mrf.mxu0  ;;  %3776 = vmatmul.msk.f32.gmra.mxu1 %vm284_vm1, %v5797_v20 }
 0x1bb   : > { %v5011_v17 = vadd.f32 %v1498_v47, %v1261_v11  ;;  %3841 = vmatmul.msk.f32.gmra.mxu2 %vm284_vm1, %v4660_v44  ;;  %v5803_v44 = vld [vmem:[#allocation25_spill] sm:$0xff] }
 0x1bc   : > { %3906 = vmatmul.msk.f32.gmra.mxu3 %vm284_vm1, %v3873_v19 }
 0x1bd   : > { %3971 = vmatmul.msk.f32.gmra.mxu0 %vm284_vm1, %v4692_v2 }
 0x1be   : > { %v946_v43 = vpop.f32.mrf.mxu2 }
 0x1bf   : > { %v984_v38 = vadd.f32 %v946_v43, %v702_v12  ;;  %v1224_v16 = vpop.f32.mrf.mxu3  ;;  %v704_v40 = vpop.f32.mrf.mxu1  ;;  %v5057_v43 = vld [vmem:[%s5717_s2] ss:$0 sm:$0xff] }
 0x1c0   : > { %v705_v20 = vadd.f32 %v704_v40, %v5803_v44 }
 0x1c1   : > { %v1262_v54 = vadd.f32 %v1224_v16, %v984_v38  ;;  %v3942_v38 = vld [vmem:[%s4238_s30 + $0xfa] sm:$0xff] }
 0x1c2   : > { %v1504_v35 = vpop.f32.mrf.mxu0  ;;  %3777 = vmatmul.msk.f32.gmra.mxu1 %vm284_vm1, %v5800_v57 }
 0x1c3   : > { %v5022_v26 = vadd.f32 %v1501_v51, %v1262_v54  ;;  %3842 = vmatmul.msk.f32.gmra.mxu2 %vm284_vm1, %v4680_v61  ;;  %v5804_v61 = vld [vmem:[#allocation28_spill] sm:$0xff] }
 0x1c4   : > { %3907 = vmatmul.msk.f32.gmra.mxu3 %vm284_vm1, %v3874_v21 }
 0x1c5   : > { %3972 = vmatmul.msk.f32.gmra.mxu0 %vm284_vm1, %v4709_v27 }
 0x1c6   : > { %v949_v34 = vpop.f32.mrf.mxu2 }
 0x1c7   : > { %v985_v55 = vadd.f32 %v949_v34, %v705_v20  ;;  %v1227_v56 = vpop.f32.mrf.mxu3  ;;  %v707_v15 = vpop.f32.mrf.mxu1 }
 0x1c8   : > { %v708_v47 = vadd.f32 %v707_v15, %v5804_v61 }
 0x1c9   : > { %v1263_v59 = vadd.f32 %v1227_v56, %v985_v55  ;;  %v3813_v55 = vld [vmem:[%s4238_s30 + $0x108] sm:$0xff] }
 0x1ca   : > { %v1507_v29 = vpop.f32.mrf.mxu0  ;;  %3778 = vmatmul.msk.f32.gmra.mxu1 %vm284_vm1, %v4692_v2  ;;  %v3878_v56 = vld [vmem:[%s4238_s30 + $0x109] sm:$0xff] }
 0x1cb   : > { %v5033_v24 = vadd.f32 %v1504_v35, %v1263_v59  ;;  %3843 = vmatmul.msk.f32.gmra.mxu2 %vm284_vm1, %v4695_v58  ;;  %v5805_v58 = vld [vmem:[#allocation30_spill] sm:$0xff]  ;;  %v3943_v59 = vld [vmem:[%s4238_s30 + $0x10a] sm:$0xff] }
 0x1cc   : > { %3908 = vmatmul.msk.f32.gmra.mxu3 %vm284_vm1, %v3875_v32 }
 0x1cd   : > { %3973 = vmatmul.msk.f32.gmra.mxu0 %vm284_vm1, %v4726_v62 }
 0x1ce   : > { %v952_v41 = vpop.f32.mrf.mxu2 }
 0x1cf   : > { %v986_v57 = vadd.f32 %v952_v41, %v708_v47  ;;  %v1230_v8 = vpop.f32.mrf.mxu3  ;;  %v1691_v31 = vpop.f32.mrf.mxu1 }
 0x1d0   : > { %v1787_v25 = vadd.f32 %v1691_v31, %v5805_v58  ;;  %v3814_v58 = vld [vmem:[%s4238_s30 + $0x110] sm:$0xff] }
 0x1d1   : > { %v1264_v49 = vadd.f32 %v1230_v8, %v986_v57 }
 0x1d2   : > { %v2523_v5 = vpop.f32.mrf.mxu0  ;;  %3779 = vmatmul.msk.f32.gmra.mxu1 %vm284_vm1, %v4709_v27  ;;  %v3877_v27 = vld [vmem:[%s4238_s30 + $0xf9] sm:$0xff] }
 0x1d3   : > { %v5044_v2 = vadd.f32 %v1507_v29, %v1264_v49  ;;  %3844 = vmatmul.msk.f32.gmra.mxu2 %vm284_vm1, %v4712_v6  ;;  %v5807_v29 = vld [vmem:[#allocation32_spill] sm:$0xff] }
 0x1d4   : > { %3909 = vmatmul.msk.f32.gmra.mxu3 %vm284_vm1, %v3876_v50 }
 0x1d5   : > { %3974 = vmatmul.msk.f32.gmra.mxu0 %vm284_vm1, %v4743_v4  ;;  %v5806_v4 = vld [vmem:[#allocation31_spill] sm:$0xff] }
 0x1d6   : > { %v1969_v11 = vpop.f32.mrf.mxu2 }
 0x1d7   : > { %v2065_v19 = vadd.f32 %v1969_v11, %v1787_v25  ;;  %v2246_v51 = vpop.f32.mrf.mxu3  ;;  %v1694_v60 = vpop.f32.mrf.mxu1  ;;  %v3879_v11 = vld [vmem:[%s4238_s30 + $0x111] sm:$0xff] }
 0x1d8   : > { %v1788_v40 = vadd.f32 %v1694_v60, %v5806_v4 }
 0x1d9   : > { %v2342_v12 = vadd.f32 %v2246_v51, %v2065_v19  ;;  %v5088_v51 = vld [vmem:[%s4238_s30 + $0x112] sm:$0xff] }
 0x1da   : > { %v2526_v6 = vpop.f32.mrf.mxu0  ;;  %3780 = vmatmul.msk.f32.gmra.mxu1 %vm284_vm1, %v4726_v62  ;;  %v3748_v62 = vld [vmem:[%s4238_s30 + $0xf2] sm:$0xff] }
 0x1db   : > { %v2619_v16 = vadd.f32 %v2523_v5, %v2342_v12  ;;  %3845 = vmatmul.msk.f32.gmra.mxu2 %vm284_vm1, %v4729_v13  ;;  %v5808_v12 = vld [vmem:[#allocation33_spill] sm:$0xff] }
 0x1dc   : > { %3910 = vmatmul.msk.f32.gmra.mxu3 %vm284_vm1, %v3877_v27 }
 0x1dd   : > { %3975 = vmatmul.msk.f32.gmra.mxu0 %vm284_vm1, %v3942_v38  ;;  %v5069_v54 = vadd.f32 %v5057_v43, %v2619_v16 }
 0x1de   : > { %v1972_v21 = vpop.f32.mrf.mxu2 }
 0x1df   : > { %v3990_v35 = vmul.f32 -1.442695, %v5069_v54  ;;  %v2066_v44 = vadd.f32 %v1972_v21, %v1788_v40  ;;  %v2249_v20 = vpop.f32.mrf.mxu3  ;;  %v1697_v34 = vpop.f32.mrf.mxu1 }
 0x1e0   : > { %v1789_v61 = vadd.f32 %v1697_v34, %v5807_v29  ;;  %v3815_v34 = vld [vmem:[%s4238_s30 + $0x120] sm:$0xff] }
 0x1e1   : > { %4039 = vpow2.f32 %v3990_v35  ;;  %v2343_v13 = vadd.f32 %v2249_v20, %v2066_v44 }
 0x1e2   : > { %v2529_v15 = vpop.f32.mrf.mxu0  ;;  %3781 = vmatmul.msk.f32.gmra.mxu1 %vm284_vm1, %v3748_v62 }
 0x1e3   : > { %v2620_v32 = vadd.f32 %v2526_v6, %v2343_v13  ;;  %3846 = vmatmul.msk.f32.gmra.mxu2 %vm284_vm1, %v3813_v55  ;;  %v3880_v55 = vld [vmem:[%s4238_s30 + $0x121] sm:$0xff] }
 0x1e4   : > { %3911 = vmatmul.msk.f32.gmra.mxu3 %vm284_vm1, %v3878_v56  ;;  %v5105_v56 = vld [vmem:[%s4238_s30 + $0x122] sm:$0xff] }
 0x1e5   : > { %3976 = vmatmul.msk.f32.gmra.mxu0 %vm284_vm1, %v3943_v59  ;;  %v5082_v47 = vadd.f32 %v5057_v43, %v2620_v32 }
 0x1e6   : > { %v1975_v41 = vpop.f32.mrf.mxu2 }
 0x1e7   : > { %v4040_v57 = vpop.eup %4039  ;;  %v3991_v8 = vmul.f32 -1.442695, %v5082_v47  ;;  %v2067_v31 = vadd.f32 %v1975_v41, %v1789_v61  ;;  %v2252_v49 = vpop.f32.mrf.mxu3 }
 0x1e8   : > { %v2815_v50 = vadd.f32 1.0, %v4040_v57  ;;  %v1700_v5 = vpop.f32.mrf.mxu1 }
 0x1e9   : > { %4041 = vpow2.f32 %v3991_v8  ;;  %v2344_v25 = vadd.f32 %v2252_v49, %v2067_v31  ;;  %v1790_v27 = vadd.f32 %v1700_v5, %v5808_v12  ;;  %v5809_v8 = vld [vmem:[#allocation34_spill] sm:$0xff] }
 0x1ea   : > { %v2532_v19 = vpop.f32.mrf.mxu0  ;;  %4043 = vrcp.f32 %v2815_v50  ;;  %3782 = vmatmul.msk.f32.gmra.mxu1 %vm284_vm1, %v3942_v38  ;;  %v2858_v29 = vand.u32 2147483648, %v2815_v50  ;;  %v2856_v41 = vand.u32 2147483647, %v2815_v50  ;;  %vm2852_vm3 = vweird.f32 %v2815_v50 }
 0x1eb   : > { %v2621_v60 = vadd.f32 %v2529_v15, %v2344_v25  ;;  %3847 = vmatmul.msk.f32.gmra.mxu2 %vm284_vm1, %v3814_v58 }
 0x1ec   : > { %3912 = vmatmul.msk.f32.gmra.mxu3 %vm284_vm1, %v3879_v11  ;;  %vm2857_vm5 = vcmp.eq.f32.partialorder %v2856_v41, 8.507059e+37 }
 0x1ed   : > { %3977 = vmatmul.msk.f32.gmra.mxu0 %vm284_vm1, %v5088_v51  ;;  %v5097_v6 = vadd.f32 %v5057_v43, %v2621_v60 }
 0x1ee   : > { %v1978_v16 = vpop.f32.mrf.mxu2 }
 0x1ef   : > { %v4042_v4 = vpop.eup %4041  ;;  %v3992_v40 = vmul.f32 -1.442695, %v5097_v6  ;;  %v2068_v21 = vadd.f32 %v1978_v16, %v1790_v27  ;;  %v2255_v38 = vpop.f32.mrf.mxu3  ;;  %v3816_v16 = vld [vmem:[%s4238_s30 + $0x128] sm:$0xff] }
 0x1f0   : > { %v4044_v35 = vpop.eup %4043  ;;  %v5100_v44 = vadd.f32 1.0, %v4042_v4  ;;  %v1703_v20 = vpop.f32.mrf.mxu1 }
 0x1f1   : > { %v2848_v62 = vmul.f32 %v4044_v35, %v2815_v50  ;;  %4045 = vpow2.f32 %v3992_v40  ;;  %v2345_v32 = vadd.f32 %v2255_v38, %v2068_v21  ;;  %vm2853_vm2 = vweird.f32 %v4044_v35  ;;  %v3881_v21 = vld [vmem:[%s4238_s30 + $0x129] sm:$0xff] }
 0x1f2   : > { %v2535_v13 = vpop.f32.mrf.mxu0  ;;  %4047 = vrcp.f32 %v5100_v44  ;;  %3783 = vmatmul.msk.f32.gmra.mxu1 %vm284_vm1, %v3943_v59  ;;  %v1791_v31 = vadd.f32 %v1703_v20, %v5809_v8  ;;  %vm2854_vm4 = vmor %vm2852_vm3, %vm2853_vm2  ;;  %v5132_v20 = vld [vmem:[%s4238_s30 + $0x12a] sm:$0xff]  ;;  %vm2867_vm8 = vweird.f32 %v5100_v44 }
 0x1f3   : > { %v2849_v15 = vsub.f32 1.0, %v2848_v62  ;;  %3848 = vmatmul.msk.f32.gmra.mxu2 %vm284_vm1, %v3815_v34  ;;  %v2622_v57 = vadd.f32 %v2532_v19, %v2345_v32  ;;  %v2859_v19 = vor.u32 1.1754944e-38, %v2858_v29  ;;  %v2687_v34 = vld [vmem:[%s5120_s20] sm:$0xff]  ;;  %v2873_v32 = vand.u32 2147483648, %v5100_v44 }
 0x1f4   : > { %3913 = vmatmul.msk.f32.gmra.mxu3 %vm284_vm1, %v3880_v55 }
 0x1f5   : > { %3978 = vmatmul.msk.f32.gmra.mxu0 %vm284_vm1, %v5105_v56  ;;  %v2850_v61 = vmul.f32 %v4044_v35, %v2849_v15  ;;  %v5123_v58 = vadd.f32 %v5057_v43, %v2622_v57 }
 0x1f6   : > { %v1981_v49 = vpop.f32.mrf.mxu2 }
 0x1f7   : > { %v4046_v5 = vpop.eup %4045  ;;  %v2851_v59 = vadd.f32 %v4044_v35, %v2850_v61  ;;  %v2258_v25 = vpop.f32.mrf.mxu3  ;;  %v2069_v12 = vadd.f32 %v1981_v49, %v1791_v31  ;;  %v3993_v50 = vmul.f32 -1.442695, %v5123_v58 }
 0x1f8   : > { %v4048_v11 = vpop.eup %4047  ;;  %v5125_v60 = vadd.f32 1.0, %v4046_v5  ;;  %v1706_v27 = vpop.f32.mrf.mxu1 }
 0x1f9   : > { %v2855_v4 = vsel %vm2854_vm4, %v4044_v35, %v2851_v59  ;;  %v2863_v40 = vmul.f32 %v4048_v11, %v5100_v44  ;;  %v2871_v35 = vand.u32 2147483647, %v5100_v44  ;;  %vm2868_vm7 = vweird.f32 %v4048_v11  ;;  %v2688_v44 = vld [vmem:[%s5120_s20 + $0x8] sm:$0xff] }
 0x1fa   : > { %v2538_v38 = vpop.f32.mrf.mxu0  ;;  %v2860_v62 = vsel %vm2857_vm5, %v2859_v19, %v2855_v4  ;;  %4049 = vrcp.f32 %v5125_v60  ;;  %3784 = vmatmul.msk.f32.gmra.mxu1 %vm284_vm1, %v5088_v51  ;;  %v1792_v61 = vadd.f32 %v1706_v27, %v4769_v28  ;;  %vm2869_vm9 = vmor %vm2867_vm8, %vm2868_vm7  ;;  %v2874_v59 = vor.u32 1.1754944e-38, %v2873_v32  ;;  %v3817_v28 = vld [vmem:[%s4238_s30 + $0x138] sm:$0xff] }
 0x1fb   : > { %v3327_v55 = vmul.f32 %v2860_v62, %v5069_v54  ;;  %v2864_v15 = vsub.f32 1.0, %v2863_v40  ;;  %4051 = vpow2.f32 %v3993_v50  ;;  %3849 = vmatmul.msk.f32.gmra.mxu2 %vm284_vm1, %v3816_v16  ;;  %v2346_v54 = vadd.f32 %v2258_v25, %v2069_v12  ;;  %v3882_v16 = vld [vmem:[%s4238_s30 + $0x139] sm:$0xff] }
 0x1fc   : > { %3914 = vmatmul.msk.f32.gmra.mxu3 %vm284_vm1, %v3881_v21  ;;  %vm2872_vm10 = vcmp.eq.f32.partialorder %v2871_v35, 8.507059e+37  ;;  %v5163_v40 = vld [vmem:[%s4238_s30 + $0x13a] sm:$0xff]  ;;  %v2888_v35 = vand.u32 2147483648, %v5125_v60  ;;  %vm2882_vm12 = vweird.f32 %v5125_v60 }
 0x1fd   : > { %3979 = vmatmul.msk.f32.gmra.mxu0 %vm284_vm1, %v5132_v20  ;;  %v3359_v51 = vadd.f32 %v3327_v55, %v2687_v34  ;;  %v2865_v29 = vmul.f32 %v4048_v11, %v2864_v15  ;;  %v2623_v41 = vadd.f32 %v2535_v13, %v2346_v54 }
 0x1fe   : > { %v1984_v57 = vpop.f32.mrf.mxu2 }
 0x1ff   : > { %3392 = vst.msk [vmem:[%s5145_s23] sm:$0xff] %vm3391_vm6, %v3359_v51  ;;  %v2866_v8 = vadd.f32 %v4048_v11, %v2865_v29  ;;  %v2070_v31 = vadd.f32 %v1984_v57, %v1792_v61  ;;  %v2261_v49 = vpop.f32.mrf.mxu3  ;;  %v5157_v25 = vadd.f32 %v5057_v43, %v2623_v41  ;;  %v2889_v57 = vor.u32 1.1754944e-38, %v2888_v35 }
 0x200   : > { %v4050_v5 = vpop.eup %4049  ;;  %v1709_v19 = vpop.f32.mrf.mxu1 }
 0x201   : > { %v4052_v13 = vpop.eup %4051  ;;  %v2870_v12 = vsel %vm2869_vm9, %v4048_v11, %v2866_v8  ;;  %v2878_v27 = vmul.f32 %v4050_v5, %v5125_v60  ;;  %v3994_v34 = vmul.f32 -1.442695, %v5157_v25  ;;  %v2347_v62 = vadd.f32 %v2261_v49, %v2070_v31  ;;  %v3818_v31 = vld [vmem:[%s4238_s30 + $0x140] sm:$0xff] }
 0x202   : > { %v2541_v4 = vpop.f32.mrf.mxu0  ;;  %v2875_v50 = vsel %vm2872_vm10, %v2874_v59, %v2870_v12  ;;  %v5166_v21 = vadd.f32 1.0, %v4052_v13  ;;  %v2886_v11 = vand.u32 2147483647, %v5125_v60  ;;  %3785 = vmatmul.msk.f32.gmra.mxu1 %vm284_vm1, %v5105_v56  ;;  %vm2883_vm11 = vweird.f32 %v4050_v5  ;;  %v5191_v13 = vld [vmem:[%s4238_s30 + $0x142] sm:$0xff]  ;;  %v2689_v12 = vld [vmem:[%s5120_s20 + $0x10] sm:$0xff] }
 0x203   : > { %v3328_v55 = vmul.f32 %v2875_v50, %v5082_v47  ;;  %v2879_v15 = vsub.f32 1.0, %v2878_v27  ;;  %3850 = vmatmul.msk.f32.gmra.mxu2 %vm284_vm1, %v3817_v28  ;;  %v1793_v32 = vadd.f32 %v1709_v19, %v4779_v14  ;;  %v2624_v51 = vadd.f32 %v2538_v38, %v2347_v62  ;;  %vm2884_vm13 = vmor %vm2882_vm12, %vm2883_vm11  ;;  %v3883_v19 = vld [vmem:[%s4238_s30 + $0x141] sm:$0xff] }
 0x204   : > { %4053 = vrcp.f32 %v5166_v21  ;;  %3915 = vmatmul.msk.f32.gmra.mxu3 %vm284_vm1, %v3882_v16  ;;  %vm2887_vm14 = vcmp.eq.f32.partialorder %v2886_v11, 8.507059e+37  ;;  %v2903_v11 = vand.u32 2147483648, %v5166_v21  ;;  %vm2897_vm0 = vweird.f32 %v5166_v21 }
 0x205   : > { %3980 = vmatmul.msk.f32.gmra.mxu0 %vm284_vm1, %v5163_v40  ;;  %v3360_v47 = vadd.f32 %v3328_v55, %v2688_v44  ;;  %v2880_v54 = vmul.f32 %v4050_v5, %v2879_v15  ;;  %4055 = vpow2.f32 %v3994_v34  ;;  %v5184_v14 = vadd.f32 %v5057_v43, %v2624_v51 }
 0x206   : > { %v1987_v56 = vpop.f32.mrf.mxu2  ;;  %v2901_v15 = vand.u32 2147483647, %v5166_v21 }
 0x207   : > { %3393 = vst.msk [vmem:[%s5145_s23 + $0x8] sm:$0xff] %vm3391_vm6, %v3360_v47  ;;  %v2881_v29 = vadd.f32 %v4050_v5, %v2880_v54  ;;  %v2071_v61 = vadd.f32 %v1987_v56, %v1793_v32  ;;  %v2264_v41 = vpop.f32.mrf.mxu3  ;;  %v3995_v49 = vmul.f32 -1.442695, %v5184_v14 }
 0x208   : > { %v1712_v8 = vpop.f32.mrf.mxu1  ;;  %vm2902_vm3 = vcmp.eq.f32.partialorder %v2901_v15, 8.507059e+37 }
 0x209   : > { %v2885_v38 = vsel %vm2884_vm13, %v4050_v5, %v2881_v29  ;;  %v2348_v59 = vadd.f32 %v2264_v41, %v2071_v61  ;;  %4057 = vpow2.f32 %v3995_v49  ;;  %v1794_v55 = vadd.f32 %v1712_v8, %v4789_v18  ;;  %v3819_v18 = vld [vmem:[%s4238_s30 + $0x150] sm:$0xff] }
 0x20a   : > { %v2544_v28 = vpop.f32.mrf.mxu0  ;;  %v4054_v60 = vpop.eup %4053  ;;  %v2890_v27 = vsel %vm2887_vm14, %v2889_v57, %v2885_v38  ;;  %3786 = vmatmul.msk.f32.gmra.mxu1 %vm284_vm1, %v5132_v20  ;;  %v3884_v41 = vld [vmem:[%s4238_s30 + $0x151] sm:$0xff] }
 0x20b   : > { %v4056_v16 = vpop.eup %4055  ;;  %v3329_v44 = vmul.f32 %v2890_v27, %v5097_v6  ;;  %v2893_v50 = vmul.f32 %v4054_v60, %v5166_v21  ;;  %3851 = vmatmul.msk.f32.gmra.mxu2 %vm284_vm1, %v3818_v31  ;;  %v2625_v34 = vadd.f32 %v2541_v4, %v2348_v59  ;;  %vm2898_vm15 = vweird.f32 %v4054_v60  ;;  %v5218_v8 = vld [vmem:[%s4238_s30 + $0x152] sm:$0xff] }
 0x20c   : > { %v5199_v5 = vadd.f32 1.0, %v4056_v16  ;;  %3916 = vmatmul.msk.f32.gmra.mxu3 %vm284_vm1, %v3883_v19  ;;  %vm2899_vm2 = vmor %vm2897_vm0, %vm2898_vm15  ;;  %v2904_v31 = vor.u32 1.1754944e-38, %v2903_v11  ;;  %v2690_v19 = vld [vmem:[%s5120_s20 + $0x18] sm:$0xff] }
 0x20d   : > { %3981 = vmatmul.msk.f32.gmra.mxu0 %vm284_vm1, %v5191_v13  ;;  %v3361_v62 = vadd.f32 %v3329_v44, %v2689_v12  ;;  %v2894_v6 = vsub.f32 1.0, %v2893_v50  ;;  %v5211_v35 = vadd.f32 %v5057_v43, %v2625_v34  ;;  %v3820_v11 = vld [vmem:[%s4238_s30 + $0x158] sm:$0xff] }
 0x20e   : > { %4059 = vrcp.f32 %v5199_v5  ;;  %v1990_v20 = vpop.f32.mrf.mxu2  ;;  %vm2912_vm5 = vweird.f32 %v5199_v5 }
 0x20f   : > { %3394 = vst.msk [vmem:[%s5145_s23 + $0x10] sm:$0xff] %vm3391_vm6, %v3361_v62  ;;  %v2895_v4 = vmul.f32 %v4054_v60, %v2894_v6  ;;  %v2072_v32 = vadd.f32 %v1990_v20, %v1794_v55  ;;  %v2267_v47 = vpop.f32.mrf.mxu3  ;;  %v4058_v51 = vpop.eup %4057  ;;  %v3996_v29 = vmul.f32 -1.442695, %v5211_v35  ;;  %v2916_v6 = vand.u32 2147483647, %v5199_v5 }
 0x210   : > { %v1715_v54 = vpop.f32.mrf.mxu1  ;;  %v5220_v38 = vadd.f32 1.0, %v4058_v51  ;;  %v2918_v55 = vand.u32 2147483648, %v5199_v5 }
 0x211   : > { %v2896_v56 = vadd.f32 %v4054_v60, %v2895_v4  ;;  %v2349_v61 = vadd.f32 %v2267_v47, %v2072_v32  ;;  %4061 = vpow2.f32 %v3996_v29  ;;  %v3885_v32 = vld [vmem:[%s4238_s30 + $0x159] sm:$0xff]  ;;  %vm2917_vm8 = vcmp.eq.f32.partialorder %v2916_v6, 8.507059e+37 }
 0x212   : > { %v2547_v57 = vpop.f32.mrf.mxu0  ;;  %3787 = vmatmul.msk.f32.gmra.mxu1 %vm284_vm1, %v5163_v40  ;;  %4063 = vrcp.f32 %v5220_v38  ;;  %v1795_v40 = vadd.f32 %v1715_v54, %v4799_v22  ;;  %v5244_v54 = vld [vmem:[%s4238_s30 + $0x15a] sm:$0xff]  ;;  %vm2927_vm10 = vweird.f32 %v5220_v38 }
 0x213   : > { %v2900_v49 = vsel %vm2899_vm2, %v4054_v60, %v2896_v56  ;;  %v2626_v59 = vadd.f32 %v2544_v28, %v2349_v61  ;;  %3852 = vmatmul.msk.f32.gmra.mxu2 %vm284_vm1, %v3819_v18 }
 0x214   : > { %v4060_v21 = vpop.eup %4059  ;;  %v2905_v12 = vsel %vm2902_vm3, %v2904_v31, %v2900_v49  ;;  %3917 = vmatmul.msk.f32.gmra.mxu3 %vm284_vm1, %v3884_v41  ;;  %v2919_v41 = vor.u32 1.1754944e-38, %v2918_v55 }
 0x215   : > { %3982 = vmatmul.msk.f32.gmra.mxu0 %vm284_vm1, %v5218_v8  ;;  %v3330_v60 = vmul.f32 %v2905_v12, %v5123_v58  ;;  %v2908_v28 = vmul.f32 %v4060_v21, %v5199_v5  ;;  %v5234_v27 = vadd.f32 %v5057_v43, %v2626_v59  ;;  %vm2913_vm4 = vweird.f32 %v4060_v21 }
 0x216   : > { %v1993_v16 = vpop.f32.mrf.mxu2  ;;  %vm2914_vm7 = vmor %vm2912_vm5, %vm2913_vm4  ;;  %v2933_v12 = vand.u32 2147483648, %v5220_v38 }
 0x217   : > { %v3362_v44 = vadd.f32 %v3330_v60, %v2690_v19  ;;  %v2909_v50 = vsub.f32 1.0, %v2908_v28  ;;  %v2073_v34 = vadd.f32 %v1993_v16, %v1795_v40  ;;  %v2270_v62 = vpop.f32.mrf.mxu3  ;;  %v3997_v58 = vmul.f32 -1.442695, %v5234_v27  ;;  %v4062_v20 = vpop.eup %4061 }
 0x218   : > { %v1718_v15 = vpop.f32.mrf.mxu1  ;;  %v4064_v18 = vpop.eup %4063  ;;  %v5246_v51 = vadd.f32 1.0, %v4062_v20  ;;  %v2931_v19 = vand.u32 2147483647, %v5220_v38  ;;  %v2934_v20 = vor.u32 1.1754944e-38, %v2933_v12 }
 0x219   : > { %3395 = vst.msk [vmem:[%s5145_s23 + $0x18] sm:$0xff] %vm3391_vm6, %v3362_v44  ;;  %v2910_v22 = vmul.f32 %v4060_v21, %v2909_v50  ;;  %v2350_v4 = vadd.f32 %v2270_v62, %v2073_v34  ;;  %4065 = vpow2.f32 %v3997_v58  ;;  %v2923_v29 = vmul.f32 %v4064_v18, %v5220_v38  ;;  %v3821_v34 = vld [vmem:[%s4238_s30 + $0x168] sm:$0xff] }
 0x21a   : > { %v2550_v47 = vpop.f32.mrf.mxu0  ;;  %3788 = vmatmul.msk.f32.gmra.mxu1 %vm284_vm1, %v5191_v13  ;;  %4067 = vrcp.f32 %v5246_v51  ;;  %v1796_v49 = vadd.f32 %v1718_v15, %v4809_v10  ;;  %v2691_v13 = vld [vmem:[%s5120_s20 + $0x20] sm:$0xff]  ;;  %vm2928_vm9 = vweird.f32 %v4064_v18  ;;  %v3886_v58 = vld [vmem:[%s4238_s30 + $0x169] sm:$0xff]  ;;  %vm2932_vm12 = vcmp.eq.f32.partialorder %v2931_v19, 8.507059e+37 }
 0x21b   : > { %v2911_v56 = vadd.f32 %v4060_v21, %v2910_v22  ;;  %v2627_v61 = vadd.f32 %v2547_v57, %v2350_v4  ;;  %3853 = vmatmul.msk.f32.gmra.mxu2 %vm284_vm1, %v3820_v11  ;;  %v2924_v5 = vsub.f32 1.0, %v2923_v29  ;;  %vm2929_vm11 = vmor %vm2927_vm10, %vm2928_vm9  ;;  %vm2942_vm14 = vweird.f32 %v5246_v51 }
 0x21c   : > { %3918 = vmatmul.msk.f32.gmra.mxu3 %vm284_vm1, %v3885_v32  ;;  %v2692_v32 = vld [vmem:[%s5120_s20 + $0x28] sm:$0xff] }
 0x21d   : > { %3983 = vmatmul.msk.f32.gmra.mxu0 %vm284_vm1, %v5244_v54  ;;  %v2915_v31 = vsel %vm2914_vm7, %v4060_v21, %v2911_v56  ;;  %v5259_v57 = vadd.f32 %v5057_v43, %v2627_v61  ;;  %v2925_v21 = vmul.f32 %v4064_v18, %v2924_v5 }
 0x21e   : > { %v2920_v59 = vsel %vm2917_vm8, %v2919_v41, %v2915_v31  ;;  %v1996_v60 = vpop.f32.mrf.mxu2  ;;  %v2948_v31 = vand.u32 2147483648, %v5246_v51 }
 0x21f   : > { %v3331_v28 = vmul.f32 %v2920_v59, %v5157_v25  ;;  %v3998_v40 = vmul.f32 -1.442695, %v5259_v57  ;;  %v2074_v10 = vadd.f32 %v1996_v60, %v1796_v49  ;;  %v2273_v16 = vpop.f32.mrf.mxu3  ;;  %v4066_v44 = vpop.eup %4065  ;;  %v2926_v6 = vadd.f32 %v4064_v18, %v2925_v21  ;;  %v5272_v25 = vld [vmem:[%s4238_s30 + $0x16a] sm:$0xff] }
 0x220   : > { %v1721_v50 = vpop.f32.mrf.mxu1  ;;  %v5268_v55 = vadd.f32 1.0, %v4066_v44  ;;  %v4068_v11 = vpop.eup %4067 }
 0x221   : > { %v3363_v62 = vadd.f32 %v3331_v28, %v2691_v13  ;;  %4069 = vpow2.f32 %v3998_v40  ;;  %v2351_v22 = vadd.f32 %v2273_v16, %v2074_v10  ;;  %v2930_v38 = vsel %vm2929_vm11, %v4064_v18, %v2926_v6  ;;  %v3887_v16 = vld [vmem:[%s4238_s30 + $0x171] sm:$0xff] }
 0x222   : > { %v2553_v15 = vpop.f32.mrf.mxu0  ;;  %v2938_v4 = vmul.f32 %v4068_v11, %v5246_v51  ;;  %4071 = vrcp.f32 %v5268_v55  ;;  %3789 = vmatmul.msk.f32.gmra.mxu1 %vm284_vm1, %v5218_v8  ;;  %v2935_v56 = vsel %vm2932_vm12, %v2934_v20, %v2930_v38  ;;  %v1797_v61 = vadd.f32 %v1721_v50, %v4819_v0  ;;  %v5302_v50 = vld [vmem:[%s4238_s30 + $0x172] sm:$0xff] }
 0x223   : > { %3396 = vst.msk [vmem:[%s5145_s23 + $0x20] sm:$0xff] %vm3391_vm6, %v3363_v62  ;;  %3854 = vmatmul.msk.f32.gmra.mxu2 %vm284_vm1, %v3821_v34  ;;  %v3332_v29 = vmul.f32 %v2935_v56, %v5184_v14  ;;  %v2628_v41 = vadd.f32 %v2550_v47, %v2351_v22  ;;  %vm2943_vm13 = vweird.f32 %v4068_v11  ;;  %v2946_v8 = vand.u32 2147483647, %v5246_v51  ;;  %v3822_v47 = vld [vmem:[%s4238_s30 + $0x170] sm:$0xff] }
 0x224   : > { %3919 = vmatmul.msk.f32.gmra.mxu3 %vm284_vm1, %v3886_v58  ;;  %v2939_v18 = vsub.f32 1.0, %v2938_v4  ;;  %vm2944_vm15 = vmor %vm2942_vm14, %vm2943_vm13  ;;  %v2949_v34 = vor.u32 1.1754944e-38, %v2948_v31  ;;  %v2693_v51 = vld [vmem:[%s5120_s20 + $0x30] sm:$0xff]  ;;  %vm2957_vm3 = vweird.f32 %v5268_v55  ;;  %v3823_v31 = vld [vmem:[%s4238_s30 + $0x180] sm:$0xff] }
 0x225   : > { %3984 = vmatmul.msk.f32.gmra.mxu0 %vm284_vm1, %v5272_v25  ;;  %v3364_v13 = vadd.f32 %v3332_v29, %v2692_v32  ;;  %v5291_v19 = vadd.f32 %v5057_v43, %v2628_v41  ;;  %vm2947_vm0 = vcmp.eq.f32.partialorder %v2946_v8, 8.507059e+37  ;;  %v2961_v32 = vand.u32 2147483647, %v5268_v55 }
 0x226   : > { %v1999_v5 = vpop.f32.mrf.mxu2  ;;  %v2940_v59 = vmul.f32 %v4068_v11, %v2939_v18 }
 0x227   : > { %v4070_v49 = vpop.eup %4069  ;;  %v2075_v14 = vadd.f32 %v1999_v5, %v1797_v61  ;;  %v2276_v12 = vpop.f32.mrf.mxu3  ;;  %3397 = vst.msk [vmem:[%s5145_s23 + $0x28] sm:$0xff] %vm3391_vm6, %v3364_v13  ;;  %v3999_v40 = vmul.f32 -1.442695, %v5291_v19  ;;  %vm2962_vm5 = vcmp.eq.f32.partialorder %v2961_v32, 8.507059e+37 }
 0x228   : > { %v5293_v60 = vadd.f32 1.0, %v4070_v49  ;;  %v1724_v0 = vpop.f32.mrf.mxu1  ;;  %v4072_v28 = vpop.eup %4071  ;;  %v2941_v21 = vadd.f32 %v4068_v11, %v2940_v59 }
 0x229   : > { %v2352_v10 = vadd.f32 %v2276_v12, %v2075_v14  ;;  %v2953_v62 = vmul.f32 %v4072_v28, %v5268_v55  ;;  %v1798_v4 = vadd.f32 %v1724_v0, %v4829_v7  ;;  %vm2958_vm2 = vweird.f32 %v4072_v28  ;;  %v3888_v14 = vld [vmem:[%s4238_s30 + $0x181] sm:$0xff] }
 0x22a   : > { %v2556_v44 = vpop.f32.mrf.mxu0  ;;  %4073 = vrcp.f32 %v5293_v60  ;;  %v2945_v6 = vsel %vm2944_vm15, %v4068_v11, %v2941_v21  ;;  %3790 = vmatmul.msk.f32.gmra.mxu1 %vm284_vm1, %v5244_v54  ;;  %v2963_v11 = vand.u32 2147483648, %v5268_v55  ;;  %vm2959_vm4 = vmor %vm2957_vm3, %vm2958_vm2  ;;  %v5330_v0 = vld [vmem:[%s4238_s30 + $0x182] sm:$0xff]  ;;  %v2694_v21 = vld [vmem:[%s5120_s20 + $0x38] sm:$0xff]  ;;  %vm2972_vm8 = vweird.f32 %v5293_v60 }
 0x22b   : > { %4075 = vpow2.f32 %v3999_v40  ;;  %3855 = vmatmul.msk.f32.gmra.mxu2 %vm284_vm1, %v3822_v47  ;;  %v2950_v58 = vsel %vm2947_vm0, %v2949_v34, %v2945_v6  ;;  %v2954_v20 = vsub.f32 1.0, %v2953_v62  ;;  %v2629_v22 = vadd.f32 %v2553_v15, %v2352_v10 }
 0x22c   : > { %3920 = vmatmul.msk.f32.gmra.mxu3 %vm284_vm1, %v3887_v16  ;;  %v3333_v38 = vmul.f32 %v2950_v58, %v5211_v35  ;;  %v2964_v49 = vor.u32 1.1754944e-38, %v2963_v11  ;;  %v2976_v62 = vand.u32 2147483647, %v5293_v60  ;;  %v2978_v6 = vand.u32 2147483648, %v5293_v60 }
 0x22d   : > { %3985 = vmatmul.msk.f32.gmra.mxu0 %vm284_vm1, %v5302_v50  ;;  %v2955_v54 = vmul.f32 %v4072_v28, %v2954_v20  ;;  %v5319_v56 = vadd.f32 %v5057_v43, %v2629_v22 }
 0x22e   : > { %v2002_v15 = vpop.f32.mrf.mxu2  ;;  %v3365_v29 = vadd.f32 %v3333_v38, %v2693_v51  ;;  %vm2977_vm10 = vcmp.eq.f32.partialorder %v2976_v62, 8.507059e+37  ;;  %v3825_v62 = vld [vmem:[%s4238_s30 + $0x198] sm:$0xff] }
 0x22f   : > { %v2076_v18 = vadd.f32 %v2002_v15, %v1798_v4  ;;  %v2279_v61 = vpop.f32.mrf.mxu3  ;;  %v2956_v41 = vadd.f32 %v4072_v28, %v2955_v54  ;;  %v4000_v7 = vmul.f32 -1.442695, %v5319_v56  ;;  %v3824_v54 = vld [vmem:[%s4238_s30 + $0x188] sm:$0xff] }
 0x230   : > { %v4074_v35 = vpop.eup %4073  ;;  %v1727_v8 = vpop.f32.mrf.mxu1  ;;  %3398 = vst.msk [vmem:[%s5145_s23 + $0x30] sm:$0xff] %vm3391_vm6, %v3365_v29  ;;  %v3889_v29 = vld [vmem:[%s4238_s30 + $0x189] sm:$0xff] }
 0x231   : > { %v4076_v5 = vpop.eup %4075  ;;  %v2968_v13 = vmul.f32 %v4074_v35, %v5293_v60  ;;  %v2353_v59 = vadd.f32 %v2279_v61, %v2076_v18  ;;  %v2960_v47 = vsel %vm2959_vm4, %v4072_v28, %v2956_v41  ;;  %4077 = vpow2.f32 %v4000_v7  ;;  %v5358_v18 = vld [vmem:[%s4238_s30 + $0x18a] sm:$0xff]  ;;  %v2695_v41 = vld [vmem:[%s5120_s20 + $0x40] sm:$0xff] }
 0x232   : > { %v2559_v12 = vpop.f32.mrf.mxu0  ;;  %v5332_v55 = vadd.f32 1.0, %v4076_v5  ;;  %v2965_v40 = vsel %vm2962_vm5, %v2964_v49, %v2960_v47  ;;  %3791 = vmatmul.msk.f32.gmra.mxu1 %vm284_vm1, %v5272_v25  ;;  %vm2973_vm7 = vweird.f32 %v4074_v35  ;;  %v1799_v25 = vadd.f32 %v1727_v8, %v4839_v45 }
 0x233   : > { %v2969_v10 = vsub.f32 1.0, %v2968_v13  ;;  %v2630_v16 = vadd.f32 %v2556_v44, %v2353_v59  ;;  %3856 = vmatmul.msk.f32.gmra.mxu2 %vm284_vm1, %v3823_v31  ;;  %v3334_v34 = vmul.f32 %v2965_v40, %v5234_v27  ;;  %vm2974_vm9 = vmor %vm2972_vm8, %vm2973_vm7  ;;  %v2979_v45 = vor.u32 1.1754944e-38, %v2978_v6 }
 0x234   : > { %4079 = vrcp.f32 %v5332_v55  ;;  %3921 = vmatmul.msk.f32.gmra.mxu3 %vm284_vm1, %v3888_v14  ;;  %v2993_v59 = vand.u32 2147483648, %v5332_v55  ;;  %vm2987_vm12 = vweird.f32 %v5332_v55 }
 0x235   : > { %3986 = vmatmul.msk.f32.gmra.mxu0 %vm284_vm1, %v5330_v0  ;;  %v2970_v28 = vmul.f32 %v4074_v35, %v2969_v10  ;;  %v5347_v44 = vadd.f32 %v5057_v43, %v2630_v16  ;;  %v3366_v27 = vadd.f32 %v3334_v34, %v2694_v21  ;;  %v2991_v21 = vand.u32 2147483647, %v5332_v55 }
 0x236   : > { %v2005_v51 = vpop.f32.mrf.mxu2 }
 0x237   : > { %v2971_v58 = vadd.f32 %v4074_v35, %v2970_v28  ;;  %v4001_v20 = vmul.f32 -1.442695, %v5347_v44  ;;  %v2077_v22 = vadd.f32 %v2005_v51, %v1799_v25  ;;  %v2282_v38 = vpop.f32.mrf.mxu3  ;;  %v4078_v11 = vpop.eup %4077  ;;  %3399 = vst.msk [vmem:[%s5145_s23 + $0x38] sm:$0xff] %vm3391_vm6, %v3366_v27  ;;  %v3890_v27 = vld [vmem:[%s4238_s30 + $0x199] sm:$0xff]  ;;  %vm2992_vm14 = vcmp.eq.f32.partialorder %v2991_v21, 8.507059e+37  ;;  %v3956_v21 = vld [vmem:[%s4238_s30 + $0x1a2] sm:$0xff] }
 0x238   : > { %v1730_v4 = vpop.f32.mrf.mxu1  ;;  %v5354_v15 = vadd.f32 1.0, %v4078_v11 }
 0x239   : > { %v2975_v32 = vsel %vm2974_vm9, %v4074_v35, %v2971_v58  ;;  %4081 = vpow2.f32 %v4001_v20  ;;  %v2354_v8 = vadd.f32 %v2282_v38, %v2077_v22  ;;  %v3955_v58 = vld [vmem:[%s4238_s30 + $0x19a] sm:$0xff]  ;;  %v2994_v20 = vor.u32 1.1754944e-38, %v2993_v59 }
 0x23a   : > { %v2562_v60 = vpop.f32.mrf.mxu0  ;;  %v4080_v61 = vpop.eup %4079  ;;  %v2980_v7 = vsel %vm2977_vm10, %v2979_v45, %v2975_v32  ;;  %4083 = vrcp.f32 %v5354_v15  ;;  %3792 = vmatmul.msk.f32.gmra.mxu1 %vm284_vm1, %v5302_v50  ;;  %v3008_v32 = vand.u32 2147483648, %v5354_v15  ;;  %vm3002_vm0 = vweird.f32 %v5354_v15 }
 0x23b   : > { %v3335_v31 = vmul.f32 %v2980_v7, %v5259_v57  ;;  %v2983_v5 = vmul.f32 %v4080_v61, %v5332_v55  ;;  %3857 = vmatmul.msk.f32.gmra.mxu2 %vm284_vm1, %v3824_v54  ;;  %v2631_v35 = vadd.f32 %v2559_v12, %v2354_v8  ;;  %v1800_v57 = vadd.f32 %v1730_v4, %v4850_v37  ;;  %v2696_v55 = vld [vmem:[%s5120_s20 + $0x48] sm:$0xff] }
 0x23c   : > { %3922 = vmatmul.msk.f32.gmra.mxu3 %vm284_vm1, %v3889_v29  ;;  %vm2988_vm11 = vweird.f32 %v4080_v61 }
 0x23d   : > { %3987 = vmatmul.msk.f32.gmra.mxu0 %vm284_vm1, %v5358_v18  ;;  %v3367_v49 = vadd.f32 %v3335_v31, %v2695_v41  ;;  %v2984_v13 = vsub.f32 1.0, %v2983_v5  ;;  %v5373_v14 = vadd.f32 %v5057_v43, %v2631_v35  ;;  %vm2989_vm13 = vmor %vm2987_vm12, %vm2988_vm11 }
 0x23e   : > { %v2008_v47 = vpop.f32.mrf.mxu2 }
 0x23f   : > { %v4082_v50 = vpop.eup %4081  ;;  %3400 = vst.msk [vmem:[%s5145_s23 + $0x40] sm:$0xff] %vm3391_vm6, %v3367_v49  ;;  %v2985_v12 = vmul.f32 %v4080_v61, %v2984_v13  ;;  %v2078_v40 = vadd.f32 %v2008_v47, %v1800_v57  ;;  %v2285_v10 = vpop.f32.mrf.mxu3  ;;  %v4002_v37 = vmul.f32 -1.442695, %v5373_v14  ;;  %v3826_v49 = vld [vmem:[%s4238_s30 + $0x1a0] sm:$0xff]  ;;  %v3009_v57 = vor.u32 1.1754944e-38, %v3008_v32 }
 0x240   : > { %v5378_v16 = vadd.f32 1.0, %v4082_v50  ;;  %v1733_v34 = vpop.f32.mrf.mxu1  ;;  %v4084_v6 = vpop.eup %4083  ;;  %v3891_v50 = vld [vmem:[%s4238_s30 + $0x1a1] sm:$0xff] }
 0x241   : > { %v2986_v28 = vadd.f32 %v4080_v61, %v2985_v12  ;;  %v2355_v25 = vadd.f32 %v2285_v10, %v2078_v40  ;;  %v2998_v22 = vmul.f32 %v4084_v6, %v5354_v15  ;;  %v1801_v29 = vadd.f32 %v1733_v34, %v4860_v46  ;;  %v2697_v10 = vld [vmem:[%s5120_s20 + $0x50] sm:$0xff] }
 0x242   : > { %v2565_v51 = vpop.f32.mrf.mxu0  ;;  %4085 = vrcp.f32 %v5378_v16  ;;  %3793 = vmatmul.msk.f32.gmra.mxu1 %vm284_vm1, %v5330_v0  ;;  %vm3003_vm15 = vweird.f32 %v4084_v6  ;;  %v3006_v0 = vand.u32 2147483647, %v5354_v15  ;;  %vm3017_vm5 = vweird.f32 %v5378_v16 }
 0x243   : > { %v2990_v38 = vsel %vm2989_vm13, %v4080_v61, %v2986_v28  ;;  %4087 = vpow2.f32 %v4002_v37  ;;  %3858 = vmatmul.msk.f32.gmra.mxu2 %vm284_vm1, %v3825_v62  ;;  %v2999_v45 = vsub.f32 1.0, %v2998_v22  ;;  %v2632_v4 = vadd.f32 %v2562_v60, %v2355_v25  ;;  %vm3004_vm2 = vmor %vm3002_vm0, %vm3003_vm15 }
 0x244   : > { %v2995_v11 = vsel %vm2992_vm14, %v2994_v20, %v2990_v38  ;;  %3923 = vmatmul.msk.f32.gmra.mxu3 %vm284_vm1, %v3890_v27  ;;  %vm3007_vm3 = vcmp.eq.f32.partialorder %v3006_v0, 8.507059e+37  ;;  %v3021_v25 = vand.u32 2147483647, %v5378_v16  ;;  %v3023_v27 = vand.u32 2147483648, %v5378_v16 }
 0x245   : > { %3988 = vmatmul.msk.f32.gmra.mxu0 %vm284_vm1, %v3955_v58  ;;  %v3336_v54 = vmul.f32 %v2995_v11, %v5291_v19  ;;  %v3000_v61 = vmul.f32 %v4084_v6, %v2999_v45  ;;  %v5399_v41 = vadd.f32 %v5057_v43, %v2632_v4 }
 0x246   : > { %v2011_v60 = vpop.f32.mrf.mxu2  ;;  %v3024_v45 = vor.u32 1.1754944e-38, %v3023_v27  ;;  %vm3022_vm7 = vcmp.eq.f32.partialorder %v3021_v25, 8.507059e+37  ;;  %v2699_v25 = vld [vmem:[%s5120_s20 + $0x60] sm:$0xff] }
 0x247   : > { %v3368_v7 = vadd.f32 %v3336_v54, %v2696_v55  ;;  %v2079_v8 = vadd.f32 %v2011_v60, %v1801_v29  ;;  %v2288_v31 = vpop.f32.mrf.mxu3  ;;  %v3001_v5 = vadd.f32 %v4084_v6, %v3000_v61  ;;  %v4003_v46 = vmul.f32 -1.442695, %v5399_v41  ;;  %v2698_v29 = vld [vmem:[%s5120_s20 + $0x58] sm:$0xff] }
 0x248   : > { %v4086_v19 = vpop.eup %4085  ;;  %v1736_v35 = vpop.f32.mrf.mxu1 }
 0x249   : > { %v4088_v13 = vpop.eup %4087  ;;  %3401 = vst.msk [vmem:[%s5145_s23 + $0x48] sm:$0xff] %vm3391_vm6, %v3368_v7  ;;  %v3013_v59 = vmul.f32 %v4086_v19, %v5378_v16  ;;  %v2356_v47 = vadd.f32 %v2288_v31, %v2079_v8  ;;  %v3005_v40 = vsel %vm3004_vm2, %v4084_v6, %v3001_v5  ;;  %4089 = vpow2.f32 %v4003_v46  ;;  %v5441_v46 = vld [vmem:[%s5717_s2] ss:$0 sm:$0xff] }
 0x24a   : > { %v2568_v12 = vpop.f32.mrf.mxu0  ;;  %v5410_v15 = vadd.f32 1.0, %v4088_v13  ;;  %v3010_v37 = vsel %vm3007_vm3, %v3009_v57, %v3005_v40  ;;  %3794 = vmatmul.msk.f32.gmra.mxu1 %vm284_vm1, %v5358_v18  ;;  %vm3018_vm4 = vweird.f32 %v4086_v19 }
 0x24b   : > { %v3014_v34 = vsub.f32 1.0, %v3013_v59  ;;  %v2633_v62 = vadd.f32 %v2565_v51, %v2356_v47  ;;  %3859 = vmatmul.msk.f32.gmra.mxu2 %vm284_vm1, %v3826_v49  ;;  %v3337_v28 = vmul.f32 %v3010_v37, %v5319_v56  ;;  %v1802_v51 = vadd.f32 %v1736_v35, %v4867_v23 }
 0x24c   : > { %4091 = vrcp.f32 %v5410_v15  ;;  %3924 = vmatmul.msk.f32.gmra.mxu3 %vm284_vm1, %v3891_v50  ;;  %v3038_v5 = vand.u32 2147483648, %v5410_v15  ;;  %v3036_v57 = vand.u32 2147483647, %v5410_v15  ;;  %vm3032_vm9 = vweird.f32 %v5410_v15 }
 0x24d   : > { %3989 = vmatmul.msk.f32.gmra.mxu0 %vm284_vm1, %v3956_v21  ;;  %v3015_v6 = vmul.f32 %v4086_v19, %v3014_v34  ;;  %v5424_v18 = vadd.f32 %v5057_v43, %v2633_v62  ;;  %v3369_v58 = vadd.f32 %v3337_v28, %v2697_v10  ;;  %vm3019_vm1 = vmor %vm3017_vm5, %vm3018_vm4 }
 0x24e   : > { %v2014_v56 = vpop.f32.mrf.mxu2  ;;  %v3039_v34 = vor.u32 1.1754944e-38, %v3038_v5  ;;  %vm3037_vm11 = vcmp.eq.f32.partialorder %v3036_v57, 8.507059e+37 }
 0x24f   : > { %v3016_v20 = vadd.f32 %v4086_v19, %v3015_v6  ;;  %v4004_v22 = vmul.f32 -1.442695, %v5424_v18  ;;  %v2080_v38 = vadd.f32 %v2014_v56, %v1802_v51  ;;  %v2291_v55 = vpop.f32.mrf.mxu3  ;;  %v4090_v11 = vpop.eup %4089  ;;  %3402 = vst.msk [vmem:[%s5145_s23 + $0x50] sm:$0xff] %vm3391_vm6, %v3369_v58 }
 0x250   : > { %v1739_v4 = vpop.f32.mrf.mxu1  ;;  %v5430_v43 = vadd.f32 1.0, %v4090_v11 }
 0x251   : > { %v3020_v23 = vsel %vm3019_vm1, %v4086_v19, %v3016_v20  ;;  %4093 = vpow2.f32 %v4004_v22  ;;  %v2357_v61 = vadd.f32 %v2291_v55, %v2080_v38  ;;  %v1803_v19 = vadd.f32 %v1739_v4, %v4878_v39 }
 0x252   : > { %v2571_v54 = vpop.f32.mrf.mxu0  ;;  %v4092_v32 = vpop.eup %4091  ;;  %v3025_v16 = vsel %vm3022_vm7, %v3024_v45, %v3020_v23  ;;  %4095 = vrcp.f32 %v5430_v43  ;;  %v3053_v56 = vand.u32 2147483648, %v5430_v43  ;;  %v3051_v22 = vand.u32 2147483647, %v5430_v43 }
 0x253   : > { %v3338_v0 = vmul.f32 %v3025_v16, %v5347_v44  ;;  %v3028_v60 = vmul.f32 %v4092_v32, %v5410_v15  ;;  %v2634_v7 = vadd.f32 %v2568_v12, %v2357_v61  ;;  %vm3033_vm8 = vweird.f32 %v4092_v32 }
 0x254   : > { %vm3034_vm10 = vmor %vm3032_vm9, %vm3033_vm8  ;;  %vm3047_vm13 = vweird.f32 %v5430_v43  ;;  %vm3052_vm15 = vcmp.eq.f32.partialorder %v3051_v22, 8.507059e+37 }
 0x255   : > { %v3370_v8 = vadd.f32 %v3338_v0, %v2698_v29  ;;  %v3029_v31 = vsub.f32 1.0, %v3028_v60  ;;  %v5444_v35 = vadd.f32 %v5441_v46, %v2634_v7  ;;  %v3054_v29 = vor.u32 1.1754944e-38, %v3053_v56 }
 0x256   : > { %v2017_v44 = vpop.f32.mrf.mxu2 }
 0x257   : > { %v4094_v49 = vpop.eup %4093  ;;  %3403 = vst.msk [vmem:[%s5145_s23 + $0x58] sm:$0xff] %vm3391_vm6, %v3370_v8  ;;  %v3030_v13 = vmul.f32 %v4092_v32, %v3029_v31  ;;  %v2081_v59 = vadd.f32 %v2017_v44, %v1803_v19  ;;  %v2294_v39 = vpop.f32.mrf.mxu3  ;;  %v4005_v50 = vmul.f32 -1.442695, %v5444_v35  ;;  %v2700_v8 = vld [vmem:[%s5120_s20 + $0x68] sm:$0xff] }
 0x258   : > { %v5449_v47 = vadd.f32 1.0, %v4094_v49  ;;  %v1742_v12 = vpop.f32.mrf.mxu1  ;;  %v4096_v21 = vpop.eup %4095 }
 0x259   : > { %v3031_v40 = vadd.f32 %v4092_v32, %v3030_v13  ;;  %v2358_v10 = vadd.f32 %v2294_v39, %v2081_v59  ;;  %v3043_v62 = vmul.f32 %v4096_v21, %v5430_v43  ;;  %v1804_v15 = vadd.f32 %v1742_v12, %v4889_v30 }
 0x25a   : > { %v2574_v37 = vpop.f32.mrf.mxu0  ;;  %4097 = vrcp.f32 %v5449_v47  ;;  %vm3048_vm12 = vweird.f32 %v4096_v21  ;;  %v3066_v44 = vand.u32 2147483647, %v5449_v47  ;;  %v3068_v49 = vand.u32 2147483648, %v5449_v47 }
 0x25b   : > { %v3035_v28 = vsel %vm3034_vm10, %v4092_v32, %v3031_v40  ;;  %4099 = vpow2.f32 %v4005_v50  ;;  %v3044_v6 = vsub.f32 1.0, %v3043_v62  ;;  %v2635_v51 = vadd.f32 %v2571_v54, %v2358_v10  ;;  %vm3049_vm14 = vmor %vm3047_vm13, %vm3048_vm12 }
 0x25c   : > { %v3040_v27 = vsel %vm3037_vm11, %v3039_v34, %v3035_v28  ;;  %vm3062_vm2 = vweird.f32 %v5449_v47  ;;  %vm3067_vm4 = vcmp.eq.f32.partialorder %v3066_v44, 8.507059e+37 }
 0x25d   : > { %v3339_v58 = vmul.f32 %v3040_v27, %v5373_v14  ;;  %v3045_v20 = vmul.f32 %v4096_v21, %v3044_v6  ;;  %v5461_v38 = vadd.f32 %v5441_v46, %v2635_v51  ;;  %v2701_v27 = vld [vmem:[%s5120_s20 + $0x70] sm:$0xff] }
 0x25e   : > { %v2020_v55 = vpop.f32.mrf.mxu2 }
 0x25f   : > { %v3371_v11 = vadd.f32 %v3339_v58, %v2699_v25  ;;  %v2082_v45 = vadd.f32 %v2020_v55, %v1804_v15  ;;  %v2297_v4 = vpop.f32.mrf.mxu3  ;;  %v3046_v54 = vadd.f32 %v4096_v21, %v3045_v20  ;;  %v4006_v14 = vmul.f32 -1.442695, %v5461_v38 }
 0x260   : > { %v4098_v23 = vpop.eup %4097  ;;  %v1745_v32 = vpop.f32.mrf.mxu1 }
 0x261   : > { %v4100_v30 = vpop.eup %4099  ;;  %3404 = vst.msk [vmem:[%s5145_s23 + $0x60] sm:$0xff] %vm3391_vm6, %v3371_v11  ;;  %v3058_v16 = vmul.f32 %v4098_v23, %v5449_v47  ;;  %v2359_v61 = vadd.f32 %v2297_v4, %v2082_v45  ;;  %v3050_v60 = vsel %vm3049_vm14, %v4096_v21, %v3046_v54  ;;  %4101 = vpow2.f32 %v4006_v14 }
 0x262   : > { %v2577_v0 = vpop.f32.mrf.mxu0  ;;  %v5468_v7 = vadd.f32 1.0, %v4100_v30  ;;  %v3055_v31 = vsel %vm3052_vm15, %v3054_v29, %v3050_v60  ;;  %vm3063_vm0 = vweird.f32 %v4098_v23  ;;  %v1805_v57 = vadd.f32 %v1745_v32, %v4900_v1 }
 0x263   : > { %v3059_v43 = vsub.f32 1.0, %v3058_v16  ;;  %v2636_v19 = vadd.f32 %v2574_v37, %v2359_v61  ;;  %v3340_v5 = vmul.f32 %v3055_v31, %v5399_v41  ;;  %vm3064_vm3 = vmor %vm3062_vm2, %vm3063_vm0  ;;  %v3069_v37 = vor.u32 1.1754944e-38, %v3068_v49 }
 0x264   : > { %4103 = vrcp.f32 %v5468_v7  ;;  %v3083_v55 = vand.u32 2147483648, %v5468_v7  ;;  %vm3077_vm1 = vweird.f32 %v5468_v7 }
 0x265   : > { %v3060_v13 = vmul.f32 %v4098_v23, %v3059_v43  ;;  %v5477_v59 = vadd.f32 %v5441_v46, %v2636_v19  ;;  %v3372_v39 = vadd.f32 %v3340_v5, %v2700_v8  ;;  %v2702_v43 = vld [vmem:[%s5120_s20 + $0x78] sm:$0xff] }
 0x266   : > { %v2023_v50 = vpop.f32.mrf.mxu2  ;;  %v3084_v60 = vor.u32 1.1754944e-38, %v3083_v55 }
 0x267   : > { %v3061_v12 = vadd.f32 %v4098_v23, %v3060_v13  ;;  %v4007_v41 = vmul.f32 -1.442695, %v5477_v59  ;;  %v2083_v21 = vadd.f32 %v2023_v50, %v1805_v57  ;;  %v2300_v40 = vpop.f32.mrf.mxu3  ;;  %v4102_v10 = vpop.eup %4101  ;;  %3405 = vst.msk [vmem:[%s5145_s23 + $0x68] sm:$0xff] %vm3391_vm6, %v3372_v39 }
 0x268   : > { %v1748_v34 = vpop.f32.mrf.mxu1  ;;  %v5483_v62 = vadd.f32 1.0, %v4102_v10 }
 0x269   : > { %v3065_v1 = vsel %vm3064_vm3, %v4098_v23, %v3061_v12  ;;  %4105 = vpow2.f32 %v4007_v41  ;;  %v2360_v6 = vadd.f32 %v2300_v40, %v2083_v21  ;;  %v1806_v22 = vadd.f32 %v1748_v34, %v4912_v53 }
 0x26a   : > { %v2580_v28 = vpop.f32.mrf.mxu0  ;;  %v4104_v25 = vpop.eup %4103  ;;  %v3070_v47 = vsel %vm3067_vm4, %v3069_v37, %v3065_v1  ;;  %4107 = vrcp.f32 %v5483_v62  ;;  %v3098_v13 = vand.u32 2147483648, %v5483_v62  ;;  %v3096_v39 = vand.u32 2147483647, %v5483_v62 }
 0x26b   : > { %v3341_v51 = vmul.f32 %v3070_v47, %v5424_v18  ;;  %v3073_v58 = vmul.f32 %v4104_v25, %v5468_v7  ;;  %v2637_v56 = vadd.f32 %v2577_v0, %v2360_v6  ;;  %vm3078_vm5 = vweird.f32 %v4104_v25 }
 0x26c   : > { %v3081_v18 = vand.u32 2147483647, %v5468_v7  ;;  %vm3079_vm7 = vmor %vm3077_vm1, %vm3078_vm5  ;;  %vm3092_vm10 = vweird.f32 %v5483_v62  ;;  %v3099_v1 = vor.u32 1.1754944e-38, %v3098_v13  ;;  %vm3097_vm12 = vcmp.eq.f32.partialorder %v3096_v39, 8.507059e+37 }
 0x26d   : > { %v3373_v15 = vadd.f32 %v3341_v51, %v2701_v27  ;;  %v3074_v20 = vsub.f32 1.0, %v3073_v58  ;;  %v5492_v11 = vadd.f32 %v5441_v46, %v2637_v56  ;;  %v2703_v51 = vld [vmem:[%s5120_s20 + $0x80] sm:$0xff] }
 0x26e   : > { %v2026_v45 = vpop.f32.mrf.mxu2  ;;  %vm3082_vm8 = vcmp.eq.f32.partialorder %v3081_v18, 8.507059e+37 }
 0x26f   : > { %v4106_v4 = vpop.eup %4105  ;;  %3406 = vst.msk [vmem:[%s5145_s23 + $0x70] sm:$0xff] %vm3391_vm6, %v3373_v15  ;;  %v3075_v23 = vmul.f32 %v4104_v25, %v3074_v20  ;;  %v2084_v54 = vadd.f32 %v2026_v45, %v1806_v22  ;;  %v2303_v14 = vpop.f32.mrf.mxu3  ;;  %v4008_v53 = vmul.f32 -1.442695, %v5492_v11 }
 0x270   : > { %v5497_v32 = vadd.f32 1.0, %v4106_v4  ;;  %v1751_v30 = vpop.f32.mrf.mxu1  ;;  %v4108_v29 = vpop.eup %4107 }
 0x271   : > { %v3076_v16 = vadd.f32 %v4104_v25, %v3075_v23  ;;  %v2361_v61 = vadd.f32 %v2303_v14, %v2084_v54  ;;  %v3088_v8 = vmul.f32 %v4108_v29, %v5483_v62  ;;  %v1807_v7 = vadd.f32 %v1751_v30, %v4923_v9 }
 0x272   : > { %v2583_v0 = vpop.f32.mrf.mxu0  ;;  %4109 = vrcp.f32 %v5497_v32  ;;  %vm3093_vm9 = vweird.f32 %v4108_v29  ;;  %v3111_v20 = vand.u32 2147483647, %v5497_v32  ;;  %v3113_v22 = vand.u32 2147483648, %v5497_v32 }
 0x273   : > { %v3080_v31 = vsel %vm3079_vm7, %v4104_v25, %v3076_v16  ;;  %4111 = vpow2.f32 %v4008_v53  ;;  %v3089_v5 = vsub.f32 1.0, %v3088_v8  ;;  %v2638_v44 = vadd.f32 %v2580_v28, %v2361_v61  ;;  %vm3094_vm11 = vmor %vm3092_vm10, %vm3093_vm9  ;;  %v2704_v8 = vld [vmem:[%s5120_s20 + $0x88] sm:$0xff] }
 0x274   : > { %v3085_v19 = vsel %vm3082_vm8, %v3084_v60, %v3080_v31  ;;  %vm3107_vm14 = vweird.f32 %v5497_v32  ;;  %vm3112_vm0 = vcmp.eq.f32.partialorder %v3111_v20, 8.507059e+37 }
 0x275   : > { %v3342_v49 = vmul.f32 %v3085_v19, %v5444_v35  ;;  %v3090_v57 = vmul.f32 %v4108_v29, %v3089_v5  ;;  %v5509_v50 = vadd.f32 %v5441_v46, %v2638_v44 }
 0x276   : > { %v2029_v12 = vpop.f32.mrf.mxu2 }
 0x277   : > { %v3374_v41 = vadd.f32 %v3342_v49, %v2702_v43  ;;  %v2085_v21 = vadd.f32 %v2029_v12, %v1807_v7  ;;  %v2306_v40 = vpop.f32.mrf.mxu3  ;;  %v3091_v37 = vadd.f32 %v4108_v29, %v3090_v57  ;;  %v4009_v35 = vmul.f32 -1.442695, %v5509_v50 }
 0x278   : > { %v4110_v10 = vpop.eup %4109  ;;  %v1754_v34 = vpop.f32.mrf.mxu1 }
 0x279   : > { %v4112_v9 = vpop.eup %4111  ;;  %3407 = vst.msk [vmem:[%s5145_s23 + $0x78] sm:$0xff] %vm3391_vm6, %v3374_v41  ;;  %v3103_v28 = vmul.f32 %v4110_v10, %v5497_v32  ;;  %v2362_v25 = vadd.f32 %v2306_v40, %v2085_v21  ;;  %v3095_v47 = vsel %vm3094_vm11, %v4108_v29, %v3091_v37  ;;  %4113 = vpow2.f32 %v4009_v35 }
 0x27a   : > { %v2586_v27 = vpop.f32.mrf.mxu0  ;;  %v5516_v6 = vadd.f32 1.0, %v4112_v9  ;;  %v3100_v58 = vsel %vm3097_vm12, %v3099_v1, %v3095_v47  ;;  %vm3108_vm13 = vweird.f32 %v4110_v10  ;;  %v1808_v45 = vadd.f32 %v1754_v34, %v4934_v3  ;;  %v2705_v47 = vld [vmem:[%s5120_s20 + $0x90] sm:$0xff] }
 0x27b   : > { %v3104_v62 = vsub.f32 1.0, %v3103_v28  ;;  %v2639_v56 = vadd.f32 %v2583_v0, %v2362_v25  ;;  %v3343_v15 = vmul.f32 %v3100_v58, %v5461_v38  ;;  %vm3109_vm15 = vmor %vm3107_vm14, %vm3108_vm13  ;;  %v3114_v29 = vor.u32 1.1754944e-38, %v3113_v22 }
 0x27c   : > { %4115 = vrcp.f32 %v5516_v6  ;;  %v3128_v7 = vand.u32 2147483648, %v5516_v6  ;;  %vm3122_vm3 = vweird.f32 %v5516_v6 }
 0x27d   : > { %v3105_v55 = vmul.f32 %v4110_v10, %v3104_v62  ;;  %v5525_v4 = vadd.f32 %v5441_v46, %v2639_v56  ;;  %v3375_v23 = vadd.f32 %v3343_v15, %v2703_v51 }
 0x27e   : > { %v2032_v18 = vpop.f32.mrf.mxu2  ;;  %v3129_v28 = vor.u32 1.1754944e-38, %v3128_v7 }
 0x27f   : > { %v3106_v54 = vadd.f32 %v4110_v10, %v3105_v55  ;;  %v4010_v38 = vmul.f32 -1.442695, %v5525_v4  ;;  %v2086_v14 = vadd.f32 %v2032_v18, %v1808_v45  ;;  %v2309_v53 = vpop.f32.mrf.mxu3  ;;  %v4114_v30 = vpop.eup %4113  ;;  %3408 = vst.msk [vmem:[%s5145_s23 + $0x80] sm:$0xff] %vm3391_vm6, %v3375_v23 }
 0x280   : > { %v1757_v16 = vpop.f32.mrf.mxu1  ;;  %v5531_v61 = vadd.f32 1.0, %v4114_v30 }
 0x281   : > { %v3110_v3 = vsel %vm3109_vm15, %v4110_v10, %v3106_v54  ;;  %4117 = vpow2.f32 %v4010_v38  ;;  %v2363_v31 = vadd.f32 %v2309_v53, %v2086_v14  ;;  %v1809_v13 = vadd.f32 %v1757_v16, %v4945_v52 }
 0x282   : > { %v2589_v0 = vpop.f32.mrf.mxu0  ;;  %v4116_v60 = vpop.eup %4115  ;;  %v3115_v32 = vsel %vm3112_vm0, %v3114_v29, %v3110_v3  ;;  %4119 = vrcp.f32 %v5531_v61  ;;  %v3143_v15 = vand.u32 2147483648, %v5531_v61  ;;  %v3141_v22 = vand.u32 2147483647, %v5531_v61 }
 0x283   : > { %v3344_v43 = vmul.f32 %v3115_v32, %v5477_v59  ;;  %v3118_v19 = vmul.f32 %v4116_v60, %v5516_v6  ;;  %v2640_v5 = vadd.f32 %v2586_v27, %v2363_v31  ;;  %vm3123_vm2 = vweird.f32 %v4116_v60 }
 0x284   : > { %v3126_v59 = vand.u32 2147483647, %v5516_v6  ;;  %vm3124_vm4 = vmor %vm3122_vm3, %vm3123_vm2  ;;  %vm3137_vm7 = vweird.f32 %v5531_v61  ;;  %v3144_v30 = vor.u32 1.1754944e-38, %v3143_v15  ;;  %vm3142_vm9 = vcmp.eq.f32.partialorder %v3141_v22, 8.507059e+37 }
 0x285   : > { %v3376_v44 = vadd.f32 %v3344_v43, %v2704_v8  ;;  %v3119_v49 = vsub.f32 1.0, %v3118_v19  ;;  %v5540_v57 = vadd.f32 %v5441_v46, %v2640_v5  ;;  %v2706_v8 = vld [vmem:[%s5120_s20 + $0x98] sm:$0xff] }
 0x286   : > { %v2035_v39 = vpop.f32.mrf.mxu2  ;;  %vm3127_vm5 = vcmp.eq.f32.partialorder %v3126_v59, 8.507059e+37 }
 0x287   : > { %v4118_v12 = vpop.eup %4117  ;;  %3409 = vst.msk [vmem:[%s5145_s23 + $0x88] sm:$0xff] %vm3391_vm6, %v3376_v44  ;;  %v3120_v41 = vmul.f32 %v4116_v60, %v3119_v49  ;;  %v2087_v21 = vadd.f32 %v2035_v39, %v1809_v13  ;;  %v2312_v40 = vpop.f32.mrf.mxu3  ;;  %v4011_v52 = vmul.f32 -1.442695, %v5540_v57 }
 0x288   : > { %v5545_v10 = vadd.f32 1.0, %v4118_v12  ;;  %v1760_v37 = vpop.f32.mrf.mxu1  ;;  %v4120_v35 = vpop.eup %4119 }
 0x289   : > { %v3121_v34 = vadd.f32 %v4116_v60, %v3120_v41  ;;  %v2364_v9 = vadd.f32 %v2312_v40, %v2087_v21  ;;  %v3133_v25 = vmul.f32 %v4120_v35, %v5531_v61  ;;  %v1810_v6 = vadd.f32 %v1760_v37, %v4956_v33 }
 0x28a   : > { %v2592_v1 = vpop.f32.mrf.mxu0  ;;  %4121 = vrcp.f32 %v5545_v10  ;;  %vm3138_vm1 = vweird.f32 %v4120_v35  ;;  %v3156_v19 = vand.u32 2147483647, %v5545_v10  ;;  %v3158_v5 = vand.u32 2147483648, %v5545_v10 }
 0x28b   : > { %v3125_v27 = vsel %vm3124_vm4, %v4116_v60, %v3121_v34  ;;  %4123 = vpow2.f32 %v4011_v52  ;;  %v3134_v58 = vsub.f32 1.0, %v3133_v25  ;;  %v2641_v62 = vadd.f32 %v2589_v0, %v2364_v9  ;;  %vm3139_vm8 = vmor %vm3137_vm7, %vm3138_vm1  ;;  %v2707_v9 = vld [vmem:[%s5120_s20 + $0xa0] sm:$0xff] }
 0x28c   : > { %v3130_v51 = vsel %vm3127_vm5, %v3129_v28, %v3125_v27  ;;  %vm3152_vm11 = vweird.f32 %v5545_v10  ;;  %v3159_v40 = vor.u32 1.1754944e-38, %v3158_v5  ;;  %vm3157_vm13 = vcmp.eq.f32.partialorder %v3156_v19, 8.507059e+37 }
 0x28d   : > { %v3345_v56 = vmul.f32 %v3130_v51, %v5492_v11  ;;  %v3135_v20 = vmul.f32 %v4120_v35, %v3134_v58  ;;  %v5557_v55 = vadd.f32 %v5441_v46, %v2641_v62 }
 0x28e   : > { %v2038_v45 = vpop.f32.mrf.mxu2 }
 0x28f   : > { %v3377_v23 = vadd.f32 %v3345_v56, %v2705_v47  ;;  %v2088_v18 = vadd.f32 %v2038_v45, %v1810_v6  ;;  %v2315_v54 = vpop.f32.mrf.mxu3  ;;  %v3136_v14 = vadd.f32 %v4120_v35, %v3135_v20  ;;  %v4012_v11 = vmul.f32 -1.442695, %v5557_v55 }
 0x290   : > { %v4122_v38 = vpop.eup %4121  ;;  %v1763_v53 = vpop.f32.mrf.mxu1 }
 0x291   : > { %v4124_v33 = vpop.eup %4123  ;;  %3410 = vst.msk [vmem:[%s5145_s23 + $0x90] sm:$0xff] %vm3391_vm6, %v3377_v23  ;;  %v3148_v29 = vmul.f32 %v4122_v38, %v5545_v10  ;;  %v2365_v16 = vadd.f32 %v2315_v54, %v2088_v18  ;;  %v3140_v0 = vsel %vm3139_vm8, %v4120_v35, %v3136_v14  ;;  %4125 = vpow2.f32 %v4012_v11 }
 0x292   : > { %v2595_v3 = vpop.f32.mrf.mxu0  ;;  %v5564_v60 = vadd.f32 1.0, %v4124_v33  ;;  %v3145_v32 = vsel %vm3142_vm9, %v3144_v30, %v3140_v0  ;;  %vm3153_vm10 = vweird.f32 %v4122_v38  ;;  %v1811_v49 = vadd.f32 %v1763_v53, %v4967_v48 }
 0x293   : > { %v3149_v61 = vsub.f32 1.0, %v3148_v29  ;;  %v2642_v31 = vadd.f32 %v2592_v1, %v2365_v16  ;;  %v3346_v43 = vmul.f32 %v3145_v32, %v5509_v50  ;;  %vm3154_vm12 = vmor %vm3152_vm11, %vm3153_vm10  ;;  %v2708_v29 = vld [vmem:[%s5120_s20 + $0xa8] sm:$0xff] }
 0x294   : > { %4127 = vrcp.f32 %v5564_v60  ;;  %v3173_v62 = vand.u32 2147483648, %v5564_v60  ;;  %vm3167_vm15 = vweird.f32 %v5564_v60 }
 0x295   : > { %v3150_v44 = vmul.f32 %v4122_v38, %v3149_v61  ;;  %v5573_v13 = vadd.f32 %v5441_v46, %v2642_v31  ;;  %v3378_v7 = vadd.f32 %v3346_v43, %v2706_v8 }
 0x296   : > { %v2041_v39 = vpop.f32.mrf.mxu2  ;;  %v3174_v53 = vor.u32 1.1754944e-38, %v3173_v62 }
 0x297   : > { %v3151_v12 = vadd.f32 %v4122_v38, %v3150_v44  ;;  %v4013_v50 = vmul.f32 -1.442695, %v5573_v13  ;;  %v2089_v41 = vadd.f32 %v2041_v39, %v1811_v49  ;;  %v2318_v59 = vpop.f32.mrf.mxu3  ;;  %v4126_v21 = vpop.eup %4125  ;;  %3411 = vst.msk [vmem:[%s5145_s23 + $0x98] sm:$0xff] %vm3391_vm6, %v3378_v7 }
 0x298   : > { %v1766_v52 = vpop.f32.mrf.mxu1  ;;  %v5579_v37 = vadd.f32 1.0, %v4126_v21 }
 0x299   : > { %v3155_v48 = vsel %vm3154_vm12, %v4122_v38, %v3151_v12  ;;  %4129 = vpow2.f32 %v4013_v50  ;;  %v2366_v1 = vadd.f32 %v2318_v59, %v2089_v41  ;;  %v1812_v58 = vadd.f32 %v1766_v52, %v4978_v36 }
 0x29a   : > { %v2598_v35 = vpop.f32.mrf.mxu0  ;;  %v4128_v34 = vpop.eup %4127  ;;  %v3160_v10 = vsel %vm3157_vm13, %v3159_v40, %v3155_v48  ;;  %4131 = vrcp.f32 %v5579_v37  ;;  %v3188_v32 = vand.u32 2147483648, %v5579_v37  ;;  %v3186_v31 = vand.u32 2147483647, %v5579_v37  ;;  %v2709_v48 = vld [vmem:[%s5120_s20 + $0xb0] sm:$0xff] }
 0x29b   : > { %v3347_v28 = vmul.f32 %v3160_v10, %v5525_v4  ;;  %v3163_v25 = vmul.f32 %v4128_v34, %v5564_v60  ;;  %v2643_v27 = vadd.f32 %v2595_v3, %v2366_v1  ;;  %vm3168_vm14 = vweird.f32 %v4128_v34 }
 0x29c   : > { %v3171_v4 = vand.u32 2147483647, %v5564_v60  ;;  %vm3169_vm0 = vmor %vm3167_vm15, %vm3168_vm14  ;;  %vm3182_vm4 = vweird.f32 %v5579_v37  ;;  %v3189_v50 = vor.u32 1.1754944e-38, %v3188_v32  ;;  %vm3187_vm1 = vcmp.eq.f32.partialorder %v3186_v31, 8.507059e+37 }
 0x29d   : > { %v3379_v47 = vadd.f32 %v3347_v28, %v2707_v9  ;;  %v3164_v51 = vsub.f32 1.0, %v3163_v25  ;;  %v5588_v56 = vadd.f32 %v5441_v46, %v2643_v27 }
 0x29e   : > { %v2044_v15 = vpop.f32.mrf.mxu2  ;;  %vm3172_vm2 = vcmp.eq.f32.partialorder %v3171_v4, 8.507059e+37 }
 0x29f   : > { %v4130_v6 = vpop.eup %4129  ;;  %3412 = vst.msk [vmem:[%s5145_s23 + $0xa0] sm:$0xff] %vm3391_vm6, %v3379_v47  ;;  %v3165_v20 = vmul.f32 %v4128_v34, %v3164_v51  ;;  %v2090_v22 = vadd.f32 %v2044_v15, %v1812_v58  ;;  %v2321_v45 = vpop.f32.mrf.mxu3  ;;  %v4014_v36 = vmul.f32 -1.442695, %v5588_v56 }
 0x2a0   : > { %v5593_v23 = vadd.f32 1.0, %v4130_v6  ;;  %v1769_v18 = vpop.f32.mrf.mxu1  ;;  %v4132_v54 = vpop.eup %4131 }
 0x2a1   : > { %v3166_v38 = vadd.f32 %v4128_v34, %v3165_v20  ;;  %v2367_v14 = vadd.f32 %v2321_v45, %v2090_v22  ;;  %v3178_v33 = vmul.f32 %v4132_v54, %v5579_v37  ;;  %v1813_v60 = vadd.f32 %v1769_v18, %v4989_v42 }
 0x2a2   : > { %v2601_v11 = vpop.f32.mrf.mxu0  ;;  %4133 = vrcp.f32 %v5593_v23  ;;  %vm3183_vm3 = vweird.f32 %v4132_v54  ;;  %v3201_v10 = vand.u32 2147483647, %v5593_v23  ;;  %v3203_v1 = vand.u32 2147483648, %v5593_v23 }
 0x2a3   : > { %v3170_v30 = vsel %vm3169_vm0, %v4128_v34, %v3166_v38  ;;  %4135 = vpow2.f32 %v4014_v36  ;;  %v3179_v3 = vsub.f32 1.0, %v3178_v33  ;;  %v2644_v0 = vadd.f32 %v2598_v35, %v2367_v14  ;;  %vm3184_vm5 = vmor %vm3182_vm4, %vm3183_vm3  ;;  %v2710_v36 = vld [vmem:[%s5120_s20 + $0xb8] sm:$0xff] }
 0x2a4   : > { %v3175_v16 = vsel %vm3172_vm2, %v3174_v53, %v3170_v30  ;;  %vm3197_vm8 = vweird.f32 %v5593_v23  ;;  %v3204_v20 = vor.u32 1.1754944e-38, %v3203_v1  ;;  %vm3202_vm10 = vcmp.eq.f32.partialorder %v3201_v10, 8.507059e+37 }
 0x2a5   : > { %v3348_v8 = vmul.f32 %v3175_v16, %v5540_v57  ;;  %v3180_v61 = vmul.f32 %v4132_v54, %v3179_v3  ;;  %v5605_v43 = vadd.f32 %v5441_v46, %v2644_v0 }
 0x2a6   : > { %v2047_v19 = vpop.f32.mrf.mxu2 }
 0x2a7   : > { %v3380_v5 = vadd.f32 %v3348_v8, %v2708_v29  ;;  %v2091_v44 = vadd.f32 %v2047_v19, %v1813_v60  ;;  %v2324_v49 = vpop.f32.mrf.mxu3  ;;  %v3181_v39 = vadd.f32 %v4132_v54, %v3180_v61  ;;  %v4015_v57 = vmul.f32 -1.442695, %v5605_v43 }
 0x2a8   : > { %v4134_v7 = vpop.eup %4133  ;;  %v1772_v12 = vpop.f32.mrf.mxu1 }
 0x2a9   : > { %v4136_v42 = vpop.eup %4135  ;;  %3413 = vst.msk [vmem:[%s5145_s23 + $0xa8] sm:$0xff] %vm3391_vm6, %v3380_v5  ;;  %v3193_v41 = vmul.f32 %v4134_v7, %v5593_v23  ;;  %v2368_v59 = vadd.f32 %v2324_v49, %v2091_v44  ;;  %v3185_v40 = vsel %vm3184_vm5, %v4132_v54, %v3181_v39  ;;  %4137 = vpow2.f32 %v4015_v57  ;;  %v2711_v57 = vld [vmem:[%s5120_s20 + $0xc0] sm:$0xff] }
 0x2aa   : > { %v2604_v21 = vpop.f32.mrf.mxu0  ;;  %v5612_v52 = vadd.f32 1.0, %v4136_v42  ;;  %v3190_v35 = vsel %vm3187_vm1, %v3189_v50, %v3185_v40  ;;  %vm3198_vm7 = vweird.f32 %v4134_v7  ;;  %v1814_v25 = vadd.f32 %v1772_v12, %v5000_v63 }
 0x2ab   : > { %v3194_v37 = vsub.f32 1.0, %v3193_v41  ;;  %v2645_v34 = vadd.f32 %v2601_v11, %v2368_v59  ;;  %v3349_v9 = vmul.f32 %v3190_v35, %v5557_v55  ;;  %vm3199_vm9 = vmor %vm3197_vm8, %vm3198_vm7 }
 0x2ac   : > { %4139 = vrcp.f32 %v5612_v52  ;;  %v3218_v29 = vand.u32 2147483648, %v5612_v52  ;;  %v3216_v8 = vand.u32 2147483647, %v5612_v52  ;;  %vm3212_vm12 = vweird.f32 %v5612_v52 }
 0x2ad   : > { %v3195_v28 = vmul.f32 %v4134_v7, %v3194_v37  ;;  %v5621_v27 = vadd.f32 %v5441_v46, %v2645_v34  ;;  %v3381_v47 = vadd.f32 %v3349_v9, %v2709_v48 }
 0x2ae   : > { %v2050_v51 = vpop.f32.mrf.mxu2  ;;  %v3219_v49 = vor.u32 1.1754944e-38, %v3218_v29  ;;  %vm3217_vm14 = vcmp.eq.f32.partialorder %v3216_v8, 8.507059e+37 }
 0x2af   : > { %v3196_v58 = vadd.f32 %v4134_v7, %v3195_v28  ;;  %v4016_v55 = vmul.f32 -1.442695, %v5621_v27  ;;  %v2092_v62 = vadd.f32 %v2050_v51, %v1814_v25  ;;  %v2327_v15 = vpop.f32.mrf.mxu3  ;;  %v4138_v6 = vpop.eup %4137  ;;  %3414 = vst.msk [vmem:[%s5145_s23 + $0xb0] sm:$0xff] %vm3391_vm6, %v3381_v47 }
 0x2b0   : > { %v1775_v4 = vpop.f32.mrf.mxu1  ;;  %v5627_v22 = vadd.f32 1.0, %v4138_v6 }
 0x2b1   : > { %v3200_v63 = vsel %vm3199_vm9, %v4134_v7, %v3196_v58  ;;  %4141 = vpow2.f32 %v4016_v55  ;;  %v2369_v23 = vadd.f32 %v2327_v15, %v2092_v62  ;;  %v1815_v30 = vadd.f32 %v1775_v4, %v5011_v17  ;;  %v2712_v15 = vld [vmem:[%s5120_s20 + $0xc8] sm:$0xff] }
 0x2b2   : > { %v4140_v45 = vpop.eup %4139  ;;  %v3205_v18 = vsel %vm3202_vm10, %v3204_v20, %v3200_v63  ;;  %4143 = vrcp.f32 %v5627_v22  ;;  %v2607_v14 = vpop.f32.mrf.mxu0  ;;  %v3233_v59 = vand.u32 2147483648, %v5627_v22  ;;  %v3231_v48 = vand.u32 2147483647, %v5627_v22 }
 0x2b3   : > { %v3350_v54 = vmul.f32 %v3205_v18, %v5573_v13  ;;  %v3208_v38 = vmul.f32 %v4140_v45, %v5612_v52  ;;  %v2646_v11 = vadd.f32 %v2604_v21, %v2369_v23  ;;  %vm3213_vm11 = vweird.f32 %v4140_v45 }
 0x2b4   : > { %vm3214_vm13 = vmor %vm3212_vm12, %vm3213_vm11  ;;  %vm3227_vm0 = vweird.f32 %v5627_v22  ;;  %v3234_v47 = vor.u32 1.1754944e-38, %v3233_v59  ;;  %vm3232_vm3 = vcmp.eq.f32.partialorder %v3231_v48, 8.507059e+37 }
 0x2b5   : > { %v3382_v53 = vadd.f32 %v3350_v54, %v2710_v36  ;;  %v3209_v33 = vsub.f32 1.0, %v3208_v38  ;;  %v5636_v16 = vadd.f32 %v5441_v46, %v2646_v11 }
 0x2b6   : > { %v2053_v3 = vpop.f32.mrf.mxu2 }
 0x2b7   : > { %v4142_v0 = vpop.eup %4141  ;;  %3415 = vst.msk [vmem:[%s5145_s23 + $0xb8] sm:$0xff] %vm3391_vm6, %v3382_v53  ;;  %v3210_v13 = vmul.f32 %v4140_v45, %v3209_v33  ;;  %v2093_v32 = vadd.f32 %v2053_v3, %v1815_v30  ;;  %v2330_v60 = vpop.f32.mrf.mxu3  ;;  %v4017_v17 = vmul.f32 -1.442695, %v5636_v16 }
 0x2b8   : > { %v5641_v61 = vadd.f32 1.0, %v4142_v0  ;;  %v1778_v31 = vpop.f32.mrf.mxu1  ;;  %v4144_v19 = vpop.eup %4143 }
 0x2b9   : > { %v3211_v5 = vadd.f32 %v4140_v45, %v3210_v13  ;;  %v2370_v44 = vadd.f32 %v2330_v60, %v2093_v32  ;;  %v3223_v7 = vmul.f32 %v4144_v19, %v5627_v22  ;;  %v1816_v21 = vadd.f32 %v1778_v31, %v5022_v26  ;;  %v2713_v13 = vld [vmem:[%s5120_s20 + $0xd0] sm:$0xff] }
 0x2ba   : > { %4145 = vrcp.f32 %v5641_v61  ;;  %v2610_v40 = vpop.f32.mrf.mxu0  ;;  %vm3228_vm15 = vweird.f32 %v4144_v19  ;;  %v3246_v22 = vand.u32 2147483647, %v5641_v61  ;;  %vm3242_vm5 = vweird.f32 %v5641_v61 }
 0x2bb   : > { %v3215_v39 = vsel %vm3214_vm13, %v4140_v45, %v3211_v5  ;;  %4147 = vpow2.f32 %v4017_v17  ;;  %v3224_v42 = vsub.f32 1.0, %v3223_v7  ;;  %v2647_v50 = vadd.f32 %v2607_v14, %v2370_v44  ;;  %vm3229_vm2 = vmor %vm3227_vm0, %vm3228_vm15 }
 0x2bc   : > { %v3220_v12 = vsel %vm3217_vm14, %v3219_v49, %v3215_v39  ;;  %v3248_v45 = vand.u32 2147483648, %v5641_v61  ;;  %vm3247_vm7 = vcmp.eq.f32.partialorder %v3246_v22, 8.507059e+37  ;;  %v2715_v22 = vld [vmem:[%s5120_s20 + $0xe0] sm:$0xff] }
 0x2bd   : > { %v3351_v41 = vmul.f32 %v3220_v12, %v5588_v56  ;;  %v3225_v52 = vmul.f32 %v4144_v19, %v3224_v42  ;;  %v5653_v35 = vadd.f32 %v5441_v46, %v2647_v50 }
 0x2be   : > { %v2056_v37 = vpop.f32.mrf.mxu2  ;;  %v3249_v29 = vor.u32 1.1754944e-38, %v3248_v45 }
 0x2bf   : > { %v3383_v34 = vadd.f32 %v3351_v41, %v2711_v57  ;;  %v2094_v9 = vadd.f32 %v2056_v37, %v1816_v21  ;;  %v2333_v10 = vpop.f32.mrf.mxu3  ;;  %v3226_v56 = vadd.f32 %v4144_v19, %v3225_v52  ;;  %v4018_v26 = vmul.f32 -1.442695, %v5653_v35 }
 0x2c0   : > { %v4146_v1 = vpop.eup %4145  ;;  %v1781_v28 = vpop.f32.mrf.mxu1 }
 0x2c1   : > { %v4148_v25 = vpop.eup %4147  ;;  %3416 = vst.msk [vmem:[%s5145_s23 + $0xc0] sm:$0xff] %vm3391_vm6, %v3383_v34  ;;  %v3238_v51 = vmul.f32 %v4146_v1, %v5641_v61  ;;  %v2371_v58 = vadd.f32 %v2333_v10, %v2094_v9  ;;  %v3230_v55 = vsel %vm3229_vm2, %v4144_v19, %v3226_v56  ;;  %4149 = vpow2.f32 %v4018_v26  ;;  %v2714_v9 = vld [vmem:[%s5120_s20 + $0xd8] sm:$0xff] }
 0x2c2   : > { %v5660_v62 = vadd.f32 1.0, %v4148_v25  ;;  %v3235_v6 = vsel %vm3232_vm3, %v3234_v47, %v3230_v55  ;;  %vm3243_vm4 = vweird.f32 %v4146_v1  ;;  %v1817_v18 = vadd.f32 %v1781_v28, %v5033_v24  ;;  %v2613_v33 = vpop.f32.mrf.mxu0 }
 0x2c3   : > { %v3239_v20 = vsub.f32 1.0, %v3238_v51  ;;  %v2648_v4 = vadd.f32 %v2610_v40, %v2371_v58  ;;  %v3352_v63 = vmul.f32 %v3235_v6, %v5605_v43  ;;  %vm3244_vm1 = vmor %vm3242_vm5, %vm3243_vm4 }
 0x2c4   : > { %4151 = vrcp.f32 %v5660_v62  ;;  %v3263_v49 = vand.u32 2147483648, %v5660_v62  ;;  %vm3257_vm9 = vweird.f32 %v5660_v62 }
 0x2c5   : > { %v3240_v36 = vmul.f32 %v4146_v1, %v3239_v20  ;;  %v5669_v23 = vadd.f32 %v5441_v46, %v2648_v4  ;;  %v3384_v54 = vadd.f32 %v3352_v63, %v2712_v15 }
 0x2c6   : > { %v2059_v38 = vpop.f32.mrf.mxu2  ;;  %v3264_v48 = vor.u32 1.1754944e-38, %v3263_v49 }
 0x2c7   : > { %v3241_v14 = vadd.f32 %v4146_v1, %v3240_v36  ;;  %v4019_v43 = vmul.f32 -1.442695, %v5669_v23  ;;  %v2095_v11 = vadd.f32 %v2059_v38, %v1817_v18  ;;  %v2336_v53 = vpop.f32.mrf.mxu3  ;;  %v4150_v30 = vpop.eup %4149  ;;  %3417 = vst.msk [vmem:[%s5145_s23 + $0xc8] sm:$0xff] %vm3391_vm6, %v3384_v54 }
 0x2c8   : > { %v2843_v3 = vadd.f32 1.0, %v4150_v30  ;;  %v1784_v32 = vpop.f32.mrf.mxu1 }
 0x2c9   : > { %v3245_v24 = vsel %vm3244_vm1, %v4146_v1, %v3241_v14  ;;  %4153 = vpow2.f32 %v4019_v43  ;;  %v2372_v60 = vadd.f32 %v2336_v53, %v2095_v11  ;;  %v1818_v44 = vadd.f32 %v1784_v32, %v5044_v2 }
 0x2ca   : > { %v4152_v0 = vpop.eup %4151  ;;  %v3250_v8 = vsel %vm3247_vm7, %v3249_v29, %v3245_v24  ;;  %4155 = vrcp.f32 %v2843_v3  ;;  %v2616_v52 = vpop.f32.mrf.mxu0  ;;  %v3278_v28 = vand.u32 2147483648, %v2843_v3  ;;  %v3276_v47 = vand.u32 2147483647, %v2843_v3 }
 0x2cb   : > { %v3353_v61 = vmul.f32 %v3250_v8, %v5621_v27  ;;  %v3253_v17 = vmul.f32 %v4152_v0, %v5660_v62  ;;  %v2649_v31 = vadd.f32 %v2613_v33, %v2372_v60  ;;  %vm3258_vm8 = vweird.f32 %v4152_v0 }
 0x2cc   : > { %v3261_v27 = vand.u32 2147483647, %v5660_v62  ;;  %vm3259_vm10 = vmor %vm3257_vm9, %vm3258_vm8  ;;  %vm3272_vm13 = vweird.f32 %v2843_v3  ;;  %v3279_v20 = vor.u32 1.1754944e-38, %v3278_v28  ;;  %vm3277_vm15 = vcmp.eq.f32.partialorder %v3276_v47, 8.507059e+37 }
 0x2cd   : > { %v3385_v19 = vadd.f32 %v3353_v61, %v2713_v13  ;;  %v3254_v5 = vsub.f32 1.0, %v3253_v17  ;;  %v5681_v7 = vadd.f32 %v5441_v46, %v2649_v31 }
 0x2ce   : > { %v2062_v39 = vpop.f32.mrf.mxu2  ;;  %vm3262_vm11 = vcmp.eq.f32.partialorder %v3261_v27, 8.507059e+37 }
 0x2cf   : > { %v4154_v57 = vpop.eup %4153  ;;  %3418 = vst.msk [vmem:[%s5145_s23 + $0xd0] sm:$0xff] %vm3391_vm6, %v3385_v19  ;;  %v3255_v12 = vmul.f32 %v4152_v0, %v3254_v5  ;;  %v2096_v42 = vadd.f32 %v2062_v39, %v1818_v44  ;;  %v2339_v50 = vpop.f32.mrf.mxu3  ;;  %v4020_v59 = vmul.f32 -1.442695, %v5681_v7 }
 0x2d0   : > { %v2844_v41 = vadd.f32 1.0, %v4154_v57  ;;  %v4156_v2 = vpop.eup %4155 }
 0x2d1   : > { %v3256_v21 = vadd.f32 %v4152_v0, %v3255_v12  ;;  %v2373_v40 = vadd.f32 %v2339_v50, %v2096_v42  ;;  %v3268_v37 = vmul.f32 %v4156_v2, %v2843_v3  ;;  %vm3273_vm12 = vweird.f32 %v4156_v2 }
 0x2d2   : > { %4157 = vrcp.f32 %v2844_v41  ;;  %vm3274_vm14 = vmor %vm3272_vm13, %vm3273_vm12  ;;  %v3293_v18 = vand.u32 2147483648, %v2844_v41  ;;  %v3291_v38 = vand.u32 2147483647, %v2844_v41  ;;  %vm3287_vm2 = vweird.f32 %v2844_v41 }
 0x2d3   : > { %v3260_v34 = vsel %vm3259_vm10, %v4152_v0, %v3256_v21  ;;  %4159 = vpow2.f32 %v4020_v59  ;;  %v3269_v1 = vsub.f32 1.0, %v3268_v37  ;;  %v2650_v56 = vadd.f32 %v2616_v52, %v2373_v40  ;;  %v2718_v21 = vld [vmem:[%s5120_s20 + $0xf8] sm:$0xff] }
 0x2d4   : > { %v3265_v10 = vsel %vm3262_vm11, %v3264_v48, %v3260_v34  ;;  %v3294_v53 = vor.u32 1.1754944e-38, %v3293_v18  ;;  %vm3292_vm4 = vcmp.eq.f32.partialorder %v3291_v38, 8.507059e+37 }
 0x2d5   : > { %v3354_v26 = vmul.f32 %v3265_v10, %v5636_v16  ;;  %v3270_v25 = vmul.f32 %v4156_v2, %v3269_v1  ;;  %v5691_v51 = vadd.f32 %v5441_v46, %v2650_v56 }
 0x2d7   : > { %v3386_v58 = vadd.f32 %v3354_v26, %v2714_v9  ;;  %v3271_v62 = vadd.f32 %v4156_v2, %v3270_v25  ;;  %v4021_v15 = vmul.f32 -1.442695, %v5691_v51 }
 0x2d8   : > { %v4158_v55 = vpop.eup %4157 }
 0x2d9   : > { %v4160_v6 = vpop.eup %4159  ;;  %3419 = vst.msk [vmem:[%s5145_s23 + $0xd8] sm:$0xff] %vm3391_vm6, %v3386_v58  ;;  %v3283_v16 = vmul.f32 %v4158_v55, %v2844_v41  ;;  %v3275_v4 = vsel %vm3274_vm14, %v4156_v2, %v3271_v62  ;;  %4161 = vpow2.f32 %v4021_v15  ;;  %vm3288_vm0 = vweird.f32 %v4158_v55 }
 0x2da   : > { %v2845_v63 = vadd.f32 1.0, %v4160_v6  ;;  %v3280_v46 = vsel %vm3277_vm15, %v3279_v20, %v3275_v4  ;;  %vm3289_vm3 = vmor %vm3287_vm2, %vm3288_vm0 }
 0x2db   : > { %v3284_v45 = vsub.f32 1.0, %v3283_v16  ;;  %v3355_v36 = vmul.f32 %v3280_v46, %v5653_v35  ;;  %v2716_v35 = vld [vmem:[%s5120_s20 + $0xe8] sm:$0xff] }
 0x2dc   : > { %4163 = vrcp.f32 %v2845_v63  ;;  %v3308_v32 = vand.u32 2147483648, %v2845_v63  ;;  %v3306_v61 = vand.u32 2147483647, %v2845_v63  ;;  %vm3302_vm1 = vweird.f32 %v2845_v63 }
 0x2dd   : > { %v3285_v54 = vmul.f32 %v4158_v55, %v3284_v45  ;;  %v3387_v14 = vadd.f32 %v3355_v36, %v2715_v22 }
 0x2de   : > { %v3309_v19 = vor.u32 1.1754944e-38, %v3308_v32  ;;  %vm3307_vm8 = vcmp.eq.f32.partialorder %v3306_v61, 8.507059e+37 }
 0x2df   : > { %v3286_v43 = vadd.f32 %v4158_v55, %v3285_v54  ;;  %v4162_v11 = vpop.eup %4161  ;;  %3420 = vst.msk [vmem:[%s5145_s23 + $0xe0] sm:$0xff] %vm3391_vm6, %v3387_v14 }
 0x2e0   : > { %v2846_v30 = vadd.f32 1.0, %v4162_v11 }
 0x2e1   : > { %v3290_v33 = vsel %vm3289_vm3, %v4158_v55, %v3286_v43 }
 0x2e2   : > { %v4164_v29 = vpop.eup %4163  ;;  %v3295_v24 = vsel %vm3292_vm4, %v3294_v53, %v3290_v33  ;;  %4165 = vrcp.f32 %v2846_v30  ;;  %v3323_v12 = vand.u32 2147483648, %v2846_v30  ;;  %v3321_v42 = vand.u32 2147483647, %v2846_v30 }
 0x2e3   : > { %v3356_v3 = vmul.f32 %v3295_v24, %v5669_v23  ;;  %v3298_v0 = vmul.f32 %v4164_v29, %v2845_v63  ;;  %vm3303_vm5 = vweird.f32 %v4164_v29  ;;  %v2717_v23 = vld [vmem:[%s5120_s20 + $0xf0] sm:$0xff]  ;;  %vm3317_vm10 = vweird.f32 %v2846_v30 }
 0x2e4   : > { %vm3304_vm7 = vmor %vm3302_vm1, %vm3303_vm5  ;;  %v3324_v59 = vor.u32 1.1754944e-38, %v3323_v12  ;;  %vm3322_vm12 = vcmp.eq.f32.partialorder %v3321_v42, 8.507059e+37 }
 0x2e5   : > { %v3388_v13 = vadd.f32 %v3356_v3, %v2716_v35  ;;  %v3299_v8 = vsub.f32 1.0, %v3298_v0 }
 0x2e7   : > { %3421 = vst.msk [vmem:[%s5145_s23 + $0xe8] sm:$0xff] %vm3391_vm6, %v3388_v13  ;;  %v3300_v60 = vmul.f32 %v4164_v29, %v3299_v8 }
 0x2e8   : > { %v4166_v17 = vpop.eup %4165 }
 0x2e9   : > { %v3301_v31 = vadd.f32 %v4164_v29, %v3300_v60  ;;  %v3313_v5 = vmul.f32 %v4166_v17, %v2846_v30  ;;  %vm3318_vm9 = vweird.f32 %v4166_v17 }
 0x2ea   : > { %vm3319_vm11 = vmor %vm3317_vm10, %vm3318_vm9 }
 0x2eb   : > { %v3305_v44 = vsel %vm3304_vm7, %v4164_v29, %v3301_v31  ;;  %v3314_v39 = vsub.f32 1.0, %v3313_v5 }
 0x2ec   : > { %v3310_v49 = vsel %vm3307_vm8, %v3309_v19, %v3305_v44 }
 0x2ed   : > { %v3357_v57 = vmul.f32 %v3310_v49, %v5681_v7  ;;  %v3315_v27 = vmul.f32 %v4166_v17, %v3314_v39 }
 0x2ef   : > { %v3389_v50 = vadd.f32 %v3357_v57, %v2717_v23  ;;  %v3316_v41 = vadd.f32 %v4166_v17, %v3315_v27 }
 0x2f1   : > { %3422 = vst.msk [vmem:[%s5145_s23 + $0xf0] sm:$0xff] %vm3391_vm6, %v3389_v50  ;;  %v3320_v2 = vsel %vm3319_vm11, %v4166_v17, %v3316_v41 }
 0x2f2   : > { %v3325_v40 = vsel %vm3322_vm12, %v3324_v59, %v3320_v2 }
 0x2f3   : > { %v3358_v52 = vmul.f32 %v3325_v40, %v5691_v51 }
 0x2f5   : > { %v3390_v48 = vadd.f32 %v3358_v52, %v2718_v21 }
 0x2f7   : > { %3423 = vst.msk [vmem:[%s5145_s23 + $0xf8] sm:$0xff] %vm3391_vm6, %v3390_v48 }
 0x2f8 PF: > { %s14_s15 = sadd.s32 1, %s4174_s15  }
 0x2f9   : > { %p11_p4 = scmp.ge.s32.totalorder %s14_s15, 4  }
 0x2fb   :  { %13 = sbr.rel (!%p11_p4) target bundleno = 1 (0x1), region = 71 }

</bundles_post_ra>
